<compile_context>
chip_gen: v6e
topology: v6e:2x2x1
jax: 0.10.0
libtpu: 0.0.40
codegen_flags: <defaults>
</compile_context>

<pallas_src>
import functools

import jax
import jax.numpy as jnp
from jax.experimental import pallas as pl
from jax.experimental.pallas import tpu as pltpu

NB_RX_ANTENNA = 16
NB_TX_ANTENNA = 12
NB_VIRTUAL_ANTENNA = NB_TX_ANTENNA * NB_RX_ANTENNA  # 192
_BN_EPS = 1e-5


# ---------------------------------------------------------------------------
# Fused DetectionHead kernel (input_angle_size=224, use_bn=True, reg_layer=2)
# ---------------------------------------------------------------------------

def _detection_head_kernel(x_ref, w1_ref, aff1_ref, w2_ref, aff2_ref,
                           w3_ref, aff3_ref, w4_ref, aff4_ref, whT_ref, bh_ref,
                           o_ref, act1, act2, act3,
                           *, H, W, ROWS):
    """One batch element per grid step; all intermediates live in flat VMEM scratch.

    x_ref : (1, H+2, W+4) f32          zero-padded single-channel input
    w1_ref: (9, C1) f32                conv1 taps (Cin = 1)
    w*_ref: (9, Cin, Cout) bf16        3x3 taps, dy*3+dx major
    aff*  : (2, Cout) f32              row0 = fused-BN scale, row1 = shift
    whT   : (9, CH, 96) bf16           fused cls/reg head taps, pre-transposed
    bh    : (CH, 1) f32                fused cls/reg head bias
    o_ref : (1, n_chunks, CH, ROWS*Wp) f32   channel-major per-chunk output
    act*  : ((H+3)*Wp, C) bf16         flat activations (flat index = row*Wp + col)
    """
    Wp = W + 2                       # flat row pitch (includes both halo columns)
    M = ROWS * Wp                    # matmul M per chunk
    n_chunks = H // ROWS
    C1 = act1.shape[1]
    C2 = act2.shape[1]
    CH = o_ref.shape[2]

    # Zero only the halo regions the masked stores below never refresh:
    # top padded row + (row 1, col 0), and the bottom padded row + slack row.
    # (done every step -> correct even when the batch grid is split across cores)
    for buf, cc in ((act1, C1), (act2, C2), (act3, C2)):
        buf[0:Wp + 1, :] = jnp.zeros((Wp + 1, cc), buf.dtype)
        buf[(H + 1) * Wp:(H + 3) * Wp, :] = jnp.zeros((2 * Wp, cc), buf.dtype)

    # Mask for the two junk columns (col >= W) produced by the flat-row conv trick.
    col = jax.lax.broadcasted_iota(jnp.int32, (M, 1), 0) % Wp
    junk = col >= W

    # ---- conv1: 1 -> C1.  Cin = 1, so 9 broadcast FMAs on the VPU ---------------
    # TODO(synk): if the VPU ever binds here, im2col to (M, 9) and use one MXU matmul.
    w1 = w1_ref[...]                 # (9, C1) f32, hoisted
    s1 = aff1_ref[0:1, :]
    b1 = aff1_ref[1:2, :]
    for c in range(n_chunks):
        y0 = c * ROWS
        acc = jnp.zeros((M, C1), jnp.float32)
        for t in range(9):
            dy, dx = divmod(t, 3)
            patch = x_ref[0, y0 + dy:y0 + dy + ROWS, dx:dx + Wp]      # (ROWS, Wp)
            acc = acc + patch.reshape(M, 1) * w1[t]                   # (C1,) bcast
        y = acc * s1 + b1
        y = jnp.where(junk, 0.0, y)
        base = (y0 + 1) * Wp + 1
        act1[base:base + M, :] = y.astype(act1.dtype)

    # ---- generic 3x3 conv + folded BN: 9 contiguous shifted slabs -> MXU --------
    def conv_bn(in_buf, w_ref, aff_ref, out_buf):
        cout = out_buf.shape[1]
        scale = aff_ref[0:1, :]
        shift = aff_ref[1:2, :]
        for c in range(n_chunks):
            y0 = c * ROWS
            acc = jnp.zeros((M, cout), jnp.float32)
            for t in range(9):
                dy, dx = divmod(t, 3)
                s = (y0 + dy) * Wp + dx                 # contiguous flat slab
                acc = acc + jnp.dot(in_buf[s:s + M, :], w_ref[t],
                                    preferred_element_type=jnp.float32)
            y = acc * scale + shift
            y = jnp.where(junk, 0.0, y)                 # keep halo columns zero
            base = (y0 + 1) * Wp + 1
            out_buf[base:base + M, :] = y.astype(out_buf.dtype)

    conv_bn(act1, w2_ref, aff2_ref, act2)   # conv2: 144 -> 96
    conv_bn(act2, w3_ref, aff3_ref, act3)   # conv3:  96 -> 96
    conv_bn(act3, w4_ref, aff4_ref, act2)   # conv4:  96 -> 96 (reuse act2)

    # ---- fused cls/reg heads, emitted channel-major (lane dim = spatial) --------
    bh = bh_ref[...]                                     # (CH, 1) f32, hoisted
    for c in range(n_chunks):
        y0 = c * ROWS
        acc = jnp.zeros((CH, M), jnp.float32)
        for t in range(9):
            dy, dx = divmod(t, 3)
            s = (y0 + dy) * Wp + dx
            # (CH, 96) x (M, 96)^T -> (CH, M): NT matmul; result is already
            # channel-major so no in-kernel transpose / relayout is needed.
            acc = acc + jax.lax.dot_general(
                whT_ref[t], act2[s:s + M, :],
                dimension_numbers=(((1,), (1,)), ((), ())),
                preferred_element_type=jnp.float32)
        y = acc + bh
        chan = jax.lax.broadcasted_iota(jnp.int32, (CH, M), 0)
        y = jnp.where(chan == 0, jax.nn.sigmoid(y), y)   # sigmoid on cls channel only
        o_ref[0, c] = y                                  # full, aligned tile store


def detection_head_forward(x_nchw, params, *, target_m=256):
    """x_nchw: (N, 1, H, W) f32 -> (N, 1+reg_layer, H, W), matching DetectionHead.forward."""
    N, cin, H, W = x_nchw.shape
    assert cin == 1, "input_angle_size=224 branch expects a single input channel"

    Wp = W + 2
    # M-tile sized to the MXU: largest divisor of H with ROWS*Wp <= target_m (>= 1).
    rmax = max(1, target_m // Wp)
    ROWS = max(r for r in range(1, H + 1) if H % r == 0 and r <= rmax)
    M = ROWS * Wp
    n_chunks = H // ROWS

    def taps(w):                                    # (3,3,Cin,Cout) -> (9,Cin,Cout)
        return w.reshape(9, w.shape[2], w.shape[3])

    def aff(scale, shift):                          # pack BN affine: (2, Cout) f32
        return jnp.stack([scale, shift]).astype(jnp.float32)

    w1, s1, b1 = params["conv1"]
    w2, s2, b2 = params["conv2"]
    w3, s3, b3 = params["conv3"]
    w4, s4, b4 = params["conv4"]
    wh, bh = params["heads"]
    C1, C2, CH = w1.shape[-1], w2.shape[-1], wh.shape[-1]

    # Zero-pad spatially once in the wrapper (1 top/bottom/left, 3 right) so every tap of
    # every flat-row column is in bounds; the channel dim of 1 is dropped entirely.
    xpad = jnp.pad(x_nchw.reshape(N, H, W).astype(jnp.float32), ((0, 0), (1, 1), (1, 3)))

    w1t = taps(w1).reshape(9, C1).astype(jnp.float32)                   # Cin == 1
    whT = jnp.transpose(taps(wh), (0, 2, 1)).astype(jnp.bfloat16)       # (9, CH, C2)

    kernel = functools.partial(_detection_head_kernel, H=H, W=W, ROWS=ROWS)

    out = pl.pallas_call(
        kernel,
        out_shape=jax.ShapeDtypeStruct((N, n_chunks, CH, M), jnp.float32),
        grid=(N,),
        in_specs=[
            pl.BlockSpec((1, H + 2, W + 4), lambda n: (n, 0, 0)),     # padded input
            pl.BlockSpec((9, C1), lambda n: (0, 0)),                  # w1 (f32, VPU)
            pl.BlockSpec((2, C1), lambda n: (0, 0)),                  # aff1
            pl.BlockSpec((9, C1, C2), lambda n: (0, 0, 0)),           # w2 (bf16)
            pl.BlockSpec((2, C2), lambda n: (0, 0)),                  # aff2
            pl.BlockSpec((9, C2, C2), lambda n: (0, 0, 0)),           # w3
            pl.BlockSpec((2, C2), lambda n: (0, 0)),                  # aff3
            pl.BlockSpec((9, C2, C2), lambda n: (0, 0, 0)),           # w4
            pl.BlockSpec((2, C2), lambda n: (0, 0)),                  # aff4
            pl.BlockSpec((9, CH, C2), lambda n: (0, 0, 0)),           # heads (pre-T)
            pl.BlockSpec((CH, 1), lambda n: (0, 0)),                  # heads bias
        ],
        out_specs=pl.BlockSpec((1, n_chunks, CH, M), lambda n: (n, 0, 0, 0)),
        scratch_shapes=[
            pltpu.VMEM(((H + 3) * Wp, C1), jnp.bfloat16),    # act after conv1
            pltpu.VMEM(((H + 3) * Wp, C2), jnp.bfloat16),    # act after conv2 / conv4
            pltpu.VMEM(((H + 3) * Wp, C2), jnp.bfloat16),    # act after conv3
        ],
        compiler_params=pltpu.CompilerParams(
            dimension_semantics=("parallel",),
            vmem_limit_bytes=32 * 1024 * 1024),
    )(xpad,
      w1t, aff(s1, b1),
      taps(w2).astype(jnp.bfloat16), aff(s2, b2),
      taps(w3).astype(jnp.bfloat16), aff(s3, b3),
      taps(w4).astype(jnp.bfloat16), aff(s4, b4),
      whT, bh.reshape(CH, 1).astype(jnp.float32))

    # (N, chunk, CH, ROWS*Wp) -> (N, CH, H, W): KB-sized chunk permute + drop junk cols.
    out = jnp.transpose(out, (0, 2, 1, 3)).reshape(N, CH, H, Wp)[:, :, :, :W]
    return out


# ---------------------------------------------------------------------------
# MIMO_PreEncoder kernel (use_bn=False: circular pad, dilated (1,12) conv, bias, crop)
# ---------------------------------------------------------------------------

def _mimo_kernel(x_ref, w_ref, b_ref, o_ref, *, OFF, DIL):
    """One batch element per grid step.

    x_ref: (1, H, Cin, Wpad) f32   circularly padded rows, antennas on the lane axis
    w_ref: (K, Cout, Cin)    f32   dilated taps (K=12), == torch weight[co, ci, 0, k]
    b_ref: (Cout, 1)         f32
    o_ref: (1, H, Cout, W)   f32
    """
    k_taps = w_ref.shape[0]
    _, H, cout, W = o_ref.shape
    bias = b_ref[...]                                    # (Cout, 1), hoisted
    wk = [w_ref[k] for k in range(k_taps)]               # hoisted: K x (Cout, Cin)
    for h in range(H):
        acc = jnp.zeros((cout, W), jnp.float32)
        for k in range(k_taps):
            s = OFF + DIL * k                            # static lane offset
            acc = acc + jnp.dot(wk[k], x_ref[0, h, :, s:s + W],
                                preferred_element_type=jnp.float32)
        o_ref[0, h] = acc + bias                         # full, aligned tile store


def mimo_pre_encoder_forward(x_nchw, params):
    """MIMO_PreEncoder.forward (use_bn=False).  x_nchw: (N, Cin, H, W) -> (N, Cout, H, W)."""
    w, b = params                          # w: (K, Cout, Cin) == torch weight[co, ci, 0, k]
    k_taps, cout, cin_w = w.shape
    dil = NB_RX_ANTENNA                    # dilation 16 along the antenna axis
    pad = NB_VIRTUAL_ANTENNA // 2          # 96
    N, cin, H, W = x_nchw.shape
    assert cin == cin_w

    # circular padding + center crop exactly as the PyTorch forward does
    xp = jnp.concatenate([x_nchw[..., -pad:], x_nchw, x_nchw[..., :pad]], axis=-1)
    wp = xp.shape[-1]
    wc = wp - dil * (k_taps - 1)           # conv output width before the crop
    off = wc // 2 - W // 2                 # padded column feeding output column 0
    assert off >= 0 and off + dil * (k_taps - 1) + W <= wp, "width too small for (1,12) kernel"

    # H <-> C swap keeps the minor (antenna) axis in place: a cheap strided copy that
    # makes every in-kernel tap read a clean lane-dense (Cin, W) window.
    xhcw = jnp.transpose(xp, (0, 2, 1, 3)).astype(jnp.float32)          # (N, H, Cin, wp)

    out = pl.pallas_call(
        functools.partial(_mimo_kernel, OFF=off, DIL=dil),
        out_shape=jax.ShapeDtypeStruct((N, H, cout, W), jnp.float32),
        grid=(N,),
        in_specs=[
            pl.BlockSpec((1, H, cin, wp), lambda n: (n, 0, 0, 0)),
            pl.BlockSpec((k_taps, cout, cin), lambda n: (0, 0, 0)),
            pl.BlockSpec((cout, 1), lambda n: (0, 0)),
        ],
        out_specs=pl.BlockSpec((1, H, cout, W), lambda n: (n, 0, 0, 0)),
        compiler_params=pltpu.CompilerParams(dimension_semantics=("parallel",)),
    )(xhcw, w.astype(jnp.float32), b.reshape(cout, 1).astype(jnp.float32))

    return jnp.transpose(out, (0, 2, 1, 3))              # (N, Cout, H, W) — tiny permute


# ---------------------------------------------------------------------------
# F.interpolate(x, (128, 224)) default 'nearest' mode — pure gather, done in jnp.
# ---------------------------------------------------------------------------

def interpolate_nearest(x_nchw, out_h, out_w):
    N, C, H, W = x_nchw.shape
    rows = (jnp.arange(out_h) * H) // out_h
    cols = (jnp.arange(out_w) * W) // out_w
    return x_nchw[:, :, rows[:, None], cols[None, :]]


# ---------------------------------------------------------------------------
# Deterministic parameter construction (BN folded to per-channel affine).
# ---------------------------------------------------------------------------

def init_detection_head_params(key, reg_layer=2):
    """DetectionHead(input_angle_size=224): conv1 1->144, conv2 144->96, conv3/4 96->96."""
    chans = [(1, 144), (144, 96), (96, 96), (96, 96)]
    params = {}
    for i, (cin, cout) in enumerate(chans):
        key, kw, kg, kb, km, kv = jax.random.split(key, 6)
        w = jax.random.normal(kw, (3, 3, cin, cout), jnp.float32) * (0.1 / jnp.sqrt(cin * 9.0))
        gamma = 1.0 + 0.1 * jax.random.normal(kg, (cout,), jnp.float32)
        beta = 0.1 * jax.random.normal(kb, (cout,), jnp.float32)
        mean = 0.1 * jax.random.normal(km, (cout,), jnp.float32)
        var = 0.5 + jax.random.uniform(kv, (cout,), jnp.float32)
        scale = gamma / jnp.sqrt(var + _BN_EPS)
        shift = beta - mean * scale
        params[f"conv{i + 1}"] = (w, scale, shift)

    key, kc, kcb, kr, krb = jax.random.split(key, 5)
    w_cls = jax.random.normal(kc, (3, 3, 96, 1), jnp.float32) * (0.1 / jnp.sqrt(96 * 9.0))
    b_cls = 0.1 * jax.random.normal(kcb, (1,), jnp.float32)
    w_reg = jax.random.normal(kr, (3, 3, 96, reg_layer), jnp.float32) * (0.1 / jnp.sqrt(96 * 9.0))
    b_reg = 0.1 * jax.random.normal(krb, (reg_layer,), jnp.float32)
    params["heads"] = (jnp.concatenate([w_cls, w_reg], axis=-1),    # (3,3,96,1+reg)
                       jnp.concatenate([b_cls, b_reg], axis=0))     # (1+reg,)
    return params


def init_mimo_params(key, in_layer=32, out_layer=3, k_taps=NB_TX_ANTENNA):
    kw, kb = jax.random.split(key)
    w = jax.random.normal(kw, (k_taps, out_layer, in_layer), jnp.float32) * (
        0.1 / jnp.sqrt(in_layer * k_taps))
    b = 0.1 * jax.random.normal(kb, (out_layer,), jnp.float32)
    return w, b


if __name__ == "__main__":
    key = jax.random.PRNGKey(0)
    k_mimo_x, k_mimo_p, k_det_x, k_det_p = jax.random.split(key, 4)

    # MIMO_PreEncoder: radar cube (32 channels, width = 192 virtual antennas).
    x_mimo = jax.random.normal(k_mimo_x, (2, 32, 8, NB_VIRTUAL_ANTENNA), jnp.float32)
    mimo_out = mimo_pre_encoder_forward(x_mimo, init_mimo_params(k_mimo_p))
    mimo_out = jax.block_until_ready(mimo_out)
    assert mimo_out.shape == (2, 3, 8, NB_VIRTUAL_ANTENNA), mimo_out.shape

    # TODO(synk): deeplabv3plus_resnet50 backbone (external pretrained model) is not translated;
    # the fused DetectionHead kernel below runs on a synthetic 1-channel stand-in for its output.
    x_det = jax.random.normal(k_det_x, (2, 1, 16, 16), jnp.float32)
    det_params = init_detection_head_params(k_det_p, reg_layer=2)
    det_out = detection_head_forward(x_det, det_params)            # (2, 3, 16, 16)
    detection = interpolate_nearest(det_out, 128, 224)             # out['Detection']
    detection = jax.block_until_ready(detection)
    assert det_out.shape == (2, 3, 16, 16), det_out.shape
    assert detection.shape == (2, 3, 128, 224), detection.shape

    print("KERNEL_OK")
</pallas_src>

<mosaic_0001>
module attributes {stable_mosaic.version = 11 : i64} {
  func.func @_mimo_kernel(%arg0: i32, %arg1: memref<1x8x32x384xf32, #tpu.memory_space<vmem>>, %arg2: memref<12x3x32xf32, #tpu.memory_space<vmem>>, %arg3: memref<3x1xf32, #tpu.memory_space<vmem>>, %arg4: memref<1x8x3x192xf32, #tpu.memory_space<vmem>>) attributes {dimension_semantics = [#tpu.dimension_semantics<parallel>], iteration_bounds = array<i64: 2>, scalar_prefetch = 0 : i64, scratch_operands = 0 : i64, tpu.core_type = #tpu.core_type<tc>, window_params = [{transform_indices = @transform_0, window_bounds = array<i64: 1, 8, 32, 384>}, {pipeline_mode = #tpu.pipeline_mode<synchronous>, transform_indices = @transform_1, window_bounds = array<i64: 12, 3, 32>}, {pipeline_mode = #tpu.pipeline_mode<synchronous>, transform_indices = @transform_2, window_bounds = array<i64: 3, 1>}, {transform_indices = @transform_3, window_bounds = array<i64: 1, 8, 3, 192>}]} {
    %c0 = arith.constant 0 : index
    %c0_0 = arith.constant 0 : index
    %0 = vector.load %arg3[%c0, %c0_0] : memref<3x1xf32, #tpu.memory_space<vmem>>, vector<3x1xf32>
    %c0_1 = arith.constant 0 : index
    %c0_2 = arith.constant 0 : index
    %c0_3 = arith.constant 0 : index
    %1 = vector.load %arg2[%c0_1, %c0_2, %c0_3] : memref<12x3x32xf32, #tpu.memory_space<vmem>>, vector<1x3x32xf32>
    %2 = vector.shape_cast %1 : vector<1x3x32xf32> to vector<3x32xf32>
    %c1 = arith.constant 1 : index
    %c0_4 = arith.constant 0 : index
    %c0_5 = arith.constant 0 : index
    %3 = vector.load %arg2[%c1, %c0_4, %c0_5] : memref<12x3x32xf32, #tpu.memory_space<vmem>>, vector<1x3x32xf32>
    %4 = vector.shape_cast %3 : vector<1x3x32xf32> to vector<3x32xf32>
    %c2 = arith.constant 2 : index
    %c0_6 = arith.constant 0 : index
    %c0_7 = arith.constant 0 : index
    %5 = vector.load %arg2[%c2, %c0_6, %c0_7] : memref<12x3x32xf32, #tpu.memory_space<vmem>>, vector<1x3x32xf32>
    %6 = vector.shape_cast %5 : vector<1x3x32xf32> to vector<3x32xf32>
    %c3 = arith.constant 3 : index
    %c0_8 = arith.constant 0 : index
    %c0_9 = arith.constant 0 : index
    %7 = vector.load %arg2[%c3, %c0_8, %c0_9] : memref<12x3x32xf32, #tpu.memory_space<vmem>>, vector<1x3x32xf32>
    %8 = vector.shape_cast %7 : vector<1x3x32xf32> to vector<3x32xf32>
    %c4 = arith.constant 4 : index
    %c0_10 = arith.constant 0 : index
    %c0_11 = arith.constant 0 : index
    %9 = vector.load %arg2[%c4, %c0_10, %c0_11] : memref<12x3x32xf32, #tpu.memory_space<vmem>>, vector<1x3x32xf32>
    %10 = vector.shape_cast %9 : vector<1x3x32xf32> to vector<3x32xf32>
    %c5 = arith.constant 5 : index
    %c0_12 = arith.constant 0 : index
    %c0_13 = arith.constant 0 : index
    %11 = vector.load %arg2[%c5, %c0_12, %c0_13] : memref<12x3x32xf32, #tpu.memory_space<vmem>>, vector<1x3x32xf32>
    %12 = vector.shape_cast %11 : vector<1x3x32xf32> to vector<3x32xf32>
    %c6 = arith.constant 6 : index
    %c0_14 = arith.constant 0 : index
    %c0_15 = arith.constant 0 : index
    %13 = vector.load %arg2[%c6, %c0_14, %c0_15] : memref<12x3x32xf32, #tpu.memory_space<vmem>>, vector<1x3x32xf32>
    %14 = vector.shape_cast %13 : vector<1x3x32xf32> to vector<3x32xf32>
    %c7 = arith.constant 7 : index
    %c0_16 = arith.constant 0 : index
    %c0_17 = arith.constant 0 : index
    %15 = vector.load %arg2[%c7, %c0_16, %c0_17] : memref<12x3x32xf32, #tpu.memory_space<vmem>>, vector<1x3x32xf32>
    %16 = vector.shape_cast %15 : vector<1x3x32xf32> to vector<3x32xf32>
    %c8 = arith.constant 8 : index
    %c0_18 = arith.constant 0 : index
    %c0_19 = arith.constant 0 : index
    %17 = vector.load %arg2[%c8, %c0_18, %c0_19] : memref<12x3x32xf32, #tpu.memory_space<vmem>>, vector<1x3x32xf32>
    %18 = vector.shape_cast %17 : vector<1x3x32xf32> to vector<3x32xf32>
    %c9 = arith.constant 9 : index
    %c0_20 = arith.constant 0 : index
    %c0_21 = arith.constant 0 : index
    %19 = vector.load %arg2[%c9, %c0_20, %c0_21] : memref<12x3x32xf32, #tpu.memory_space<vmem>>, vector<1x3x32xf32>
    %20 = vector.shape_cast %19 : vector<1x3x32xf32> to vector<3x32xf32>
    %c10 = arith.constant 10 : index
    %c0_22 = arith.constant 0 : index
    %c0_23 = arith.constant 0 : index
    %21 = vector.load %arg2[%c10, %c0_22, %c0_23] : memref<12x3x32xf32, #tpu.memory_space<vmem>>, vector<1x3x32xf32>
    %22 = vector.shape_cast %21 : vector<1x3x32xf32> to vector<3x32xf32>
    %c11 = arith.constant 11 : index
    %c0_24 = arith.constant 0 : index
    %c0_25 = arith.constant 0 : index
    %23 = vector.load %arg2[%c11, %c0_24, %c0_25] : memref<12x3x32xf32, #tpu.memory_space<vmem>>, vector<1x3x32xf32>
    %24 = vector.shape_cast %23 : vector<1x3x32xf32> to vector<3x32xf32>
    %cst = arith.constant 0.000000e+00 : f32
    %25 = vector.broadcast %cst : f32 to vector<3x192xf32>
    %c0_26 = arith.constant 0 : index
    %c0_27 = arith.constant 0 : index
    %c0_28 = arith.constant 0 : index
    %c8_29 = arith.constant 8 : index
    %26 = vector.load %arg1[%c0_26, %c0_27, %c0_28, %c8_29] : memref<1x8x32x384xf32, #tpu.memory_space<vmem>>, vector<1x1x32x192xf32>
    %27 = vector.shape_cast %26 : vector<1x1x32x192xf32> to vector<32x192xf32>
    %cst_30 = arith.constant dense<0.000000e+00> : vector<3x192xf32>
    %28 = tpu.matmul %2, %27, %cst_30 {dimension_numbers = #tpu.dot_dimension_numbers<[1], [0], [0], [1], [0, 0, 1, 1], [], []>} : vector<3x32xf32>, vector<32x192xf32>, vector<3x192xf32> -> vector<3x192xf32>
    %29 = arith.addf %25, %28 : vector<3x192xf32>
    %c0_31 = arith.constant 0 : index
    %c0_32 = arith.constant 0 : index
    %c0_33 = arith.constant 0 : index
    %c24 = arith.constant 24 : index
    %30 = vector.load %arg1[%c0_31, %c0_32, %c0_33, %c24] : memref<1x8x32x384xf32, #tpu.memory_space<vmem>>, vector<1x1x32x192xf32>
    %31 = vector.shape_cast %30 : vector<1x1x32x192xf32> to vector<32x192xf32>
    %cst_34 = arith.constant dense<0.000000e+00> : vector<3x192xf32>
    %32 = tpu.matmul %4, %31, %cst_34 {dimension_numbers = #tpu.dot_dimension_numbers<[1], [0], [0], [1], [0, 0, 1, 1], [], []>} : vector<3x32xf32>, vector<32x192xf32>, vector<3x192xf32> -> vector<3x192xf32>
    %33 = arith.addf %29, %32 : vector<3x192xf32>
    %c0_35 = arith.constant 0 : index
    %c0_36 = arith.constant 0 : index
    %c0_37 = arith.constant 0 : index
    %c40 = arith.constant 40 : index
    %34 = vector.load %arg1[%c0_35, %c0_36, %c0_37, %c40] : memref<1x8x32x384xf32, #tpu.memory_space<vmem>>, vector<1x1x32x192xf32>
    %35 = vector.shape_cast %34 : vector<1x1x32x192xf32> to vector<32x192xf32>
    %cst_38 = arith.constant dense<0.000000e+00> : vector<3x192xf32>
    %36 = tpu.matmul %6, %35, %cst_38 {dimension_numbers = #tpu.dot_dimension_numbers<[1], [0], [0], [1], [0, 0, 1, 1], [], []>} : vector<3x32xf32>, vector<32x192xf32>, vector<3x192xf32> -> vector<3x192xf32>
    %37 = arith.addf %33, %36 : vector<3x192xf32>
    %c0_39 = arith.constant 0 : index
    %c0_40 = arith.constant 0 : index
    %c0_41 = arith.constant 0 : index
    %c56 = arith.constant 56 : index
    %38 = vector.load %arg1[%c0_39, %c0_40, %c0_41, %c56] : memref<1x8x32x384xf32, #tpu.memory_space<vmem>>, vector<1x1x32x192xf32>
    %39 = vector.shape_cast %38 : vector<1x1x32x192xf32> to vector<32x192xf32>
    %cst_42 = arith.constant dense<0.000000e+00> : vector<3x192xf32>
    %40 = tpu.matmul %8, %39, %cst_42 {dimension_numbers = #tpu.dot_dimension_numbers<[1], [0], [0], [1], [0, 0, 1, 1], [], []>} : vector<3x32xf32>, vector<32x192xf32>, vector<3x192xf32> -> vector<3x192xf32>
    %41 = arith.addf %37, %40 : vector<3x192xf32>
    %c0_43 = arith.constant 0 : index
    %c0_44 = arith.constant 0 : index
    %c0_45 = arith.constant 0 : index
    %c72 = arith.constant 72 : index
    %42 = vector.load %arg1[%c0_43, %c0_44, %c0_45, %c72] : memref<1x8x32x384xf32, #tpu.memory_space<vmem>>, vector<1x1x32x192xf32>
    %43 = vector.shape_cast %42 : vector<1x1x32x192xf32> to vector<32x192xf32>
    %cst_46 = arith.constant dense<0.000000e+00> : vector<3x192xf32>
    %44 = tpu.matmul %10, %43, %cst_46 {dimension_numbers = #tpu.dot_dimension_numbers<[1], [0], [0], [1], [0, 0, 1, 1], [], []>} : vector<3x32xf32>, vector<32x192xf32>, vector<3x192xf32> -> vector<3x192xf32>
    %45 = arith.addf %41, %44 : vector<3x192xf32>
    %c0_47 = arith.constant 0 : index
    %c0_48 = arith.constant 0 : index
    %c0_49 = arith.constant 0 : index
    %c88 = arith.constant 88 : index
    %46 = vector.load %arg1[%c0_47, %c0_48, %c0_49, %c88] : memref<1x8x32x384xf32, #tpu.memory_space<vmem>>, vector<1x1x32x192xf32>
    %47 = vector.shape_cast %46 : vector<1x1x32x192xf32> to vector<32x192xf32>
    %cst_50 = arith.constant dense<0.000000e+00> : vector<3x192xf32>
    %48 = tpu.matmul %12, %47, %cst_50 {dimension_numbers = #tpu.dot_dimension_numbers<[1], [0], [0], [1], [0, 0, 1, 1], [], []>} : vector<3x32xf32>, vector<32x192xf32>, vector<3x192xf32> -> vector<3x192xf32>
    %49 = arith.addf %45, %48 : vector<3x192xf32>
    %c0_51 = arith.constant 0 : index
    %c0_52 = arith.constant 0 : index
    %c0_53 = arith.constant 0 : index
    %c104 = arith.constant 104 : index
    %50 = vector.load %arg1[%c0_51, %c0_52, %c0_53, %c104] : memref<1x8x32x384xf32, #tpu.memory_space<vmem>>, vector<1x1x32x192xf32>
    %51 = vector.shape_cast %50 : vector<1x1x32x192xf32> to vector<32x192xf32>
    %cst_54 = arith.constant dense<0.000000e+00> : vector<3x192xf32>
    %52 = tpu.matmul %14, %51, %cst_54 {dimension_numbers = #tpu.dot_dimension_numbers<[1], [0], [0], [1], [0, 0, 1, 1], [], []>} : vector<3x32xf32>, vector<32x192xf32>, vector<3x192xf32> -> vector<3x192xf32>
    %53 = arith.addf %49, %52 : vector<3x192xf32>
    %c0_55 = arith.constant 0 : index
    %c0_56 = arith.constant 0 : index
    %c0_57 = arith.constant 0 : index
    %c120 = arith.constant 120 : index
    %54 = vector.load %arg1[%c0_55, %c0_56, %c0_57, %c120] : memref<1x8x32x384xf32, #tpu.memory_space<vmem>>, vector<1x1x32x192xf32>
    %55 = vector.shape_cast %54 : vector<1x1x32x192xf32> to vector<32x192xf32>
    %cst_58 = arith.constant dense<0.000000e+00> : vector<3x192xf32>
    %56 = tpu.matmul %16, %55, %cst_58 {dimension_numbers = #tpu.dot_dimension_numbers<[1], [0], [0], [1], [0, 0, 1, 1], [], []>} : vector<3x32xf32>, vector<32x192xf32>, vector<3x192xf32> -> vector<3x192xf32>
    %57 = arith.addf %53, %56 : vector<3x192xf32>
    %c0_59 = arith.constant 0 : index
    %c0_60 = arith.constant 0 : index
    %c0_61 = arith.constant 0 : index
    %c136 = arith.constant 136 : index
    %58 = vector.load %arg1[%c0_59, %c0_60, %c0_61, %c136] : memref<1x8x32x384xf32, #tpu.memory_space<vmem>>, vector<1x1x32x192xf32>
    %59 = vector.shape_cast %58 : vector<1x1x32x192xf32> to vector<32x192xf32>
    %cst_62 = arith.constant dense<0.000000e+00> : vector<3x192xf32>
    %60 = tpu.matmul %18, %59, %cst_62 {dimension_numbers = #tpu.dot_dimension_numbers<[1], [0], [0], [1], [0, 0, 1, 1], [], []>} : vector<3x32xf32>, vector<32x192xf32>, vector<3x192xf32> -> vector<3x192xf32>
    %61 = arith.addf %57, %60 : vector<3x192xf32>
    %c0_63 = arith.constant 0 : index
    %c0_64 = arith.constant 0 : index
    %c0_65 = arith.constant 0 : index
    %c152 = arith.constant 152 : index
    %62 = vector.load %arg1[%c0_63, %c0_64, %c0_65, %c152] : memref<1x8x32x384xf32, #tpu.memory_space<vmem>>, vector<1x1x32x192xf32>
    %63 = vector.shape_cast %62 : vector<1x1x32x192xf32> to vector<32x192xf32>
    %cst_66 = arith.constant dense<0.000000e+00> : vector<3x192xf32>
    %64 = tpu.matmul %20, %63, %cst_66 {dimension_numbers = #tpu.dot_dimension_numbers<[1], [0], [0], [1], [0, 0, 1, 1], [], []>} : vector<3x32xf32>, vector<32x192xf32>, vector<3x192xf32> -> vector<3x192xf32>
    %65 = arith.addf %61, %64 : vector<3x192xf32>
    %c0_67 = arith.constant 0 : index
    %c0_68 = arith.constant 0 : index
    %c0_69 = arith.constant 0 : index
    %c168 = arith.constant 168 : index
    %66 = vector.load %arg1[%c0_67, %c0_68, %c0_69, %c168] : memref<1x8x32x384xf32, #tpu.memory_space<vmem>>, vector<1x1x32x192xf32>
    %67 = vector.shape_cast %66 : vector<1x1x32x192xf32> to vector<32x192xf32>
    %cst_70 = arith.constant dense<0.000000e+00> : vector<3x192xf32>
    %68 = tpu.matmul %22, %67, %cst_70 {dimension_numbers = #tpu.dot_dimension_numbers<[1], [0], [0], [1], [0, 0, 1, 1], [], []>} : vector<3x32xf32>, vector<32x192xf32>, vector<3x192xf32> -> vector<3x192xf32>
    %69 = arith.addf %65, %68 : vector<3x192xf32>
    %c0_71 = arith.constant 0 : index
    %c0_72 = arith.constant 0 : index
    %c0_73 = arith.constant 0 : index
    %c184 = arith.constant 184 : index
    %70 = vector.load %arg1[%c0_71, %c0_72, %c0_73, %c184] : memref<1x8x32x384xf32, #tpu.memory_space<vmem>>, vector<1x1x32x192xf32>
    %71 = vector.shape_cast %70 : vector<1x1x32x192xf32> to vector<32x192xf32>
    %cst_74 = arith.constant dense<0.000000e+00> : vector<3x192xf32>
    %72 = tpu.matmul %24, %71, %cst_74 {dimension_numbers = #tpu.dot_dimension_numbers<[1], [0], [0], [1], [0, 0, 1, 1], [], []>} : vector<3x32xf32>, vector<32x192xf32>, vector<3x192xf32> -> vector<3x192xf32>
    %73 = arith.addf %69, %72 : vector<3x192xf32>
    %74 = vector.broadcast %0 : vector<3x1xf32> to vector<3x192xf32>
    %75 = arith.addf %73, %74 : vector<3x192xf32>
    %c0_75 = arith.constant 0 : index
    %c0_76 = arith.constant 0 : index
    %c0_77 = arith.constant 0 : index
    %c0_78 = arith.constant 0 : index
    %76 = vector.load %arg4[%c0_75, %c0_76, %c0_77, %c0_78] : memref<1x8x3x192xf32, #tpu.memory_space<vmem>>, vector<1x1x3x192xf32>
    %77 = vector.shape_cast %76 : vector<1x1x3x192xf32> to vector<3x192xf32>
    %78 = vector.shape_cast %75 : vector<3x192xf32> to vector<1x1x3x192xf32>
    tpu.vector_store %arg4[%c0_75, %c0_76, %c0_77, %c0_78], %78 {strides = array<i32>} : memref<1x8x3x192xf32, #tpu.memory_space<vmem>>, vector<1x1x3x192xf32>,
    %cst_79 = arith.constant 0.000000e+00 : f32
    %79 = vector.broadcast %cst_79 : f32 to vector<3x192xf32>
    %c0_80 = arith.constant 0 : index
    %c1_81 = arith.constant 1 : index
    %c0_82 = arith.constant 0 : index
    %c8_83 = arith.constant 8 : index
    %80 = vector.load %arg1[%c0_80, %c1_81, %c0_82, %c8_83] : memref<1x8x32x384xf32, #tpu.memory_space<vmem>>, vector<1x1x32x192xf32>
    %81 = vector.shape_cast %80 : vector<1x1x32x192xf32> to vector<32x192xf32>
    %cst_84 = arith.constant dense<0.000000e+00> : vector<3x192xf32>
    %82 = tpu.matmul %2, %81, %cst_84 {dimension_numbers = #tpu.dot_dimension_numbers<[1], [0], [0], [1], [0, 0, 1, 1], [], []>} : vector<3x32xf32>, vector<32x192xf32>, vector<3x192xf32> -> vector<3x192xf32>
    %83 = arith.addf %79, %82 : vector<3x192xf32>
    %c0_85 = arith.constant 0 : index
    %c1_86 = arith.constant 1 : index
    %c0_87 = arith.constant 0 : index
    %c24_88 = arith.constant 24 : index
    %84 = vector.load %arg1[%c0_85, %c1_86, %c0_87, %c24_88] : memref<1x8x32x384xf32, #tpu.memory_space<vmem>>, vector<1x1x32x192xf32>
    %85 = vector.shape_cast %84 : vector<1x1x32x192xf32> to vector<32x192xf32>
    %cst_89 = arith.constant dense<0.000000e+00> : vector<3x192xf32>
    %86 = tpu.matmul %4, %85, %cst_89 {dimension_numbers = #tpu.dot_dimension_numbers<[1], [0], [0], [1], [0, 0, 1, 1], [], []>} : vector<3x32xf32>, vector<32x192xf32>, vector<3x192xf32> -> vector<3x192xf32>
    %87 = arith.addf %83, %86 : vector<3x192xf32>
    %c0_90 = arith.constant 0 : index
    %c1_91 = arith.constant 1 : index
    %c0_92 = arith.constant 0 : index
    %c40_93 = arith.constant 40 : index
    %88 = vector.load %arg1[%c0_90, %c1_91, %c0_92, %c40_93] : memref<1x8x32x384xf32, #tpu.memory_space<vmem>>, vector<1x1x32x192xf32>
    %89 = vector.shape_cast %88 : vector<1x1x32x192xf32> to vector<32x192xf32>
    %cst_94 = arith.constant dense<0.000000e+00> : vector<3x192xf32>
    %90 = tpu.matmul %6, %89, %cst_94 {dimension_numbers = #tpu.dot_dimension_numbers<[1], [0], [0], [1], [0, 0, 1, 1], [], []>} : vector<3x32xf32>, vector<32x192xf32>, vector<3x192xf32> -> vector<3x192xf32>
    %91 = arith.addf %87, %90 : vector<3x192xf32>
    %c0_95 = arith.constant 0 : index
    %c1_96 = arith.constant 1 : index
    %c0_97 = arith.constant 0 : index
    %c56_98 = arith.constant 56 : index
    %92 = vector.load %arg1[%c0_95, %c1_96, %c0_97, %c56_98] : memref<1x8x32x384xf32, #tpu.memory_space<vmem>>, vector<1x1x32x192xf32>
    %93 = vector.shape_cast %92 : vector<1x1x32x192xf32> to vector<32x192xf32>
    %cst_99 = arith.constant dense<0.000000e+00> : vector<3x192xf32>
    %94 = tpu.matmul %8, %93, %cst_99 {dimension_numbers = #tpu.dot_dimension_numbers<[1], [0], [0], [1], [0, 0, 1, 1], [], []>} : vector<3x32xf32>, vector<32x192xf32>, vector<3x192xf32> -> vector<3x192xf32>
    %95 = arith.addf %91, %94 : vector<3x192xf32>
    %c0_100 = arith.constant 0 : index
    %c1_101 = arith.constant 1 : index
    %c0_102 = arith.constant 0 : index
    %c72_103 = arith.constant 72 : index
    %96 = vector.load %arg1[%c0_100, %c1_101, %c0_102, %c72_103] : memref<1x8x32x384xf32, #tpu.memory_space<vmem>>, vector<1x1x32x192xf32>
    %97 = vector.shape_cast %96 : vector<1x1x32x192xf32> to vector<32x192xf32>
    %cst_104 = arith.constant dense<0.000000e+00> : vector<3x192xf32>
    %98 = tpu.matmul %10, %97, %cst_104 {dimension_numbers = #tpu.dot_dimension_numbers<[1], [0], [0], [1], [0, 0, 1, 1], [], []>} : vector<3x32xf32>, vector<32x192xf32>, vector<3x192xf32> -> vector<3x192xf32>
    %99 = arith.addf %95, %98 : vector<3x192xf32>
    %c0_105 = arith.constant 0 : index
    %c1_106 = arith.constant 1 : index
    %c0_107 = arith.constant 0 : index
    %c88_108 = arith.constant 88 : index
    %100 = vector.load %arg1[%c0_105, %c1_106, %c0_107, %c88_108] : memref<1x8x32x384xf32, #tpu.memory_space<vmem>>, vector<1x1x32x192xf32>
    %101 = vector.shape_cast %100 : vector<1x1x32x192xf32> to vector<32x192xf32>
    %cst_109 = arith.constant dense<0.000000e+00> : vector<3x192xf32>
    %102 = tpu.matmul %12, %101, %cst_109 {dimension_numbers = #tpu.dot_dimension_numbers<[1], [0], [0], [1], [0, 0, 1, 1], [], []>} : vector<3x32xf32>, vector<32x192xf32>, vector<3x192xf32> -> vector<3x192xf32>
    %103 = arith.addf %99, %102 : vector<3x192xf32>
    %c0_110 = arith.constant 0 : index
    %c1_111 = arith.constant 1 : index
    %c0_112 = arith.constant 0 : index
    %c104_113 = arith.constant 104 : index
    %104 = vector.load %arg1[%c0_110, %c1_111, %c0_112, %c104_113] : memref<1x8x32x384xf32, #tpu.memory_space<vmem>>, vector<1x1x32x192xf32>
    %105 = vector.shape_cast %104 : vector<1x1x32x192xf32> to vector<32x192xf32>
    %cst_114 = arith.constant dense<0.000000e+00> : vector<3x192xf32>
    %106 = tpu.matmul %14, %105, %cst_114 {dimension_numbers = #tpu.dot_dimension_numbers<[1], [0], [0], [1], [0, 0, 1, 1], [], []>} : vector<3x32xf32>, vector<32x192xf32>, vector<3x192xf32> -> vector<3x192xf32>
    %107 = arith.addf %103, %106 : vector<3x192xf32>
    %c0_115 = arith.constant 0 : index
    %c1_116 = arith.constant 1 : index
    %c0_117 = arith.constant 0 : index
    %c120_118 = arith.constant 120 : index
    %108 = vector.load %arg1[%c0_115, %c1_116, %c0_117, %c120_118] : memref<1x8x32x384xf32, #tpu.memory_space<vmem>>, vector<1x1x32x192xf32>
    %109 = vector.shape_cast %108 : vector<1x1x32x192xf32> to vector<32x192xf32>
    %cst_119 = arith.constant dense<0.000000e+00> : vector<3x192xf32>
    %110 = tpu.matmul %16, %109, %cst_119 {dimension_numbers = #tpu.dot_dimension_numbers<[1], [0], [0], [1], [0, 0, 1, 1], [], []>} : vector<3x32xf32>, vector<32x192xf32>, vector<3x192xf32> -> vector<3x192xf32>
    %111 = arith.addf %107, %110 : vector<3x192xf32>
    %c0_120 = arith.constant 0 : index
    %c1_121 = arith.constant 1 : index
    %c0_122 = arith.constant 0 : index
    %c136_123 = arith.constant 136 : index
    %112 = vector.load %arg1[%c0_120, %c1_121, %c0_122, %c136_123] : memref<1x8x32x384xf32, #tpu.memory_space<vmem>>, vector<1x1x32x192xf32>
    %113 = vector.shape_cast %112 : vector<1x1x32x192xf32> to vector<32x192xf32>
    %cst_124 = arith.constant dense<0.000000e+00> : vector<3x192xf32>
    %114 = tpu.matmul %18, %113, %cst_124 {dimension_numbers = #tpu.dot_dimension_numbers<[1], [0], [0], [1], [0, 0, 1, 1], [], []>} : vector<3x32xf32>, vector<32x192xf32>, vector<3x192xf32> -> vector<3x192xf32>
    %115 = arith.addf %111, %114 : vector<3x192xf32>
    %c0_125 = arith.constant 0 : index
    %c1_126 = arith.constant 1 : index
    %c0_127 = arith.constant 0 : index
    %c152_128 = arith.constant 152 : index
    %116 = vector.load %arg1[%c0_125, %c1_126, %c0_127, %c152_128] : memref<1x8x32x384xf32, #tpu.memory_space<vmem>>, vector<1x1x32x192xf32>
    %117 = vector.shape_cast %116 : vector<1x1x32x192xf32> to vector<32x192xf32>
    %cst_129 = arith.constant dense<0.000000e+00> : vector<3x192xf32>
    %118 = tpu.matmul %20, %117, %cst_129 {dimension_numbers = #tpu.dot_dimension_numbers<[1], [0], [0], [1], [0, 0, 1, 1], [], []>} : vector<3x32xf32>, vector<32x192xf32>, vector<3x192xf32> -> vector<3x192xf32>
    %119 = arith.addf %115, %118 : vector<3x192xf32>
    %c0_130 = arith.constant 0 : index
    %c1_131 = arith.constant 1 : index
    %c0_132 = arith.constant 0 : index
    %c168_133 = arith.constant 168 : index
    %120 = vector.load %arg1[%c0_130, %c1_131, %c0_132, %c168_133] : memref<1x8x32x384xf32, #tpu.memory_space<vmem>>, vector<1x1x32x192xf32>
    %121 = vector.shape_cast %120 : vector<1x1x32x192xf32> to vector<32x192xf32>
    %cst_134 = arith.constant dense<0.000000e+00> : vector<3x192xf32>
    %122 = tpu.matmul %22, %121, %cst_134 {dimension_numbers = #tpu.dot_dimension_numbers<[1], [0], [0], [1], [0, 0, 1, 1], [], []>} : vector<3x32xf32>, vector<32x192xf32>, vector<3x192xf32> -> vector<3x192xf32>
    %123 = arith.addf %119, %122 : vector<3x192xf32>
    %c0_135 = arith.constant 0 : index
    %c1_136 = arith.constant 1 : index
    %c0_137 = arith.constant 0 : index
    %c184_138 = arith.constant 184 : index
    %124 = vector.load %arg1[%c0_135, %c1_136, %c0_137, %c184_138] : memref<1x8x32x384xf32, #tpu.memory_space<vmem>>, vector<1x1x32x192xf32>
    %125 = vector.shape_cast %124 : vector<1x1x32x192xf32> to vector<32x192xf32>
    %cst_139 = arith.constant dense<0.000000e+00> : vector<3x192xf32>
    %126 = tpu.matmul %24, %125, %cst_139 {dimension_numbers = #tpu.dot_dimension_numbers<[1], [0], [0], [1], [0, 0, 1, 1], [], []>} : vector<3x32xf32>, vector<32x192xf32>, vector<3x192xf32> -> vector<3x192xf32>
    %127 = arith.addf %123, %126 : vector<3x192xf32>
    %128 = vector.broadcast %0 : vector<3x1xf32> to vector<3x192xf32>
    %129 = arith.addf %127, %128 : vector<3x192xf32>
    %c0_140 = arith.constant 0 : index
    %c1_141 = arith.constant 1 : index
    %c0_142 = arith.constant 0 : index
    %c0_143 = arith.constant 0 : index
    %130 = vector.load %arg4[%c0_140, %c1_141, %c0_142, %c0_143] : memref<1x8x3x192xf32, #tpu.memory_space<vmem>>, vector<1x1x3x192xf32>
    %131 = vector.shape_cast %130 : vector<1x1x3x192xf32> to vector<3x192xf32>
    %132 = vector.shape_cast %129 : vector<3x192xf32> to vector<1x1x3x192xf32>
    tpu.vector_store %arg4[%c0_140, %c1_141, %c0_142, %c0_143], %132 {strides = array<i32>} : memref<1x8x3x192xf32, #tpu.memory_space<vmem>>, vector<1x1x3x192xf32>,
    %cst_144 = arith.constant 0.000000e+00 : f32
    %133 = vector.broadcast %cst_144 : f32 to vector<3x192xf32>
    %c0_145 = arith.constant 0 : index
    %c2_146 = arith.constant 2 : index
    %c0_147 = arith.constant 0 : index
    %c8_148 = arith.constant 8 : index
    %134 = vector.load %arg1[%c0_145, %c2_146, %c0_147, %c8_148] : memref<1x8x32x384xf32, #tpu.memory_space<vmem>>, vector<1x1x32x192xf32>
    %135 = vector.shape_cast %134 : vector<1x1x32x192xf32> to vector<32x192xf32>
    %cst_149 = arith.constant dense<0.000000e+00> : vector<3x192xf32>
    %136 = tpu.matmul %2, %135, %cst_149 {dimension_numbers = #tpu.dot_dimension_numbers<[1], [0], [0], [1], [0, 0, 1, 1], [], []>} : vector<3x32xf32>, vector<32x192xf32>, vector<3x192xf32> -> vector<3x192xf32>
    %137 = arith.addf %133, %136 : vector<3x192xf32>
    %c0_150 = arith.constant 0 : index
    %c2_151 = arith.constant 2 : index
    %c0_152 = arith.constant 0 : index
    %c24_153 = arith.constant 24 : index
    %138 = vector.load %arg1[%c0_150, %c2_151, %c0_152, %c24_153] : memref<1x8x32x384xf32, #tpu.memory_space<vmem>>, vector<1x1x32x192xf32>
    %139 = vector.shape_cast %138 : vector<1x1x32x192xf32> to vector<32x192xf32>
    %cst_154 = arith.constant dense<0.000000e+00> : vector<3x192xf32>
    %140 = tpu.matmul %4, %139, %cst_154 {dimension_numbers = #tpu.dot_dimension_numbers<[1], [0], [0], [1], [0, 0, 1, 1], [], []>} : vector<3x32xf32>, vector<32x192xf32>, vector<3x192xf32> -> vector<3x192xf32>
    %141 = arith.addf %137, %140 : vector<3x192xf32>
    %c0_155 = arith.constant 0 : index
    %c2_156 = arith.constant 2 : index
    %c0_157 = arith.constant 0 : index
    %c40_158 = arith.constant 40 : index
    %142 = vector.load %arg1[%c0_155, %c2_156, %c0_157, %c40_158] : memref<1x8x32x384xf32, #tpu.memory_space<vmem>>, vector<1x1x32x192xf32>
    %143 = vector.shape_cast %142 : vector<1x1x32x192xf32> to vector<32x192xf32>
    %cst_159 = arith.constant dense<0.000000e+00> : vector<3x192xf32>
    %144 = tpu.matmul %6, %143, %cst_159 {dimension_numbers = #tpu.dot_dimension_numbers<[1], [0], [0], [1], [0, 0, 1, 1], [], []>} : vector<3x32xf32>, vector<32x192xf32>, vector<3x192xf32> -> vector<3x192xf32>
    %145 = arith.addf %141, %144 : vector<3x192xf32>
    %c0_160 = arith.constant 0 : index
    %c2_161 = arith.constant 2 : index
    %c0_162 = arith.constant 0 : index
    %c56_163 = arith.constant 56 : index
    %146 = vector.load %arg1[%c0_160, %c2_161, %c0_162, %c56_163] : memref<1x8x32x384xf32, #tpu.memory_space<vmem>>, vector<1x1x32x192xf32>
    %147 = vector.shape_cast %146 : vector<1x1x32x192xf32> to vector<32x192xf32>
    %cst_164 = arith.constant dense<0.000000e+00> : vector<3x192xf32>
    %148 = tpu.matmul %8, %147, %cst_164 {dimension_numbers = #tpu.dot_dimension_numbers<[1], [0], [0], [1], [0, 0, 1, 1], [], []>} : vector<3x32xf32>, vector<32x192xf32>, vector<3x192xf32> -> vector<3x192xf32>
    %149 = arith.addf %145, %148 : vector<3x192xf32>
    %c0_165 = arith.constant 0 : index
    %c2_166 = arith.constant 2 : index
    %c0_167 = arith.constant 0 : index
    %c72_168 = arith.constant 72 : index
    %150 = vector.load %arg1[%c0_165, %c2_166, %c0_167, %c72_168] : memref<1x8x32x384xf32, #tpu.memory_space<vmem>>, vector<1x1x32x192xf32>
    %151 = vector.shape_cast %150 : vector<1x1x32x192xf32> to vector<32x192xf32>
    %cst_169 = arith.constant dense<0.000000e+00> : vector<3x192xf32>
    %152 = tpu.matmul %10, %151, %cst_169 {dimension_numbers = #tpu.dot_dimension_numbers<[1], [0], [0], [1], [0, 0, 1, 1], [], []>} : vector<3x32xf32>, vector<32x192xf32>, vector<3x192xf32> -> vector<3x192xf32>
    %153 = arith.addf %149, %152 : vector<3x192xf32>
    %c0_170 = arith.constant 0 : index
    %c2_171 = arith.constant 2 : index
    %c0_172 = arith.constant 0 : index
    %c88_173 = arith.constant 88 : index
    %154 = vector.load %arg1[%c0_170, %c2_171, %c0_172, %c88_173] : memref<1x8x32x384xf32, #tpu.memory_space<vmem>>, vector<1x1x32x192xf32>
    %155 = vector.shape_cast %154 : vector<1x1x32x192xf32> to vector<32x192xf32>
    %cst_174 = arith.constant dense<0.000000e+00> : vector<3x192xf32>
    %156 = tpu.matmul %12, %155, %cst_174 {dimension_numbers = #tpu.dot_dimension_numbers<[1], [0], [0], [1], [0, 0, 1, 1], [], []>} : vector<3x32xf32>, vector<32x192xf32>, vector<3x192xf32> -> vector<3x192xf32>
    %157 = arith.addf %153, %156 : vector<3x192xf32>
    %c0_175 = arith.constant 0 : index
    %c2_176 = arith.constant 2 : index
    %c0_177 = arith.constant 0 : index
    %c104_178 = arith.constant 104 : index
    %158 = vector.load %arg1[%c0_175, %c2_176, %c0_177, %c104_178] : memref<1x8x32x384xf32, #tpu.memory_space<vmem>>, vector<1x1x32x192xf32>
    %159 = vector.shape_cast %158 : vector<1x1x32x192xf32> to vector<32x192xf32>
    %cst_179 = arith.constant dense<0.000000e+00> : vector<3x192xf32>
    %160 = tpu.matmul %14, %159, %cst_179 {dimension_numbers = #tpu.dot_dimension_numbers<[1], [0], [0], [1], [0, 0, 1, 1], [], []>} : vector<3x32xf32>, vector<32x192xf32>, vector<3x192xf32> -> vector<3x192xf32>
    %161 = arith.addf %157, %160 : vector<3x192xf32>
    %c0_180 = arith.constant 0 : index
    %c2_181 = arith.constant 2 : index
    %c0_182 = arith.constant 0 : index
    %c120_183 = arith.constant 120 : index
    %162 = vector.load %arg1[%c0_180, %c2_181, %c0_182, %c120_183] : memref<1x8x32x384xf32, #tpu.memory_space<vmem>>, vector<1x1x32x192xf32>
    %163 = vector.shape_cast %162 : vector<1x1x32x192xf32> to vector<32x192xf32>
    %cst_184 = arith.constant dense<0.000000e+00> : vector<3x192xf32>
    %164 = tpu.matmul %16, %163, %cst_184 {dimension_numbers = #tpu.dot_dimension_numbers<[1], [0], [0], [1], [0, 0, 1, 1], [], []>} : vector<3x32xf32>, vector<32x192xf32>, vector<3x192xf32> -> vector<3x192xf32>
    %165 = arith.addf %161, %164 : vector<3x192xf32>
    %c0_185 = arith.constant 0 : index
    %c2_186 = arith.constant 2 : index
    %c0_187 = arith.constant 0 : index
    %c136_188 = arith.constant 136 : index
    %166 = vector.load %arg1[%c0_185, %c2_186, %c0_187, %c136_188] : memref<1x8x32x384xf32, #tpu.memory_space<vmem>>, vector<1x1x32x192xf32>
    %167 = vector.shape_cast %166 : vector<1x1x32x192xf32> to vector<32x192xf32>
    %cst_189 = arith.constant dense<0.000000e+00> : vector<3x192xf32>
    %168 = tpu.matmul %18, %167, %cst_189 {dimension_numbers = #tpu.dot_dimension_numbers<[1], [0], [0], [1], [0, 0, 1, 1], [], []>} : vector<3x32xf32>, vector<32x192xf32>, vector<3x192xf32> -> vector<3x192xf32>
    %169 = arith.addf %165, %168 : vector<3x192xf32>
    %c0_190 = arith.constant 0 : index
    %c2_191 = arith.constant 2 : index
    %c0_192 = arith.constant 0 : index
    %c152_193 = arith.constant 152 : index
    %170 = vector.load %arg1[%c0_190, %c2_191, %c0_192, %c152_193] : memref<1x8x32x384xf32, #tpu.memory_space<vmem>>, vector<1x1x32x192xf32>
    %171 = vector.shape_cast %170 : vector<1x1x32x192xf32> to vector<32x192xf32>
    %cst_194 = arith.constant dense<0.000000e+00> : vector<3x192xf32>
    %172 = tpu.matmul %20, %171, %cst_194 {dimension_numbers = #tpu.dot_dimension_numbers<[1], [0], [0], [1], [0, 0, 1, 1], [], []>} : vector<3x32xf32>, vector<32x192xf32>, vector<3x192xf32> -> vector<3x192xf32>
    %173 = arith.addf %169, %172 : vector<3x192xf32>
    %c0_195 = arith.constant 0 : index
    %c2_196 = arith.constant 2 : index
    %c0_197 = arith.constant 0 : index
    %c168_198 = arith.constant 168 : index
    %174 = vector.load %arg1[%c0_195, %c2_196, %c0_197, %c168_198] : memref<1x8x32x384xf32, #tpu.memory_space<vmem>>, vector<1x1x32x192xf32>
    %175 = vector.shape_cast %174 : vector<1x1x32x192xf32> to vector<32x192xf32>
    %cst_199 = arith.constant dense<0.000000e+00> : vector<3x192xf32>
    %176 = tpu.matmul %22, %175, %cst_199 {dimension_numbers = #tpu.dot_dimension_numbers<[1], [0], [0], [1], [0, 0, 1, 1], [], []>} : vector<3x32xf32>, vector<32x192xf32>, vector<3x192xf32> -> vector<3x192xf32>
    %177 = arith.addf %173, %176 : vector<3x192xf32>
    %c0_200 = arith.constant 0 : index
    %c2_201 = arith.constant 2 : index
    %c0_202 = arith.constant 0 : index
    %c184_203 = arith.constant 184 : index
    %178 = vector.load %arg1[%c0_200, %c2_201, %c0_202, %c184_203] : memref<1x8x32x384xf32, #tpu.memory_space<vmem>>, vector<1x1x32x192xf32>
    %179 = vector.shape_cast %178 : vector<1x1x32x192xf32> to vector<32x192xf32>
    %cst_204 = arith.constant dense<0.000000e+00> : vector<3x192xf32>
    %180 = tpu.matmul %24, %179, %cst_204 {dimension_numbers = #tpu.dot_dimension_numbers<[1], [0], [0], [1], [0, 0, 1, 1], [], []>} : vector<3x32xf32>, vector<32x192xf32>, vector<3x192xf32> -> vector<3x192xf32>
    %181 = arith.addf %177, %180 : vector<3x192xf32>
    %182 = vector.broadcast %0 : vector<3x1xf32> to vector<3x192xf32>
    %183 = arith.addf %181, %182 : vector<3x192xf32>
    %c0_205 = arith.constant 0 : index
    %c2_206 = arith.constant 2 : index
    %c0_207 = arith.constant 0 : index
    %c0_208 = arith.constant 0 : index
    %184 = vector.load %arg4[%c0_205, %c2_206, %c0_207, %c0_208] : memref<1x8x3x192xf32, #tpu.memory_space<vmem>>, vector<1x1x3x192xf32>
    %185 = vector.shape_cast %184 : vector<1x1x3x192xf32> to vector<3x192xf32>
    %186 = vector.shape_cast %183 : vector<3x192xf32> to vector<1x1x3x192xf32>
    tpu.vector_store %arg4[%c0_205, %c2_206, %c0_207, %c0_208], %186 {strides = array<i32>} : memref<1x8x3x192xf32, #tpu.memory_space<vmem>>, vector<1x1x3x192xf32>,
    %cst_209 = arith.constant 0.000000e+00 : f32
    %187 = vector.broadcast %cst_209 : f32 to vector<3x192xf32>
    %c0_210 = arith.constant 0 : index
    %c3_211 = arith.constant 3 : index
    %c0_212 = arith.constant 0 : index
    %c8_213 = arith.constant 8 : index
    %188 = vector.load %arg1[%c0_210, %c3_211, %c0_212, %c8_213] : memref<1x8x32x384xf32, #tpu.memory_space<vmem>>, vector<1x1x32x192xf32>
    %189 = vector.shape_cast %188 : vector<1x1x32x192xf32> to vector<32x192xf32>
    %cst_214 = arith.constant dense<0.000000e+00> : vector<3x192xf32>
    %190 = tpu.matmul %2, %189, %cst_214 {dimension_numbers = #tpu.dot_dimension_numbers<[1], [0], [0], [1], [0, 0, 1, 1], [], []>} : vector<3x32xf32>, vector<32x192xf32>, vector<3x192xf32> -> vector<3x192xf32>
    %191 = arith.addf %187, %190 : vector<3x192xf32>
    %c0_215 = arith.constant 0 : index
    %c3_216 = arith.constant 3 : index
    %c0_217 = arith.constant 0 : index
    %c24_218 = arith.constant 24 : index
    %192 = vector.load %arg1[%c0_215, %c3_216, %c0_217, %c24_218] : memref<1x8x32x384xf32, #tpu.memory_space<vmem>>, vector<1x1x32x192xf32>
    %193 = vector.shape_cast %192 : vector<1x1x32x192xf32> to vector<32x192xf32>
    %cst_219 = arith.constant dense<0.000000e+00> : vector<3x192xf32>
    %194 = tpu.matmul %4, %193, %cst_219 {dimension_numbers = #tpu.dot_dimension_numbers<[1], [0], [0], [1], [0, 0, 1, 1], [], []>} : vector<3x32xf32>, vector<32x192xf32>, vector<3x192xf32> -> vector<3x192xf32>
    %195 = arith.addf %191, %194 : vector<3x192xf32>
    %c0_220 = arith.constant 0 : index
    %c3_221 = arith.constant 3 : index
    %c0_222 = arith.constant 0 : index
    %c40_223 = arith.constant 40 : index
    %196 = vector.load %arg1[%c0_220, %c3_221, %c0_222, %c40_223] : memref<1x8x32x384xf32, #tpu.memory_space<vmem>>, vector<1x1x32x192xf32>
    %197 = vector.shape_cast %196 : vector<1x1x32x192xf32> to vector<32x192xf32>
    %cst_224 = arith.constant dense<0.000000e+00> : vector<3x192xf32>
    %198 = tpu.matmul %6, %197, %cst_224 {dimension_numbers = #tpu.dot_dimension_numbers<[1], [0], [0], [1], [0, 0, 1, 1], [], []>} : vector<3x32xf32>, vector<32x192xf32>, vector<3x192xf32> -> vector<3x192xf32>
    %199 = arith.addf %195, %198 : vector<3x192xf32>
    %c0_225 = arith.constant 0 : index
    %c3_226 = arith.constant 3 : index
    %c0_227 = arith.constant 0 : index
    %c56_228 = arith.constant 56 : index
    %200 = vector.load %arg1[%c0_225, %c3_226, %c0_227, %c56_228] : memref<1x8x32x384xf32, #tpu.memory_space<vmem>>, vector<1x1x32x192xf32>
    %201 = vector.shape_cast %200 : vector<1x1x32x192xf32> to vector<32x192xf32>
    %cst_229 = arith.constant dense<0.000000e+00> : vector<3x192xf32>
    %202 = tpu.matmul %8, %201, %cst_229 {dimension_numbers = #tpu.dot_dimension_numbers<[1], [0], [0], [1], [0, 0, 1, 1], [], []>} : vector<3x32xf32>, vector<32x192xf32>, vector<3x192xf32> -> vector<3x192xf32>
    %203 = arith.addf %199, %202 : vector<3x192xf32>
    %c0_230 = arith.constant 0 : index
    %c3_231 = arith.constant 3 : index
    %c0_232 = arith.constant 0 : index
    %c72_233 = arith.constant 72 : index
    %204 = vector.load %arg1[%c0_230, %c3_231, %c0_232, %c72_233] : memref<1x8x32x384xf32, #tpu.memory_space<vmem>>, vector<1x1x32x192xf32>
    %205 = vector.shape_cast %204 : vector<1x1x32x192xf32> to vector<32x192xf32>
    %cst_234 = arith.constant dense<0.000000e+00> : vector<3x192xf32>
    %206 = tpu.matmul %10, %205, %cst_234 {dimension_numbers = #tpu.dot_dimension_numbers<[1], [0], [0], [1], [0, 0, 1, 1], [], []>} : vector<3x32xf32>, vector<32x192xf32>, vector<3x192xf32> -> vector<3x192xf32>
    %207 = arith.addf %203, %206 : vector<3x192xf32>
    %c0_235 = arith.constant 0 : index
    %c3_236 = arith.constant 3 : index
    %c0_237 = arith.constant 0 : index
    %c88_238 = arith.constant 88 : index
    %208 = vector.load %arg1[%c0_235, %c3_236, %c0_237, %c88_238] : memref<1x8x32x384xf32, #tpu.memory_space<vmem>>, vector<1x1x32x192xf32>
    %209 = vector.shape_cast %208 : vector<1x1x32x192xf32> to vector<32x192xf32>
    %cst_239 = arith.constant dense<0.000000e+00> : vector<3x192xf32>
    %210 = tpu.matmul %12, %209, %cst_239 {dimension_numbers = #tpu.dot_dimension_numbers<[1], [0], [0], [1], [0, 0, 1, 1], [], []>} : vector<3x32xf32>, vector<32x192xf32>, vector<3x192xf32> -> vector<3x192xf32>
    %211 = arith.addf %207, %210 : vector<3x192xf32>
    %c0_240 = arith.constant 0 : index
    %c3_241 = arith.constant 3 : index
    %c0_242 = arith.constant 0 : index
    %c104_243 = arith.constant 104 : index
    %212 = vector.load %arg1[%c0_240, %c3_241, %c0_242, %c104_243] : memref<1x8x32x384xf32, #tpu.memory_space<vmem>>, vector<1x1x32x192xf32>
    %213 = vector.shape_cast %212 : vector<1x1x32x192xf32> to vector<32x192xf32>
    %cst_244 = arith.constant dense<0.000000e+00> : vector<3x192xf32>
    %214 = tpu.matmul %14, %213, %cst_244 {dimension_numbers = #tpu.dot_dimension_numbers<[1], [0], [0], [1], [0, 0, 1, 1], [], []>} : vector<3x32xf32>, vector<32x192xf32>, vector<3x192xf32> -> vector<3x192xf32>
    %215 = arith.addf %211, %214 : vector<3x192xf32>
    %c0_245 = arith.constant 0 : index
    %c3_246 = arith.constant 3 : index
    %c0_247 = arith.constant 0 : index
    %c120_248 = arith.constant 120 : index
    %216 = vector.load %arg1[%c0_245, %c3_246, %c0_247, %c120_248] : memref<1x8x32x384xf32, #tpu.memory_space<vmem>>, vector<1x1x32x192xf32>
    %217 = vector.shape_cast %216 : vector<1x1x32x192xf32> to vector<32x192xf32>
    %cst_249 = arith.constant dense<0.000000e+00> : vector<3x192xf32>
    %218 = tpu.matmul %16, %217, %cst_249 {dimension_numbers = #tpu.dot_dimension_numbers<[1], [0], [0], [1], [0, 0, 1, 1], [], []>} : vector<3x32xf32>, vector<32x192xf32>, vector<3x192xf32> -> vector<3x192xf32>
    %219 = arith.addf %215, %218 : vector<3x192xf32>
    %c0_250 = arith.constant 0 : index
    %c3_251 = arith.constant 3 : index
    %c0_252 = arith.constant 0 : index
    %c136_253 = arith.constant 136 : index
    %220 = vector.load %arg1[%c0_250, %c3_251, %c0_252, %c136_253] : memref<1x8x32x384xf32, #tpu.memory_space<vmem>>, vector<1x1x32x192xf32>
    %221 = vector.shape_cast %220 : vector<1x1x32x192xf32> to vector<32x192xf32>
    %cst_254 = arith.constant dense<0.000000e+00> : vector<3x192xf32>
    %222 = tpu.matmul %18, %221, %cst_254 {dimension_numbers = #tpu.dot_dimension_numbers<[1], [0], [0], [1], [0, 0, 1, 1], [], []>} : vector<3x32xf32>, vector<32x192xf32>, vector<3x192xf32> -> vector<3x192xf32>
    %223 = arith.addf %219, %222 : vector<3x192xf32>
    %c0_255 = arith.constant 0 : index
    %c3_256 = arith.constant 3 : index
    %c0_257 = arith.constant 0 : index
    %c152_258 = arith.constant 152 : index
    %224 = vector.load %arg1[%c0_255, %c3_256, %c0_257, %c152_258] : memref<1x8x32x384xf32, #tpu.memory_space<vmem>>, vector<1x1x32x192xf32>
    %225 = vector.shape_cast %224 : vector<1x1x32x192xf32> to vector<32x192xf32>
    %cst_259 = arith.constant dense<0.000000e+00> : vector<3x192xf32>
    %226 = tpu.matmul %20, %225, %cst_259 {dimension_numbers = #tpu.dot_dimension_numbers<[1], [0], [0], [1], [0, 0, 1, 1], [], []>} : vector<3x32xf32>, vector<32x192xf32>, vector<3x192xf32> -> vector<3x192xf32>
    %227 = arith.addf %223, %226 : vector<3x192xf32>
    %c0_260 = arith.constant 0 : index
    %c3_261 = arith.constant 3 : index
    %c0_262 = arith.constant 0 : index
    %c168_263 = arith.constant 168 : index
    %228 = vector.load %arg1[%c0_260, %c3_261, %c0_262, %c168_263] : memref<1x8x32x384xf32, #tpu.memory_space<vmem>>, vector<1x1x32x192xf32>
    %229 = vector.shape_cast %228 : vector<1x1x32x192xf32> to vector<32x192xf32>
    %cst_264 = arith.constant dense<0.000000e+00> : vector<3x192xf32>
    %230 = tpu.matmul %22, %229, %cst_264 {dimension_numbers = #tpu.dot_dimension_numbers<[1], [0], [0], [1], [0, 0, 1, 1], [], []>} : vector<3x32xf32>, vector<32x192xf32>, vector<3x192xf32> -> vector<3x192xf32>
    %231 = arith.addf %227, %230 : vector<3x192xf32>
    %c0_265 = arith.constant 0 : index
    %c3_266 = arith.constant 3 : index
    %c0_267 = arith.constant 0 : index
    %c184_268 = arith.constant 184 : index
    %232 = vector.load %arg1[%c0_265, %c3_266, %c0_267, %c184_268] : memref<1x8x32x384xf32, #tpu.memory_space<vmem>>, vector<1x1x32x192xf32>
    %233 = vector.shape_cast %232 : vector<1x1x32x192xf32> to vector<32x192xf32>
    %cst_269 = arith.constant dense<0.000000e+00> : vector<3x192xf32>
    %234 = tpu.matmul %24, %233, %cst_269 {dimension_numbers = #tpu.dot_dimension_numbers<[1], [0], [0], [1], [0, 0, 1, 1], [], []>} : vector<3x32xf32>, vector<32x192xf32>, vector<3x192xf32> -> vector<3x192xf32>
    %235 = arith.addf %231, %234 : vector<3x192xf32>
    %236 = vector.broadcast %0 : vector<3x1xf32> to vector<3x192xf32>
    %237 = arith.addf %235, %236 : vector<3x192xf32>
    %c0_270 = arith.constant 0 : index
    %c3_271 = arith.constant 3 : index
    %c0_272 = arith.constant 0 : index
    %c0_273 = arith.constant 0 : index
    %238 = vector.load %arg4[%c0_270, %c3_271, %c0_272, %c0_273] : memref<1x8x3x192xf32, #tpu.memory_space<vmem>>, vector<1x1x3x192xf32>
    %239 = vector.shape_cast %238 : vector<1x1x3x192xf32> to vector<3x192xf32>
    %240 = vector.shape_cast %237 : vector<3x192xf32> to vector<1x1x3x192xf32>
    tpu.vector_store %arg4[%c0_270, %c3_271, %c0_272, %c0_273], %240 {strides = array<i32>} : memref<1x8x3x192xf32, #tpu.memory_space<vmem>>, vector<1x1x3x192xf32>,
    %cst_274 = arith.constant 0.000000e+00 : f32
    %241 = vector.broadcast %cst_274 : f32 to vector<3x192xf32>
    %c0_275 = arith.constant 0 : index
    %c4_276 = arith.constant 4 : index
    %c0_277 = arith.constant 0 : index
    %c8_278 = arith.constant 8 : index
    %242 = vector.load %arg1[%c0_275, %c4_276, %c0_277, %c8_278] : memref<1x8x32x384xf32, #tpu.memory_space<vmem>>, vector<1x1x32x192xf32>
    %243 = vector.shape_cast %242 : vector<1x1x32x192xf32> to vector<32x192xf32>
    %cst_279 = arith.constant dense<0.000000e+00> : vector<3x192xf32>
    %244 = tpu.matmul %2, %243, %cst_279 {dimension_numbers = #tpu.dot_dimension_numbers<[1], [0], [0], [1], [0, 0, 1, 1], [], []>} : vector<3x32xf32>, vector<32x192xf32>, vector<3x192xf32> -> vector<3x192xf32>
    %245 = arith.addf %241, %244 : vector<3x192xf32>
    %c0_280 = arith.constant 0 : index
    %c4_281 = arith.constant 4 : index
    %c0_282 = arith.constant 0 : index
    %c24_283 = arith.constant 24 : index
    %246 = vector.load %arg1[%c0_280, %c4_281, %c0_282, %c24_283] : memref<1x8x32x384xf32, #tpu.memory_space<vmem>>, vector<1x1x32x192xf32>
    %247 = vector.shape_cast %246 : vector<1x1x32x192xf32> to vector<32x192xf32>
    %cst_284 = arith.constant dense<0.000000e+00> : vector<3x192xf32>
    %248 = tpu.matmul %4, %247, %cst_284 {dimension_numbers = #tpu.dot_dimension_numbers<[1], [0], [0], [1], [0, 0, 1, 1], [], []>} : vector<3x32xf32>, vector<32x192xf32>, vector<3x192xf32> -> vector<3x192xf32>
    %249 = arith.addf %245, %248 : vector<3x192xf32>
    %c0_285 = arith.constant 0 : index
    %c4_286 = arith.constant 4 : index
    %c0_287 = arith.constant 0 : index
    %c40_288 = arith.constant 40 : index
    %250 = vector.load %arg1[%c0_285, %c4_286, %c0_287, %c40_288] : memref<1x8x32x384xf32, #tpu.memory_space<vmem>>, vector<1x1x32x192xf32>
    %251 = vector.shape_cast %250 : vector<1x1x32x192xf32> to vector<32x192xf32>
    %cst_289 = arith.constant dense<0.000000e+00> : vector<3x192xf32>
    %252 = tpu.matmul %6, %251, %cst_289 {dimension_numbers = #tpu.dot_dimension_numbers<[1], [0], [0], [1], [0, 0, 1, 1], [], []>} : vector<3x32xf32>, vector<32x192xf32>, vector<3x192xf32> -> vector<3x192xf32>
    %253 = arith.addf %249, %252 : vector<3x192xf32>
    %c0_290 = arith.constant 0 : index
    %c4_291 = arith.constant 4 : index
    %c0_292 = arith.constant 0 : index
    %c56_293 = arith.constant 56 : index
    %254 = vector.load %arg1[%c0_290, %c4_291, %c0_292, %c56_293] : memref<1x8x32x384xf32, #tpu.memory_space<vmem>>, vector<1x1x32x192xf32>
    %255 = vector.shape_cast %254 : vector<1x1x32x192xf32> to vector<32x192xf32>
    %cst_294 = arith.constant dense<0.000000e+00> : vector<3x192xf32>
    %256 = tpu.matmul %8, %255, %cst_294 {dimension_numbers = #tpu.dot_dimension_numbers<[1], [0], [0], [1], [0, 0, 1, 1], [], []>} : vector<3x32xf32>, vector<32x192xf32>, vector<3x192xf32> -> vector<3x192xf32>
    %257 = arith.addf %253, %256 : vector<3x192xf32>
    %c0_295 = arith.constant 0 : index
    %c4_296 = arith.constant 4 : index
    %c0_297 = arith.constant 0 : index
    %c72_298 = arith.constant 72 : index
    %258 = vector.load %arg1[%c0_295, %c4_296, %c0_297, %c72_298] : memref<1x8x32x384xf32, #tpu.memory_space<vmem>>, vector<1x1x32x192xf32>
    %259 = vector.shape_cast %258 : vector<1x1x32x192xf32> to vector<32x192xf32>
    %cst_299 = arith.constant dense<0.000000e+00> : vector<3x192xf32>
    %260 = tpu.matmul %10, %259, %cst_299 {dimension_numbers = #tpu.dot_dimension_numbers<[1], [0], [0], [1], [0, 0, 1, 1], [], []>} : vector<3x32xf32>, vector<32x192xf32>, vector<3x192xf32> -> vector<3x192xf32>
    %261 = arith.addf %257, %260 : vector<3x192xf32>
    %c0_300 = arith.constant 0 : index
    %c4_301 = arith.constant 4 : index
    %c0_302 = arith.constant 0 : index
    %c88_303 = arith.constant 88 : index
    %262 = vector.load %arg1[%c0_300, %c4_301, %c0_302, %c88_303] : memref<1x8x32x384xf32, #tpu.memory_space<vmem>>, vector<1x1x32x192xf32>
    %263 = vector.shape_cast %262 : vector<1x1x32x192xf32> to vector<32x192xf32>
    %cst_304 = arith.constant dense<0.000000e+00> : vector<3x192xf32>
    %264 = tpu.matmul %12, %263, %cst_304 {dimension_numbers = #tpu.dot_dimension_numbers<[1], [0], [0], [1], [0, 0, 1, 1], [], []>} : vector<3x32xf32>, vector<32x192xf32>, vector<3x192xf32> -> vector<3x192xf32>
    %265 = arith.addf %261, %264 : vector<3x192xf32>
    %c0_305 = arith.constant 0 : index
    %c4_306 = arith.constant 4 : index
    %c0_307 = arith.constant 0 : index
    %c104_308 = arith.constant 104 : index
    %266 = vector.load %arg1[%c0_305, %c4_306, %c0_307, %c104_308] : memref<1x8x32x384xf32, #tpu.memory_space<vmem>>, vector<1x1x32x192xf32>
    %267 = vector.shape_cast %266 : vector<1x1x32x192xf32> to vector<32x192xf32>
    %cst_309 = arith.constant dense<0.000000e+00> : vector<3x192xf32>
    %268 = tpu.matmul %14, %267, %cst_309 {dimension_numbers = #tpu.dot_dimension_numbers<[1], [0], [0], [1], [0, 0, 1, 1], [], []>} : vector<3x32xf32>, vector<32x192xf32>, vector<3x192xf32> -> vector<3x192xf32>
    %269 = arith.addf %265, %268 : vector<3x192xf32>
    %c0_310 = arith.constant 0 : index
    %c4_311 = arith.constant 4 : index
    %c0_312 = arith.constant 0 : index
    %c120_313 = arith.constant 120 : index
    %270 = vector.load %arg1[%c0_310, %c4_311, %c0_312, %c120_313] : memref<1x8x32x384xf32, #tpu.memory_space<vmem>>, vector<1x1x32x192xf32>
    %271 = vector.shape_cast %270 : vector<1x1x32x192xf32> to vector<32x192xf32>
    %cst_314 = arith.constant dense<0.000000e+00> : vector<3x192xf32>
    %272 = tpu.matmul %16, %271, %cst_314 {dimension_numbers = #tpu.dot_dimension_numbers<[1], [0], [0], [1], [0, 0, 1, 1], [], []>} : vector<3x32xf32>, vector<32x192xf32>, vector<3x192xf32> -> vector<3x192xf32>
    %273 = arith.addf %269, %272 : vector<3x192xf32>
    %c0_315 = arith.constant 0 : index
    %c4_316 = arith.constant 4 : index
    %c0_317 = arith.constant 0 : index
    %c136_318 = arith.constant 136 : index
    %274 = vector.load %arg1[%c0_315, %c4_316, %c0_317, %c136_318] : memref<1x8x32x384xf32, #tpu.memory_space<vmem>>, vector<1x1x32x192xf32>
    %275 = vector.shape_cast %274 : vector<1x1x32x192xf32> to vector<32x192xf32>
    %cst_319 = arith.constant dense<0.000000e+00> : vector<3x192xf32>
    %276 = tpu.matmul %18, %275, %cst_319 {dimension_numbers = #tpu.dot_dimension_numbers<[1], [0], [0], [1], [0, 0, 1, 1], [], []>} : vector<3x32xf32>, vector<32x192xf32>, vector<3x192xf32> -> vector<3x192xf32>
    %277 = arith.addf %273, %276 : vector<3x192xf32>
    %c0_320 = arith.constant 0 : index
    %c4_321 = arith.constant 4 : index
    %c0_322 = arith.constant 0 : index
    %c152_323 = arith.constant 152 : index
    %278 = vector.load %arg1[%c0_320, %c4_321, %c0_322, %c152_323] : memref<1x8x32x384xf32, #tpu.memory_space<vmem>>, vector<1x1x32x192xf32>
    %279 = vector.shape_cast %278 : vector<1x1x32x192xf32> to vector<32x192xf32>
    %cst_324 = arith.constant dense<0.000000e+00> : vector<3x192xf32>
    %280 = tpu.matmul %20, %279, %cst_324 {dimension_numbers = #tpu.dot_dimension_numbers<[1], [0], [0], [1], [0, 0, 1, 1], [], []>} : vector<3x32xf32>, vector<32x192xf32>, vector<3x192xf32> -> vector<3x192xf32>
    %281 = arith.addf %277, %280 : vector<3x192xf32>
    %c0_325 = arith.constant 0 : index
    %c4_326 = arith.constant 4 : index
    %c0_327 = arith.constant 0 : index
    %c168_328 = arith.constant 168 : index
    %282 = vector.load %arg1[%c0_325, %c4_326, %c0_327, %c168_328] : memref<1x8x32x384xf32, #tpu.memory_space<vmem>>, vector<1x1x32x192xf32>
    %283 = vector.shape_cast %282 : vector<1x1x32x192xf32> to vector<32x192xf32>
    %cst_329 = arith.constant dense<0.000000e+00> : vector<3x192xf32>
    %284 = tpu.matmul %22, %283, %cst_329 {dimension_numbers = #tpu.dot_dimension_numbers<[1], [0], [0], [1], [0, 0, 1, 1], [], []>} : vector<3x32xf32>, vector<32x192xf32>, vector<3x192xf32> -> vector<3x192xf32>
    %285 = arith.addf %281, %284 : vector<3x192xf32>
    %c0_330 = arith.constant 0 : index
    %c4_331 = arith.constant 4 : index
    %c0_332 = arith.constant 0 : index
    %c184_333 = arith.constant 184 : index
    %286 = vector.load %arg1[%c0_330, %c4_331, %c0_332, %c184_333] : memref<1x8x32x384xf32, #tpu.memory_space<vmem>>, vector<1x1x32x192xf32>
    %287 = vector.shape_cast %286 : vector<1x1x32x192xf32> to vector<32x192xf32>
    %cst_334 = arith.constant dense<0.000000e+00> : vector<3x192xf32>
    %288 = tpu.matmul %24, %287, %cst_334 {dimension_numbers = #tpu.dot_dimension_numbers<[1], [0], [0], [1], [0, 0, 1, 1], [], []>} : vector<3x32xf32>, vector<32x192xf32>, vector<3x192xf32> -> vector<3x192xf32>
    %289 = arith.addf %285, %288 : vector<3x192xf32>
    %290 = vector.broadcast %0 : vector<3x1xf32> to vector<3x192xf32>
    %291 = arith.addf %289, %290 : vector<3x192xf32>
    %c0_335 = arith.constant 0 : index
    %c4_336 = arith.constant 4 : index
    %c0_337 = arith.constant 0 : index
    %c0_338 = arith.constant 0 : index
    %292 = vector.load %arg4[%c0_335, %c4_336, %c0_337, %c0_338] : memref<1x8x3x192xf32, #tpu.memory_space<vmem>>, vector<1x1x3x192xf32>
    %293 = vector.shape_cast %292 : vector<1x1x3x192xf32> to vector<3x192xf32>
    %294 = vector.shape_cast %291 : vector<3x192xf32> to vector<1x1x3x192xf32>
    tpu.vector_store %arg4[%c0_335, %c4_336, %c0_337, %c0_338], %294 {strides = array<i32>} : memref<1x8x3x192xf32, #tpu.memory_space<vmem>>, vector<1x1x3x192xf32>,
    %cst_339 = arith.constant 0.000000e+00 : f32
    %295 = vector.broadcast %cst_339 : f32 to vector<3x192xf32>
    %c0_340 = arith.constant 0 : index
    %c5_341 = arith.constant 5 : index
    %c0_342 = arith.constant 0 : index
    %c8_343 = arith.constant 8 : index
    %296 = vector.load %arg1[%c0_340, %c5_341, %c0_342, %c8_343] : memref<1x8x32x384xf32, #tpu.memory_space<vmem>>, vector<1x1x32x192xf32>
    %297 = vector.shape_cast %296 : vector<1x1x32x192xf32> to vector<32x192xf32>
    %cst_344 = arith.constant dense<0.000000e+00> : vector<3x192xf32>
    %298 = tpu.matmul %2, %297, %cst_344 {dimension_numbers = #tpu.dot_dimension_numbers<[1], [0], [0], [1], [0, 0, 1, 1], [], []>} : vector<3x32xf32>, vector<32x192xf32>, vector<3x192xf32> -> vector<3x192xf32>
    %299 = arith.addf %295, %298 : vector<3x192xf32>
    %c0_345 = arith.constant 0 : index
    %c5_346 = arith.constant 5 : index
    %c0_347 = arith.constant 0 : index
    %c24_348 = arith.constant 24 : index
    %300 = vector.load %arg1[%c0_345, %c5_346, %c0_347, %c24_348] : memref<1x8x32x384xf32, #tpu.memory_space<vmem>>, vector<1x1x32x192xf32>
    %301 = vector.shape_cast %300 : vector<1x1x32x192xf32> to vector<32x192xf32>
    %cst_349 = arith.constant dense<0.000000e+00> : vector<3x192xf32>
    %302 = tpu.matmul %4, %301, %cst_349 {dimension_numbers = #tpu.dot_dimension_numbers<[1], [0], [0], [1], [0, 0, 1, 1], [], []>} : vector<3x32xf32>, vector<32x192xf32>, vector<3x192xf32> -> vector<3x192xf32>
    %303 = arith.addf %299, %302 : vector<3x192xf32>
    %c0_350 = arith.constant 0 : index
    %c5_351 = arith.constant 5 : index
    %c0_352 = arith.constant 0 : index
    %c40_353 = arith.constant 40 : index
    %304 = vector.load %arg1[%c0_350, %c5_351, %c0_352, %c40_353] : memref<1x8x32x384xf32, #tpu.memory_space<vmem>>, vector<1x1x32x192xf32>
    %305 = vector.shape_cast %304 : vector<1x1x32x192xf32> to vector<32x192xf32>
    %cst_354 = arith.constant dense<0.000000e+00> : vector<3x192xf32>
    %306 = tpu.matmul %6, %305, %cst_354 {dimension_numbers = #tpu.dot_dimension_numbers<[1], [0], [0], [1], [0, 0, 1, 1], [], []>} : vector<3x32xf32>, vector<32x192xf32>, vector<3x192xf32> -> vector<3x192xf32>
    %307 = arith.addf %303, %306 : vector<3x192xf32>
    %c0_355 = arith.constant 0 : index
    %c5_356 = arith.constant 5 : index
    %c0_357 = arith.constant 0 : index
    %c56_358 = arith.constant 56 : index
    %308 = vector.load %arg1[%c0_355, %c5_356, %c0_357, %c56_358] : memref<1x8x32x384xf32, #tpu.memory_space<vmem>>, vector<1x1x32x192xf32>
    %309 = vector.shape_cast %308 : vector<1x1x32x192xf32> to vector<32x192xf32>
    %cst_359 = arith.constant dense<0.000000e+00> : vector<3x192xf32>
    %310 = tpu.matmul %8, %309, %cst_359 {dimension_numbers = #tpu.dot_dimension_numbers<[1], [0], [0], [1], [0, 0, 1, 1], [], []>} : vector<3x32xf32>, vector<32x192xf32>, vector<3x192xf32> -> vector<3x192xf32>
    %311 = arith.addf %307, %310 : vector<3x192xf32>
    %c0_360 = arith.constant 0 : index
    %c5_361 = arith.constant 5 : index
    %c0_362 = arith.constant 0 : index
    %c72_363 = arith.constant 72 : index
    %312 = vector.load %arg1[%c0_360, %c5_361, %c0_362, %c72_363] : memref<1x8x32x384xf32, #tpu.memory_space<vmem>>, vector<1x1x32x192xf32>
    %313 = vector.shape_cast %312 : vector<1x1x32x192xf32> to vector<32x192xf32>
    %cst_364 = arith.constant dense<0.000000e+00> : vector<3x192xf32>
    %314 = tpu.matmul %10, %313, %cst_364 {dimension_numbers = #tpu.dot_dimension_numbers<[1], [0], [0], [1], [0, 0, 1, 1], [], []>} : vector<3x32xf32>, vector<32x192xf32>, vector<3x192xf32> -> vector<3x192xf32>
    %315 = arith.addf %311, %314 : vector<3x192xf32>
    %c0_365 = arith.constant 0 : index
    %c5_366 = arith.constant 5 : index
    %c0_367 = arith.constant 0 : index
    %c88_368 = arith.constant 88 : index
    %316 = vector.load %arg1[%c0_365, %c5_366, %c0_367, %c88_368] : memref<1x8x32x384xf32, #tpu.memory_space<vmem>>, vector<1x1x32x192xf32>
    %317 = vector.shape_cast %316 : vector<1x1x32x192xf32> to vector<32x192xf32>
    %cst_369 = arith.constant dense<0.000000e+00> : vector<3x192xf32>
    %318 = tpu.matmul %12, %317, %cst_369 {dimension_numbers = #tpu.dot_dimension_numbers<[1], [0], [0], [1], [0, 0, 1, 1], [], []>} : vector<3x32xf32>, vector<32x192xf32>, vector<3x192xf32> -> vector<3x192xf32>
    %319 = arith.addf %315, %318 : vector<3x192xf32>
    %c0_370 = arith.constant 0 : index
    %c5_371 = arith.constant 5 : index
    %c0_372 = arith.constant 0 : index
    %c104_373 = arith.constant 104 : index
    %320 = vector.load %arg1[%c0_370, %c5_371, %c0_372, %c104_373] : memref<1x8x32x384xf32, #tpu.memory_space<vmem>>, vector<1x1x32x192xf32>
    %321 = vector.shape_cast %320 : vector<1x1x32x192xf32> to vector<32x192xf32>
    %cst_374 = arith.constant dense<0.000000e+00> : vector<3x192xf32>
    %322 = tpu.matmul %14, %321, %cst_374 {dimension_numbers = #tpu.dot_dimension_numbers<[1], [0], [0], [1], [0, 0, 1, 1], [], []>} : vector<3x32xf32>, vector<32x192xf32>, vector<3x192xf32> -> vector<3x192xf32>
    %323 = arith.addf %319, %322 : vector<3x192xf32>
    %c0_375 = arith.constant 0 : index
    %c5_376 = arith.constant 5 : index
    %c0_377 = arith.constant 0 : index
    %c120_378 = arith.constant 120 : index
    %324 = vector.load %arg1[%c0_375, %c5_376, %c0_377, %c120_378] : memref<1x8x32x384xf32, #tpu.memory_space<vmem>>, vector<1x1x32x192xf32>
    %325 = vector.shape_cast %324 : vector<1x1x32x192xf32> to vector<32x192xf32>
    %cst_379 = arith.constant dense<0.000000e+00> : vector<3x192xf32>
    %326 = tpu.matmul %16, %325, %cst_379 {dimension_numbers = #tpu.dot_dimension_numbers<[1], [0], [0], [1], [0, 0, 1, 1], [], []>} : vector<3x32xf32>, vector<32x192xf32>, vector<3x192xf32> -> vector<3x192xf32>
    %327 = arith.addf %323, %326 : vector<3x192xf32>
    %c0_380 = arith.constant 0 : index
    %c5_381 = arith.constant 5 : index
    %c0_382 = arith.constant 0 : index
    %c136_383 = arith.constant 136 : index
    %328 = vector.load %arg1[%c0_380, %c5_381, %c0_382, %c136_383] : memref<1x8x32x384xf32, #tpu.memory_space<vmem>>, vector<1x1x32x192xf32>
    %329 = vector.shape_cast %328 : vector<1x1x32x192xf32> to vector<32x192xf32>
    %cst_384 = arith.constant dense<0.000000e+00> : vector<3x192xf32>
    %330 = tpu.matmul %18, %329, %cst_384 {dimension_numbers = #tpu.dot_dimension_numbers<[1], [0], [0], [1], [0, 0, 1, 1], [], []>} : vector<3x32xf32>, vector<32x192xf32>, vector<3x192xf32> -> vector<3x192xf32>
    %331 = arith.addf %327, %330 : vector<3x192xf32>
    %c0_385 = arith.constant 0 : index
    %c5_386 = arith.constant 5 : index
    %c0_387 = arith.constant 0 : index
    %c152_388 = arith.constant 152 : index
    %332 = vector.load %arg1[%c0_385, %c5_386, %c0_387, %c152_388] : memref<1x8x32x384xf32, #tpu.memory_space<vmem>>, vector<1x1x32x192xf32>
    %333 = vector.shape_cast %332 : vector<1x1x32x192xf32> to vector<32x192xf32>
    %cst_389 = arith.constant dense<0.000000e+00> : vector<3x192xf32>
    %334 = tpu.matmul %20, %333, %cst_389 {dimension_numbers = #tpu.dot_dimension_numbers<[1], [0], [0], [1], [0, 0, 1, 1], [], []>} : vector<3x32xf32>, vector<32x192xf32>, vector<3x192xf32> -> vector<3x192xf32>
    %335 = arith.addf %331, %334 : vector<3x192xf32>
    %c0_390 = arith.constant 0 : index
    %c5_391 = arith.constant 5 : index
    %c0_392 = arith.constant 0 : index
    %c168_393 = arith.constant 168 : index
    %336 = vector.load %arg1[%c0_390, %c5_391, %c0_392, %c168_393] : memref<1x8x32x384xf32, #tpu.memory_space<vmem>>, vector<1x1x32x192xf32>
    %337 = vector.shape_cast %336 : vector<1x1x32x192xf32> to vector<32x192xf32>
    %cst_394 = arith.constant dense<0.000000e+00> : vector<3x192xf32>
    %338 = tpu.matmul %22, %337, %cst_394 {dimension_numbers = #tpu.dot_dimension_numbers<[1], [0], [0], [1], [0, 0, 1, 1], [], []>} : vector<3x32xf32>, vector<32x192xf32>, vector<3x192xf32> -> vector<3x192xf32>
    %339 = arith.addf %335, %338 : vector<3x192xf32>
    %c0_395 = arith.constant 0 : index
    %c5_396 = arith.constant 5 : index
    %c0_397 = arith.constant 0 : index
    %c184_398 = arith.constant 184 : index
    %340 = vector.load %arg1[%c0_395, %c5_396, %c0_397, %c184_398] : memref<1x8x32x384xf32, #tpu.memory_space<vmem>>, vector<1x1x32x192xf32>
    %341 = vector.shape_cast %340 : vector<1x1x32x192xf32> to vector<32x192xf32>
    %cst_399 = arith.constant dense<0.000000e+00> : vector<3x192xf32>
    %342 = tpu.matmul %24, %341, %cst_399 {dimension_numbers = #tpu.dot_dimension_numbers<[1], [0], [0], [1], [0, 0, 1, 1], [], []>} : vector<3x32xf32>, vector<32x192xf32>, vector<3x192xf32> -> vector<3x192xf32>
    %343 = arith.addf %339, %342 : vector<3x192xf32>
    %344 = vector.broadcast %0 : vector<3x1xf32> to vector<3x192xf32>
    %345 = arith.addf %343, %344 : vector<3x192xf32>
    %c0_400 = arith.constant 0 : index
    %c5_401 = arith.constant 5 : index
    %c0_402 = arith.constant 0 : index
    %c0_403 = arith.constant 0 : index
    %346 = vector.load %arg4[%c0_400, %c5_401, %c0_402, %c0_403] : memref<1x8x3x192xf32, #tpu.memory_space<vmem>>, vector<1x1x3x192xf32>
    %347 = vector.shape_cast %346 : vector<1x1x3x192xf32> to vector<3x192xf32>
    %348 = vector.shape_cast %345 : vector<3x192xf32> to vector<1x1x3x192xf32>
    tpu.vector_store %arg4[%c0_400, %c5_401, %c0_402, %c0_403], %348 {strides = array<i32>} : memref<1x8x3x192xf32, #tpu.memory_space<vmem>>, vector<1x1x3x192xf32>,
    %cst_404 = arith.constant 0.000000e+00 : f32
    %349 = vector.broadcast %cst_404 : f32 to vector<3x192xf32>
    %c0_405 = arith.constant 0 : index
    %c6_406 = arith.constant 6 : index
    %c0_407 = arith.constant 0 : index
    %c8_408 = arith.constant 8 : index
    %350 = vector.load %arg1[%c0_405, %c6_406, %c0_407, %c8_408] : memref<1x8x32x384xf32, #tpu.memory_space<vmem>>, vector<1x1x32x192xf32>
    %351 = vector.shape_cast %350 : vector<1x1x32x192xf32> to vector<32x192xf32>
    %cst_409 = arith.constant dense<0.000000e+00> : vector<3x192xf32>
    %352 = tpu.matmul %2, %351, %cst_409 {dimension_numbers = #tpu.dot_dimension_numbers<[1], [0], [0], [1], [0, 0, 1, 1], [], []>} : vector<3x32xf32>, vector<32x192xf32>, vector<3x192xf32> -> vector<3x192xf32>
    %353 = arith.addf %349, %352 : vector<3x192xf32>
    %c0_410 = arith.constant 0 : index
    %c6_411 = arith.constant 6 : index
    %c0_412 = arith.constant 0 : index
    %c24_413 = arith.constant 24 : index
    %354 = vector.load %arg1[%c0_410, %c6_411, %c0_412, %c24_413] : memref<1x8x32x384xf32, #tpu.memory_space<vmem>>, vector<1x1x32x192xf32>
    %355 = vector.shape_cast %354 : vector<1x1x32x192xf32> to vector<32x192xf32>
    %cst_414 = arith.constant dense<0.000000e+00> : vector<3x192xf32>
    %356 = tpu.matmul %4, %355, %cst_414 {dimension_numbers = #tpu.dot_dimension_numbers<[1], [0], [0], [1], [0, 0, 1, 1], [], []>} : vector<3x32xf32>, vector<32x192xf32>, vector<3x192xf32> -> vector<3x192xf32>
    %357 = arith.addf %353, %356 : vector<3x192xf32>
    %c0_415 = arith.constant 0 : index
    %c6_416 = arith.constant 6 : index
    %c0_417 = arith.constant 0 : index
    %c40_418 = arith.constant 40 : index
    %358 = vector.load %arg1[%c0_415, %c6_416, %c0_417, %c40_418] : memref<1x8x32x384xf32, #tpu.memory_space<vmem>>, vector<1x1x32x192xf32>
    %359 = vector.shape_cast %358 : vector<1x1x32x192xf32> to vector<32x192xf32>
    %cst_419 = arith.constant dense<0.000000e+00> : vector<3x192xf32>
    %360 = tpu.matmul %6, %359, %cst_419 {dimension_numbers = #tpu.dot_dimension_numbers<[1], [0], [0], [1], [0, 0, 1, 1], [], []>} : vector<3x32xf32>, vector<32x192xf32>, vector<3x192xf32> -> vector<3x192xf32>
    %361 = arith.addf %357, %360 : vector<3x192xf32>
    %c0_420 = arith.constant 0 : index
    %c6_421 = arith.constant 6 : index
    %c0_422 = arith.constant 0 : index
    %c56_423 = arith.constant 56 : index
    %362 = vector.load %arg1[%c0_420, %c6_421, %c0_422, %c56_423] : memref<1x8x32x384xf32, #tpu.memory_space<vmem>>, vector<1x1x32x192xf32>
    %363 = vector.shape_cast %362 : vector<1x1x32x192xf32> to vector<32x192xf32>
    %cst_424 = arith.constant dense<0.000000e+00> : vector<3x192xf32>
    %364 = tpu.matmul %8, %363, %cst_424 {dimension_numbers = #tpu.dot_dimension_numbers<[1], [0], [0], [1], [0, 0, 1, 1], [], []>} : vector<3x32xf32>, vector<32x192xf32>, vector<3x192xf32> -> vector<3x192xf32>
    %365 = arith.addf %361, %364 : vector<3x192xf32>
    %c0_425 = arith.constant 0 : index
    %c6_426 = arith.constant 6 : index
    %c0_427 = arith.constant 0 : index
    %c72_428 = arith.constant 72 : index
    %366 = vector.load %arg1[%c0_425, %c6_426, %c0_427, %c72_428] : memref<1x8x32x384xf32, #tpu.memory_space<vmem>>, vector<1x1x32x192xf32>
    %367 = vector.shape_cast %366 : vector<1x1x32x192xf32> to vector<32x192xf32>
    %cst_429 = arith.constant dense<0.000000e+00> : vector<3x192xf32>
    %368 = tpu.matmul %10, %367, %cst_429 {dimension_numbers = #tpu.dot_dimension_numbers<[1], [0], [0], [1], [0, 0, 1, 1], [], []>} : vector<3x32xf32>, vector<32x192xf32>, vector<3x192xf32> -> vector<3x192xf32>
    %369 = arith.addf %365, %368 : vector<3x192xf32>
    %c0_430 = arith.constant 0 : index
    %c6_431 = arith.constant 6 : index
    %c0_432 = arith.constant 0 : index
    %c88_433 = arith.constant 88 : index
    %370 = vector.load %arg1[%c0_430, %c6_431, %c0_432, %c88_433] : memref<1x8x32x384xf32, #tpu.memory_space<vmem>>, vector<1x1x32x192xf32>
    %371 = vector.shape_cast %370 : vector<1x1x32x192xf32> to vector<32x192xf32>
    %cst_434 = arith.constant dense<0.000000e+00> : vector<3x192xf32>
    %372 = tpu.matmul %12, %371, %cst_434 {dimension_numbers = #tpu.dot_dimension_numbers<[1], [0], [0], [1], [0, 0, 1, 1], [], []>} : vector<3x32xf32>, vector<32x192xf32>, vector<3x192xf32> -> vector<3x192xf32>
    %373 = arith.addf %369, %372 : vector<3x192xf32>
    %c0_435 = arith.constant 0 : index
    %c6_436 = arith.constant 6 : index
    %c0_437 = arith.constant 0 : index
    %c104_438 = arith.constant 104 : index
    %374 = vector.load %arg1[%c0_435, %c6_436, %c0_437, %c104_438] : memref<1x8x32x384xf32, #tpu.memory_space<vmem>>, vector<1x1x32x192xf32>
    %375 = vector.shape_cast %374 : vector<1x1x32x192xf32> to vector<32x192xf32>
    %cst_439 = arith.constant dense<0.000000e+00> : vector<3x192xf32>
    %376 = tpu.matmul %14, %375, %cst_439 {dimension_numbers = #tpu.dot_dimension_numbers<[1], [0], [0], [1], [0, 0, 1, 1], [], []>} : vector<3x32xf32>, vector<32x192xf32>, vector<3x192xf32> -> vector<3x192xf32>
    %377 = arith.addf %373, %376 : vector<3x192xf32>
    %c0_440 = arith.constant 0 : index
    %c6_441 = arith.constant 6 : index
    %c0_442 = arith.constant 0 : index
    %c120_443 = arith.constant 120 : index
    %378 = vector.load %arg1[%c0_440, %c6_441, %c0_442, %c120_443] : memref<1x8x32x384xf32, #tpu.memory_space<vmem>>, vector<1x1x32x192xf32>
    %379 = vector.shape_cast %378 : vector<1x1x32x192xf32> to vector<32x192xf32>
    %cst_444 = arith.constant dense<0.000000e+00> : vector<3x192xf32>
    %380 = tpu.matmul %16, %379, %cst_444 {dimension_numbers = #tpu.dot_dimension_numbers<[1], [0], [0], [1], [0, 0, 1, 1], [], []>} : vector<3x32xf32>, vector<32x192xf32>, vector<3x192xf32> -> vector<3x192xf32>
    %381 = arith.addf %377, %380 : vector<3x192xf32>
    %c0_445 = arith.constant 0 : index
    %c6_446 = arith.constant 6 : index
    %c0_447 = arith.constant 0 : index
    %c136_448 = arith.constant 136 : index
    %382 = vector.load %arg1[%c0_445, %c6_446, %c0_447, %c136_448] : memref<1x8x32x384xf32, #tpu.memory_space<vmem>>, vector<1x1x32x192xf32>
    %383 = vector.shape_cast %382 : vector<1x1x32x192xf32> to vector<32x192xf32>
    %cst_449 = arith.constant dense<0.000000e+00> : vector<3x192xf32>
    %384 = tpu.matmul %18, %383, %cst_449 {dimension_numbers = #tpu.dot_dimension_numbers<[1], [0], [0], [1], [0, 0, 1, 1], [], []>} : vector<3x32xf32>, vector<32x192xf32>, vector<3x192xf32> -> vector<3x192xf32>
    %385 = arith.addf %381, %384 : vector<3x192xf32>
    %c0_450 = arith.constant 0 : index
    %c6_451 = arith.constant 6 : index
    %c0_452 = arith.constant 0 : index
    %c152_453 = arith.constant 152 : index
    %386 = vector.load %arg1[%c0_450, %c6_451, %c0_452, %c152_453] : memref<1x8x32x384xf32, #tpu.memory_space<vmem>>, vector<1x1x32x192xf32>
    %387 = vector.shape_cast %386 : vector<1x1x32x192xf32> to vector<32x192xf32>
    %cst_454 = arith.constant dense<0.000000e+00> : vector<3x192xf32>
    %388 = tpu.matmul %20, %387, %cst_454 {dimension_numbers = #tpu.dot_dimension_numbers<[1], [0], [0], [1], [0, 0, 1, 1], [], []>} : vector<3x32xf32>, vector<32x192xf32>, vector<3x192xf32> -> vector<3x192xf32>
    %389 = arith.addf %385, %388 : vector<3x192xf32>
    %c0_455 = arith.constant 0 : index
    %c6_456 = arith.constant 6 : index
    %c0_457 = arith.constant 0 : index
    %c168_458 = arith.constant 168 : index
    %390 = vector.load %arg1[%c0_455, %c6_456, %c0_457, %c168_458] : memref<1x8x32x384xf32, #tpu.memory_space<vmem>>, vector<1x1x32x192xf32>
    %391 = vector.shape_cast %390 : vector<1x1x32x192xf32> to vector<32x192xf32>
    %cst_459 = arith.constant dense<0.000000e+00> : vector<3x192xf32>
    %392 = tpu.matmul %22, %391, %cst_459 {dimension_numbers = #tpu.dot_dimension_numbers<[1], [0], [0], [1], [0, 0, 1, 1], [], []>} : vector<3x32xf32>, vector<32x192xf32>, vector<3x192xf32> -> vector<3x192xf32>
    %393 = arith.addf %389, %392 : vector<3x192xf32>
    %c0_460 = arith.constant 0 : index
    %c6_461 = arith.constant 6 : index
    %c0_462 = arith.constant 0 : index
    %c184_463 = arith.constant 184 : index
    %394 = vector.load %arg1[%c0_460, %c6_461, %c0_462, %c184_463] : memref<1x8x32x384xf32, #tpu.memory_space<vmem>>, vector<1x1x32x192xf32>
    %395 = vector.shape_cast %394 : vector<1x1x32x192xf32> to vector<32x192xf32>
    %cst_464 = arith.constant dense<0.000000e+00> : vector<3x192xf32>
    %396 = tpu.matmul %24, %395, %cst_464 {dimension_numbers = #tpu.dot_dimension_numbers<[1], [0], [0], [1], [0, 0, 1, 1], [], []>} : vector<3x32xf32>, vector<32x192xf32>, vector<3x192xf32> -> vector<3x192xf32>
    %397 = arith.addf %393, %396 : vector<3x192xf32>
    %398 = vector.broadcast %0 : vector<3x1xf32> to vector<3x192xf32>
    %399 = arith.addf %397, %398 : vector<3x192xf32>
    %c0_465 = arith.constant 0 : index
    %c6_466 = arith.constant 6 : index
    %c0_467 = arith.constant 0 : index
    %c0_468 = arith.constant 0 : index
    %400 = vector.load %arg4[%c0_465, %c6_466, %c0_467, %c0_468] : memref<1x8x3x192xf32, #tpu.memory_space<vmem>>, vector<1x1x3x192xf32>
    %401 = vector.shape_cast %400 : vector<1x1x3x192xf32> to vector<3x192xf32>
    %402 = vector.shape_cast %399 : vector<3x192xf32> to vector<1x1x3x192xf32>
    tpu.vector_store %arg4[%c0_465, %c6_466, %c0_467, %c0_468], %402 {strides = array<i32>} : memref<1x8x3x192xf32, #tpu.memory_space<vmem>>, vector<1x1x3x192xf32>,
    %cst_469 = arith.constant 0.000000e+00 : f32
    %403 = vector.broadcast %cst_469 : f32 to vector<3x192xf32>
    %c0_470 = arith.constant 0 : index
    %c7_471 = arith.constant 7 : index
    %c0_472 = arith.constant 0 : index
    %c8_473 = arith.constant 8 : index
    %404 = vector.load %arg1[%c0_470, %c7_471, %c0_472, %c8_473] : memref<1x8x32x384xf32, #tpu.memory_space<vmem>>, vector<1x1x32x192xf32>
    %405 = vector.shape_cast %404 : vector<1x1x32x192xf32> to vector<32x192xf32>
    %cst_474 = arith.constant dense<0.000000e+00> : vector<3x192xf32>
    %406 = tpu.matmul %2, %405, %cst_474 {dimension_numbers = #tpu.dot_dimension_numbers<[1], [0], [0], [1], [0, 0, 1, 1], [], []>} : vector<3x32xf32>, vector<32x192xf32>, vector<3x192xf32> -> vector<3x192xf32>
    %407 = arith.addf %403, %406 : vector<3x192xf32>
    %c0_475 = arith.constant 0 : index
    %c7_476 = arith.constant 7 : index
    %c0_477 = arith.constant 0 : index
    %c24_478 = arith.constant 24 : index
    %408 = vector.load %arg1[%c0_475, %c7_476, %c0_477, %c24_478] : memref<1x8x32x384xf32, #tpu.memory_space<vmem>>, vector<1x1x32x192xf32>
    %409 = vector.shape_cast %408 : vector<1x1x32x192xf32> to vector<32x192xf32>
    %cst_479 = arith.constant dense<0.000000e+00> : vector<3x192xf32>
    %410 = tpu.matmul %4, %409, %cst_479 {dimension_numbers = #tpu.dot_dimension_numbers<[1], [0], [0], [1], [0, 0, 1, 1], [], []>} : vector<3x32xf32>, vector<32x192xf32>, vector<3x192xf32> -> vector<3x192xf32>
    %411 = arith.addf %407, %410 : vector<3x192xf32>
    %c0_480 = arith.constant 0 : index
    %c7_481 = arith.constant 7 : index
    %c0_482 = arith.constant 0 : index
    %c40_483 = arith.constant 40 : index
    %412 = vector.load %arg1[%c0_480, %c7_481, %c0_482, %c40_483] : memref<1x8x32x384xf32, #tpu.memory_space<vmem>>, vector<1x1x32x192xf32>
    %413 = vector.shape_cast %412 : vector<1x1x32x192xf32> to vector<32x192xf32>
    %cst_484 = arith.constant dense<0.000000e+00> : vector<3x192xf32>
    %414 = tpu.matmul %6, %413, %cst_484 {dimension_numbers = #tpu.dot_dimension_numbers<[1], [0], [0], [1], [0, 0, 1, 1], [], []>} : vector<3x32xf32>, vector<32x192xf32>, vector<3x192xf32> -> vector<3x192xf32>
    %415 = arith.addf %411, %414 : vector<3x192xf32>
    %c0_485 = arith.constant 0 : index
    %c7_486 = arith.constant 7 : index
    %c0_487 = arith.constant 0 : index
    %c56_488 = arith.constant 56 : index
    %416 = vector.load %arg1[%c0_485, %c7_486, %c0_487, %c56_488] : memref<1x8x32x384xf32, #tpu.memory_space<vmem>>, vector<1x1x32x192xf32>
    %417 = vector.shape_cast %416 : vector<1x1x32x192xf32> to vector<32x192xf32>
    %cst_489 = arith.constant dense<0.000000e+00> : vector<3x192xf32>
    %418 = tpu.matmul %8, %417, %cst_489 {dimension_numbers = #tpu.dot_dimension_numbers<[1], [0], [0], [1], [0, 0, 1, 1], [], []>} : vector<3x32xf32>, vector<32x192xf32>, vector<3x192xf32> -> vector<3x192xf32>
    %419 = arith.addf %415, %418 : vector<3x192xf32>
    %c0_490 = arith.constant 0 : index
    %c7_491 = arith.constant 7 : index
    %c0_492 = arith.constant 0 : index
    %c72_493 = arith.constant 72 : index
    %420 = vector.load %arg1[%c0_490, %c7_491, %c0_492, %c72_493] : memref<1x8x32x384xf32, #tpu.memory_space<vmem>>, vector<1x1x32x192xf32>
    %421 = vector.shape_cast %420 : vector<1x1x32x192xf32> to vector<32x192xf32>
    %cst_494 = arith.constant dense<0.000000e+00> : vector<3x192xf32>
    %422 = tpu.matmul %10, %421, %cst_494 {dimension_numbers = #tpu.dot_dimension_numbers<[1], [0], [0], [1], [0, 0, 1, 1], [], []>} : vector<3x32xf32>, vector<32x192xf32>, vector<3x192xf32> -> vector<3x192xf32>
    %423 = arith.addf %419, %422 : vector<3x192xf32>
    %c0_495 = arith.constant 0 : index
    %c7_496 = arith.constant 7 : index
    %c0_497 = arith.constant 0 : index
    %c88_498 = arith.constant 88 : index
    %424 = vector.load %arg1[%c0_495, %c7_496, %c0_497, %c88_498] : memref<1x8x32x384xf32, #tpu.memory_space<vmem>>, vector<1x1x32x192xf32>
    %425 = vector.shape_cast %424 : vector<1x1x32x192xf32> to vector<32x192xf32>
    %cst_499 = arith.constant dense<0.000000e+00> : vector<3x192xf32>
    %426 = tpu.matmul %12, %425, %cst_499 {dimension_numbers = #tpu.dot_dimension_numbers<[1], [0], [0], [1], [0, 0, 1, 1], [], []>} : vector<3x32xf32>, vector<32x192xf32>, vector<3x192xf32> -> vector<3x192xf32>
    %427 = arith.addf %423, %426 : vector<3x192xf32>
    %c0_500 = arith.constant 0 : index
    %c7_501 = arith.constant 7 : index
    %c0_502 = arith.constant 0 : index
    %c104_503 = arith.constant 104 : index
    %428 = vector.load %arg1[%c0_500, %c7_501, %c0_502, %c104_503] : memref<1x8x32x384xf32, #tpu.memory_space<vmem>>, vector<1x1x32x192xf32>
    %429 = vector.shape_cast %428 : vector<1x1x32x192xf32> to vector<32x192xf32>
    %cst_504 = arith.constant dense<0.000000e+00> : vector<3x192xf32>
    %430 = tpu.matmul %14, %429, %cst_504 {dimension_numbers = #tpu.dot_dimension_numbers<[1], [0], [0], [1], [0, 0, 1, 1], [], []>} : vector<3x32xf32>, vector<32x192xf32>, vector<3x192xf32> -> vector<3x192xf32>
    %431 = arith.addf %427, %430 : vector<3x192xf32>
    %c0_505 = arith.constant 0 : index
    %c7_506 = arith.constant 7 : index
    %c0_507 = arith.constant 0 : index
    %c120_508 = arith.constant 120 : index
    %432 = vector.load %arg1[%c0_505, %c7_506, %c0_507, %c120_508] : memref<1x8x32x384xf32, #tpu.memory_space<vmem>>, vector<1x1x32x192xf32>
    %433 = vector.shape_cast %432 : vector<1x1x32x192xf32> to vector<32x192xf32>
    %cst_509 = arith.constant dense<0.000000e+00> : vector<3x192xf32>
    %434 = tpu.matmul %16, %433, %cst_509 {dimension_numbers = #tpu.dot_dimension_numbers<[1], [0], [0], [1], [0, 0, 1, 1], [], []>} : vector<3x32xf32>, vector<32x192xf32>, vector<3x192xf32> -> vector<3x192xf32>
    %435 = arith.addf %431, %434 : vector<3x192xf32>
    %c0_510 = arith.constant 0 : index
    %c7_511 = arith.constant 7 : index
    %c0_512 = arith.constant 0 : index
    %c136_513 = arith.constant 136 : index
    %436 = vector.load %arg1[%c0_510, %c7_511, %c0_512, %c136_513] : memref<1x8x32x384xf32, #tpu.memory_space<vmem>>, vector<1x1x32x192xf32>
    %437 = vector.shape_cast %436 : vector<1x1x32x192xf32> to vector<32x192xf32>
    %cst_514 = arith.constant dense<0.000000e+00> : vector<3x192xf32>
    %438 = tpu.matmul %18, %437, %cst_514 {dimension_numbers = #tpu.dot_dimension_numbers<[1], [0], [0], [1], [0, 0, 1, 1], [], []>} : vector<3x32xf32>, vector<32x192xf32>, vector<3x192xf32> -> vector<3x192xf32>
    %439 = arith.addf %435, %438 : vector<3x192xf32>
    %c0_515 = arith.constant 0 : index
    %c7_516 = arith.constant 7 : index
    %c0_517 = arith.constant 0 : index
    %c152_518 = arith.constant 152 : index
    %440 = vector.load %arg1[%c0_515, %c7_516, %c0_517, %c152_518] : memref<1x8x32x384xf32, #tpu.memory_space<vmem>>, vector<1x1x32x192xf32>
    %441 = vector.shape_cast %440 : vector<1x1x32x192xf32> to vector<32x192xf32>
    %cst_519 = arith.constant dense<0.000000e+00> : vector<3x192xf32>
    %442 = tpu.matmul %20, %441, %cst_519 {dimension_numbers = #tpu.dot_dimension_numbers<[1], [0], [0], [1], [0, 0, 1, 1], [], []>} : vector<3x32xf32>, vector<32x192xf32>, vector<3x192xf32> -> vector<3x192xf32>
    %443 = arith.addf %439, %442 : vector<3x192xf32>
    %c0_520 = arith.constant 0 : index
    %c7_521 = arith.constant 7 : index
    %c0_522 = arith.constant 0 : index
    %c168_523 = arith.constant 168 : index
    %444 = vector.load %arg1[%c0_520, %c7_521, %c0_522, %c168_523] : memref<1x8x32x384xf32, #tpu.memory_space<vmem>>, vector<1x1x32x192xf32>
    %445 = vector.shape_cast %444 : vector<1x1x32x192xf32> to vector<32x192xf32>
    %cst_524 = arith.constant dense<0.000000e+00> : vector<3x192xf32>
    %446 = tpu.matmul %22, %445, %cst_524 {dimension_numbers = #tpu.dot_dimension_numbers<[1], [0], [0], [1], [0, 0, 1, 1], [], []>} : vector<3x32xf32>, vector<32x192xf32>, vector<3x192xf32> -> vector<3x192xf32>
    %447 = arith.addf %443, %446 : vector<3x192xf32>
    %c0_525 = arith.constant 0 : index
    %c7_526 = arith.constant 7 : index
    %c0_527 = arith.constant 0 : index
    %c184_528 = arith.constant 184 : index
    %448 = vector.load %arg1[%c0_525, %c7_526, %c0_527, %c184_528] : memref<1x8x32x384xf32, #tpu.memory_space<vmem>>, vector<1x1x32x192xf32>
    %449 = vector.shape_cast %448 : vector<1x1x32x192xf32> to vector<32x192xf32>
    %cst_529 = arith.constant dense<0.000000e+00> : vector<3x192xf32>
    %450 = tpu.matmul %24, %449, %cst_529 {dimension_numbers = #tpu.dot_dimension_numbers<[1], [0], [0], [1], [0, 0, 1, 1], [], []>} : vector<3x32xf32>, vector<32x192xf32>, vector<3x192xf32> -> vector<3x192xf32>
    %451 = arith.addf %447, %450 : vector<3x192xf32>
    %452 = vector.broadcast %0 : vector<3x1xf32> to vector<3x192xf32>
    %453 = arith.addf %451, %452 : vector<3x192xf32>
    %c0_530 = arith.constant 0 : index
    %c7_531 = arith.constant 7 : index
    %c0_532 = arith.constant 0 : index
    %c0_533 = arith.constant 0 : index
    %454 = vector.load %arg4[%c0_530, %c7_531, %c0_532, %c0_533] : memref<1x8x3x192xf32, #tpu.memory_space<vmem>>, vector<1x1x3x192xf32>
    %455 = vector.shape_cast %454 : vector<1x1x3x192xf32> to vector<3x192xf32>
    %456 = vector.shape_cast %453 : vector<3x192xf32> to vector<1x1x3x192xf32>
    tpu.vector_store %arg4[%c0_530, %c7_531, %c0_532, %c0_533], %456 {strides = array<i32>} : memref<1x8x3x192xf32, #tpu.memory_space<vmem>>, vector<1x1x3x192xf32>,
    return
  }
  func.func @transform_0(%arg0: i32) -> (i32, i32, i32, i32) {
    %c0_i32 = arith.constant 0 : i32
    %c0_i32_0 = arith.constant 0 : i32
    %c0_i32_1 = arith.constant 0 : i32
    %c0_i32_2 = arith.constant 0 : i32
    return %arg0, %c0_i32, %c0_i32_0, %c0_i32_1 : i32, i32, i32, i32
  }
  func.func @transform_1(%arg0: i32) -> (i32, i32, i32) {
    %c0_i32 = arith.constant 0 : i32
    %c0_i32_0 = arith.constant 0 : i32
    %c0_i32_1 = arith.constant 0 : i32
    %c0_i32_2 = arith.constant 0 : i32
    return %c0_i32, %c0_i32_0, %c0_i32_1 : i32, i32, i32
  }
  func.func @transform_2(%arg0: i32) -> (i32, i32) {
    %c0_i32 = arith.constant 0 : i32
    %c0_i32_0 = arith.constant 0 : i32
    %c0_i32_1 = arith.constant 0 : i32
    return %c0_i32, %c0_i32_0 : i32, i32
  }
  func.func @transform_3(%arg0: i32) -> (i32, i32, i32, i32) {
    %c0_i32 = arith.constant 0 : i32
    %c0_i32_0 = arith.constant 0 : i32
    %c0_i32_1 = arith.constant 0 : i32
    %c0_i32_2 = arith.constant 0 : i32
    return %arg0, %c0_i32, %c0_i32_0, %c0_i32_1 : i32, i32, i32, i32
  }
}

</mosaic_0001>

<bundles_post_ra>
// kernel: tpu_custom_call.1
= control target key start
LH: loop header
LB: loop body
LE: loop exit
PB: predicated region body
PF: predicated region fallthrough
CT: control target
= control target key end

     0   :  { %8 = vsyncpa [#allocation3], 0  ;;  %s14636_s0 = inlined_call_operand.hbm [shape: f32[2,8,32,384], index: 0, kind: input, shape index: {}]   ;;  %s14637_s1 = inlined_call_operand.hbm [shape: f32[12,3,32], index: 1, kind: input, shape index: {}]   ;;  %s14638_s2 = inlined_call_operand.vmem [shape: f32[3,1], index: 2, kind: input, shape index: {}]   ;;  %s14639_s3 = inlined_call_operand.vmem [shape: f32[2,8,3,192], index: 3, kind: output, shape index: {}]  }
   0x1   :  { %10 = vsyncpa [#allocation3 + $0x1], 0 }
   0x2   :  { %11 = vsyncpa [#allocation5], 0  ;;  %s11287_s12 = smov 0   ;;  %s11289_s13 = smov 0  }
   0x3   :  { %s11291_s14 = smov 0   ;;  %s11293_s15 = smov 0  }
   0x4 LB: > { %s11306_s16 = sadd.s32 4294967295, %s11249_s15   ;;  %p37_p0 = scmp.ne.s32.totalorder %s11241_s13, %s11237_s12  ;;  %s11249_s15 = sphi %s11293_s15, %s14656_s15   ;;  %s11245_s14 = sphi %s11291_s14, %s14655_s14   ;;  %s11241_s13 = sphi %s11289_s13, %s14654_s13   ;;  %s11237_s12 = sphi %s11287_s12, %s14653_s12  }
   0x5   : > { %p14640_p1 = scmp.eq.s32.totalorder %s11306_s16, 0  ;;  %p10799_p2 = scmp.ge.s32.totalorder %s11249_s15, 1 }
   0x6   : > { %p116_p3 = scmp.lt.s32.totalorder %s11249_s15, 3  ;;  %s11251_s19 = smov [#allocation4]  }
   0x7   : > { %p11314_p4 = por %p14640_p1, %p37_p0  ;;  %s128_s20 = sshll.u32 %s11251_s19, 4  ;;  %s129_s20 = int_to_ptr.vmem [resolvable:$true] %s128_s20 }
   0x8   : > { %p11318_p5 = pnand %p10799_p2, %p116_p3  ;;  %s11331_s22 = sadd.s32 1, %s11249_s15  }
   0x9   : > { %s14643_s17 = scalar_select %p11314_p4, 1, 0 }
   0xa   : > { %s14644_s18 = scalar_select %p11318_p5, 1, 0 }
   0xb   : > { %p11062_p6 = pneg %p11318_p5  ;;  %s24_s23 = sadd.s32 1, %s11245_s14 }
   0xc   : > { %s21_s24 = ssub.s32 %s11249_s15, %s11331_s22  ;;  %s11168_s25 = scalar_lea.vmem %s129_s20, 768 }
   0xd   : > { %p11326_p7 = pnand %p11062_p6, %p14640_p1  ;;  %p11169_p9 = scmp.ne.s32.totalorder %s129_s20, %s11168_s25 }
   0xe   : > { %p11176_p12 = scmp.lt.s32.totalorder %s129_s20, %s129_s20  ;;  %p11177_p13 = scmp.lt.s32.totalorder %s11168_s25, %s11168_s25 }
   0xf   : > { %p11159_p8 = pneg %p11326_p7 }
  0x10   : > { %p11178_p0 = por %p11177_p13, %p11176_p12 }
  0x11   : > { %p11171_p10 = pnand %p11169_p9, %p11159_p8 }
  0x13   : > { %p11172_p11 = pneg %p11171_p10 }
  0x15   : > { %p11179_p2 = pnand %p11178_p0, %p11172_p11 }
  0x17   : > { %11182 = shalt.err (!%p11179_p2)
}
  0x18   : > { %s11252_s26 = smov 64   ;;  %s11253_s27 = smov 4  }
  0x19   : > { %11065 = dma.hbm_to_vmem [thread:$0]  (!%p11326_p7), %s14637_s1, 768, %s129_s20, [#allocation5], %s11252_s26, %s11252_s26, %s11253_s27  }
  0x1a   : > { %p22_p3 = scmp.eq.s32.totalorder %s21_s24, 0  ;;  %p31_p6 = scmp.ne.s32.totalorder %s11245_s14, %s11241_s13 }
  0x1b   : > { %p32_p8 = scmp.eq.s32.totalorder %s11249_s15, 0  ;;  %p11071_p9 = scmp.lt.s32.totalorder %s11249_s15, 2 }
  0x1c   : > { %s11348_s30 = scalar_select %p22_p3, %s11245_s14, %s24_s23  }
  0x1d   : > { %p33_p10 = por %p32_p8, %p31_p6  ;;  %s145_s4 = sand.u32 1, %s11245_s14  }
  0x1e   : > { %s11053_s5 = smul.u32 768, %s145_s4  ;;  %s11363_s19 = scalar_lea.sflag [#allocation3], %s145_s4 }
  0x1f   : > { %s11054_s6 = smul.u32 12288, %s11249_s15  ;;  %p11352_p11 = pnand %p11071_p9, %p33_p10 }
  0x20   : > { %s149_s11 = scalar_lea.vmem [#allocation2], %s11053_s5  ;;  %s11188_s23 = scalar_lea.hbm %s14636_s0, 24576 }
  0x21   : > { %s11359_s10 = scalar_lea.hbm %s14636_s0, %s11054_s6  ;;  %s156_s12 = sshll.u32 %s149_s11, 4  ;;  %s11361_s12 = int_to_ptr.vmem [resolvable:$true] %s156_s12 }
  0x22   : > { %s11183_s15 = scalar_lea.hbm %s11359_s10, 12288  ;;  %p11185_p12 = pneg %p11352_p11 }
  0x23   : > { %p11184_p7 = scmp.ne.s32.totalorder %s11359_s10, %s11183_s15  ;;  %p11189_p2 = scmp.lt.s32.totalorder %s11359_s10, %s14636_s0 }
  0x24   : > { %p11190_p3 = scmp.lt.s32.totalorder %s11188_s23, %s11183_s15 }
  0x25   : > { %p11186_p13 = pnand %p11185_p12, %p11184_p7 }
  0x26   : > { %p11191_p6 = por %p11190_p3, %p11189_p2 }
  0x27   : > { %p11187_p0 = pneg %p11186_p13 }
  0x29   : > { %p11192_p8 = pnand %p11191_p6, %p11187_p0 }
  0x2b   : > { %11195 = shalt.err (!%p11192_p8)
}
  0x2c   : > { %s11196_s26 = scalar_lea.vmem %s11361_s12, 12288  ;;  %s11254_s27 = smov [#allocation2]  }
  0x2d   : > { %p11197_p9 = scmp.ne.s32.totalorder %s11361_s12, %s11196_s26  ;;  %s11201_s28 = sshll.u32 %s11254_s27, 4  ;;  %s11202_s28 = int_to_ptr.vmem [resolvable:$false] %s11201_s28 }
  0x2e   : > { %s11203_s29 = scalar_lea.vmem %s11202_s28, 24576  ;;  %p11204_p13 = scmp.lt.s32.totalorder %s11361_s12, %s11202_s28 }
  0x2f   : > { %p11199_p10 = pnand %p11197_p9, %p11185_p12  ;;  %p11205_p1 = scmp.lt.s32.totalorder %s11203_s29, %s11196_s26 }
  0x31   : > { %p11200_p7 = pneg %p11199_p10  ;;  %p11206_p4 = por %p11205_p1, %p11204_p13 }
  0x33   : > { %p11207_p5 = pnand %p11206_p4, %p11200_p7 }
  0x35   : > { %11210 = shalt.err (!%p11207_p5)
}
  0x36   : > { %s11255_s4 = smov 384   ;;  %s11256_s5 = smov 24  }
  0x37   : > { %11069 = dma.hbm_to_vmem [thread:$0]  (!%p11352_p11), %s11359_s10, 12288, %s11361_s12, %s11363_s19, %s11255_s4, %s11255_s4, %s11256_s5  }
  0x38   : > { %p14647_p12 = scmp.ne.s32.totalorder %s14644_s18, 0 }
  0x39   : > { %s170_s6 = sand.u32 (!%p14647_p12), 1, %s11241_s13   ;;  %p14648_p1 = scmp.ne.s32.totalorder (!%p14647_p12), %s14643_s17, 0 }
  0x3a   : > { %168 = sbr.rel (%p14647_p12) target bundleno = 2185 (0x889), region = 32  ;;  %s171_s9 = scalar_lea.sflag (!%p14647_p12), [#allocation3], %s170_s6 }
  0x3b   : > { %s11055_s8 = smul.u32 (!%p14647_p12), 768, %s170_s6 }
  0x3d   : > { %s11387_s11 = scalar_lea.vmem (!%p14647_p12), [#allocation2], %s11055_s8 }
  0x3f   : > { %11228 = dma.done.wait (%p14648_p1), %s171_s9, 12288  }
  0x40   : > { %11230 = vsyncadd (%p14648_p1), %s171_s9, 4294955008  ;;  %p14649_p4 = scmp.eq.s32.totalorder %s11306_s16, 0 }
  0x42   : > { %11232 = dma.done.wait (%p14649_p4), [#allocation5], 768   ;;  %p14650_p5 = pmov %p14649_p4 }
  0x43   : > { %v11398_v0 = vld [vmem:[%s11387_s11 + $0x18] sm:$0xff]  ;;  %v11401_v1 = vld [vmem:[%s11387_s11] sm:$0xff]  ;;  %s11257_s17 = smov 104   ;;  %v11411_v3 = vld [vmem:[%s11387_s11 + $0x8] sm:$0xff]  ;;  %s11258_s18 = smov 120   ;;  %v11260_v8 = vmov 0.0  }
  0x44   : > { %11234 = vsyncadd (%p14650_p5), [#allocation5], 4294966528  ;;  %250 = vrot.lane.b32.xlu1 %v11398_v0, %s11257_s17  ;;  %246 = vrot.lane.b32.xlu0 %v11401_v1, %s11257_s17  ;;  %v11408_v2 = vld [vmem:[%s11387_s11 + $0x20] sm:$0xff]  ;;  %v11418_v4 = vld [vmem:[%s11387_s11 + $0x38] sm:$0xff]  ;;  %s11259_s7 = smov 88   ;;  %s11261_s10 = smov 72  }
  0x45   : > { %v11421_v5 = vld [vmem:[%s11387_s11 + $0x30] sm:$0xff]  ;;  %v11431_v7 = vld [vmem:[%s11387_s11 + $0x48] sm:$0xff]  ;;  %343 = vmatprep.mubr.f32.mxu0 %v11260_v8  ;;  %446 = vmatprep.mubr.f32.mxu1 %v11260_v8  ;;  %s11262_s12 = smov 56   ;;  %v11510_v11 = vld [vmem:[%s11387_s11 + $0x40] sm:$0xff]  ;;  %s11263_s19 = smov 40   ;;  %v11264_v13 = vmov 0  }
  0x46   : > { %v11428_v6 = vld [vmem:[%s11387_s11 + $0x50] sm:$0xff]  ;;  %v11499_v10 = vld [vmem:[%s11387_s11 + $0x28] sm:$0xff]  ;;  %v11517_v12 = vld [vmem:[%s11387_s11 + $0x58] sm:$0xff]  ;;  %11120 = vset.pattern.permute.xlu0 %v11264_v13  ;;  %s11265_s15 = smov 24   ;;  %vm262_vm0 = vcmask 850944   ;;  %vm275_vm1 = vcmask 261120  }
  0x47   : > { %v11492_v9 = vld [vmem:[%s11387_s11 + $0x10] sm:$0xff]  ;;  %v11574_v27 = vld [vmem:[#allocation4 + $0x4] sm:$0x7]  ;;  %s11266_s20 = smov 8   ;;  %vm366_vm2 = vcmask 982016   ;;  %vm469_vm3 = vcmask 719872  }
  0x48   : > { %252 = vrot.lane.b32.xlu1 %v11408_v2, %s11257_s17  ;;  %248 = vrot.lane.b32.xlu0 %v11411_v3, %s11257_s17  ;;  %v11597_v40 = vld [vmem:[#allocation4] sm:$0x7]  ;;  %v11622_v53 = vld [vmem:[#allocation4 + $0x8] sm:$0x7]  ;;  %vm574_vm4 = vcmask 588800   ;;  %vm711_vm5 = vcmask 457728  }
  0x49   : > { %vm828_vm6 = vcmask 326656   ;;  %vm945_vm7 = vcmask 195584   ;;  %vm1062_vm8 = vcmask 64512   ;;  %p201_p11 = scmp.lt.s32.totalorder %s11306_s16, 1  ;;  %vm1582_vm9 = vcmask 1042432  }
  0x4a   : > { %vm1583_vm10 = vcmask 522244  }
  0x4b   : > { %s14658_s16 = smov (!%p201_p11, %s11306_s16), 1  ;;  %vm12307_vm11 = vmor %vm1583_vm10, %vm1582_vm9 }
  0x4c   : > { %256 = vrot.lane.b32.xlu1 %v11418_v4, %s11257_s17  ;;  %254 = vrot.lane.b32.xlu0 %v11421_v5, %s11257_s17  ;;  %s11052_s24 = sshll.u32 %s14658_s16, 6 }
  0x4d   : > { %s12305_s26 = scalar_lea.vmem %s14639_s3, %s11052_s24 }
  0x50   : > { %260 = vrot.lane.b32.xlu1 %v11428_v6, %s11257_s17  ;;  %258 = vrot.lane.b32.xlu0 %v11431_v7, %s11257_s17 }
  0x54   : > { %352 = vrot.lane.b32.xlu1 %v11411_v3, %s11258_s18  ;;  %350 = vrot.lane.b32.xlu0 %v11401_v1, %s11258_s18 }
  0x58   : > { %356 = vrot.lane.b32.xlu1 %v11408_v2, %s11258_s18  ;;  %354 = vrot.lane.b32.xlu0 %v11398_v0, %s11258_s18 }
  0x5c   : > { %360 = vrot.lane.b32.xlu1 %v11418_v4, %s11258_s18  ;;  %358 = vrot.lane.b32.xlu0 %v11421_v5, %s11258_s18 }
  0x60   : > { %364 = vrot.lane.b32.xlu1 %v11428_v6, %s11258_s18  ;;  %362 = vrot.lane.b32.xlu0 %v11431_v7, %s11258_s18 }
  0x64   : > { %455 = vrot.lane.b32.xlu1 %v11411_v3, %s11259_s7  ;;  %453 = vrot.lane.b32.xlu0 %v11401_v1, %s11259_s7 }
  0x68   : > { %459 = vrot.lane.b32.xlu1 %v11408_v2, %s11259_s7  ;;  %457 = vrot.lane.b32.xlu0 %v11398_v0, %s11259_s7 }
  0x6c   : > { %463 = vrot.lane.b32.xlu1 %v11418_v4, %s11259_s7  ;;  %461 = vrot.lane.b32.xlu0 %v11421_v5, %s11259_s7 }
  0x70   : > { %467 = vrot.lane.b32.xlu1 %v11428_v6, %s11259_s7  ;;  %465 = vrot.lane.b32.xlu0 %v11431_v7, %s11259_s7 }
  0x74   : > { %560 = vrot.lane.b32.xlu1 %v11411_v3, %s11261_s10  ;;  %558 = vrot.lane.b32.xlu0 %v11401_v1, %s11261_s10 }
  0x78   : > { %564 = vrot.lane.b32.xlu1 %v11408_v2, %s11261_s10  ;;  %562 = vrot.lane.b32.xlu0 %v11398_v0, %s11261_s10 }
  0x7c   : > { %568 = vrot.lane.b32.xlu1 %v11418_v4, %s11261_s10  ;;  %566 = vrot.lane.b32.xlu0 %v11421_v5, %s11261_s10 }
  0x80   : > { %572 = vrot.lane.b32.xlu1 %v11428_v6, %s11261_s10  ;;  %570 = vrot.lane.b32.xlu0 %v11431_v7, %s11261_s10 }
  0x84   : > { %689 = vrot.lane.b32.xlu1 %v11411_v3, %s11262_s12  ;;  %687 = vrot.lane.b32.xlu0 %v11401_v1, %s11262_s12 }
  0x88   : > { %693 = vrot.lane.b32.xlu1 %v11398_v0, %s11262_s12  ;;  %691 = vrot.lane.b32.xlu0 %v11492_v9, %s11262_s12 }
  0x8c   : > { %697 = vrot.lane.b32.xlu1 %v11499_v10, %s11262_s12  ;;  %695 = vrot.lane.b32.xlu0 %v11408_v2, %s11262_s12 }
  0x90   : > { %701 = vrot.lane.b32.xlu1 %v11418_v4, %s11262_s12  ;;  %699 = vrot.lane.b32.xlu0 %v11421_v5, %s11262_s12 }
  0x94   : > { %705 = vrot.lane.b32.xlu1 %v11431_v7, %s11262_s12  ;;  %703 = vrot.lane.b32.xlu0 %v11510_v11, %s11262_s12 }
  0x98   : > { %709 = vrot.lane.b32.xlu1 %v11517_v12, %s11262_s12  ;;  %707 = vrot.lane.b32.xlu0 %v11428_v6, %s11262_s12 }
  0x9c   : > { %806 = vrot.lane.b32.xlu1 %v11411_v3, %s11263_s19  ;;  %804 = vrot.lane.b32.xlu0 %v11401_v1, %s11263_s19 }
  0xa0   : > { %810 = vrot.lane.b32.xlu1 %v11398_v0, %s11263_s19  ;;  %808 = vrot.lane.b32.xlu0 %v11492_v9, %s11263_s19 }
  0xa4   : > { %814 = vrot.lane.b32.xlu1 %v11499_v10, %s11263_s19  ;;  %812 = vrot.lane.b32.xlu0 %v11408_v2, %s11263_s19 }
  0xa8   : > { %818 = vrot.lane.b32.xlu1 %v11418_v4, %s11263_s19  ;;  %816 = vrot.lane.b32.xlu0 %v11421_v5, %s11263_s19 }
  0xac   : > { %822 = vrot.lane.b32.xlu1 %v11431_v7, %s11263_s19  ;;  %820 = vrot.lane.b32.xlu0 %v11510_v11, %s11263_s19 }
  0xb0   : > { %826 = vrot.lane.b32.xlu1 %v11517_v12, %s11263_s19  ;;  %824 = vrot.lane.b32.xlu0 %v11428_v6, %s11263_s19 }
  0xb4   : > { %923 = vrot.lane.b32.xlu1 %v11411_v3, %s11265_s15  ;;  %921 = vrot.lane.b32.xlu0 %v11401_v1, %s11265_s15 }
  0xb6   : > { %v251_v14 = vpop.permute.xlu1 %250  ;;  %v247_v15 = vpop.permute.xlu0 %246 }
  0xb8   : > { %927 = vrot.lane.b32.xlu1 %v11398_v0, %s11265_s15  ;;  %925 = vrot.lane.b32.xlu0 %v11492_v9, %s11265_s15 }
  0xba   : > { %v253_v16 = vpop.permute.xlu1 %252  ;;  %v249_v17 = vpop.permute.xlu0 %248 }
  0xbb   : > { %v264_v26 = vsel %vm262_vm0, %v251_v14, %v253_v16  ;;  %v263_v29 = vsel %vm262_vm0, %v247_v15, %v249_v17 }
  0xbc   : > { %931 = vrot.lane.b32.xlu1 %v11499_v10, %s11265_s15  ;;  %929 = vrot.lane.b32.xlu0 %v11408_v2, %s11265_s15 }
  0xbe   : > { %v257_v18 = vpop.permute.xlu1 %256  ;;  %v255_v19 = vpop.permute.xlu0 %254 }
  0xbf   : > { %v265_v24 = vsel %vm262_vm0, %v255_v19, %v257_v18 }
  0xc0   : > { %935 = vrot.lane.b32.xlu1 %v11418_v4, %s11265_s15  ;;  %933 = vrot.lane.b32.xlu0 %v11421_v5, %s11265_s15 }
  0xc2   : > { %v261_v20 = vpop.permute.xlu1 %260  ;;  %v259_v21 = vpop.permute.xlu0 %258 }
  0xc3   : > { %303 = vmatprep.subr.mxu0 %v261_v20  ;;  %v266_v22 = vsel %vm262_vm0, %v259_v21, %v261_v20 }
  0xc4   : > { %939 = vrot.lane.b32.xlu1 %v11431_v7, %s11265_s15  ;;  %937 = vrot.lane.b32.xlu0 %v11510_v11, %s11265_s15 }
  0xc5   : > { %304 = vmatpush1.msra.mxu0 %v266_v22 }
  0xc6   : > { %305 = vmatprep.subr.mxu0 %v257_v18  ;;  %v353_v23 = vpop.permute.xlu1 %352  ;;  %v351_v25 = vpop.permute.xlu0 %350 }
  0xc7   : > { %306 = vmatpush1.msra.mxu0 %v265_v24  ;;  %v367_v41 = vsel %vm366_vm2, %v351_v25, %v353_v23 }
  0xc8   : > { %307 = vmatprep.subr.mxu0 %v253_v16  ;;  %943 = vrot.lane.b32.xlu1 %v11517_v12, %s11265_s15 }
  0xc9   : > { %941 = vrot.lane.b32.xlu0 %v11428_v6, %s11265_s15  ;;  %308 = vmatpush1.msra.mxu0 %v264_v26 }
  0xca   : > { %309 = vmatprep.subr.mxu0 %v249_v17  ;;  %v357_v28 = vpop.permute.xlu1 %356  ;;  %v355_v30 = vpop.permute.xlu0 %354 }
  0xcb   : > { %310 = vmatpush1.msra.mxu0 %v263_v29  ;;  %v368_v39 = vsel %vm366_vm2, %v355_v30, %v357_v28 }
  0xcc   : > { %1040 = vrot.lane.b32.xlu1 %v11411_v3, %s11266_s20  ;;  %10807 = vmatmul.mubr.msk.f32.vlgmr.msra.gmra.mxu0 %vm275_vm1, %v11574_v27 }
  0xcd   : > { %1038 = vrot.lane.b32.xlu0 %v11401_v1, %s11266_s20  ;;  %549 = vmatprep.mubr.f32.mxu0 %v11260_v8 }
  0xce   : > { %v361_v31 = vpop.permute.xlu1 %360  ;;  %v359_v32 = vpop.permute.xlu0 %358 }
  0xcf   : > { %v369_v36 = vsel %vm366_vm2, %v359_v32, %v361_v31 }
  0xd0   : > { %1044 = vrot.lane.b32.xlu1 %v11398_v0, %s11266_s20 }
  0xd1   : > { %1042 = vrot.lane.b32.xlu0 %v11492_v9, %s11266_s20 }
  0xd2   : > { %v365_v33 = vpop.permute.xlu1 %364  ;;  %v363_v34 = vpop.permute.xlu0 %362 }
  0xd3   : > { %406 = vmatprep.subr.mxu1 %v365_v33  ;;  %v370_v35 = vsel %vm366_vm2, %v363_v34, %v365_v33  ;;  %v11686_v33 = vld [vmem:[#allocation4 + $0x10] sm:$0x7] }
  0xd4   : > { %1048 = vrot.lane.b32.xlu1 %v11499_v10, %s11266_s20  ;;  %407 = vmatpush1.msra.mxu1 %v370_v35 }
  0xd5   : > { %1046 = vrot.lane.b32.xlu0 %v11408_v2, %s11266_s20  ;;  %408 = vmatprep.subr.mxu1 %v361_v31 }
  0xd6   : > { %v456_v37 = vpop.permute.xlu1 %455  ;;  %409 = vmatpush1.msra.mxu1 %v369_v36  ;;  %v454_v38 = vpop.permute.xlu0 %453 }
  0xd7   : > { %410 = vmatprep.subr.mxu1 %v357_v28  ;;  %v470_v54 = vsel %vm469_vm3, %v454_v38, %v456_v37 }
  0xd8   : > { %1052 = vrot.lane.b32.xlu1 %v11418_v4, %s11266_s20  ;;  %411 = vmatpush1.msra.mxu1 %v368_v39 }
  0xd9   : > { %1050 = vrot.lane.b32.xlu0 %v11421_v5, %s11266_s20  ;;  %412 = vmatprep.subr.mxu1 %v353_v23  ;;  %v11647_v5 = vld [vmem:[#allocation4 + $0xc] sm:$0x7] }
  0xda   : > { %v460_v42 = vpop.permute.xlu1 %459  ;;  %413 = vmatpush1.msra.mxu1 %v367_v41  ;;  %v458_v43 = vpop.permute.xlu0 %457 }
  0xdb   : > { %10808 = vmatmul.mubr.msk.f32.vlgmr.msra.gmra.mxu1 %vm275_vm1, %v11597_v40  ;;  %v471_v52 = vsel %vm469_vm3, %v458_v43, %v460_v42 }
  0xdc   : > { %1056 = vrot.lane.b32.xlu1 %v11431_v7, %s11266_s20  ;;  %654 = vmatprep.mubr.f32.mxu1 %v11260_v8 }
  0xdd   : > { %1054 = vrot.lane.b32.xlu0 %v11510_v11, %s11266_s20 }
  0xde   : > { %v464_v44 = vpop.permute.xlu1 %463  ;;  %v462_v45 = vpop.permute.xlu0 %461 }
  0xdf   : > { %v472_v49 = vsel %vm469_vm3, %v462_v45, %v464_v44 }
  0xe0   : > { %1060 = vrot.lane.b32.xlu1 %v11517_v12, %s11266_s20 }
  0xe1   : > { %1058 = vrot.lane.b32.xlu0 %v11428_v6, %s11266_s20 }
  0xe2   : > { %v468_v46 = vpop.permute.xlu1 %467  ;;  %v466_v47 = vpop.permute.xlu0 %465 }
  0xe3   : > { %v473_v48 = vsel %vm469_vm3, %v466_v47, %v468_v46  ;;  %509 = vmatprep.subr.mxu0 %v468_v46  ;;  %v11728_v47 = vld [vmem:[%s11387_s11 + $0x78] sm:$0xff] }
  0xe4   : > { %1157 = vrot.lane.b32.xlu1 %v11492_v9, %s11258_s18  ;;  %510 = vmatpush1.msra.mxu0 %v473_v48 }
  0xe5   : > { %1155 = vrot.lane.b32.xlu0 %v11411_v3, %s11258_s18  ;;  %511 = vmatprep.subr.mxu0 %v464_v44 }
  0xe6   : > { %v561_v50 = vpop.permute.xlu1 %560  ;;  %v559_v51 = vpop.permute.xlu0 %558  ;;  %512 = vmatpush1.msra.mxu0 %v472_v49 }
  0xe7   : > { %513 = vmatprep.subr.mxu0 %v460_v42  ;;  %v575_v7 = vsel %vm574_vm4, %v559_v51, %v561_v50  ;;  %v11736_v51 = vld [vmem:[%s11387_s11 + $0x80] sm:$0xff] }
  0xe8   : > { %1161 = vrot.lane.b32.xlu1 %v11499_v10, %s11258_s18  ;;  %514 = vmatpush1.msra.mxu0 %v471_v52  ;;  %v11740_v52 = vld [vmem:[#allocation4 + $0x14] sm:$0x7] }
  0xe9   : > { %1159 = vrot.lane.b32.xlu0 %v11408_v2, %s11258_s18  ;;  %515 = vmatprep.subr.mxu0 %v456_v37 }
  0xea   : > { %v565_v55 = vpop.permute.xlu1 %564  ;;  %v563_v56 = vpop.permute.xlu0 %562  ;;  %516 = vmatpush1.msra.mxu0 %v470_v54 }
  0xeb   : > { %10809 = vmatmul.mubr.msk.f32.vlgmr.msra.gmra.mxu0 %vm275_vm1, %v11622_v53  ;;  %v576_v1 = vsel %vm574_vm4, %v563_v56, %v565_v55 }
  0xec   : > { %1165 = vrot.lane.b32.xlu1 %v11510_v11, %s11258_s18  ;;  %795 = vmatprep.mubr.f32.mxu0 %v11260_v8 }
  0xed   : > { %1163 = vrot.lane.b32.xlu0 %v11418_v4, %s11258_s18 }
  0xee   : > { %v569_v57 = vpop.permute.xlu1 %568  ;;  %v567_v58 = vpop.permute.xlu0 %566 }
  0xef   : > { %v577_v62 = vsel %vm574_vm4, %v567_v58, %v569_v57  ;;  %v11751_v58 = vld [vmem:[%s11387_s11 + $0x98] sm:$0xff] }
  0xf0   : > { %1169 = vrot.lane.b32.xlu1 %v11517_v12, %s11258_s18 }
  0xf1   : > { %1167 = vrot.lane.b32.xlu0 %v11428_v6, %s11258_s18 }
  0xf2   : > { %v573_v59 = vpop.permute.xlu1 %572  ;;  %v571_v60 = vpop.permute.xlu0 %570 }
  0xf3   : > { %v578_v61 = vsel %vm574_vm4, %v571_v60, %v573_v59  ;;  %614 = vmatprep.subr.mxu1 %v573_v59 }
  0xf4   : > { %1261 = vrot.lane.b32.xlu1 %v11492_v9, %s11257_s17  ;;  %615 = vmatpush1.msra.mxu1 %v578_v61  ;;  %v11757_v61 = vld [vmem:[%s11387_s11 + $0xa8] sm:$0xff] }
  0xf5   : > { %1259 = vrot.lane.b32.xlu0 %v11411_v3, %s11257_s17  ;;  %616 = vmatprep.subr.mxu1 %v569_v57  ;;  %v11744_v57 = vld [vmem:[%s11387_s11 + $0x90] sm:$0xff] }
  0xf6   : > { %v690_v63 = vpop.permute.xlu1 %689  ;;  %v688_v0 = vpop.permute.xlu0 %687  ;;  %617 = vmatpush1.msra.mxu1 %v577_v62  ;;  %v11762_v62 = vld [vmem:[%s11387_s11 + $0xb0] sm:$0xff] }
  0xf7   : > { %618 = vmatprep.subr.mxu1 %v565_v55  ;;  %v712_v34 = vsel %vm711_vm5, %v688_v0, %v690_v63 }
  0xf8   : > { %1265 = vrot.lane.b32.xlu1 %v11499_v10, %s11257_s17  ;;  %619 = vmatpush1.msra.mxu1 %v576_v1 }
  0xf9   : > { %1263 = vrot.lane.b32.xlu0 %v11408_v2, %s11257_s17  ;;  %620 = vmatprep.subr.mxu1 %v561_v50 }
  0xfa   : > { %v694_v13 = vpop.permute.xlu1 %693  ;;  %v692_v14 = vpop.permute.xlu0 %691  ;;  %621 = vmatpush1.msra.mxu1 %v575_v7 }
  0xfb   : > { %10810 = vmatmul.mubr.msk.f32.vlgmr.msra.gmra.mxu1 %vm275_vm1, %v11647_v5  ;;  %v713_v32 = vsel %vm711_vm5, %v690_v63, %v692_v14 }
  0xfc   : > { %1269 = vrot.lane.b32.xlu1 %v11510_v11, %s11257_s17  ;;  %912 = vmatprep.mubr.f32.mxu1 %v11260_v8 }
  0xfd   : > { %1267 = vrot.lane.b32.xlu0 %v11418_v4, %s11257_s17 }
  0xfe   : > { %v698_v15 = vpop.permute.xlu1 %697  ;;  %v696_v16 = vpop.permute.xlu0 %695 }
  0xff   : > { %v715_v30 = vsel %vm711_vm5, %v696_v16, %v698_v15  ;;  %v714_v31 = vsel %vm711_vm5, %v694_v13, %v696_v16 }
 0x100   : > { %1273 = vrot.lane.b32.xlu1 %v11517_v12, %s11257_s17 }
 0x101   : > { %1271 = vrot.lane.b32.xlu0 %v11428_v6, %s11257_s17 }
 0x102   : > { %v702_v17 = vpop.permute.xlu1 %701  ;;  %v700_v18 = vpop.permute.xlu0 %699 }
 0x103   : > { %v716_v26 = vsel %vm711_vm5, %v700_v18, %v702_v17 }
 0x104   : > { %1365 = vrot.lane.b32.xlu1 %v11492_v9, %s11259_s7 }
 0x105   : > { %1363 = vrot.lane.b32.xlu0 %v11411_v3, %s11259_s7 }
 0x106   : > { %v706_v19 = vpop.permute.xlu1 %705  ;;  %v704_v20 = vpop.permute.xlu0 %703 }
 0x107   : > { %v717_v25 = vsel %vm711_vm5, %v702_v17, %v704_v20 }
 0x108   : > { %1369 = vrot.lane.b32.xlu1 %v11499_v10, %s11259_s7 }
 0x109   : > { %1367 = vrot.lane.b32.xlu0 %v11408_v2, %s11259_s7 }
 0x10a   : > { %v710_v21 = vpop.permute.xlu1 %709  ;;  %v708_v22 = vpop.permute.xlu0 %707 }
 0x10b   : > { %v719_v23 = vsel %vm711_vm5, %v708_v22, %v710_v21  ;;  %v718_v24 = vsel %vm711_vm5, %v706_v19, %v708_v22 }
 0x10c   : > { %1373 = vrot.lane.b32.xlu1 %v11510_v11, %s11259_s7  ;;  %755 = vmatprep.subr.mxu0 %v719_v23 }
 0x10d   : > { %1371 = vrot.lane.b32.xlu0 %v11418_v4, %s11259_s7  ;;  %756 = vmatpush1.msra.mxu0 %v718_v24 }
 0x10e   : > { %v807_v28 = vpop.permute.xlu1 %806  ;;  %v805_v29 = vpop.permute.xlu0 %804  ;;  %757 = vmatprep.subr.mxu0 %v717_v25  ;;  %v11790_v25 = vld [vmem:[#allocation4 + $0x18] sm:$0x7] }
 0x10f   : > { %758 = vmatpush1.msra.mxu0 %v716_v26  ;;  %v829_v54 = vsel %vm828_vm6, %v805_v29, %v807_v28 }
 0x110   : > { %1377 = vrot.lane.b32.xlu1 %v11517_v12, %s11259_s7  ;;  %759 = vmatprep.subr.mxu0 %v715_v30 }
 0x111   : > { %1375 = vrot.lane.b32.xlu0 %v11428_v6, %s11259_s7  ;;  %760 = vmatpush1.msra.mxu0 %v714_v31 }
 0x112   : > { %v811_v35 = vpop.permute.xlu1 %810  ;;  %v809_v36 = vpop.permute.xlu0 %808  ;;  %761 = vmatprep.subr.mxu0 %v713_v32 }
 0x113   : > { %762 = vmatpush1.msra.mxu0 %v712_v34  ;;  %v830_v50 = vsel %vm828_vm6, %v807_v28, %v809_v36 }
 0x114   : > { %1469 = vrot.lane.b32.xlu1 %v11492_v9, %s11261_s10  ;;  %10811 = vmatmul.mubr.msk.f32.vlgmr.msra.gmra.mxu0 %vm275_vm1, %v11686_v33 }
 0x115   : > { %1467 = vrot.lane.b32.xlu0 %v11411_v3, %s11261_s10  ;;  %1029 = vmatprep.mubr.f32.mxu0 %v11260_v8 }
 0x116   : > { %v815_v37 = vpop.permute.xlu1 %814  ;;  %v813_v38 = vpop.permute.xlu0 %812 }
 0x117   : > { %v832_v48 = vsel %vm828_vm6, %v813_v38, %v815_v37  ;;  %v831_v49 = vsel %vm828_vm6, %v811_v35, %v813_v38 }
 0x118   : > { %1473 = vrot.lane.b32.xlu1 %v11499_v10, %s11261_s10  ;;  %v11709_v10 = vld [vmem:[%s11387_s11 + $0x60] sm:$0xff] }
 0x119   : > { %1471 = vrot.lane.b32.xlu0 %v11408_v2, %s11261_s10 }
 0x11a   : > { %v819_v39 = vpop.permute.xlu1 %818  ;;  %v817_v41 = vpop.permute.xlu0 %816 }
 0x11b   : > { %v833_v44 = vsel %vm828_vm6, %v817_v41, %v819_v39 }
 0x11c   : > { %1477 = vrot.lane.b32.xlu1 %v11510_v11, %s11261_s10  ;;  %v206_v11 = vld [vmem:[%s14638_s2] sm:$0x7] }
 0x11d   : > { %1475 = vrot.lane.b32.xlu0 %v11418_v4, %s11261_s10 }
 0x11e   : > { %v823_v9 = vpop.permute.xlu1 %822  ;;  %v821_v3 = vpop.permute.xlu0 %820 }
 0x120   : > { %1481 = vrot.lane.b32.xlu1 %v11517_v12, %s11261_s10  ;;  %v11720_v12 = vld [vmem:[%s11387_s11 + $0x68] sm:$0xff] }
 0x121   : > { %1479 = vrot.lane.b32.xlu0 %v11428_v6, %s11261_s10  ;;  %v834_v6 = vsel %vm828_vm6, %v819_v39, %v821_v3 }
 0x122   : > { %v827_v2 = vpop.permute.xlu1 %826  ;;  %v825_v42 = vpop.permute.xlu0 %824 }
 0x123   : > { %v836_v4 = vsel %vm828_vm6, %v825_v42, %v827_v2  ;;  %v835_v43 = vsel %vm828_vm6, %v823_v9, %v825_v42 }
 0x124   : > { %1603 = vrot.lane.b32.xlu1 %v11709_v10, %s11257_s17  ;;  %872 = vmatprep.subr.mxu1 %v836_v4 }
 0x125   : > { %1573 = vperm.xlu0 %11120, %v206_v11   ;;  %873 = vmatpush1.msra.mxu1 %v835_v43 }
 0x126   : > { %v11723_v45 = vpop.permute.xlu1 %923  ;;  %v11725_v46 = vpop.permute.xlu0 %921  ;;  %874 = vmatprep.subr.mxu1 %v834_v6  ;;  %v11829_v6 = vld [vmem:[#allocation4 + $0x1c] sm:$0x7] }
 0x127   : > { %875 = vmatpush1.msra.mxu1 %v833_v44  ;;  %v946_v26 = vsel %vm945_vm7, %v11725_v46, %v11723_v45 }
 0x128   : > { %1605 = vrot.lane.b32.xlu1 %v11720_v12, %s11257_s17  ;;  %876 = vmatprep.subr.mxu1 %v832_v48 }
 0x129   : > { %877 = vmatpush1.msra.mxu1 %v831_v49  ;;  %1607 = vrot.lane.b32.xlu0 %v11728_v47, %s11257_s17 }
 0x12a   : > { %v928_v55 = vpop.permute.xlu1 %927  ;;  %v926_v56 = vpop.permute.xlu0 %925  ;;  %878 = vmatprep.subr.mxu1 %v830_v50 }
 0x12b   : > { %879 = vmatpush1.msra.mxu1 %v829_v54  ;;  %v947_v24 = vsel %vm945_vm7, %v11723_v45, %v926_v56 }
 0x12c   : > { %1609 = vrot.lane.b32.xlu1 %v11736_v51, %s11257_s17  ;;  %10812 = vmatmul.mubr.msk.f32.vlgmr.msra.gmra.mxu1 %vm275_vm1, %v11740_v52 }
 0x12d   : > { %1611 = vrot.lane.b32.xlu0 %v11744_v57, %s11257_s17  ;;  %1146 = vmatprep.mubr.f32.mxu1 %v11260_v8 }
 0x12e   : > { %v932_v59 = vpop.permute.xlu1 %931  ;;  %v930_v60 = vpop.permute.xlu0 %929 }
 0x12f   : > { %v949_v21 = vsel %vm945_vm7, %v930_v60, %v932_v59  ;;  %v948_v22 = vsel %vm945_vm7, %v928_v55, %v930_v60  ;;  %v11850_v59 = vld [vmem:[%s11387_s11 + $0x70] sm:$0xff] }
 0x130   : > { %1613 = vrot.lane.b32.xlu1 %v11751_v58, %s11257_s17 }
 0x131   : > { %1615 = vrot.lane.b32.xlu0 %v11757_v61, %s11257_s17 }
 0x132   : > { %v936_v63 = vpop.permute.xlu1 %935  ;;  %v934_v0 = vpop.permute.xlu0 %933 }
 0x133   : > { %v950_v19 = vsel %vm945_vm7, %v934_v0, %v936_v63  ;;  %v11857_v0 = vld [vmem:[#allocation4 + $0x20] sm:$0x7] }
 0x134   : > { %1617 = vrot.lane.b32.xlu1 %v11762_v62, %s11257_s17 }
 0x135   : > { %1702 = vrot.lane.b32.xlu0 %v11709_v10, %s11258_s18 }
 0x136   : > { %v940_v1 = vpop.permute.xlu1 %939  ;;  %v938_v7 = vpop.permute.xlu0 %937 }
 0x137   : > { %v951_v18 = vsel %vm945_vm7, %v936_v63, %v938_v7 }
 0x138   : > { %1704 = vrot.lane.b32.xlu1 %v11720_v12, %s11258_s18 }
 0x139   : > { %1706 = vrot.lane.b32.xlu0 %v11728_v47, %s11258_s18 }
 0x13a   : > { %v944_v13 = vpop.permute.xlu1 %943 }
 0x13b   : > { %v942_v14 = vpop.permute.xlu0 %941 }
 0x13c   : > { %1708 = vrot.lane.b32.xlu1 %v11736_v51, %s11258_s18  ;;  %v953_v15 = vsel %vm945_vm7, %v942_v14, %v944_v13  ;;  %v952_v16 = vsel %vm945_vm7, %v940_v1, %v942_v14  ;;  %v11865_v14 = vld [vmem:[%s11387_s11 + $0x88] sm:$0xff] }
 0x13d   : > { %989 = vmatprep.subr.mxu0 %v953_v15  ;;  %1710 = vrot.lane.b32.xlu0 %v11744_v57, %s11258_s18 }
 0x13e   : > { %990 = vmatpush1.msra.mxu0 %v952_v16  ;;  %v1041_v17 = vpop.permute.xlu1 %1040 }
 0x13f   : > { %v1039_v20 = vpop.permute.xlu0 %1038  ;;  %991 = vmatprep.subr.mxu0 %v951_v18  ;;  %v11875_v18 = vld [vmem:[%s11387_s11 + $0xa0] sm:$0xff] }
 0x140   : > { %992 = vmatpush1.msra.mxu0 %v950_v19  ;;  %1712 = vrot.lane.b32.xlu1 %v11751_v58, %s11258_s18  ;;  %v1063_v44 = vsel %vm1062_vm8, %v1039_v20, %v1041_v17 }
 0x141   : > { %993 = vmatprep.subr.mxu0 %v949_v21  ;;  %1714 = vrot.lane.b32.xlu0 %v11757_v61, %s11258_s18 }
 0x142   : > { %994 = vmatpush1.msra.mxu0 %v948_v22  ;;  %v1045_v23 = vpop.permute.xlu1 %1044 }
 0x143   : > { %v1043_v28 = vpop.permute.xlu0 %1042  ;;  %995 = vmatprep.subr.mxu0 %v947_v24 }
 0x144   : > { %996 = vmatpush1.msra.mxu0 %v946_v26  ;;  %1716 = vrot.lane.b32.xlu1 %v11762_v62, %s11258_s18  ;;  %v1064_v43 = vsel %vm1062_vm8, %v1041_v17, %v1043_v28  ;;  %v11887_v26 = vld [vmem:[%s11387_s11 + $0xb8] sm:$0xff]  ;;  %v11891_v28 = vld [vmem:[#allocation4 + $0x24] sm:$0x7] }
 0x145   : > { %1801 = vrot.lane.b32.xlu0 %v11709_v10, %s11259_s7  ;;  %10813 = vmatmul.mubr.msk.f32.vlgmr.msra.gmra.mxu0 %vm275_vm1, %v11790_v25 }
 0x146   : > { %v1049_v29 = vpop.permute.xlu1 %1048  ;;  %1250 = vmatprep.mubr.f32.mxu0 %v11260_v8 }
 0x147   : > { %v1047_v30 = vpop.permute.xlu0 %1046 }
 0x148   : > { %1803 = vrot.lane.b32.xlu1 %v11720_v12, %s11259_s7  ;;  %v1066_v42 = vsel %vm1062_vm8, %v1047_v30, %v1049_v29  ;;  %v1065_v11 = vsel %vm1062_vm8, %v1045_v23, %v1047_v30 }
 0x149   : > { %1805 = vrot.lane.b32.xlu0 %v11728_v47, %s11259_s7 }
 0x14a   : > { %v1053_v31 = vpop.permute.xlu1 %1052 }
 0x14b   : > { %v1051_v32 = vpop.permute.xlu0 %1050 }
 0x14c   : > { %1807 = vrot.lane.b32.xlu1 %v11736_v51, %s11259_s7  ;;  %v1067_v3 = vsel %vm1062_vm8, %v1051_v32, %v1053_v31 }
 0x14d   : > { %1809 = vrot.lane.b32.xlu0 %v11744_v57, %s11259_s7 }
 0x14e   : > { %v1057_v34 = vpop.permute.xlu1 %1056 }
 0x14f   : > { %v1055_v35 = vpop.permute.xlu0 %1054 }
 0x150   : > { %1811 = vrot.lane.b32.xlu1 %v11751_v58, %s11259_s7  ;;  %v1068_v9 = vsel %vm1062_vm8, %v1053_v31, %v1055_v35 }
 0x151   : > { %1813 = vrot.lane.b32.xlu0 %v11757_v61, %s11259_s7 }
 0x152   : > { %v1061_v36 = vpop.permute.xlu1 %1060 }
 0x153   : > { %v1059_v37 = vpop.permute.xlu0 %1058 }
 0x154   : > { %1815 = vrot.lane.b32.xlu1 %v11762_v62, %s11259_s7  ;;  %v1070_v38 = vsel %vm1062_vm8, %v1059_v37, %v1061_v36  ;;  %v1069_v39 = vsel %vm1062_vm8, %v1057_v34, %v1059_v37 }
 0x155   : > { %1106 = vmatprep.subr.mxu1 %v1070_v38  ;;  %1902 = vrot.lane.b32.xlu0 %v11709_v10, %s11261_s10 }
 0x156   : > { %1107 = vmatpush1.msra.mxu1 %v1069_v39  ;;  %v1158_v41 = vpop.permute.xlu1 %1157 }
 0x157   : > { %v1156_v2 = vpop.permute.xlu0 %1155  ;;  %1108 = vmatprep.subr.mxu1 %v1068_v9 }
 0x158   : > { %1109 = vmatpush1.msra.mxu1 %v1067_v3  ;;  %1904 = vrot.lane.b32.xlu1 %v11720_v12, %s11261_s10  ;;  %v1171_v1 = vsel %vm366_vm2, %v1156_v2, %v1158_v41  ;;  %v11916_v3 = vld [vmem:[#allocation4 + $0x28] sm:$0x7] }
 0x159   : > { %1110 = vmatprep.subr.mxu1 %v1066_v42  ;;  %1906 = vrot.lane.b32.xlu0 %v11728_v47, %s11261_s10 }
 0x15a   : > { %1111 = vmatpush1.msra.mxu1 %v1065_v11  ;;  %v1162_v4 = vpop.permute.xlu1 %1161 }
 0x15b   : > { %v1160_v45 = vpop.permute.xlu0 %1159  ;;  %1112 = vmatprep.subr.mxu1 %v1064_v43 }
 0x15c   : > { %1113 = vmatpush1.msra.mxu1 %v1063_v44  ;;  %1908 = vrot.lane.b32.xlu1 %v11736_v51, %s11261_s10  ;;  %v1172_v63 = vsel %vm366_vm2, %v1160_v45, %v1162_v4 }
 0x15d   : > { %1910 = vrot.lane.b32.xlu0 %v11744_v57, %s11261_s10  ;;  %10814 = vmatmul.mubr.msk.f32.vlgmr.msra.gmra.mxu1 %vm275_vm1, %v11829_v6 }
 0x15e   : > { %v1166_v46 = vpop.permute.xlu1 %1165  ;;  %1354 = vmatprep.mubr.f32.mxu1 %v11260_v8 }
 0x15f   : > { %v1164_v48 = vpop.permute.xlu0 %1163 }
 0x160   : > { %1912 = vrot.lane.b32.xlu1 %v11751_v58, %s11261_s10  ;;  %v1173_v55 = vsel %vm366_vm2, %v1164_v48, %v1166_v46 }
 0x161   : > { %1914 = vrot.lane.b32.xlu0 %v11757_v61, %s11261_s10 }
 0x162   : > { %v1170_v49 = vpop.permute.xlu1 %1169 }
 0x163   : > { %v1168_v50 = vpop.permute.xlu0 %1167  ;;  %1210 = vmatprep.subr.mxu0 %v1170_v49 }
 0x164   : > { %v1174_v54 = vsel %vm366_vm2, %v1168_v50, %v1170_v49  ;;  %1916 = vrot.lane.b32.xlu1 %v11762_v62, %s11261_s10 }
 0x165   : > { %1211 = vmatpush1.msra.mxu0 %v1174_v54  ;;  %2027 = vrot.lane.b32.xlu0 %v11709_v10, %s11262_s12  ;;  %v11939_v54 = vld [vmem:[#allocation4 + $0x2c] sm:$0x7] }
 0x166   : > { %1212 = vmatprep.subr.mxu0 %v1166_v46  ;;  %v1262_v56 = vpop.permute.xlu1 %1261 }
 0x167   : > { %v1260_v60 = vpop.permute.xlu0 %1259  ;;  %1213 = vmatpush1.msra.mxu0 %v1173_v55 }
 0x168   : > { %1214 = vmatprep.subr.mxu0 %v1162_v4  ;;  %2029 = vrot.lane.b32.xlu1 %v11720_v12, %s11262_s12  ;;  %v1275_v29 = vsel %vm262_vm0, %v1260_v60, %v1262_v56 }
 0x169   : > { %1215 = vmatpush1.msra.mxu0 %v1172_v63  ;;  %2031 = vrot.lane.b32.xlu0 %v11850_v59, %s11262_s12 }
 0x16a   : > { %1216 = vmatprep.subr.mxu0 %v1158_v41  ;;  %v1266_v7 = vpop.permute.xlu1 %1265 }
 0x16b   : > { %v1264_v13 = vpop.permute.xlu0 %1263  ;;  %1217 = vmatpush1.msra.mxu0 %v1171_v1 }
 0x16c   : > { %2033 = vrot.lane.b32.xlu1 %v11728_v47, %s11262_s12  ;;  %10815 = vmatmul.mubr.msk.f32.vlgmr.msra.gmra.mxu0 %vm275_vm1, %v11857_v0  ;;  %v1276_v24 = vsel %vm262_vm0, %v1264_v13, %v1266_v7 }
 0x16d   : > { %2035 = vrot.lane.b32.xlu0 %v11736_v51, %s11262_s12  ;;  %1458 = vmatprep.mubr.f32.mxu0 %v11260_v8 }
 0x16e   : > { %v1270_v15 = vpop.permute.xlu1 %1269 }
 0x16f   : > { %v1268_v16 = vpop.permute.xlu0 %1267 }
 0x170   : > { %2037 = vrot.lane.b32.xlu1 %v11865_v14, %s11262_s12  ;;  %v1277_v21 = vsel %vm262_vm0, %v1268_v16, %v1270_v15 }
 0x171   : > { %2039 = vrot.lane.b32.xlu0 %v11744_v57, %s11262_s12 }
 0x172   : > { %v1274_v17 = vpop.permute.xlu1 %1273 }
 0x173   : > { %v1272_v19 = vpop.permute.xlu0 %1271  ;;  %1314 = vmatprep.subr.mxu1 %v1274_v17 }
 0x174   : > { %v1278_v20 = vsel %vm262_vm0, %v1272_v19, %v1274_v17  ;;  %2041 = vrot.lane.b32.xlu1 %v11751_v58, %s11262_s12 }
 0x175   : > { %1315 = vmatpush1.msra.mxu1 %v1278_v20  ;;  %2043 = vrot.lane.b32.xlu0 %v11875_v18, %s11262_s12 }
 0x176   : > { %1316 = vmatprep.subr.mxu1 %v1270_v15  ;;  %v1366_v22 = vpop.permute.xlu1 %1365 }
 0x177   : > { %v1364_v23 = vpop.permute.xlu0 %1363  ;;  %1317 = vmatpush1.msra.mxu1 %v1277_v21 }
 0x178   : > { %1318 = vmatprep.subr.mxu1 %v1266_v7  ;;  %2045 = vrot.lane.b32.xlu1 %v11757_v61, %s11262_s12  ;;  %v1379_v2 = vsel %vm469_vm3, %v1364_v23, %v1366_v22 }
 0x179   : > { %1319 = vmatpush1.msra.mxu1 %v1276_v24  ;;  %2047 = vrot.lane.b32.xlu0 %v11762_v62, %s11262_s12 }
 0x17a   : > { %1320 = vmatprep.subr.mxu1 %v1262_v56  ;;  %v1370_v30 = vpop.permute.xlu1 %1369 }
 0x17b   : > { %v1368_v31 = vpop.permute.xlu0 %1367  ;;  %1321 = vmatpush1.msra.mxu1 %v1275_v29 }
 0x17c   : > { %2049 = vrot.lane.b32.xlu1 %v11887_v26, %s11262_s12  ;;  %10816 = vmatmul.mubr.msk.f32.vlgmr.msra.gmra.mxu1 %vm275_vm1, %v11891_v28  ;;  %v1380_v9 = vsel %vm469_vm3, %v1368_v31, %v1370_v30 }
 0x17d   : > { %2140 = vrot.lane.b32.xlu0 %v11709_v10, %s11263_s19  ;;  %1562 = vmatprep.mubr.f32.mxu1 %v11260_v8 }
 0x17e   : > { %v1374_v32 = vpop.permute.xlu1 %1373 }
 0x17f   : > { %v1372_v34 = vpop.permute.xlu0 %1371 }
 0x180   : > { %2142 = vrot.lane.b32.xlu1 %v11720_v12, %s11263_s19  ;;  %v1381_v38 = vsel %vm469_vm3, %v1372_v34, %v1374_v32 }
 0x181   : > { %2144 = vrot.lane.b32.xlu0 %v11850_v59, %s11263_s19 }
 0x182   : > { %v1378_v35 = vpop.permute.xlu1 %1377 }
 0x183   : > { %v1376_v36 = vpop.permute.xlu0 %1375  ;;  %1418 = vmatprep.subr.mxu0 %v1378_v35 }
 0x184   : > { %v1382_v37 = vsel %vm469_vm3, %v1376_v36, %v1378_v35  ;;  %2146 = vrot.lane.b32.xlu1 %v11728_v47, %s11263_s19 }
 0x185   : > { %1419 = vmatpush1.msra.mxu0 %v1382_v37  ;;  %2148 = vrot.lane.b32.xlu0 %v11736_v51, %s11263_s19 }
 0x186   : > { %1420 = vmatprep.subr.mxu0 %v1374_v32  ;;  %v1470_v39 = vpop.permute.xlu1 %1469 }
 0x187   : > { %v1468_v41 = vpop.permute.xlu0 %1467  ;;  %1421 = vmatpush1.msra.mxu0 %v1381_v38 }
 0x188   : > { %1422 = vmatprep.subr.mxu0 %v1370_v30  ;;  %2150 = vrot.lane.b32.xlu1 %v11865_v14, %s11263_s19  ;;  %v1483_v55 = vsel %vm574_vm4, %v1468_v41, %v1470_v39 }
 0x189   : > { %1423 = vmatpush1.msra.mxu0 %v1380_v9  ;;  %2152 = vrot.lane.b32.xlu0 %v11744_v57, %s11263_s19 }
 0x18a   : > { %1424 = vmatprep.subr.mxu0 %v1366_v22  ;;  %v1474_v42 = vpop.permute.xlu1 %1473 }
 0x18b   : > { %v1472_v11 = vpop.permute.xlu0 %1471  ;;  %1425 = vmatpush1.msra.mxu0 %v1379_v2 }
 0x18c   : > { %2154 = vrot.lane.b32.xlu1 %v11751_v58, %s11263_s19  ;;  %10817 = vmatmul.mubr.msk.f32.vlgmr.msra.gmra.mxu0 %vm275_vm1, %v11916_v3  ;;  %v1484_v50 = vsel %vm574_vm4, %v1472_v11, %v1474_v42 }
 0x18d   : > { %2156 = vrot.lane.b32.xlu0 %v11875_v18, %s11263_s19  ;;  %1695 = vmatprep.mubr.f32.mxu0 %v11260_v8 }
 0x18e   : > { %v1478_v4 = vpop.permute.xlu1 %1477 }
 0x18f   : > { %v1476_v43 = vpop.permute.xlu0 %1475 }
 0x190   : > { %2158 = vrot.lane.b32.xlu1 %v11757_v61, %s11263_s19  ;;  %v1485_v48 = vsel %vm574_vm4, %v1476_v43, %v1478_v4 }
 0x191   : > { %2160 = vrot.lane.b32.xlu0 %v11762_v62, %s11263_s19 }
 0x192   : > { %v1482_v44 = vpop.permute.xlu1 %1481 }
 0x193   : > { %v1480_v45 = vpop.permute.xlu0 %1479  ;;  %1522 = vmatprep.subr.mxu1 %v1482_v44 }
 0x194   : > { %v1486_v46 = vsel %vm574_vm4, %v1480_v45, %v1482_v44  ;;  %2162 = vrot.lane.b32.xlu1 %v11887_v26, %s11263_s19 }
 0x195   : > { %1523 = vmatpush1.msra.mxu1 %v1486_v46  ;;  %2253 = vrot.lane.b32.xlu0 %v11709_v10, %s11265_s15 }
 0x196   : > { %1524 = vmatprep.subr.mxu1 %v1478_v4  ;;  %v1604_v49 = vpop.permute.xlu1 %1603 }
 0x197   : > { %1525 = vmatpush1.msra.mxu1 %v1485_v48 }
 0x198   : > { %1526 = vmatprep.subr.mxu1 %v1474_v42  ;;  %2255 = vrot.lane.b32.xlu1 %v11720_v12, %s11265_s15 }
 0x199   : > { %1527 = vmatpush1.msra.mxu1 %v1484_v50  ;;  %2257 = vrot.lane.b32.xlu0 %v11850_v59, %s11265_s15 }
 0x19a   : > { %1528 = vmatprep.subr.mxu1 %v1470_v39  ;;  %v1606_v56 = vpop.permute.xlu1 %1605 }
 0x19b   : > { %1529 = vmatpush1.msra.mxu1 %v1483_v55 }
 0x19c   : > { %10818 = vmatmul.mubr.msk.f32.vlgmr.msra.gmra.mxu1 %vm275_vm1, %v11939_v54  ;;  %2259 = vrot.lane.b32.xlu1 %v11728_v47, %s11265_s15 }
 0x19d   : > { %2261 = vrot.lane.b32.xlu0 %v11736_v51, %s11265_s15  ;;  %1794 = vmatprep.mubr.f32.mxu1 %v11260_v8 }
 0x19e   : > { %v1610_v60 = vpop.permute.xlu1 %1609 }
 0x1a0   : > { %v11951_v63 = vpop.permute.xlu0 %1573  ;;  %2263 = vrot.lane.b32.xlu1 %v11865_v14, %s11265_s15 }
 0x1a1   : > { %2265 = vrot.lane.b32.xlu0 %v11744_v57, %s11265_s15 }
 0x1a2   : > { %v1614_v1 = vpop.permute.xlu1 %1613 }
 0x1a4   : > { %v1608_v7 = vpop.permute.xlu0 %1607  ;;  %2267 = vrot.lane.b32.xlu1 %v11751_v58, %s11265_s15 }
 0x1a5   : > { %2269 = vrot.lane.b32.xlu0 %v11875_v18, %s11265_s15  ;;  %v1620_v23 = vsel %vm262_vm0, %v1608_v7, %v1610_v60 }
 0x1a6   : > { %v1618_v13 = vpop.permute.xlu1 %1617 }
 0x1a7   : > { %1655 = vmatprep.subr.mxu0 %v1618_v13 }
 0x1a8   : > { %v1612_v15 = vpop.permute.xlu0 %1611  ;;  %2271 = vrot.lane.b32.xlu1 %v11757_v61, %s11265_s15 }
 0x1a9   : > { %2273 = vrot.lane.b32.xlu0 %v11762_v62, %s11265_s15  ;;  %v1621_v21 = vsel %vm262_vm0, %v1612_v15, %v1614_v1 }
 0x1aa   : > { %v1705_v16 = vpop.permute.xlu1 %1704 }
 0x1ac   : > { %v1616_v17 = vpop.permute.xlu0 %1615  ;;  %2275 = vrot.lane.b32.xlu1 %v11887_v26, %s11265_s15 }
 0x1ad   : > { %v1622_v19 = vsel %vm262_vm0, %v1616_v17, %v1618_v13  ;;  %2366 = vrot.lane.b32.xlu0 %v11709_v10, %s11266_s20  ;;  %v1619_v10 = vsel %vm262_vm0, %v1604_v49, %v1606_v56 }
 0x1ae   : > { %1656 = vmatpush1.msra.mxu0 %v1622_v19  ;;  %v1709_v20 = vpop.permute.xlu1 %1708 }
 0x1af   : > { %1657 = vmatprep.subr.mxu0 %v1614_v1 }
 0x1b0   : > { %1658 = vmatpush1.msra.mxu0 %v1621_v21  ;;  %v1703_v22 = vpop.permute.xlu0 %1702  ;;  %2368 = vrot.lane.b32.xlu1 %v11720_v12, %s11266_s20 }
 0x1b1   : > { %1659 = vmatprep.subr.mxu0 %v1610_v60  ;;  %2370 = vrot.lane.b32.xlu0 %v11850_v59, %s11266_s20  ;;  %v1718_v38 = vsel %vm366_vm2, %v1703_v22, %v1705_v16 }
 0x1b2   : > { %1660 = vmatpush1.msra.mxu0 %v1620_v23  ;;  %v1713_v24 = vpop.permute.xlu1 %1712 }
 0x1b3   : > { %1661 = vmatprep.subr.mxu0 %v1606_v56 }
 0x1b4   : > { %1662 = vmatpush1.msra.mxu0 %v1619_v10  ;;  %v1707_v29 = vpop.permute.xlu0 %1706  ;;  %2372 = vrot.lane.b32.xlu1 %v11728_v47, %s11266_s20 }
 0x1b5   : > { %2374 = vrot.lane.b32.xlu0 %v11736_v51, %s11266_s20  ;;  %10827 = vmatmul.mubr.msk.f32.vlgmr.msra.gmra.mxu0 %vm275_vm1, %v11574_v27 }
 0x1b6   : > { %v1717_v30 = vpop.permute.xlu1 %1716  ;;  %1893 = vmatprep.mubr.f32.mxu0 %v11260_v8 }
 0x1b7   : > { %1754 = vmatprep.subr.mxu1 %v1717_v30 }
 0x1b8   : > { %v1711_v31 = vpop.permute.xlu0 %1710  ;;  %2376 = vrot.lane.b32.xlu1 %v11865_v14, %s11266_s20 }
 0x1b9   : > { %2378 = vrot.lane.b32.xlu0 %v11744_v57, %s11266_s20  ;;  %v1720_v35 = vsel %vm366_vm2, %v1711_v31, %v1713_v24  ;;  %v1719_v57 = vsel %vm366_vm2, %v1707_v29, %v1709_v20 }
 0x1ba   : > { %v1804_v32 = vpop.permute.xlu1 %1803 }
 0x1bc   : > { %v1715_v34 = vpop.permute.xlu0 %1714  ;;  %2380 = vrot.lane.b32.xlu1 %v11751_v58, %s11266_s20 }
 0x1bd   : > { %v1721_v47 = vsel %vm366_vm2, %v1715_v34, %v1717_v30  ;;  %2382 = vrot.lane.b32.xlu0 %v11875_v18, %s11266_s20 }
 0x1be   : > { %1755 = vmatpush1.msra.mxu1 %v1721_v47  ;;  %v1808_v27 = vpop.permute.xlu1 %1807 }
 0x1bf   : > { %1756 = vmatprep.subr.mxu1 %v1713_v24 }
 0x1c0   : > { %1757 = vmatpush1.msra.mxu1 %v1720_v35  ;;  %v1802_v36 = vpop.permute.xlu0 %1801  ;;  %2384 = vrot.lane.b32.xlu1 %v11757_v61, %s11266_s20 }
 0x1c1   : > { %1758 = vmatprep.subr.mxu1 %v1709_v20  ;;  %2386 = vrot.lane.b32.xlu0 %v11762_v62, %s11266_s20  ;;  %v1817_v45 = vsel %vm469_vm3, %v1802_v36, %v1804_v32 }
 0x1c2   : > { %1759 = vmatpush1.msra.mxu1 %v1719_v57  ;;  %v1812_v37 = vpop.permute.xlu1 %1811 }
 0x1c3   : > { %1760 = vmatprep.subr.mxu1 %v1705_v16 }
 0x1c4   : > { %1761 = vmatpush1.msra.mxu1 %v1718_v38  ;;  %v1806_v39 = vpop.permute.xlu0 %1805  ;;  %2388 = vrot.lane.b32.xlu1 %v11887_v26, %s11266_s20 }
 0x1c5   : > { %2479 = vrot.lane.b32.xlu0 %v11720_v12, %s11258_s18  ;;  %10828 = vmatmul.mubr.msk.f32.vlgmr.msra.gmra.mxu1 %vm275_vm1, %v11597_v40  ;;  %v1818_v43 = vsel %vm469_vm3, %v1806_v39, %v1808_v27  ;;  %v12107_v39 = vld [vmem:[%s11387_s11 + $0xd8] sm:$0xff] }
 0x1c6   : > { %v1816_v61 = vpop.permute.xlu1 %1815  ;;  %1994 = vmatprep.mubr.f32.mxu1 %v11260_v8 }
 0x1c7   : > { %1853 = vmatprep.subr.mxu0 %v1816_v61 }
 0x1c8   : > { %v1810_v41 = vpop.permute.xlu0 %1809  ;;  %2481 = vrot.lane.b32.xlu1 %v11850_v59, %s11258_s18 }
 0x1c9   : > { %2483 = vrot.lane.b32.xlu0 %v11736_v51, %s11258_s18  ;;  %v1819_v11 = vsel %vm469_vm3, %v1810_v41, %v1812_v37 }
 0x1ca   : > { %v1905_v9 = vpop.permute.xlu1 %1904 }
 0x1cc   : > { %v1814_v2 = vpop.permute.xlu0 %1813  ;;  %2485 = vrot.lane.b32.xlu1 %v11865_v14, %s11258_s18 }
 0x1cd   : > { %v1820_v42 = vsel %vm469_vm3, %v1814_v2, %v1816_v61  ;;  %2487 = vrot.lane.b32.xlu0 %v11751_v58, %s11258_s18 }
 0x1ce   : > { %1854 = vmatpush1.msra.mxu0 %v1820_v42  ;;  %v1909_v40 = vpop.permute.xlu1 %1908  ;;  %v12126_v42 = vld [vmem:[%s11387_s11 + $0xf8] sm:$0xff] }
 0x1cf   : > { %1855 = vmatprep.subr.mxu0 %v1812_v37  ;;  %v12097_v37 = vld [vmem:[%s11387_s11 + $0xc0] sm:$0xff] }
 0x1d0   : > { %1856 = vmatpush1.msra.mxu0 %v1819_v11  ;;  %v1903_v4 = vpop.permute.xlu0 %1902  ;;  %2489 = vrot.lane.b32.xlu1 %v11875_v18, %s11258_s18  ;;  %v12131_v11 = vld [vmem:[%s11387_s11 + $0x108] sm:$0xff] }
 0x1d1   : > { %1857 = vmatprep.subr.mxu0 %v1808_v27  ;;  %2491 = vrot.lane.b32.xlu0 %v11762_v62, %s11258_s18  ;;  %v1918_v15 = vsel %vm574_vm4, %v1903_v4, %v1905_v9 }
 0x1d2   : > { %1858 = vmatpush1.msra.mxu0 %v1818_v43  ;;  %v1913_v44 = vpop.permute.xlu1 %1912 }
 0x1d3   : > { %1859 = vmatprep.subr.mxu0 %v1804_v32 }
 0x1d4   : > { %1860 = vmatpush1.msra.mxu0 %v1817_v45  ;;  %v1907_v46 = vpop.permute.xlu0 %1906  ;;  %2493 = vrot.lane.b32.xlu1 %v11887_v26, %s11258_s18 }
 0x1d5   : > { %2580 = vrot.lane.b32.xlu0 %v11720_v12, %s11257_s17  ;;  %10829 = vmatmul.mubr.msk.f32.vlgmr.msra.gmra.mxu0 %vm275_vm1, %v11622_v53  ;;  %v1919_v7 = vsel %vm574_vm4, %v1907_v46, %v1909_v40  ;;  %v12139_v46 = vld [vmem:[%s11387_s11 + $0x110] sm:$0xff] }
 0x1d6   : > { %v1917_v48 = vpop.permute.xlu1 %1916  ;;  %2131 = vmatprep.mubr.f32.mxu0 %v11260_v8 }
 0x1d7   : > { %1954 = vmatprep.subr.mxu1 %v1917_v48 }
 0x1d8   : > { %v1911_v49 = vpop.permute.xlu0 %1910  ;;  %2582 = vrot.lane.b32.xlu1 %v11850_v59, %s11257_s17 }
 0x1d9   : > { %2584 = vrot.lane.b32.xlu0 %v11736_v51, %s11257_s17  ;;  %v1920_v60 = vsel %vm574_vm4, %v1911_v49, %v1913_v44 }
 0x1da   : > { %v2030_v50 = vpop.permute.xlu1 %2029 }
 0x1dc   : > { %v1915_v55 = vpop.permute.xlu0 %1914  ;;  %2586 = vrot.lane.b32.xlu1 %v11865_v14, %s11257_s17 }
 0x1dd   : > { %v1921_v56 = vsel %vm574_vm4, %v1915_v55, %v1917_v48  ;;  %2588 = vrot.lane.b32.xlu0 %v11751_v58, %s11257_s17 }
 0x1de   : > { %1955 = vmatpush1.msra.mxu1 %v1921_v56  ;;  %v2034_v53 = vpop.permute.xlu1 %2033 }
 0x1df   : > { %1956 = vmatprep.subr.mxu1 %v1913_v44 }
 0x1e0   : > { %1957 = vmatpush1.msra.mxu1 %v1920_v60  ;;  %v2028_v1 = vpop.permute.xlu0 %2027  ;;  %2590 = vrot.lane.b32.xlu1 %v11875_v18, %s11257_s17 }
 0x1e1   : > { %1958 = vmatprep.subr.mxu1 %v1909_v40  ;;  %2592 = vrot.lane.b32.xlu0 %v11762_v62, %s11257_s17  ;;  %v2051_v36 = vsel %vm711_vm5, %v2028_v1, %v2030_v50 }
 0x1e2   : > { %1959 = vmatpush1.msra.mxu1 %v1919_v7  ;;  %v2038_v13 = vpop.permute.xlu1 %2037 }
 0x1e3   : > { %1960 = vmatprep.subr.mxu1 %v1905_v9 }
 0x1e4   : > { %1961 = vmatpush1.msra.mxu1 %v1918_v15  ;;  %v2032_v16 = vpop.permute.xlu0 %2031  ;;  %2594 = vrot.lane.b32.xlu1 %v11887_v26, %s11257_s17 }
 0x1e5   : > { %2681 = vrot.lane.b32.xlu0 %v11720_v12, %s11259_s7  ;;  %10830 = vmatmul.mubr.msk.f32.vlgmr.msra.gmra.mxu1 %vm275_vm1, %v11647_v5  ;;  %v2052_v35 = vsel %vm711_vm5, %v2030_v50, %v2032_v16 }
 0x1e6   : > { %v2042_v17 = vpop.permute.xlu1 %2041  ;;  %2244 = vmatprep.mubr.f32.mxu1 %v11260_v8 }
 0x1e8   : > { %v2036_v19 = vpop.permute.xlu0 %2035  ;;  %2683 = vrot.lane.b32.xlu1 %v11850_v59, %s11259_s7 }
 0x1e9   : > { %2685 = vrot.lane.b32.xlu0 %v11736_v51, %s11259_s7  ;;  %v2054_v47 = vsel %vm711_vm5, %v2036_v19, %v2038_v13  ;;  %v2053_v27 = vsel %vm711_vm5, %v2034_v53, %v2036_v19 }
 0x1ea   : > { %v2046_v20 = vpop.permute.xlu1 %2045 }
 0x1ec   : > { %v2040_v21 = vpop.permute.xlu0 %2039  ;;  %2687 = vrot.lane.b32.xlu1 %v11865_v14, %s11259_s7 }
 0x1ed   : > { %2689 = vrot.lane.b32.xlu0 %v11751_v58, %s11259_s7  ;;  %v2055_v32 = vsel %vm711_vm5, %v2040_v21, %v2042_v17 }
 0x1ee   : > { %v2050_v22 = vpop.permute.xlu1 %2049 }
 0x1f0   : > { %v2044_v5 = vpop.permute.xlu0 %2043  ;;  %2691 = vrot.lane.b32.xlu1 %v11875_v18, %s11259_s7 }
 0x1f1   : > { %2693 = vrot.lane.b32.xlu0 %v11762_v62, %s11259_s7  ;;  %v2056_v31 = vsel %vm711_vm5, %v2042_v17, %v2044_v5 }
 0x1f2   : > { %v12065_v23 = vpop.permute.xlu1 %2142 }
 0x1f4   : > { %v2048_v24 = vpop.permute.xlu0 %2047  ;;  %2695 = vrot.lane.b32.xlu1 %v11887_v26, %s11259_s7 }
 0x1f5   : > { %v2058_v10 = vsel %vm711_vm5, %v2048_v24, %v2050_v22  ;;  %v2057_v29 = vsel %vm711_vm5, %v2046_v20, %v2048_v24  ;;  %2782 = vrot.lane.b32.xlu0 %v11720_v12, %s11261_s10 }
 0x1f6   : > { %2091 = vmatprep.subr.mxu0 %v2058_v10  ;;  %v12073_v30 = vpop.permute.xlu1 %2146 }
 0x1f7   : > { %2092 = vmatpush1.msra.mxu0 %v2057_v29 }
 0x1f8   : > { %2093 = vmatprep.subr.mxu0 %v2056_v31  ;;  %v2141_v34 = vpop.permute.xlu0 %2140  ;;  %2784 = vrot.lane.b32.xlu1 %v11850_v59, %s11261_s10 }
 0x1f9   : > { %2094 = vmatpush1.msra.mxu0 %v2055_v32  ;;  %2786 = vrot.lane.b32.xlu0 %v11736_v51, %s11261_s10  ;;  %v2164_v55 = vsel %vm828_vm6, %v2141_v34, %v12065_v23  ;;  %v345_v32 = vpop.f32.mrf.mxu0 }
 0x1fa   : > { %2095 = vmatprep.subr.mxu0 %v2054_v47  ;;  %v2151_v12 = vpop.permute.xlu1 %2150  ;;  %v448_v47 = vpop.f32.mrf.mxu1 }
 0x1fb   : > { %2096 = vmatpush1.msra.mxu0 %v2053_v27  ;;  %v347_v27 = vpop.f32.mrf.mxu0 }
 0x1fc   : > { %2097 = vmatprep.subr.mxu0 %v2052_v35  ;;  %v2145_v57 = vpop.permute.xlu0 %2144  ;;  %2788 = vrot.lane.b32.xlu1 %v11865_v14, %s11261_s10 }
 0x1fd   : > { %2098 = vmatpush1.msra.mxu0 %v2051_v36  ;;  %2790 = vrot.lane.b32.xlu0 %v11751_v58, %s11261_s10  ;;  %v12102_v58 = vld [vmem:[%s11387_s11 + $0xc8] sm:$0xff]  ;;  %v2165_v50 = vsel %vm828_vm6, %v12065_v23, %v2145_v57  ;;  %v450_v36 = vpop.f32.mrf.mxu1 }
 0x1fe   : > { %v2155_v51 = vpop.permute.xlu1 %2154  ;;  %10843 = vmatmul.mubr.msk.f32.vlgmr.msra.gmra.mxu0 %vm275_vm1, %v11686_v33 }
 0x1ff   : > { %2357 = vmatprep.mubr.f32.mxu0 %v11260_v8 }
 0x200   : > { %v2149_v59 = vpop.permute.xlu0 %2148  ;;  %2792 = vrot.lane.b32.xlu1 %v11875_v18, %s11261_s10 }
 0x201   : > { %2794 = vrot.lane.b32.xlu0 %v11762_v62, %s11261_s10  ;;  %v12112_v62 = vld [vmem:[%s11387_s11 + $0xe0] sm:$0xff]  ;;  %v2167_v45 = vsel %vm828_vm6, %v2149_v59, %v2151_v12  ;;  %v2166_v49 = vsel %vm828_vm6, %v12073_v30, %v2149_v59 }
 0x202   : > { %v2159_v14 = vpop.permute.xlu1 %2158 }
 0x204   : > { %v2153_v38 = vpop.permute.xlu0 %2152  ;;  %2796 = vrot.lane.b32.xlu1 %v11887_v26, %s11261_s10  ;;  %v12119_v26 = vld [vmem:[%s11387_s11 + $0xf0] sm:$0xff] }
 0x205   : > { %2908 = vrot.lane.b32.xlu0 %v12097_v37, %s11257_s17  ;;  %v2168_v43 = vsel %vm828_vm6, %v2153_v38, %v2155_v51  ;;  %v656_v38 = vpop.f32.mrf.mxu1 }
 0x206   : > { %v2163_v33 = vpop.permute.xlu1 %2162 }
 0x208   : > { %v2157_v18 = vpop.permute.xlu0 %2156  ;;  %2910 = vrot.lane.b32.xlu1 %v12102_v58, %s11257_s17 }
 0x209   : > { %2912 = vrot.lane.b32.xlu0 %v12107_v39, %s11257_s17  ;;  %v2169_v4 = vsel %vm828_vm6, %v2155_v51, %v2157_v18  ;;  %v551_v51 = vpop.f32.mrf.mxu0 }
 0x20a   : > { %v12116_v61 = vpop.permute.xlu1 %2255 }
 0x20b   : > { %v553_v18 = vpop.f32.mrf.mxu0 }
 0x20c   : > { %v2161_v41 = vpop.permute.xlu0 %2160  ;;  %2914 = vrot.lane.b32.xlu1 %v12112_v62, %s11257_s17 }
 0x20d   : > { %v2171_v9 = vsel %vm828_vm6, %v2161_v41, %v2163_v33  ;;  %v2170_v2 = vsel %vm828_vm6, %v2159_v14, %v2161_v41  ;;  %2916 = vrot.lane.b32.xlu0 %v12119_v26, %s11257_s17  ;;  %v451_v14 = vadd.f32 %v450_v36, %v347_v27 }
 0x20e   : > { %2204 = vmatprep.subr.mxu1 %v2171_v9  ;;  %v2260_v40 = vpop.permute.xlu1 %2259 }
 0x20f   : > { %2205 = vmatpush1.msra.mxu1 %v2170_v2  ;;  %v557_v9 = vadd.f32 %v553_v18, %v451_v14  ;;  %v658_v2 = vpop.f32.mrf.mxu1 }
 0x210   : > { %2206 = vmatprep.subr.mxu1 %v2169_v4  ;;  %v2254_v44 = vpop.permute.xlu0 %2253  ;;  %2918 = vrot.lane.b32.xlu1 %v12126_v42, %s11257_s17  ;;  %v797_v4 = vpop.f32.mrf.mxu0 }
 0x211   : > { %2207 = vmatpush1.msra.mxu1 %v2168_v43  ;;  %2920 = vrot.lane.b32.xlu0 %v12131_v11, %s11257_s17  ;;  %v2277_v30 = vsel %vm945_vm7, %v2254_v44, %v12116_v61 }
 0x212   : > { %2208 = vmatprep.subr.mxu1 %v2167_v45  ;;  %v2264_v48 = vpop.permute.xlu1 %2263 }
 0x213   : > { %2209 = vmatpush1.msra.mxu1 %v2166_v49 }
 0x214   : > { %2210 = vmatprep.subr.mxu1 %v2165_v50  ;;  %v2258_v56 = vpop.permute.xlu0 %2257  ;;  %2922 = vrot.lane.b32.xlu1 %v12139_v46, %s11257_s17  ;;  %v662_v50 = vadd.f32 %v658_v2, %v557_v9  ;;  %v12266_v9 = vld [vmem:[%s11387_s11 + $0x100] sm:$0xff] }
 0x215   : > { %2211 = vmatpush1.msra.mxu1 %v2164_v55  ;;  %3007 = vrot.lane.b32.xlu0 %v12097_v37, %s11258_s18  ;;  %v2278_v29 = vsel %vm945_vm7, %v12116_v61, %v2258_v56  ;;  %v914_v55 = vpop.f32.mrf.mxu1 }
 0x216   : > { %v2268_v53 = vpop.permute.xlu1 %2267  ;;  %10844 = vmatmul.mubr.msk.f32.vlgmr.msra.gmra.mxu1 %vm275_vm1, %v11740_v52 }
 0x217   : > { %2470 = vmatprep.mubr.f32.mxu1 %v11260_v8 }
 0x218   : > { %v2262_v60 = vpop.permute.xlu0 %2261  ;;  %3009 = vrot.lane.b32.xlu1 %v12102_v58, %s11258_s18 }
 0x219   : > { %3011 = vrot.lane.b32.xlu0 %v12107_v39, %s11258_s18  ;;  %v2280_v23 = vsel %vm945_vm7, %v2262_v60, %v2264_v48  ;;  %v2279_v10 = vsel %vm945_vm7, %v2260_v40, %v2262_v60  ;;  %v799_v60 = vpop.f32.mrf.mxu0 }
 0x21a   : > { %v2272_v1 = vpop.permute.xlu1 %2271 }
 0x21c   : > { %v2266_v7 = vpop.permute.xlu0 %2265  ;;  %3013 = vrot.lane.b32.xlu1 %v12112_v62, %s11258_s18 }
 0x21d   : > { %3015 = vrot.lane.b32.xlu0 %v12119_v26, %s11258_s18  ;;  %v2281_v22 = vsel %vm945_vm7, %v2266_v7, %v2268_v53 }
 0x21e   : > { %v2276_v13 = vpop.permute.xlu1 %2275 }
 0x220   : > { %v2270_v15 = vpop.permute.xlu0 %2269  ;;  %3017 = vrot.lane.b32.xlu1 %v12126_v42, %s11258_s18 }
 0x221   : > { %3019 = vrot.lane.b32.xlu0 %v12131_v11, %s11258_s18  ;;  %v2282_v21 = vsel %vm945_vm7, %v2268_v53, %v2270_v15 }
 0x222   : > { %v12168_v52 = vpop.permute.xlu1 %2368 }
 0x224   : > { %v2274_v16 = vpop.permute.xlu0 %2273  ;;  %3021 = vrot.lane.b32.xlu1 %v12139_v46, %s11258_s18 }
 0x225   : > { %v2284_v17 = vsel %vm945_vm7, %v2274_v16, %v2276_v13  ;;  %v2283_v19 = vsel %vm945_vm7, %v2272_v1, %v2274_v16  ;;  %3106 = vrot.lane.b32.xlu0 %v12097_v37, %s11259_s7 }
 0x226   : > { %2317 = vmatprep.subr.mxu0 %v2284_v17  ;;  %v12176_v20 = vpop.permute.xlu1 %2372  ;;  %v803_v17 = vadd.f32 %v799_v60, %v662_v50 }
 0x227   : > { %2318 = vmatpush1.msra.mxu0 %v2283_v19  ;;  %v916_v19 = vpop.f32.mrf.mxu1 }
 0x228   : > { %2319 = vmatprep.subr.mxu0 %v2282_v21  ;;  %v12180_v5 = vpop.permute.xlu0 %2366  ;;  %3108 = vrot.lane.b32.xlu1 %v12102_v58, %s11259_s7 }
 0x229   : > { %2320 = vmatpush1.msra.mxu0 %v2281_v22  ;;  %3110 = vrot.lane.b32.xlu0 %v12107_v39, %s11259_s7  ;;  %v2390_v21 = vsel %vm1062_vm8, %v12180_v5, %v12168_v52  ;;  %v1148_v5 = vpop.f32.mrf.mxu1 }
 0x22a   : > { %2321 = vmatprep.subr.mxu0 %v2280_v23  ;;  %v2377_v24 = vpop.permute.xlu1 %2376  ;;  %v1031_v23 = vpop.f32.mrf.mxu0 }
 0x22b   : > { %2322 = vmatpush1.msra.mxu0 %v2279_v10  ;;  %v12238_v10 = vld [vmem:[%s11387_s11 + $0xd0] sm:$0xff] }
 0x22c   : > { %2323 = vmatprep.subr.mxu0 %v2278_v29  ;;  %v2371_v31 = vpop.permute.xlu0 %2370  ;;  %3112 = vrot.lane.b32.xlu1 %v12112_v62, %s11259_s7 }
 0x22d   : > { %2324 = vmatpush1.msra.mxu0 %v2277_v30  ;;  %3114 = vrot.lane.b32.xlu0 %v12119_v26, %s11259_s7  ;;  %v2391_v16 = vsel %vm1062_vm8, %v12168_v52, %v2371_v31  ;;  %v920_v52 = vadd.f32 %v916_v19, %v803_v17  ;;  %v1033_v30 = vpop.f32.mrf.mxu0 }
 0x22e   : > { %v2381_v34 = vpop.permute.xlu1 %2380  ;;  %10845 = vmatmul.mubr.msk.f32.vlgmr.msra.gmra.mxu0 %vm275_vm1, %v11790_v25  ;;  %v449_v25 = vadd.f32 %v448_v47, %v345_v32  ;;  %v1150_v47 = vpop.f32.mrf.mxu1 }
 0x22f   : > { %2571 = vmatprep.mubr.f32.mxu0 %v11260_v8 }
 0x230   : > { %v2375_v12 = vpop.permute.xlu0 %2374  ;;  %3116 = vrot.lane.b32.xlu1 %v12126_v42, %s11259_s7  ;;  %v556_v61 = vadd.f32 %v551_v51, %v449_v25 }
 0x231   : > { %3118 = vrot.lane.b32.xlu0 %v12131_v11, %s11259_s7  ;;  %v2393_v1 = vsel %vm1062_vm8, %v2375_v12, %v2377_v24  ;;  %v2392_v15 = vsel %vm1062_vm8, %v12176_v20, %v2375_v12  ;;  %v1252_v12 = vpop.f32.mrf.mxu0 }
 0x232   : > { %v2385_v35 = vpop.permute.xlu1 %2384  ;;  %v661_v45 = vadd.f32 %v656_v38, %v556_v61 }
 0x233   : > { %v1254_v38 = vpop.f32.mrf.mxu0 }
 0x234   : > { %v2379_v57 = vpop.permute.xlu0 %2378  ;;  %3120 = vrot.lane.b32.xlu1 %v12139_v46, %s11259_s7  ;;  %v802_v7 = vadd.f32 %v797_v4, %v661_v45 }
 0x235   : > { %3207 = vrot.lane.b32.xlu0 %v12097_v37, %s11261_s10  ;;  %v2394_v56 = vsel %vm1062_vm8, %v2379_v57, %v2381_v34 }
 0x236   : > { %v2389_v59 = vpop.permute.xlu1 %2388  ;;  %v919_v20 = vadd.f32 %v914_v55, %v802_v7 }
 0x238   : > { %v2383_v33 = vpop.permute.xlu0 %2382  ;;  %3209 = vrot.lane.b32.xlu1 %v12102_v58, %s11261_s10  ;;  %v1036_v31 = vadd.f32 %v1031_v23, %v919_v20 }
 0x239   : > { %3211 = vrot.lane.b32.xlu0 %v12107_v39, %s11261_s10  ;;  %v2395_v49 = vsel %vm1062_vm8, %v2381_v34, %v2383_v33  ;;  %v1037_v34 = vadd.f32 %v1033_v30, %v920_v52 }
 0x23a   : > { %v12211_v41 = vpop.permute.xlu1 %2481  ;;  %v1153_v36 = vadd.f32 %v1148_v5, %v1036_v31 }
 0x23b   : > { %v1154_v25 = vadd.f32 %v1150_v47, %v1037_v34 }
 0x23c   : > { %v2387_v40 = vpop.permute.xlu0 %2386  ;;  %3213 = vrot.lane.b32.xlu1 %v12112_v62, %s11261_s10  ;;  %v1257_v18 = vadd.f32 %v1252_v12, %v1153_v36 }
 0x23d   : > { %v2397_v43 = vsel %vm1062_vm8, %v2387_v40, %v2389_v59  ;;  %v2396_v44 = vsel %vm1062_vm8, %v2385_v35, %v2387_v40  ;;  %3215 = vrot.lane.b32.xlu0 %v12119_v26, %s11261_s10  ;;  %v12253_v35 = vld [vmem:[%s11387_s11 + $0xe8] sm:$0xff]  ;;  %v1356_v59 = vpop.f32.mrf.mxu1  ;;  %v1258_v40 = vadd.f32 %v1254_v38, %v1154_v25 }
 0x23e   : > { %2430 = vmatprep.subr.mxu1 %v2397_v43  ;;  %v2486_v48 = vpop.permute.xlu1 %2485  ;;  %v1361_v45 = vadd.f32 %v1356_v59, %v1257_v18 }
 0x23f   : > { %2431 = vmatpush1.msra.mxu1 %v2396_v44  ;;  %v1358_v4 = vpop.f32.mrf.mxu1 }
 0x240   : > { %2432 = vmatprep.subr.mxu1 %v2395_v49  ;;  %v2480_v53 = vpop.permute.xlu0 %2479  ;;  %3217 = vrot.lane.b32.xlu1 %v12126_v42, %s11261_s10 }
 0x241   : > { %2433 = vmatpush1.msra.mxu1 %v2394_v56  ;;  %3219 = vrot.lane.b32.xlu0 %v12131_v11, %s11261_s10  ;;  %v2495_v2 = vsel %vm366_vm2, %v2480_v53, %v12211_v41  ;;  %v12282_v56 = vld [vmem:[%s11387_s11 + $0x118] sm:$0xff] }
 0x242   : > { %2434 = vmatprep.subr.mxu1 %v2393_v1  ;;  %v2490_v13 = vpop.permute.xlu1 %2489 }
 0x243   : > { %2435 = vmatpush1.msra.mxu1 %v2392_v15 }
 0x244   : > { %2436 = vmatprep.subr.mxu1 %v2391_v16  ;;  %v2484_v22 = vpop.permute.xlu0 %2483  ;;  %3221 = vrot.lane.b32.xlu1 %v12139_v46, %s11261_s10 }
 0x245   : > { %2437 = vmatpush1.msra.mxu1 %v2390_v21  ;;  %3332 = vrot.lane.b32.xlu0 %v12097_v37, %s11262_s12  ;;  %v2496_v33 = vsel %vm366_vm2, %v2484_v22, %v2486_v48 }
 0x246   : > { %v2494_v24 = vpop.permute.xlu1 %2493  ;;  %10846 = vmatmul.mubr.msk.f32.vlgmr.msra.gmra.mxu1 %vm275_vm1, %v11829_v6 }
 0x247   : > { %2531 = vmatprep.subr.mxu0 %v2494_v24  ;;  %2672 = vmatprep.mubr.f32.mxu1 %v11260_v8 }
 0x248   : > { %v2488_v29 = vpop.permute.xlu0 %2487  ;;  %3334 = vrot.lane.b32.xlu1 %v12102_v58, %s11262_s12 }
 0x249   : > { %3336 = vrot.lane.b32.xlu0 %v12238_v10, %s11262_s12  ;;  %v2497_v51 = vsel %vm366_vm2, %v2488_v29, %v2490_v13 }
 0x24a   : > { %v12247_v32 = vpop.permute.xlu1 %2582 }
 0x24c   : > { %v2492_v6 = vpop.permute.xlu0 %2491  ;;  %3338 = vrot.lane.b32.xlu1 %v12107_v39, %s11262_s12  ;;  %v1460_v44 = vpop.f32.mrf.mxu0 }
 0x24d   : > { %v2498_v27 = vsel %vm366_vm2, %v2492_v6, %v2494_v24  ;;  %3340 = vrot.lane.b32.xlu0 %v12112_v62, %s11262_s12  ;;  %v1465_v55 = vadd.f32 %v1460_v44, %v1361_v45 }
 0x24e   : > { %2532 = vmatpush1.msra.mxu0 %v2498_v27  ;;  %v2587_v57 = vpop.permute.xlu1 %2586  ;;  %v1462_v50 = vpop.f32.mrf.mxu0 }
 0x24f   : > { %2533 = vmatprep.subr.mxu0 %v2490_v13 }
 0x250   : > { %2534 = vmatpush1.msra.mxu0 %v2497_v51  ;;  %v12258_v14 = vpop.permute.xlu0 %2580  ;;  %3342 = vrot.lane.b32.xlu1 %v12253_v35, %s11262_s12 }
 0x251   : > { %2535 = vmatprep.subr.mxu0 %v2486_v48  ;;  %3344 = vrot.lane.b32.xlu0 %v12119_v26, %s11262_s12  ;;  %v2596_v5 = vsel %vm262_vm0, %v12258_v14, %v12247_v32 }
 0x252   : > { %2536 = vmatpush1.msra.mxu0 %v2496_v33  ;;  %v2591_v61 = vpop.permute.xlu1 %2590 }
 0x253   : > { %2537 = vmatprep.subr.mxu0 %v12211_v41  ;;  %v1362_v41 = vadd.f32 %v1358_v4, %v1258_v40 }
 0x254   : > { %2538 = vmatpush1.msra.mxu0 %v2495_v2  ;;  %v2585_v43 = vpop.permute.xlu0 %2584  ;;  %3346 = vrot.lane.b32.xlu1 %v12126_v42, %s11262_s12 }
 0x255   : > { %3348 = vrot.lane.b32.xlu0 %v12266_v9, %s11262_s12  ;;  %10847 = vmatmul.mubr.msk.f32.vlgmr.msra.gmra.mxu0 %vm275_vm1, %v11857_v0  ;;  %v1466_v0 = vadd.f32 %v1462_v50, %v1362_v41  ;;  %v2597_v22 = vsel %vm262_vm0, %v2585_v43, %v2587_v57 }
 0x256   : > { %v2595_v48 = vpop.permute.xlu1 %2594  ;;  %2773 = vmatprep.mubr.f32.mxu0 %v11260_v8 }
 0x257   : > { %2632 = vmatprep.subr.mxu1 %v2595_v48 }
 0x258   : > { %v2589_v49 = vpop.permute.xlu0 %2588  ;;  %3350 = vrot.lane.b32.xlu1 %v12131_v11, %s11262_s12 }
 0x259   : > { %3352 = vrot.lane.b32.xlu0 %v12139_v46, %s11262_s12  ;;  %v2598_v17 = vsel %vm262_vm0, %v2589_v49, %v2591_v61 }
 0x25a   : > { %v12286_v53 = vpop.permute.xlu1 %2683 }
 0x25c   : > { %v1564_v60 = vpop.f32.mrf.mxu1  ;;  %v2593_v1 = vpop.permute.xlu0 %2592  ;;  %3354 = vrot.lane.b32.xlu1 %v12282_v56, %s11262_s12 }
 0x25d   : > { %v1569_v7 = vadd.f32 %v1564_v60, %v1465_v55  ;;  %v2599_v13 = vsel %vm262_vm0, %v2593_v1, %v2595_v48  ;;  %3445 = vrot.lane.b32.xlu0 %v12097_v37, %s11263_s19 }
 0x25e   : > { %v1566_v15 = vpop.f32.mrf.mxu1  ;;  %2633 = vmatpush1.msra.mxu1 %v2599_v13  ;;  %v2688_v16 = vpop.permute.xlu1 %2687 }
 0x25f   : > { %v1570_v19 = vadd.f32 %v1566_v15, %v1466_v0  ;;  %2634 = vmatprep.subr.mxu1 %v2591_v61  ;;  %v1576_v23 = vadd.f32 %v11951_v63, %v1569_v7  ;;  %v12393_v7 = vld [vmem:[#allocation4 + $0x4] sm:$0x7] }
 0x260   : > { %2635 = vmatpush1.msra.mxu1 %v2598_v17  ;;  %v2682_v21 = vpop.permute.xlu0 %2681  ;;  %3447 = vrot.lane.b32.xlu1 %v12102_v58, %s11263_s19 }
 0x261   : > { %v1577_v20 = vadd.f32 %v11951_v63, %v1570_v19  ;;  %2636 = vmatprep.subr.mxu1 %v2587_v57  ;;  %3449 = vrot.lane.b32.xlu0 %v12238_v10, %s11263_s19  ;;  %v2697_v51 = vsel %vm469_vm3, %v2682_v21, %v12286_v53 }
 0x262   : > { %2637 = vmatpush1.msra.mxu1 %v2597_v22  ;;  %v2692_v52 = vpop.permute.xlu1 %2691 }
 0x263   : > { %v1580_v29 = vcombine.low %v1576_v23, %v1577_v20  ;;  %2638 = vmatprep.subr.mxu1 %v12247_v32 }
 0x264   : > { %2639 = vmatpush1.msra.mxu1 %v2596_v5  ;;  %v2686_v30 = vpop.permute.xlu0 %2685  ;;  %3451 = vrot.lane.b32.xlu1 %v12107_v39, %s11263_s19 }
 0x265   : > { %1585 = vst.msk [vmem:[%s12305_s26] sm:$0x77] %vm12307_vm11, %v1580_v29  ;;  %3453 = vrot.lane.b32.xlu0 %v12112_v62, %s11263_s19  ;;  %10848 = vmatmul.mubr.msk.f32.vlgmr.msra.gmra.mxu1 %vm275_vm1, %v11891_v28  ;;  %v2698_v36 = vsel %vm469_vm3, %v2686_v30, %v2688_v16 }
 0x266   : > { %v2696_v31 = vpop.permute.xlu1 %2695  ;;  %2874 = vmatprep.mubr.f32.mxu1 %v11260_v8 }
 0x267   : > { %2733 = vmatprep.subr.mxu0 %v2696_v31 }
 0x268   : > { %v2690_v34 = vpop.permute.xlu0 %2689  ;;  %3455 = vrot.lane.b32.xlu1 %v12253_v35, %s11263_s19 }
 0x269   : > { %3457 = vrot.lane.b32.xlu0 %v12119_v26, %s11263_s19  ;;  %v2699_v12 = vsel %vm469_vm3, %v2690_v34, %v2692_v52 }
 0x26a   : > { %v2785_v32 = vpop.permute.xlu1 %2784 }
 0x26c   : > { %v2694_v47 = vpop.permute.xlu0 %2693  ;;  %3459 = vrot.lane.b32.xlu1 %v12126_v42, %s11263_s19 }
 0x26d   : > { %v2700_v6 = vsel %vm469_vm3, %v2694_v47, %v2696_v31  ;;  %3461 = vrot.lane.b32.xlu0 %v12266_v9, %s11263_s19 }
 0x26e   : > { %2734 = vmatpush1.msra.mxu0 %v2700_v6  ;;  %v2789_v28 = vpop.permute.xlu1 %2788 }
 0x26f   : > { %2735 = vmatprep.subr.mxu0 %v2692_v52 }
 0x270   : > { %2736 = vmatpush1.msra.mxu0 %v2699_v12  ;;  %v2783_v27 = vpop.permute.xlu0 %2782  ;;  %3463 = vrot.lane.b32.xlu1 %v12131_v11, %s11263_s19 }
 0x271   : > { %2737 = vmatprep.subr.mxu0 %v2688_v16  ;;  %3465 = vrot.lane.b32.xlu0 %v12139_v46, %s11263_s19  ;;  %v2798_v43 = vsel %vm574_vm4, %v2783_v27, %v2785_v32 }
 0x272   : > { %2738 = vmatpush1.msra.mxu0 %v2698_v36  ;;  %v2793_v57 = vpop.permute.xlu1 %2792 }
 0x273   : > { %2739 = vmatprep.subr.mxu0 %v12286_v53 }
 0x274   : > { %2740 = vmatpush1.msra.mxu0 %v2697_v51  ;;  %v2787_v25 = vpop.permute.xlu0 %2786  ;;  %3467 = vrot.lane.b32.xlu1 %v12282_v56, %s11263_s19 }
 0x275   : > { %3558 = vrot.lane.b32.xlu0 %v12097_v37, %s11265_s15  ;;  %10849 = vmatmul.mubr.msk.f32.vlgmr.msra.gmra.mxu0 %vm275_vm1, %v11916_v3  ;;  %v2799_v40 = vsel %vm574_vm4, %v2787_v25, %v2789_v28 }
 0x276   : > { %v2797_v59 = vpop.permute.xlu1 %2796  ;;  %3000 = vmatprep.mubr.f32.mxu0 %v11260_v8 }
 0x277   : > { %2834 = vmatprep.subr.mxu1 %v2797_v59 }
 0x278   : > { %v2791_v14 = vpop.permute.xlu0 %2790  ;;  %3560 = vrot.lane.b32.xlu1 %v12102_v58, %s11265_s15 }
 0x279   : > { %3562 = vrot.lane.b32.xlu0 %v12238_v10, %s11265_s15  ;;  %v2800_v61 = vsel %vm574_vm4, %v2791_v14, %v2793_v57 }
 0x27a   : > { %v2911_v38 = vpop.permute.xlu1 %2910 }
 0x27c   : > { %v2795_v33 = vpop.permute.xlu0 %2794  ;;  %3564 = vrot.lane.b32.xlu1 %v12107_v39, %s11265_s15 }
 0x27d   : > { %v2801_v18 = vsel %vm574_vm4, %v2795_v33, %v2797_v59  ;;  %3566 = vrot.lane.b32.xlu0 %v12112_v62, %s11265_s15 }
 0x27e   : > { %2835 = vmatpush1.msra.mxu1 %v2801_v18  ;;  %v2915_v3 = vpop.permute.xlu1 %2914 }
 0x27f   : > { %2836 = vmatprep.subr.mxu1 %v2793_v57  ;;  %v12443_v57 = vld [vmem:[#allocation4 + $0x8] sm:$0x7] }
 0x280   : > { %2837 = vmatpush1.msra.mxu1 %v2800_v61  ;;  %v2909_v2 = vpop.permute.xlu0 %2908  ;;  %3568 = vrot.lane.b32.xlu1 %v12253_v35, %s11265_s15 }
 0x281   : > { %2838 = vmatprep.subr.mxu1 %v2789_v28  ;;  %3570 = vrot.lane.b32.xlu0 %v12119_v26, %s11265_s15 }
 0x282   : > { %2839 = vmatpush1.msra.mxu1 %v2799_v40  ;;  %v2919_v4 = vpop.permute.xlu1 %2918 }
 0x283   : > { %2840 = vmatprep.subr.mxu1 %v2785_v32 }
 0x284   : > { %2841 = vmatpush1.msra.mxu1 %v2798_v43  ;;  %v2913_v44 = vpop.permute.xlu0 %2912  ;;  %3572 = vrot.lane.b32.xlu1 %v12126_v42, %s11265_s15  ;;  %v12468_v43 = vld [vmem:[#allocation4 + $0xc] sm:$0x7] }
 0x285   : > { %10850 = vmatmul.mubr.msk.f32.vlgmr.msra.gmra.mxu1 %vm275_vm1, %v11939_v54  ;;  %3574 = vrot.lane.b32.xlu0 %v12266_v9, %s11265_s15  ;;  %v2925_v0 = vsel %vm262_vm0, %v2913_v44, %v2915_v3 }
 0x286   : > { %v2923_v45 = vpop.permute.xlu1 %2922  ;;  %3099 = vmatprep.mubr.f32.mxu1 %v11260_v8 }
 0x287   : > { %2960 = vmatprep.subr.mxu0 %v2923_v45 }
 0x288   : > { %v2917_v48 = vpop.permute.xlu0 %2916  ;;  %3576 = vrot.lane.b32.xlu1 %v12131_v11, %s11265_s15 }
 0x289   : > { %3578 = vrot.lane.b32.xlu0 %v12139_v46, %s11265_s15  ;;  %v2926_v55 = vsel %vm262_vm0, %v2917_v48, %v2919_v4 }
 0x28a   : > { %v3010_v41 = vpop.permute.xlu1 %3009 }
 0x28c   : > { %v2921_v49 = vpop.permute.xlu0 %2920  ;;  %3580 = vrot.lane.b32.xlu1 %v12282_v56, %s11265_s15 }
 0x28d   : > { %v2927_v54 = vsel %vm262_vm0, %v2921_v49, %v2923_v45  ;;  %3671 = vrot.lane.b32.xlu0 %v12097_v37, %s11266_s20  ;;  %v2924_v37 = vsel %vm262_vm0, %v2909_v2, %v2911_v38 }
 0x28e   : > { %2961 = vmatpush1.msra.mxu0 %v2927_v54  ;;  %v3014_v50 = vpop.permute.xlu1 %3013 }
 0x28f   : > { %2962 = vmatprep.subr.mxu0 %v2919_v4 }
 0x290   : > { %2963 = vmatpush1.msra.mxu0 %v2926_v55  ;;  %v3008_v53 = vpop.permute.xlu0 %3007  ;;  %3673 = vrot.lane.b32.xlu1 %v12102_v58, %s11266_s20 }
 0x291   : > { %2964 = vmatprep.subr.mxu0 %v2915_v3  ;;  %3675 = vrot.lane.b32.xlu0 %v12238_v10, %s11266_s20  ;;  %v3023_v20 = vsel %vm366_vm2, %v3008_v53, %v3010_v41 }
 0x292   : > { %2965 = vmatpush1.msra.mxu0 %v2925_v0  ;;  %v3018_v60 = vpop.permute.xlu1 %3017 }
 0x293   : > { %2966 = vmatprep.subr.mxu0 %v2911_v38 }
 0x294   : > { %2967 = vmatpush1.msra.mxu0 %v2924_v37  ;;  %v3012_v1 = vpop.permute.xlu0 %3011  ;;  %3677 = vrot.lane.b32.xlu1 %v12107_v39, %s11266_s20 }
 0x295   : > { %3679 = vrot.lane.b32.xlu0 %v12112_v62, %s11266_s20  ;;  %10860 = vmatmul.mubr.msk.f32.vlgmr.msra.gmra.mxu0 %vm275_vm1, %v12393_v7 }
 0x296   : > { %v3022_v13 = vpop.permute.xlu1 %3021  ;;  %3198 = vmatprep.mubr.f32.mxu0 %v11260_v8 }
 0x297   : > { %3059 = vmatprep.subr.mxu1 %v3022_v13 }
 0x298   : > { %v3016_v15 = vpop.permute.xlu0 %3015  ;;  %3681 = vrot.lane.b32.xlu1 %v12253_v35, %s11266_s20 }
 0x299   : > { %3683 = vrot.lane.b32.xlu0 %v12119_v26, %s11266_s20  ;;  %v3025_v21 = vsel %vm366_vm2, %v3016_v15, %v3018_v60  ;;  %v3024_v26 = vsel %vm366_vm2, %v3012_v1, %v3014_v50 }
 0x29a   : > { %v3109_v39 = vpop.permute.xlu1 %3108 }
 0x29c   : > { %v3020_v16 = vpop.permute.xlu0 %3019  ;;  %3685 = vrot.lane.b32.xlu1 %v12126_v42, %s11266_s20 }
 0x29d   : > { %v3026_v17 = vsel %vm366_vm2, %v3020_v16, %v3022_v13  ;;  %3687 = vrot.lane.b32.xlu0 %v12266_v9, %s11266_s20 }
 0x29e   : > { %3060 = vmatpush1.msra.mxu1 %v3026_v17  ;;  %v3113_v19 = vpop.permute.xlu1 %3112 }
 0x29f   : > { %3061 = vmatprep.subr.mxu1 %v3018_v60 }
 0x2a0   : > { %3062 = vmatpush1.msra.mxu1 %v3025_v21  ;;  %v3107_v22 = vpop.permute.xlu0 %3106  ;;  %3689 = vrot.lane.b32.xlu1 %v12131_v11, %s11266_s20  ;;  %v12418_v11 = vld [vmem:[#allocation4] sm:$0x7] }
 0x2a1   : > { %3063 = vmatprep.subr.mxu1 %v3014_v50  ;;  %3691 = vrot.lane.b32.xlu0 %v12139_v46, %s11266_s20  ;;  %v3122_v27 = vsel %vm469_vm3, %v3107_v22, %v3109_v39  ;;  %v12519_v22 = vld [vmem:[%s11387_s11 + $0x120] sm:$0xff] }
 0x2a2   : > { %3064 = vmatpush1.msra.mxu1 %v3024_v26  ;;  %v3117_v23 = vpop.permute.xlu1 %3116  ;;  %v12524_v26 = vld [vmem:[%s11387_s11 + $0x128] sm:$0xff] }
 0x2a3   : > { %3065 = vmatprep.subr.mxu1 %v3010_v41 }
 0x2a4   : > { %3066 = vmatpush1.msra.mxu1 %v3023_v20  ;;  %v3111_v52 = vpop.permute.xlu0 %3110  ;;  %3693 = vrot.lane.b32.xlu1 %v12282_v56, %s11266_s20  ;;  %v12529_v20 = vld [vmem:[%s11387_s11 + $0x138] sm:$0xff] }
 0x2a5   : > { %3784 = vrot.lane.b32.xlu0 %v12102_v58, %s11258_s18  ;;  %10861 = vmatmul.mubr.msk.f32.vlgmr.msra.gmra.mxu1 %vm275_vm1, %v12418_v11  ;;  %v3123_v28 = vsel %vm469_vm3, %v3111_v52, %v3113_v19 }
 0x2a6   : > { %v3121_v5 = vpop.permute.xlu1 %3120  ;;  %3299 = vmatprep.mubr.f32.mxu1 %v11260_v8 }
 0x2a7   : > { %3158 = vmatprep.subr.mxu0 %v3121_v5 }
 0x2a8   : > { %v3115_v29 = vpop.permute.xlu0 %3114  ;;  %3786 = vrot.lane.b32.xlu1 %v12238_v10, %s11258_s18 }
 0x2a9   : > { %3788 = vrot.lane.b32.xlu0 %v12112_v62, %s11258_s18  ;;  %v3124_v47 = vsel %vm469_vm3, %v3115_v29, %v3117_v23 }
 0x2aa   : > { %v3210_v30 = vpop.permute.xlu1 %3209 }
 0x2ac   : > { %v3119_v31 = vpop.permute.xlu0 %3118  ;;  %3790 = vrot.lane.b32.xlu1 %v12253_v35, %s11258_s18 }
 0x2ad   : > { %v3125_v34 = vsel %vm469_vm3, %v3119_v31, %v3121_v5  ;;  %3792 = vrot.lane.b32.xlu0 %v12126_v42, %s11258_s18  ;;  %v12548_v31 = vld [vmem:[%s11387_s11 + $0x158] sm:$0xff] }
 0x2ae   : > { %3159 = vmatpush1.msra.mxu0 %v3125_v34  ;;  %v3214_v32 = vpop.permute.xlu1 %3213 }
 0x2af   : > { %3160 = vmatprep.subr.mxu0 %v3117_v23 }
 0x2b0   : > { %3161 = vmatpush1.msra.mxu0 %v3124_v47  ;;  %v3208_v6 = vpop.permute.xlu0 %3207  ;;  %3794 = vrot.lane.b32.xlu1 %v12266_v9, %s11258_s18 }
 0x2b1   : > { %3162 = vmatprep.subr.mxu0 %v3113_v19  ;;  %3796 = vrot.lane.b32.xlu0 %v12139_v46, %s11258_s18  ;;  %v3223_v40 = vsel %vm574_vm4, %v3208_v6, %v3210_v30 }
 0x2b2   : > { %3163 = vmatpush1.msra.mxu0 %v3123_v28  ;;  %v3218_v12 = vpop.permute.xlu1 %3217 }
 0x2b3   : > { %3164 = vmatprep.subr.mxu0 %v3109_v39 }
 0x2b4   : > { %3165 = vmatpush1.msra.mxu0 %v3122_v27  ;;  %v3212_v36 = vpop.permute.xlu0 %3211  ;;  %3798 = vrot.lane.b32.xlu1 %v12282_v56, %s11258_s18  ;;  %v12561_v27 = vld [vmem:[%s11387_s11 + $0x170] sm:$0xff] }
 0x2b5   : > { %3885 = vrot.lane.b32.xlu0 %v12102_v58, %s11257_s17  ;;  %10862 = vmatmul.mubr.msk.f32.vlgmr.msra.gmra.mxu0 %vm275_vm1, %v12443_v57  ;;  %v3224_v61 = vsel %vm574_vm4, %v3212_v36, %v3214_v32 }
 0x2b6   : > { %v3222_v51 = vpop.permute.xlu1 %3221  ;;  %3436 = vmatprep.mubr.f32.mxu0 %v11260_v8 }
 0x2b7   : > { %3259 = vmatprep.subr.mxu1 %v3222_v51 }
 0x2b8   : > { %v3216_v25 = vpop.permute.xlu0 %3215  ;;  %3887 = vrot.lane.b32.xlu1 %v12238_v10, %s11257_s17 }
 0x2b9   : > { %3889 = vrot.lane.b32.xlu0 %v12112_v62, %s11257_s17  ;;  %v3225_v18 = vsel %vm574_vm4, %v3216_v25, %v3218_v12 }
 0x2ba   : > { %v3335_v59 = vpop.permute.xlu1 %3334 }
 0x2bc   : > { %v3220_v14 = vpop.permute.xlu0 %3219  ;;  %3891 = vrot.lane.b32.xlu1 %v12253_v35, %s11257_s17 }
 0x2bd   : > { %v3226_v38 = vsel %vm574_vm4, %v3220_v14, %v3222_v51  ;;  %3893 = vrot.lane.b32.xlu0 %v12126_v42, %s11257_s17 }
 0x2be   : > { %3260 = vmatpush1.msra.mxu1 %v3226_v38  ;;  %v3339_v33 = vpop.permute.xlu1 %3338 }
 0x2bf   : > { %3261 = vmatprep.subr.mxu1 %v3218_v12 }
 0x2c0   : > { %3262 = vmatpush1.msra.mxu1 %v3225_v18  ;;  %v3333_v3 = vpop.permute.xlu0 %3332  ;;  %3895 = vrot.lane.b32.xlu1 %v12266_v9, %s11257_s17 }
 0x2c1   : > { %3263 = vmatprep.subr.mxu1 %v3214_v32  ;;  %3897 = vrot.lane.b32.xlu0 %v12139_v46, %s11257_s17  ;;  %v3356_v17 = vsel %vm711_vm5, %v3333_v3, %v3335_v59  ;;  %v12553_v32 = vld [vmem:[%s11387_s11 + $0x168] sm:$0xff] }
 0x2c2   : > { %3264 = vmatpush1.msra.mxu1 %v3224_v61  ;;  %v3343_v2 = vpop.permute.xlu1 %3342 }
 0x2c3   : > { %3265 = vmatprep.subr.mxu1 %v3210_v30 }
 0x2c4   : > { %3266 = vmatpush1.msra.mxu1 %v3223_v40  ;;  %v3337_v4 = vpop.permute.xlu0 %3336  ;;  %3899 = vrot.lane.b32.xlu1 %v12282_v56, %s11257_s17 }
 0x2c5   : > { %3986 = vrot.lane.b32.xlu0 %v12102_v58, %s11259_s7  ;;  %10863 = vmatmul.mubr.msk.f32.vlgmr.msra.gmra.mxu1 %vm275_vm1, %v12468_v43  ;;  %v3357_v16 = vsel %vm711_vm5, %v3335_v59, %v3337_v4 }
 0x2c6   : > { %v3347_v44 = vpop.permute.xlu1 %3346  ;;  %3549 = vmatprep.mubr.f32.mxu1 %v11260_v8 }
 0x2c8   : > { %v3341_v45 = vpop.permute.xlu0 %3340  ;;  %3988 = vrot.lane.b32.xlu1 %v12238_v10, %s11259_s7 }
 0x2c9   : > { %3990 = vrot.lane.b32.xlu0 %v12112_v62, %s11259_s7  ;;  %v3359_v15 = vsel %vm711_vm5, %v3341_v45, %v3343_v2  ;;  %v3358_v39 = vsel %vm711_vm5, %v3339_v33, %v3341_v45  ;;  %v12575_v33 = vld [vmem:[#allocation4 + $0x14] sm:$0x7] }
 0x2ca   : > { %v3351_v48 = vpop.permute.xlu1 %3350 }
 0x2cc   : > { %v3345_v41 = vpop.permute.xlu0 %3344  ;;  %3992 = vrot.lane.b32.xlu1 %v12253_v35, %s11259_s7 }
 0x2cd   : > { %3994 = vrot.lane.b32.xlu0 %v12126_v42, %s11259_s7  ;;  %v3360_v1 = vsel %vm711_vm5, %v3345_v41, %v3347_v44 }
 0x2ce   : > { %v3355_v49 = vpop.permute.xlu1 %3354 }
 0x2d0   : > { %v3349_v54 = vpop.permute.xlu0 %3348  ;;  %3996 = vrot.lane.b32.xlu1 %v12266_v9, %s11259_s7 }
 0x2d1   : > { %3998 = vrot.lane.b32.xlu0 %v12139_v46, %s11259_s7  ;;  %v3361_v37 = vsel %vm711_vm5, %v3347_v44, %v3349_v54 }
 0x2d2   : > { %v12485_v50 = vpop.permute.xlu1 %3447 }
 0x2d4   : > { %v3353_v55 = vpop.permute.xlu0 %3352  ;;  %4000 = vrot.lane.b32.xlu1 %v12282_v56, %s11259_s7 }
 0x2d5   : > { %v3363_v53 = vsel %vm711_vm5, %v3353_v55, %v3355_v49  ;;  %v3362_v0 = vsel %vm711_vm5, %v3351_v48, %v3353_v55  ;;  %4087 = vrot.lane.b32.xlu0 %v12102_v58, %s11261_s10 }
 0x2d6   : > { %3396 = vmatprep.subr.mxu0 %v3363_v53  ;;  %v12493_v60 = vpop.permute.xlu1 %3451 }
 0x2d7   : > { %3397 = vmatpush1.msra.mxu0 %v3362_v0 }
 0x2d8   : > { %3398 = vmatprep.subr.mxu0 %v3361_v37  ;;  %v3446_v13 = vpop.permute.xlu0 %3445  ;;  %4089 = vrot.lane.b32.xlu1 %v12238_v10, %s11261_s10  ;;  %v12509_v10 = vld [vmem:[#allocation4 + $0x10] sm:$0x7] }
 0x2d9   : > { %3399 = vmatpush1.msra.mxu0 %v3360_v1  ;;  %4091 = vrot.lane.b32.xlu0 %v12112_v62, %s11261_s10  ;;  %v3469_v59 = vsel %vm828_vm6, %v3446_v13, %v12485_v50 }
 0x2da   : > { %3400 = vmatprep.subr.mxu0 %v3359_v15  ;;  %v3456_v58 = vpop.permute.xlu1 %3455  ;;  %v12620_v15 = vld [vmem:[#allocation4 + $0x18] sm:$0x7] }
 0x2db   : > { %3401 = vmatpush1.msra.mxu0 %v3358_v39 }
 0x2dc   : > { %3402 = vmatprep.subr.mxu0 %v3357_v16  ;;  %v3450_v19 = vpop.permute.xlu0 %3449  ;;  %4093 = vrot.lane.b32.xlu1 %v12253_v35, %s11261_s10 }
 0x2dd   : > { %3403 = vmatpush1.msra.mxu0 %v3356_v17  ;;  %4095 = vrot.lane.b32.xlu0 %v12126_v42, %s11261_s10  ;;  %v3470_v25 = vsel %vm828_vm6, %v12485_v50, %v3450_v19  ;;  %v1697_v17 = vpop.f32.mrf.mxu0 }
 0x2de   : > { %v3460_v62 = vpop.permute.xlu1 %3459  ;;  %10876 = vmatmul.mubr.msk.f32.vlgmr.msra.gmra.mxu0 %vm275_vm1, %v12509_v10 }
 0x2df   : > { %3662 = vmatprep.mubr.f32.mxu0 %v11260_v8 }
 0x2e0   : > { %v3454_v21 = vpop.permute.xlu0 %3453  ;;  %4097 = vrot.lane.b32.xlu1 %v12266_v9, %s11261_s10 }
 0x2e1   : > { %4099 = vrot.lane.b32.xlu0 %v12139_v46, %s11261_s10  ;;  %v12534_v46 = vld [vmem:[%s11387_s11 + $0x140] sm:$0xff]  ;;  %v3472_v12 = vsel %vm828_vm6, %v3454_v21, %v3456_v58  ;;  %v3471_v51 = vsel %vm828_vm6, %v12493_v60, %v3454_v21  ;;  %v1699_v21 = vpop.f32.mrf.mxu0 }
 0x2e2   : > { %v3464_v35 = vpop.permute.xlu1 %3463 }
 0x2e4   : > { %v3458_v42 = vpop.permute.xlu0 %3457  ;;  %4101 = vrot.lane.b32.xlu1 %v12282_v56, %s11261_s10  ;;  %v12541_v56 = vld [vmem:[%s11387_s11 + $0x150] sm:$0xff] }
 0x2e5   : > { %4213 = vrot.lane.b32.xlu0 %v12519_v22, %s11257_s17  ;;  %v3473_v6 = vsel %vm828_vm6, %v3458_v42, %v3460_v62 }
 0x2e6   : > { %v3468_v23 = vpop.permute.xlu1 %3467 }
 0x2e8   : > { %v3462_v9 = vpop.permute.xlu0 %3461  ;;  %4215 = vrot.lane.b32.xlu1 %v12524_v26, %s11257_s17 }
 0x2e9   : > { %4217 = vrot.lane.b32.xlu0 %v12529_v20, %s11257_s17  ;;  %v3474_v47 = vsel %vm828_vm6, %v3460_v62, %v3462_v9 }
 0x2ea   : > { %v12538_v52 = vpop.permute.xlu1 %3560 }
 0x2ec   : > { %v3466_v5 = vpop.permute.xlu0 %3465  ;;  %4219 = vrot.lane.b32.xlu1 %v12534_v46, %s11257_s17 }
 0x2ed   : > { %v3476_v29 = vsel %vm828_vm6, %v3466_v5, %v3468_v23  ;;  %v3475_v30 = vsel %vm828_vm6, %v3464_v35, %v3466_v5  ;;  %4221 = vrot.lane.b32.xlu0 %v12541_v56, %s11257_s17  ;;  %v1796_v35 = vpop.f32.mrf.mxu1 }
 0x2ee   : > { %3509 = vmatprep.subr.mxu1 %v3476_v29  ;;  %v3565_v34 = vpop.permute.xlu1 %3564  ;;  %v1895_v29 = vpop.f32.mrf.mxu0 }
 0x2ef   : > { %3510 = vmatpush1.msra.mxu1 %v3475_v30  ;;  %v1798_v5 = vpop.f32.mrf.mxu1 }
 0x2f0   : > { %3511 = vmatprep.subr.mxu1 %v3474_v47  ;;  %v3559_v28 = vpop.permute.xlu0 %3558  ;;  %4223 = vrot.lane.b32.xlu1 %v12548_v31, %s11257_s17 }
 0x2f1   : > { %3512 = vmatpush1.msra.mxu1 %v3473_v6  ;;  %4225 = vrot.lane.b32.xlu0 %v12553_v32, %s11257_s17  ;;  %v3582_v37 = vsel %vm945_vm7, %v3559_v28, %v12538_v52 }
 0x2f2   : > { %3513 = vmatprep.subr.mxu1 %v3472_v12  ;;  %v3569_v36 = vpop.permute.xlu1 %3568  ;;  %v1799_v12 = vadd.f32 %v1798_v5, %v1699_v21 }
 0x2f3   : > { %3514 = vmatpush1.msra.mxu1 %v3471_v51  ;;  %v1897_v51 = vpop.f32.mrf.mxu0 }
 0x2f4   : > { %3515 = vmatprep.subr.mxu1 %v3470_v25  ;;  %v3563_v14 = vpop.permute.xlu0 %3562  ;;  %4227 = vrot.lane.b32.xlu1 %v12561_v27, %s11257_s17  ;;  %v1996_v25 = vpop.f32.mrf.mxu1 }
 0x2f5   : > { %3516 = vmatpush1.msra.mxu1 %v3469_v59  ;;  %4312 = vrot.lane.b32.xlu0 %v12519_v22, %s11258_s18  ;;  %v3583_v60 = vsel %vm945_vm7, %v12538_v52, %v3563_v14 }
 0x2f6   : > { %v3573_v38 = vpop.permute.xlu1 %3572  ;;  %10877 = vmatmul.mubr.msk.f32.vlgmr.msra.gmra.mxu1 %vm275_vm1, %v12575_v33 }
 0x2f7   : > { %3775 = vmatprep.mubr.f32.mxu1 %v11260_v8 }
 0x2f8   : > { %v3567_v18 = vpop.permute.xlu0 %3566  ;;  %4314 = vrot.lane.b32.xlu1 %v12524_v26, %s11258_s18 }
 0x2f9   : > { %4316 = vrot.lane.b32.xlu0 %v12529_v20, %s11258_s18  ;;  %v3585_v55 = vsel %vm945_vm7, %v3567_v18, %v3569_v36  ;;  %v3584_v0 = vsel %vm945_vm7, %v3565_v34, %v3567_v18  ;;  %v1797_v34 = vadd.f32 %v1796_v35, %v1697_v17 }
 0x2fa   : > { %v3577_v3 = vpop.permute.xlu1 %3576 }
 0x2fc   : > { %v3571_v61 = vpop.permute.xlu0 %3570  ;;  %4318 = vrot.lane.b32.xlu1 %v12534_v46, %s11258_s18 }
 0x2fd   : > { %4320 = vrot.lane.b32.xlu0 %v12541_v56, %s11258_s18  ;;  %v3586_v54 = vsel %vm945_vm7, %v3571_v61, %v3573_v38 }
 0x2fe   : > { %v3581_v2 = vpop.permute.xlu1 %3580 }
 0x300   : > { %v3575_v40 = vpop.permute.xlu0 %3574  ;;  %4322 = vrot.lane.b32.xlu1 %v12548_v31, %s11258_s18 }
 0x301   : > { %4324 = vrot.lane.b32.xlu0 %v12553_v32, %s11258_s18  ;;  %v3587_v49 = vsel %vm945_vm7, %v3573_v38, %v3575_v40  ;;  %v1900_v38 = vadd.f32 %v1895_v29, %v1797_v34  ;;  %v1998_v40 = vpop.f32.mrf.mxu1  ;;  %v12694_v29 = vld [vmem:[%s11387_s11 + $0x160] sm:$0xff] }
 0x302   : > { %v12592_v4 = vpop.permute.xlu1 %3673 }
 0x304   : > { %v3579_v44 = vpop.permute.xlu0 %3578  ;;  %4326 = vrot.lane.b32.xlu1 %v12561_v27, %s11258_s18 }
 0x305   : > { %v3589_v45 = vsel %vm945_vm7, %v3579_v44, %v3581_v2  ;;  %v3588_v48 = vsel %vm945_vm7, %v3577_v3, %v3579_v44  ;;  %4411 = vrot.lane.b32.xlu0 %v12519_v22, %s11259_s7  ;;  %v1901_v2 = vadd.f32 %v1897_v51, %v1799_v12  ;;  %v2133_v44 = vpop.f32.mrf.mxu0 }
 0x306   : > { %3622 = vmatprep.subr.mxu0 %v3589_v45  ;;  %v12600_v41 = vpop.permute.xlu1 %3677 }
 0x307   : > { %3623 = vmatpush1.msra.mxu0 %v3588_v48  ;;  %v12666_v48 = vld [vmem:[%s11387_s11 + $0x130] sm:$0xff] }
 0x308   : > { %3624 = vmatprep.subr.mxu0 %v3587_v49  ;;  %v12604_v50 = vpop.permute.xlu0 %3671  ;;  %4413 = vrot.lane.b32.xlu1 %v12524_v26, %s11259_s7  ;;  %v12668_v49 = vld [vmem:[#allocation4 + $0x1c] sm:$0x7] }
 0x309   : > { %3625 = vmatpush1.msra.mxu0 %v3586_v54  ;;  %4415 = vrot.lane.b32.xlu0 %v12529_v20, %s11259_s7  ;;  %v3695_v3 = vsel %vm1062_vm8, %v12604_v50, %v12592_v4  ;;  %v2002_v54 = vadd.f32 %v1998_v40, %v1901_v2  ;;  %v2135_v50 = vpop.f32.mrf.mxu0 }
 0x30a   : > { %3626 = vmatprep.subr.mxu0 %v3585_v55  ;;  %v3682_v53 = vpop.permute.xlu1 %3681  ;;  %v2246_v55 = vpop.f32.mrf.mxu1 }
 0x30b   : > { %3627 = vmatpush1.msra.mxu0 %v3584_v0 }
 0x30c   : > { %3628 = vmatprep.subr.mxu0 %v3583_v60  ;;  %v3676_v1 = vpop.permute.xlu0 %3675  ;;  %4417 = vrot.lane.b32.xlu1 %v12534_v46, %s11259_s7 }
 0x30d   : > { %3629 = vmatpush1.msra.mxu0 %v3582_v37  ;;  %4419 = vrot.lane.b32.xlu0 %v12541_v56, %s11259_s7  ;;  %v3696_v18 = vsel %vm1062_vm8, %v12592_v4, %v3676_v1  ;;  %v2139_v37 = vadd.f32 %v2135_v50, %v2002_v54 }
 0x30e   : > { %v3686_v13 = vpop.permute.xlu1 %3685  ;;  %10878 = vmatmul.mubr.msk.f32.vlgmr.msra.gmra.mxu0 %vm275_vm1, %v12620_v15 }
 0x30f   : > { %3876 = vmatprep.mubr.f32.mxu0 %v11260_v8 }
 0x310   : > { %v3680_v58 = vpop.permute.xlu0 %3679  ;;  %4421 = vrot.lane.b32.xlu1 %v12548_v31, %s11259_s7 }
 0x311   : > { %4423 = vrot.lane.b32.xlu0 %v12553_v32, %s11259_s7  ;;  %v3698_v36 = vsel %vm1062_vm8, %v3680_v58, %v3682_v53  ;;  %v3697_v14 = vsel %vm1062_vm8, %v12600_v41, %v3680_v58  ;;  %v2001_v41 = vadd.f32 %v1996_v25, %v1900_v38  ;;  %v2248_v58 = vpop.f32.mrf.mxu1 }
 0x312   : > { %v3690_v39 = vpop.permute.xlu1 %3689  ;;  %v2252_v21 = vadd.f32 %v2248_v58, %v2139_v37 }
 0x313   : > { %v2138_v0 = vadd.f32 %v2133_v44, %v2001_v41 }
 0x314   : > { %v3684_v16 = vpop.permute.xlu0 %3683  ;;  %4425 = vrot.lane.b32.xlu1 %v12561_v27, %s11259_s7 }
 0x315   : > { %4512 = vrot.lane.b32.xlu0 %v12519_v22, %s11261_s10  ;;  %v3699_v6 = vsel %vm1062_vm8, %v3684_v16, %v3686_v13  ;;  %v2251_v17 = vadd.f32 %v2246_v55, %v2138_v0 }
 0x316   : > { %v3694_v19 = vpop.permute.xlu1 %3693 }
 0x318   : > { %v3688_v62 = vpop.permute.xlu0 %3687  ;;  %4514 = vrot.lane.b32.xlu1 %v12524_v26, %s11261_s10 }
 0x319   : > { %4516 = vrot.lane.b32.xlu0 %v12529_v20, %s11261_s10  ;;  %v3700_v47 = vsel %vm1062_vm8, %v3686_v13, %v3688_v62  ;;  %v12683_v13 = vld [vmem:[%s11387_s11 + $0x148] sm:$0xff] }
 0x31a   : > { %v12637_v42 = vpop.permute.xlu1 %3786 }
 0x31c   : > { %v3692_v23 = vpop.permute.xlu0 %3691  ;;  %4518 = vrot.lane.b32.xlu1 %v12534_v46, %s11261_s10 }
 0x31d   : > { %v3702_v9 = vsel %vm1062_vm8, %v3692_v23, %v3694_v19  ;;  %v3701_v52 = vsel %vm1062_vm8, %v3690_v39, %v3692_v23  ;;  %4520 = vrot.lane.b32.xlu0 %v12541_v56, %s11261_s10  ;;  %v2359_v39 = vpop.f32.mrf.mxu0 }
 0x31e   : > { %3735 = vmatprep.subr.mxu1 %v3702_v9  ;;  %v3791_v30 = vpop.permute.xlu1 %3790  ;;  %v2472_v9 = vpop.f32.mrf.mxu1  ;;  %v2364_v5 = vadd.f32 %v2359_v39, %v2251_v17 }
 0x31f   : > { %3736 = vmatpush1.msra.mxu1 %v3701_v52  ;;  %v2361_v23 = vpop.f32.mrf.mxu0 }
 0x320   : > { %3737 = vmatprep.subr.mxu1 %v3700_v47  ;;  %v12647_v28 = vpop.permute.xlu0 %3784  ;;  %4522 = vrot.lane.b32.xlu1 %v12548_v31, %s11261_s10  ;;  %v2477_v51 = vadd.f32 %v2472_v9, %v2364_v5 }
 0x321   : > { %3738 = vmatpush1.msra.mxu1 %v3699_v6  ;;  %4524 = vrot.lane.b32.xlu0 %v12553_v32, %s11261_s10  ;;  %v3800_v34 = vsel %vm366_vm2, %v12647_v28, %v12637_v42  ;;  %v2474_v6 = vpop.f32.mrf.mxu1  ;;  %v2573_v12 = vpop.f32.mrf.mxu0 }
 0x322   : > { %3739 = vmatprep.subr.mxu1 %v3698_v36  ;;  %v3795_v59 = vpop.permute.xlu1 %3794  ;;  %v12704_v36 = vld [vmem:[#allocation4 + $0x20] sm:$0x7] }
 0x323   : > { %3740 = vmatpush1.msra.mxu1 %v3697_v14  ;;  %v2575_v14 = vpop.f32.mrf.mxu0 }
 0x324   : > { %3741 = vmatprep.subr.mxu1 %v3696_v18  ;;  %v3789_v61 = vpop.permute.xlu0 %3788  ;;  %4526 = vrot.lane.b32.xlu1 %v12561_v27, %s11261_s10 }
 0x325   : > { %3742 = vmatpush1.msra.mxu1 %v3695_v3  ;;  %4637 = vrot.lane.b32.xlu0 %v12519_v22, %s11262_s12  ;;  %v3801_v35 = vsel %vm366_vm2, %v3789_v61, %v3791_v30  ;;  %v2674_v38 = vpop.f32.mrf.mxu1  ;;  %v2578_v3 = vadd.f32 %v2573_v12, %v2477_v51 }
 0x326   : > { %v3799_v45 = vpop.permute.xlu1 %3798  ;;  %10879 = vmatmul.mubr.msk.f32.vlgmr.msra.gmra.mxu1 %vm275_vm1, %v12668_v49 }
 0x327   : > { %3836 = vmatprep.subr.mxu0 %v3799_v45  ;;  %3977 = vmatprep.mubr.f32.mxu1 %v11260_v8  ;;  %v2676_v44 = vpop.f32.mrf.mxu1 }
 0x328   : > { %v3793_v4 = vpop.permute.xlu0 %3792  ;;  %4639 = vrot.lane.b32.xlu1 %v12524_v26, %s11262_s12 }
 0x329   : > { %4641 = vrot.lane.b32.xlu0 %v12666_v48, %s11262_s12  ;;  %v3802_v19 = vsel %vm366_vm2, %v3793_v4, %v3795_v59  ;;  %v2679_v4 = vadd.f32 %v2674_v38, %v2578_v3  ;;  %v12768_v38 = vld [vmem:[#allocation4 + $0x28] sm:$0x7] }
 0x32a   : > { %v12677_v53 = vpop.permute.xlu1 %3887 }
 0x32c   : > { %v3797_v60 = vpop.permute.xlu0 %3796  ;;  %4643 = vrot.lane.b32.xlu1 %v12529_v20, %s11262_s12 }
 0x32d   : > { %v3803_v1 = vsel %vm366_vm2, %v3797_v60, %v3799_v45  ;;  %4645 = vrot.lane.b32.xlu0 %v12534_v46, %s11262_s12 }
 0x32e   : > { %3837 = vmatpush1.msra.mxu0 %v3803_v1  ;;  %v3892_v16 = vpop.permute.xlu1 %3891 }
 0x32f   : > { %3838 = vmatprep.subr.mxu0 %v3795_v59  ;;  %v12712_v59 = vld [vmem:[%s11387_s11 + $0x178] sm:$0xff] }
 0x330   : > { %3839 = vmatpush1.msra.mxu0 %v3802_v19  ;;  %v3886_v62 = vpop.permute.xlu0 %3885  ;;  %4647 = vrot.lane.b32.xlu1 %v12683_v13, %s11262_s12 }
 0x331   : > { %3840 = vmatprep.subr.mxu0 %v3791_v30  ;;  %4649 = vrot.lane.b32.xlu0 %v12541_v56, %s11262_s12  ;;  %v2365_v30 = vadd.f32 %v2361_v23, %v2252_v21  ;;  %v3901_v58 = vsel %vm262_vm0, %v3886_v62, %v12677_v53 }
 0x332   : > { %3841 = vmatpush1.msra.mxu0 %v3801_v35  ;;  %v3896_v52 = vpop.permute.xlu1 %3895 }
 0x333   : > { %3842 = vmatprep.subr.mxu0 %v12637_v42  ;;  %v2478_v25 = vadd.f32 %v2474_v6, %v2365_v30 }
 0x334   : > { %3843 = vmatpush1.msra.mxu0 %v3800_v34  ;;  %v3890_v47 = vpop.permute.xlu0 %3889  ;;  %4651 = vrot.lane.b32.xlu1 %v12548_v31, %s11262_s12 }
 0x335   : > { %4653 = vrot.lane.b32.xlu0 %v12694_v29, %s11262_s12  ;;  %10880 = vmatmul.mubr.msk.f32.vlgmr.msra.gmra.mxu0 %vm275_vm1, %v12704_v36  ;;  %v2579_v2 = vadd.f32 %v2575_v14, %v2478_v25  ;;  %v2775_v45 = vpop.f32.mrf.mxu0  ;;  %v3902_v0 = vsel %vm262_vm0, %v3890_v47, %v3892_v16 }
 0x336   : > { %v3900_v28 = vpop.permute.xlu1 %3899  ;;  %4078 = vmatprep.mubr.f32.mxu0 %v11260_v8  ;;  %v2780_v1 = vadd.f32 %v2775_v45, %v2679_v4 }
 0x337   : > { %3937 = vmatprep.subr.mxu1 %v3900_v28  ;;  %v2680_v55 = vadd.f32 %v2676_v44, %v2579_v2  ;;  %v2777_v60 = vpop.f32.mrf.mxu0 }
 0x338   : > { %v3894_v42 = vpop.permute.xlu0 %3893  ;;  %4655 = vrot.lane.b32.xlu1 %v12553_v32, %s11262_s12 }
 0x339   : > { %4657 = vrot.lane.b32.xlu0 %v12561_v27, %s11262_s12  ;;  %v3903_v54 = vsel %vm262_vm0, %v3894_v42, %v3896_v52  ;;  %v2781_v17 = vadd.f32 %v2777_v60, %v2680_v55 }
 0x33a   : > { %v12716_v18 = vpop.permute.xlu1 %3988 }
 0x33c   : > { %v3898_v61 = vpop.permute.xlu0 %3897  ;;  %4659 = vrot.lane.b32.xlu1 %v12712_v59, %s11262_s12 }
 0x33d   : > { %v3904_v40 = vsel %vm262_vm0, %v3898_v61, %v3900_v28  ;;  %4750 = vrot.lane.b32.xlu0 %v12519_v22, %s11263_s19 }
 0x33e   : > { %3938 = vmatpush1.msra.mxu1 %v3904_v40  ;;  %v3993_v41 = vpop.permute.xlu1 %3992 }
 0x33f   : > { %3939 = vmatprep.subr.mxu1 %v3896_v52 }
 0x340   : > { %3940 = vmatpush1.msra.mxu1 %v3903_v54  ;;  %v3987_v50 = vpop.permute.xlu0 %3986  ;;  %4752 = vrot.lane.b32.xlu1 %v12524_v26, %s11263_s19 }
 0x341   : > { %3941 = vmatprep.subr.mxu1 %v3892_v16  ;;  %4754 = vrot.lane.b32.xlu0 %v12666_v48, %s11263_s19  ;;  %v12736_v16 = vld [vmem:[#allocation4 + $0x24] sm:$0x7]  ;;  %v4002_v25 = vsel %vm469_vm3, %v3987_v50, %v12716_v18 }
 0x342   : > { %3942 = vmatpush1.msra.mxu1 %v3902_v0  ;;  %v3997_v37 = vpop.permute.xlu1 %3996  ;;  %v12791_v0 = vld [vmem:[#allocation4 + $0x2c] sm:$0x7] }
 0x343   : > { %3943 = vmatprep.subr.mxu1 %v12677_v53 }
 0x344   : > { %3944 = vmatpush1.msra.mxu1 %v3901_v58  ;;  %v3991_v39 = vpop.permute.xlu0 %3990  ;;  %4756 = vrot.lane.b32.xlu1 %v12529_v20, %s11263_s19 }
 0x345   : > { %v2876_v19 = vpop.f32.mrf.mxu1  ;;  %4758 = vrot.lane.b32.xlu0 %v12534_v46, %s11263_s19  ;;  %10881 = vmatmul.mubr.msk.f32.vlgmr.msra.gmra.mxu1 %vm275_vm1, %v12736_v16  ;;  %v4003_v51 = vsel %vm469_vm3, %v3991_v39, %v3993_v41 }
 0x346   : > { %v2881_v21 = vadd.f32 %v2876_v19, %v2780_v1  ;;  %v4001_v35 = vpop.permute.xlu1 %4000  ;;  %4179 = vmatprep.mubr.f32.mxu1 %v11260_v8 }
 0x347   : > { %v2878_v53 = vpop.f32.mrf.mxu1  ;;  %4038 = vmatprep.subr.mxu0 %v4001_v35 }
 0x348   : > { %v2882_v62 = vadd.f32 %v2878_v53, %v2781_v17  ;;  %v3995_v23 = vpop.permute.xlu0 %3994  ;;  %4760 = vrot.lane.b32.xlu1 %v12683_v13, %s11263_s19  ;;  %v2883_v9 = vadd.f32 %v2881_v21, %v11951_v63 }
 0x349   : > { %4762 = vrot.lane.b32.xlu0 %v12541_v56, %s11263_s19  ;;  %v4004_v12 = vsel %vm469_vm3, %v3995_v23, %v3997_v37 }
 0x34a   : > { %v2884_v52 = vadd.f32 %v2882_v62, %v11951_v63  ;;  %v4090_v5 = vpop.permute.xlu1 %4089 }
 0x34c   : > { %v2887_v34 = vcombine.low %v2883_v9, %v2884_v52  ;;  %v3999_v47 = vpop.permute.xlu0 %3998  ;;  %4764 = vrot.lane.b32.xlu1 %v12548_v31, %s11263_s19 }
 0x34d   : > { %v4005_v30 = vsel %vm469_vm3, %v3999_v47, %v4001_v35  ;;  %4766 = vrot.lane.b32.xlu0 %v12694_v29, %s11263_s19 }
 0x34e   : > { %10851 = vst.msk [vmem:[%s12305_s26 + $0x8] sm:$0x77] %vm12307_vm11, %v2887_v34  ;;  %4039 = vmatpush1.msra.mxu0 %v4005_v30  ;;  %v4094_v6 = vpop.permute.xlu1 %4093 }
 0x34f   : > { %4040 = vmatprep.subr.mxu0 %v3997_v37 }
 0x350   : > { %4041 = vmatpush1.msra.mxu0 %v4004_v12  ;;  %v4088_v28 = vpop.permute.xlu0 %4087  ;;  %4768 = vrot.lane.b32.xlu1 %v12553_v32, %s11263_s19 }
 0x351   : > { %4042 = vmatprep.subr.mxu0 %v3993_v41  ;;  %4770 = vrot.lane.b32.xlu0 %v12561_v27, %s11263_s19  ;;  %v4103_v50 = vsel %vm574_vm4, %v4088_v28, %v4090_v5 }
 0x352   : > { %4043 = vmatpush1.msra.mxu0 %v4003_v51  ;;  %v4098_v42 = vpop.permute.xlu1 %4097 }
 0x353   : > { %4044 = vmatprep.subr.mxu0 %v12716_v18 }
 0x354   : > { %4045 = vmatpush1.msra.mxu0 %v4002_v25  ;;  %v4092_v14 = vpop.permute.xlu0 %4091  ;;  %4772 = vrot.lane.b32.xlu1 %v12712_v59, %s11263_s19 }
 0x355   : > { %4863 = vrot.lane.b32.xlu0 %v12519_v22, %s11265_s15  ;;  %10882 = vmatmul.mubr.msk.f32.vlgmr.msra.gmra.mxu0 %vm275_vm1, %v12768_v38  ;;  %v4104_v4 = vsel %vm574_vm4, %v4092_v14, %v4094_v6 }
 0x356   : > { %v4102_v3 = vpop.permute.xlu1 %4101  ;;  %4305 = vmatprep.mubr.f32.mxu0 %v11260_v8 }
 0x357   : > { %4139 = vmatprep.subr.mxu1 %v4102_v3 }
 0x358   : > { %v4096_v61 = vpop.permute.xlu0 %4095  ;;  %4865 = vrot.lane.b32.xlu1 %v12524_v26, %s11265_s15 }
 0x359   : > { %4867 = vrot.lane.b32.xlu0 %v12666_v48, %s11265_s15  ;;  %v4105_v45 = vsel %vm574_vm4, %v4096_v61, %v4098_v42 }
 0x35a   : > { %v4216_v18 = vpop.permute.xlu1 %4215 }
 0x35c   : > { %v4100_v2 = vpop.permute.xlu0 %4099  ;;  %4869 = vrot.lane.b32.xlu1 %v12529_v20, %s11265_s15 }
 0x35d   : > { %v4106_v40 = vsel %vm574_vm4, %v4100_v2, %v4102_v3  ;;  %4871 = vrot.lane.b32.xlu0 %v12534_v46, %s11265_s15 }
 0x35e   : > { %4140 = vmatpush1.msra.mxu1 %v4106_v40  ;;  %v4220_v44 = vpop.permute.xlu1 %4219 }
 0x35f   : > { %4141 = vmatprep.subr.mxu1 %v4098_v42 }
 0x360   : > { %4142 = vmatpush1.msra.mxu1 %v4105_v45  ;;  %v4214_v41 = vpop.permute.xlu0 %4213  ;;  %4873 = vrot.lane.b32.xlu1 %v12683_v13, %s11265_s15 }
 0x361   : > { %4143 = vmatprep.subr.mxu1 %v4094_v6  ;;  %4875 = vrot.lane.b32.xlu0 %v12541_v56, %s11265_s15 }
 0x362   : > { %4144 = vmatpush1.msra.mxu1 %v4104_v4  ;;  %v4224_v54 = vpop.permute.xlu1 %4223 }
 0x363   : > { %4145 = vmatprep.subr.mxu1 %v4090_v5 }
 0x364   : > { %4146 = vmatpush1.msra.mxu1 %v4103_v50  ;;  %v4218_v55 = vpop.permute.xlu0 %4217  ;;  %4877 = vrot.lane.b32.xlu1 %v12548_v31, %s11265_s15 }
 0x365   : > { %10883 = vmatmul.mubr.msk.f32.vlgmr.msra.gmra.mxu1 %vm275_vm1, %v12791_v0  ;;  %4879 = vrot.lane.b32.xlu0 %v12694_v29, %s11265_s15  ;;  %v4230_v35 = vsel %vm262_vm0, %v4218_v55, %v4220_v44 }
 0x366   : > { %v4228_v60 = vpop.permute.xlu1 %4227  ;;  %4404 = vmatprep.mubr.f32.mxu1 %v11260_v8 }
 0x367   : > { %4265 = vmatprep.subr.mxu0 %v4228_v60 }
 0x368   : > { %v4222_v37 = vpop.permute.xlu0 %4221  ;;  %4881 = vrot.lane.b32.xlu1 %v12553_v32, %s11265_s15 }
 0x369   : > { %4883 = vrot.lane.b32.xlu0 %v12561_v27, %s11265_s15  ;;  %v4231_v19 = vsel %vm262_vm0, %v4222_v37, %v4224_v54 }
 0x36a   : > { %v4315_v1 = vpop.permute.xlu1 %4314 }
 0x36c   : > { %v4226_v58 = vpop.permute.xlu0 %4225  ;;  %4885 = vrot.lane.b32.xlu1 %v12712_v59, %s11265_s15 }
 0x36d   : > { %v4232_v39 = vsel %vm262_vm0, %v4226_v58, %v4228_v60  ;;  %4976 = vrot.lane.b32.xlu0 %v12519_v22, %s11266_s20  ;;  %v4229_v22 = vsel %vm262_vm0, %v4214_v41, %v4216_v18 }
 0x36e   : > { %4266 = vmatpush1.msra.mxu0 %v4232_v39  ;;  %v4319_v17 = vpop.permute.xlu1 %4318 }
 0x36f   : > { %4267 = vmatprep.subr.mxu0 %v4224_v54 }
 0x370   : > { %4268 = vmatpush1.msra.mxu0 %v4231_v19  ;;  %v4313_v21 = vpop.permute.xlu0 %4312  ;;  %4978 = vrot.lane.b32.xlu1 %v12524_v26, %s11266_s20 }
 0x371   : > { %4269 = vmatprep.subr.mxu0 %v4220_v44  ;;  %4980 = vrot.lane.b32.xlu0 %v12666_v48, %s11266_s20  ;;  %v4328_v6 = vsel %vm366_vm2, %v4313_v21, %v4315_v1 }
 0x372   : > { %4270 = vmatpush1.msra.mxu0 %v4230_v35  ;;  %v4323_v53 = vpop.permute.xlu1 %4322 }
 0x373   : > { %4271 = vmatprep.subr.mxu0 %v4216_v18 }
 0x374   : > { %4272 = vmatpush1.msra.mxu0 %v4229_v22  ;;  %v4317_v62 = vpop.permute.xlu0 %4316  ;;  %4982 = vrot.lane.b32.xlu1 %v12529_v20, %s11266_s20 }
 0x375   : > { %4984 = vrot.lane.b32.xlu0 %v12534_v46, %s11266_s20  ;;  %10893 = vmatmul.mubr.msk.f32.vlgmr.msra.gmra.mxu0 %vm275_vm1, %v12393_v7 }
 0x376   : > { %v4327_v23 = vpop.permute.xlu1 %4326  ;;  %4503 = vmatprep.mubr.f32.mxu0 %v11260_v8 }
 0x377   : > { %4364 = vmatprep.subr.mxu1 %v4327_v23 }
 0x378   : > { %v4321_v9 = vpop.permute.xlu0 %4320  ;;  %4986 = vrot.lane.b32.xlu1 %v12683_v13, %s11266_s20 }
 0x379   : > { %4988 = vrot.lane.b32.xlu0 %v12541_v56, %s11266_s20  ;;  %v4330_v34 = vsel %vm366_vm2, %v4321_v9, %v4323_v53  ;;  %v4329_v56 = vsel %vm366_vm2, %v4317_v62, %v4319_v17 }
 0x37a   : > { %v4414_v52 = vpop.permute.xlu1 %4413 }
 0x37c   : > { %v4325_v5 = vpop.permute.xlu0 %4324  ;;  %4990 = vrot.lane.b32.xlu1 %v12548_v31, %s11266_s20 }
 0x37d   : > { %v4331_v20 = vsel %vm366_vm2, %v4325_v5, %v4327_v23  ;;  %4992 = vrot.lane.b32.xlu0 %v12694_v29, %s11266_s20 }
 0x37e   : > { %4365 = vmatpush1.msra.mxu1 %v4331_v20  ;;  %v4418_v7 = vpop.permute.xlu1 %4417 }
 0x37f   : > { %4366 = vmatprep.subr.mxu1 %v4323_v53 }
 0x380   : > { %4367 = vmatpush1.msra.mxu1 %v4330_v34  ;;  %v4412_v47 = vpop.permute.xlu0 %4411  ;;  %4994 = vrot.lane.b32.xlu1 %v12553_v32, %s11266_s20 }
 0x381   : > { %4368 = vmatprep.subr.mxu1 %v4319_v17  ;;  %4996 = vrot.lane.b32.xlu0 %v12561_v27, %s11266_s20  ;;  %v4427_v2 = vsel %vm469_vm3, %v4412_v47, %v4414_v52 }
 0x382   : > { %4369 = vmatpush1.msra.mxu1 %v4329_v56  ;;  %v4422_v30 = vpop.permute.xlu1 %4421 }
 0x383   : > { %4370 = vmatprep.subr.mxu1 %v4315_v1 }
 0x384   : > { %4371 = vmatpush1.msra.mxu1 %v4328_v6  ;;  %v4416_v12 = vpop.permute.xlu0 %4415  ;;  %4998 = vrot.lane.b32.xlu1 %v12712_v59, %s11266_s20  ;;  %v12934_v6 = vld [vmem:[%s11387_s11 + $0x180] sm:$0xff] }
 0x385   : > { %5089 = vrot.lane.b32.xlu0 %v12524_v26, %s11258_s18  ;;  %10894 = vmatmul.mubr.msk.f32.vlgmr.msra.gmra.mxu1 %vm275_vm1, %v12418_v11  ;;  %v4428_v61 = vsel %vm469_vm3, %v4416_v12, %v4418_v7 }
 0x386   : > { %v4426_v32 = vpop.permute.xlu1 %4425  ;;  %4604 = vmatprep.mubr.f32.mxu1 %v11260_v8 }
 0x387   : > { %4463 = vmatprep.subr.mxu0 %v4426_v32 }
 0x388   : > { %v4420_v28 = vpop.permute.xlu0 %4419  ;;  %5091 = vrot.lane.b32.xlu1 %v12666_v48, %s11258_s18 }
 0x389   : > { %5093 = vrot.lane.b32.xlu0 %v12534_v46, %s11258_s18  ;;  %v4429_v14 = vsel %vm469_vm3, %v4420_v28, %v4422_v30 }
 0x38a   : > { %v4515_v51 = vpop.permute.xlu1 %4514 }
 0x38c   : > { %v4424_v42 = vpop.permute.xlu0 %4423  ;;  %5095 = vrot.lane.b32.xlu1 %v12683_v13, %s11258_s18 }
 0x38d   : > { %v4430_v25 = vsel %vm469_vm3, %v4424_v42, %v4426_v32  ;;  %5097 = vrot.lane.b32.xlu0 %v12548_v31, %s11258_s18  ;;  %v12944_v32 = vld [vmem:[%s11387_s11 + $0x198] sm:$0xff] }
 0x38e   : > { %4464 = vmatpush1.msra.mxu0 %v4430_v25  ;;  %v4519_v11 = vpop.permute.xlu1 %4518 }
 0x38f   : > { %4465 = vmatprep.subr.mxu0 %v4422_v30 }
 0x390   : > { %4466 = vmatpush1.msra.mxu0 %v4429_v14  ;;  %v4513_v3 = vpop.permute.xlu0 %4512  ;;  %5099 = vrot.lane.b32.xlu1 %v12694_v29, %s11258_s18 }
 0x391   : > { %4467 = vmatprep.subr.mxu0 %v4418_v7  ;;  %5101 = vrot.lane.b32.xlu0 %v12561_v27, %s11258_s18  ;;  %v4528_v1 = vsel %vm574_vm4, %v4513_v3, %v4515_v51  ;;  %v12968_v3 = vld [vmem:[%s11387_s11 + $0x1c8] sm:$0xff] }
 0x392   : > { %4468 = vmatpush1.msra.mxu0 %v4428_v61  ;;  %v4523_v18 = vpop.permute.xlu1 %4522 }
 0x393   : > { %4469 = vmatprep.subr.mxu0 %v4414_v52 }
 0x394   : > { %4470 = vmatpush1.msra.mxu0 %v4427_v2  ;;  %v4517_v40 = vpop.permute.xlu0 %4516  ;;  %5103 = vrot.lane.b32.xlu1 %v12712_v59, %s11258_s18 }
 0x395   : > { %5190 = vrot.lane.b32.xlu0 %v12524_v26, %s11257_s17  ;;  %10895 = vmatmul.mubr.msk.f32.vlgmr.msra.gmra.mxu0 %vm275_vm1, %v12443_v57  ;;  %v4529_v60 = vsel %vm574_vm4, %v4517_v40, %v4519_v11 }
 0x396   : > { %v4527_v44 = vpop.permute.xlu1 %4526  ;;  %4741 = vmatprep.mubr.f32.mxu0 %v11260_v8 }
 0x397   : > { %4564 = vmatprep.subr.mxu1 %v4527_v44 }
 0x398   : > { %v4521_v45 = vpop.permute.xlu0 %4520  ;;  %5192 = vrot.lane.b32.xlu1 %v12666_v48, %s11257_s17 }
 0x399   : > { %5194 = vrot.lane.b32.xlu0 %v12534_v46, %s11257_s17  ;;  %v4530_v50 = vsel %vm574_vm4, %v4521_v45, %v4523_v18 }
 0x39a   : > { %v4640_v41 = vpop.permute.xlu1 %4639 }
 0x39c   : > { %v4525_v4 = vpop.permute.xlu0 %4524  ;;  %5196 = vrot.lane.b32.xlu1 %v12683_v13, %s11257_s17 }
 0x39d   : > { %v4531_v54 = vsel %vm574_vm4, %v4525_v4, %v4527_v44  ;;  %5198 = vrot.lane.b32.xlu0 %v12548_v31, %s11257_s17  ;;  %v12976_v44 = vld [vmem:[%s11387_s11 + $0x1d0] sm:$0xff] }
 0x39e   : > { %4565 = vmatpush1.msra.mxu1 %v4531_v54  ;;  %v4644_v57 = vpop.permute.xlu1 %4643 }
 0x39f   : > { %4566 = vmatprep.subr.mxu1 %v4523_v18 }
 0x3a0   : > { %4567 = vmatpush1.msra.mxu1 %v4530_v50  ;;  %v4638_v55 = vpop.permute.xlu0 %4637  ;;  %5200 = vrot.lane.b32.xlu1 %v12694_v29, %s11257_s17 }
 0x3a1   : > { %4568 = vmatprep.subr.mxu1 %v4519_v11  ;;  %5202 = vrot.lane.b32.xlu0 %v12561_v27, %s11257_s17  ;;  %v4661_v56 = vsel %vm711_vm5, %v4638_v55, %v4640_v41  ;;  %v12963_v11 = vld [vmem:[%s11387_s11 + $0x1b8] sm:$0xff] }
 0x3a2   : > { %4569 = vmatpush1.msra.mxu1 %v4529_v60  ;;  %v4648_v37 = vpop.permute.xlu1 %4647 }
 0x3a3   : > { %4570 = vmatprep.subr.mxu1 %v4515_v51 }
 0x3a4   : > { %4571 = vmatpush1.msra.mxu1 %v4528_v1  ;;  %v4642_v58 = vpop.permute.xlu0 %4641  ;;  %5204 = vrot.lane.b32.xlu1 %v12712_v59, %s11257_s17 }
 0x3a5   : > { %5291 = vrot.lane.b32.xlu0 %v12524_v26, %s11259_s7  ;;  %10896 = vmatmul.mubr.msk.f32.vlgmr.msra.gmra.mxu1 %vm275_vm1, %v12468_v43  ;;  %v4662_v47 = vsel %vm711_vm5, %v4640_v41, %v4642_v58 }
 0x3a6   : > { %v4652_v39 = vpop.permute.xlu1 %4651  ;;  %4854 = vmatprep.mubr.f32.mxu1 %v11260_v8 }
 0x3a8   : > { %v4646_v17 = vpop.permute.xlu0 %4645  ;;  %5293 = vrot.lane.b32.xlu1 %v12666_v48, %s11259_s7 }
 0x3a9   : > { %5295 = vrot.lane.b32.xlu0 %v12534_v46, %s11259_s7  ;;  %v4664_v7 = vsel %vm711_vm5, %v4646_v17, %v4648_v37  ;;  %v4663_v34 = vsel %vm711_vm5, %v4644_v57, %v4646_v17 }
 0x3aa   : > { %v4656_v19 = vpop.permute.xlu1 %4655 }
 0x3ac   : > { %v4650_v21 = vpop.permute.xlu0 %4649  ;;  %5297 = vrot.lane.b32.xlu1 %v12683_v13, %s11259_s7 }
 0x3ad   : > { %5299 = vrot.lane.b32.xlu0 %v12548_v31, %s11259_s7  ;;  %v4665_v5 = vsel %vm711_vm5, %v4650_v21, %v4652_v39 }
 0x3ae   : > { %v4660_v35 = vpop.permute.xlu1 %4659 }
 0x3b0   : > { %v4654_v43 = vpop.permute.xlu0 %4653  ;;  %5301 = vrot.lane.b32.xlu1 %v12694_v29, %s11259_s7 }
 0x3b1   : > { %5303 = vrot.lane.b32.xlu0 %v12561_v27, %s11259_s7  ;;  %v4666_v52 = vsel %vm711_vm5, %v4652_v39, %v4654_v43 }
 0x3b2   : > { %v12902_v53 = vpop.permute.xlu1 %4752 }
 0x3b4   : > { %v4658_v22 = vpop.permute.xlu0 %4657  ;;  %5305 = vrot.lane.b32.xlu1 %v12712_v59, %s11259_s7 }
 0x3b5   : > { %v4668_v62 = vsel %vm711_vm5, %v4658_v22, %v4660_v35  ;;  %v4667_v23 = vsel %vm711_vm5, %v4656_v19, %v4658_v22  ;;  %5392 = vrot.lane.b32.xlu0 %v12524_v26, %s11261_s10 }
 0x3b6   : > { %4701 = vmatprep.subr.mxu0 %v4668_v62  ;;  %v12910_v9 = vpop.permute.xlu1 %4756 }
 0x3b7   : > { %4702 = vmatpush1.msra.mxu0 %v4667_v23 }
 0x3b8   : > { %4703 = vmatprep.subr.mxu0 %v4666_v52  ;;  %v4751_v20 = vpop.permute.xlu0 %4750  ;;  %5394 = vrot.lane.b32.xlu1 %v12666_v48, %s11261_s10 }
 0x3b9   : > { %4704 = vmatpush1.msra.mxu0 %v4665_v5  ;;  %5396 = vrot.lane.b32.xlu0 %v12534_v46, %s11261_s10  ;;  %v4774_v54 = vsel %vm828_vm6, %v4751_v20, %v12902_v53 }
 0x3ba   : > { %4705 = vmatprep.subr.mxu0 %v4664_v7  ;;  %v4761_v26 = vpop.permute.xlu1 %4760 }
 0x3bb   : > { %4706 = vmatpush1.msra.mxu0 %v4663_v34 }
 0x3bc   : > { %4707 = vmatprep.subr.mxu0 %v4662_v47  ;;  %v4755_v30 = vpop.permute.xlu0 %4754  ;;  %5398 = vrot.lane.b32.xlu1 %v12683_v13, %s11261_s10  ;;  %v3002_v47 = vpop.f32.mrf.mxu0 }
 0x3bd   : > { %4708 = vmatpush1.msra.mxu0 %v4661_v56  ;;  %5400 = vrot.lane.b32.xlu0 %v12548_v31, %s11261_s10  ;;  %v12939_v31 = vld [vmem:[%s11387_s11 + $0x188] sm:$0xff]  ;;  %v4775_v4 = vsel %vm828_vm6, %v12902_v53, %v4755_v30 }
 0x3be   : > { %v4765_v46 = vpop.permute.xlu1 %4764  ;;  %10909 = vmatmul.mubr.msk.f32.vlgmr.msra.gmra.mxu0 %vm275_vm1, %v12509_v10  ;;  %v3004_v30 = vpop.f32.mrf.mxu0 }
 0x3bf   : > { %4967 = vmatprep.mubr.f32.mxu0 %v11260_v8 }
 0x3c0   : > { %v4759_v48 = vpop.permute.xlu0 %4758  ;;  %5402 = vrot.lane.b32.xlu1 %v12694_v29, %s11261_s10 }
 0x3c1   : > { %5404 = vrot.lane.b32.xlu0 %v12561_v27, %s11261_s10  ;;  %v12949_v27 = vld [vmem:[%s11387_s11 + $0x1a0] sm:$0xff]  ;;  %v4777_v40 = vsel %vm828_vm6, %v4759_v48, %v4761_v26  ;;  %v4776_v41 = vsel %vm828_vm6, %v12910_v9, %v4759_v48 }
 0x3c2   : > { %v4769_v13 = vpop.permute.xlu1 %4768 }
 0x3c4   : > { %v4763_v12 = vpop.permute.xlu0 %4762  ;;  %5406 = vrot.lane.b32.xlu1 %v12712_v59, %s11261_s10  ;;  %v12956_v59 = vld [vmem:[%s11387_s11 + $0x1b0] sm:$0xff] }
 0x3c5   : > { %5518 = vrot.lane.b32.xlu0 %v12934_v6, %s11257_s17  ;;  %v4778_v18 = vsel %vm828_vm6, %v4763_v12, %v4765_v46 }
 0x3c6   : > { %v4773_v10 = vpop.permute.xlu1 %4772 }
 0x3c8   : > { %v4767_v29 = vpop.permute.xlu0 %4766  ;;  %5520 = vrot.lane.b32.xlu1 %v12939_v31, %s11257_s17 }
 0x3c9   : > { %5522 = vrot.lane.b32.xlu0 %v12944_v32, %s11257_s17  ;;  %v4779_v61 = vsel %vm828_vm6, %v4765_v46, %v4767_v29  ;;  %v3101_v46 = vpop.f32.mrf.mxu1 }
 0x3ca   : > { %v12953_v28 = vpop.permute.xlu1 %4865 }
 0x3cb   : > { %v3103_v29 = vpop.f32.mrf.mxu1 }
 0x3cc   : > { %v4771_v51 = vpop.permute.xlu0 %4770  ;;  %5524 = vrot.lane.b32.xlu1 %v12949_v27, %s11257_s17 }
 0x3cd   : > { %v4781_v42 = vsel %vm828_vm6, %v4771_v51, %v4773_v10  ;;  %v4780_v25 = vsel %vm828_vm6, %v4769_v13, %v4771_v51  ;;  %5526 = vrot.lane.b32.xlu0 %v12956_v59, %s11257_s17 }
 0x3ce   : > { %4814 = vmatprep.subr.mxu1 %v4781_v42  ;;  %v4870_v14 = vpop.permute.xlu1 %4869  ;;  %v3102_v42 = vadd.f32 %v3101_v46, %v3002_v47 }
 0x3cf   : > { %4815 = vmatpush1.msra.mxu1 %v4780_v25 }
 0x3d0   : > { %4816 = vmatprep.subr.mxu1 %v4779_v61  ;;  %v4864_v2 = vpop.permute.xlu0 %4863  ;;  %5528 = vrot.lane.b32.xlu1 %v12963_v11, %s11257_s17 }
 0x3d1   : > { %4817 = vmatpush1.msra.mxu1 %v4778_v18  ;;  %5530 = vrot.lane.b32.xlu0 %v12968_v3, %s11257_s17  ;;  %v4887_v52 = vsel %vm945_vm7, %v4864_v2, %v12953_v28  ;;  %v3104_v18 = vadd.f32 %v3103_v29, %v3004_v30 }
 0x3d2   : > { %4818 = vmatprep.subr.mxu1 %v4777_v40  ;;  %v4874_v45 = vpop.permute.xlu1 %4873 }
 0x3d3   : > { %4819 = vmatpush1.msra.mxu1 %v4776_v41 }
 0x3d4   : > { %4820 = vmatprep.subr.mxu1 %v4775_v4  ;;  %v4868_v57 = vpop.permute.xlu0 %4867  ;;  %5532 = vrot.lane.b32.xlu1 %v12976_v44, %s11257_s17 }
 0x3d5   : > { %4821 = vmatpush1.msra.mxu1 %v4774_v54  ;;  %5617 = vrot.lane.b32.xlu0 %v12934_v6, %s11258_s18  ;;  %v4888_v9 = vsel %vm945_vm7, %v12953_v28, %v4868_v57  ;;  %v3200_v28 = vpop.f32.mrf.mxu0 }
 0x3d6   : > { %v4878_v50 = vpop.permute.xlu1 %4877  ;;  %10910 = vmatmul.mubr.msk.f32.vlgmr.msra.gmra.mxu1 %vm275_vm1, %v12575_v33  ;;  %v3205_v54 = vadd.f32 %v3200_v28, %v3102_v42 }
 0x3d7   : > { %5080 = vmatprep.mubr.f32.mxu1 %v11260_v8  ;;  %v3202_v40 = vpop.f32.mrf.mxu0 }
 0x3d8   : > { %v4872_v55 = vpop.permute.xlu0 %4871  ;;  %5619 = vrot.lane.b32.xlu1 %v12939_v31, %s11258_s18 }
 0x3d9   : > { %5621 = vrot.lane.b32.xlu0 %v12944_v32, %s11258_s18  ;;  %v4890_v22 = vsel %vm945_vm7, %v4872_v55, %v4874_v45  ;;  %v4889_v23 = vsel %vm945_vm7, %v4870_v14, %v4872_v55  ;;  %v3301_v45 = vpop.f32.mrf.mxu1 }
 0x3da   : > { %v4882_v60 = vpop.permute.xlu1 %4881 }
 0x3dc   : > { %v4876_v37 = vpop.permute.xlu0 %4875  ;;  %5623 = vrot.lane.b32.xlu1 %v12949_v27, %s11258_s18 }
 0x3dd   : > { %5625 = vrot.lane.b32.xlu0 %v12956_v59, %s11258_s18  ;;  %v4891_v43 = vsel %vm945_vm7, %v4876_v37, %v4878_v50  ;;  %v3303_v37 = vpop.f32.mrf.mxu1 }
 0x3de   : > { %v4886_v1 = vpop.permute.xlu1 %4885 }
 0x3e0   : > { %v4880_v58 = vpop.permute.xlu0 %4879  ;;  %5627 = vrot.lane.b32.xlu1 %v12963_v11, %s11258_s18 }
 0x3e1   : > { %5629 = vrot.lane.b32.xlu0 %v12968_v3, %s11258_s18  ;;  %v4892_v35 = vsel %vm945_vm7, %v4878_v50, %v4880_v58 }
 0x3e2   : > { %v13005_v33 = vpop.permute.xlu1 %4978 }
 0x3e4   : > { %v4884_v39 = vpop.permute.xlu0 %4883  ;;  %5631 = vrot.lane.b32.xlu1 %v12976_v44, %s11258_s18 }
 0x3e5   : > { %v4894_v17 = vsel %vm945_vm7, %v4884_v39, %v4886_v1  ;;  %v4893_v19 = vsel %vm945_vm7, %v4882_v60, %v4884_v39  ;;  %5716 = vrot.lane.b32.xlu0 %v12934_v6, %s11259_s7  ;;  %v3206_v60 = vadd.f32 %v3202_v40, %v3104_v18  ;;  %v3438_v1 = vpop.f32.mrf.mxu0  ;;  %v13077_v39 = vld [vmem:[%s11387_s11 + $0x190] sm:$0xff] }
 0x3e6   : > { %4927 = vmatprep.subr.mxu0 %v4894_v17  ;;  %v13013_v21 = vpop.permute.xlu1 %4982  ;;  %v3306_v17 = vadd.f32 %v3301_v45, %v3205_v54 }
 0x3e7   : > { %4928 = vmatpush1.msra.mxu0 %v4893_v19  ;;  %v3307_v19 = vadd.f32 %v3303_v37, %v3206_v60 }
 0x3e8   : > { %4929 = vmatprep.subr.mxu0 %v4892_v35  ;;  %v13017_v53 = vpop.permute.xlu0 %4976  ;;  %5718 = vrot.lane.b32.xlu1 %v12939_v31, %s11259_s7  ;;  %v3551_v35 = vpop.f32.mrf.mxu1 }
 0x3e9   : > { %4930 = vmatpush1.msra.mxu0 %v4891_v43  ;;  %5720 = vrot.lane.b32.xlu0 %v12944_v32, %s11259_s7  ;;  %v5000_v50 = vsel %vm1062_vm8, %v13017_v53, %v13005_v33  ;;  %v3443_v53 = vadd.f32 %v3438_v1, %v3306_v17 }
 0x3ea   : > { %4931 = vmatprep.subr.mxu0 %v4890_v22  ;;  %v4987_v62 = vpop.permute.xlu1 %4986 }
 0x3eb   : > { %4932 = vmatpush1.msra.mxu0 %v4889_v23  ;;  %v13092_v23 = vld [vmem:[%s11387_s11 + $0x1a8] sm:$0xff] }
 0x3ec   : > { %4933 = vmatprep.subr.mxu0 %v4888_v9  ;;  %v4981_v5 = vpop.permute.xlu0 %4980  ;;  %5722 = vrot.lane.b32.xlu1 %v12949_v27, %s11259_s7  ;;  %v3553_v9 = vpop.f32.mrf.mxu1 }
 0x3ed   : > { %4934 = vmatpush1.msra.mxu0 %v4887_v52  ;;  %5724 = vrot.lane.b32.xlu0 %v12956_v59, %s11259_s7  ;;  %v5001_v57 = vsel %vm1062_vm8, %v13005_v33, %v4981_v5 }
 0x3ee   : > { %v4991_v20 = vpop.permute.xlu1 %4990  ;;  %10911 = vmatmul.mubr.msk.f32.vlgmr.msra.gmra.mxu0 %vm275_vm1, %v12620_v15 }
 0x3ef   : > { %5181 = vmatprep.mubr.f32.mxu0 %v11260_v8 }
 0x3f0   : > { %v4985_v7 = vpop.permute.xlu0 %4984  ;;  %5726 = vrot.lane.b32.xlu1 %v12963_v11, %s11259_s7 }
 0x3f1   : > { %5728 = vrot.lane.b32.xlu0 %v12968_v3, %s11259_s7  ;;  %v5003_v2 = vsel %vm1062_vm8, %v4985_v7, %v4987_v62  ;;  %v5002_v4 = vsel %vm1062_vm8, %v13013_v21, %v4985_v7  ;;  %v3440_v21 = vpop.f32.mrf.mxu0 }
 0x3f2   : > { %v4995_v26 = vpop.permute.xlu1 %4994 }
 0x3f3   : > { %v3664_v52 = vpop.f32.mrf.mxu0 }
 0x3f4   : > { %v4989_v34 = vpop.permute.xlu0 %4988  ;;  %5730 = vrot.lane.b32.xlu1 %v12976_v44, %s11259_s7 }
 0x3f5   : > { %5817 = vrot.lane.b32.xlu0 %v12934_v6, %s11261_s10  ;;  %v5004_v14 = vsel %vm1062_vm8, %v4989_v34, %v4991_v20 }
 0x3f6   : > { %v4999_v56 = vpop.permute.xlu1 %4998 }
 0x3f8   : > { %v4993_v15 = vpop.permute.xlu0 %4992  ;;  %5819 = vrot.lane.b32.xlu1 %v12939_v31, %s11261_s10 }
 0x3f9   : > { %5821 = vrot.lane.b32.xlu0 %v12944_v32, %s11261_s10  ;;  %v5005_v25 = vsel %vm1062_vm8, %v4991_v20, %v4993_v15  ;;  %v3556_v20 = vadd.f32 %v3551_v35, %v3443_v53  ;;  %v3777_v15 = vpop.f32.mrf.mxu1 }
 0x3fa   : > { %v13048_v48 = vpop.permute.xlu1 %5091 }
 0x3fb   : > { %v3669_v46 = vadd.f32 %v3664_v52, %v3556_v20  ;;  %v3779_v28 = vpop.f32.mrf.mxu1 }
 0x3fc   : > { %v4997_v13 = vpop.permute.xlu0 %4996  ;;  %5823 = vrot.lane.b32.xlu1 %v12949_v27, %s11261_s10 }
 0x3fd   : > { %v5007_v12 = vsel %vm1062_vm8, %v4997_v13, %v4999_v56  ;;  %v5006_v10 = vsel %vm1062_vm8, %v4995_v26, %v4997_v13  ;;  %5825 = vrot.lane.b32.xlu0 %v12956_v59, %s11261_s10  ;;  %v3666_v56 = vpop.f32.mrf.mxu0  ;;  %v13103_v13 = vld [vmem:[%s11387_s11 + $0x1c0] sm:$0xff] }
 0x3fe   : > { %5040 = vmatprep.subr.mxu1 %v5007_v12  ;;  %v5096_v51 = vpop.permute.xlu1 %5095 }
 0x3ff   : > { %5041 = vmatpush1.msra.mxu1 %v5006_v10 }
 0x400   : > { %5042 = vmatprep.subr.mxu1 %v5005_v25  ;;  %v13058_v61 = vpop.permute.xlu0 %5089  ;;  %5827 = vrot.lane.b32.xlu1 %v12963_v11, %s11261_s10  ;;  %v3782_v25 = vadd.f32 %v3777_v15, %v3669_v46 }
 0x401   : > { %5043 = vmatpush1.msra.mxu1 %v5004_v14  ;;  %5829 = vrot.lane.b32.xlu0 %v12968_v3, %s11261_s10  ;;  %v5105_v12 = vsel %vm366_vm2, %v13058_v61, %v13048_v48  ;;  %v13119_v61 = vld [vmem:[%s11387_s11 + $0x1d8] sm:$0xff] }
 0x402   : > { %5044 = vmatprep.subr.mxu1 %v5003_v2  ;;  %v5100_v41 = vpop.permute.xlu1 %5099 }
 0x403   : > { %5045 = vmatpush1.msra.mxu1 %v5002_v4 }
 0x404   : > { %5046 = vmatprep.subr.mxu1 %v5001_v57  ;;  %v5094_v55 = vpop.permute.xlu0 %5093  ;;  %5831 = vrot.lane.b32.xlu1 %v12976_v44, %s11261_s10 }
 0x405   : > { %5047 = vmatpush1.msra.mxu1 %v5000_v50  ;;  %5942 = vrot.lane.b32.xlu0 %v12934_v6, %s11262_s12  ;;  %v5106_v47 = vsel %vm366_vm2, %v5094_v55, %v5096_v51  ;;  %v3979_v2 = vpop.f32.mrf.mxu1 }
 0x406   : > { %v5104_v58 = vpop.permute.xlu1 %5103  ;;  %10912 = vmatmul.mubr.msk.f32.vlgmr.msra.gmra.mxu1 %vm275_vm1, %v12668_v49  ;;  %v3444_v49 = vadd.f32 %v3440_v21, %v3307_v19 }
 0x407   : > { %5141 = vmatprep.subr.mxu0 %v5104_v58  ;;  %5282 = vmatprep.mubr.f32.mxu1 %v11260_v8  ;;  %v3981_v54 = vpop.f32.mrf.mxu1 }
 0x408   : > { %v5098_v33 = vpop.permute.xlu0 %5097  ;;  %5944 = vrot.lane.b32.xlu1 %v12939_v31, %s11262_s12  ;;  %v3557_v34 = vadd.f32 %v3553_v9, %v3444_v49 }
 0x409   : > { %5946 = vrot.lane.b32.xlu0 %v13077_v39, %s11262_s12  ;;  %v5107_v7 = vsel %vm366_vm2, %v5098_v33, %v5100_v41 }
 0x40a   : > { %v13086_v43 = vpop.permute.xlu1 %5192  ;;  %v3670_v29 = vadd.f32 %v3666_v56, %v3557_v34 }
 0x40c   : > { %v5102_v22 = vpop.permute.xlu0 %5101  ;;  %5948 = vrot.lane.b32.xlu1 %v12944_v32, %s11262_s12  ;;  %v3783_v14 = vadd.f32 %v3779_v28, %v3670_v29 }
 0x40d   : > { %v5108_v62 = vsel %vm366_vm2, %v5102_v22, %v5104_v58  ;;  %5950 = vrot.lane.b32.xlu0 %v12949_v27, %s11262_s12 }
 0x40e   : > { %5142 = vmatpush1.msra.mxu0 %v5108_v62  ;;  %v5197_v5 = vpop.permute.xlu1 %5196 }
 0x40f   : > { %5143 = vmatprep.subr.mxu0 %v5100_v41 }
 0x410   : > { %5144 = vmatpush1.msra.mxu0 %v5107_v7  ;;  %v5191_v26 = vpop.permute.xlu0 %5190  ;;  %5952 = vrot.lane.b32.xlu1 %v13092_v23, %s11262_s12 }
 0x411   : > { %5145 = vmatprep.subr.mxu0 %v5096_v51  ;;  %5954 = vrot.lane.b32.xlu0 %v12956_v59, %s11262_s12  ;;  %v3878_v51 = vpop.f32.mrf.mxu0  ;;  %v5206_v21 = vsel %vm262_vm0, %v5191_v26, %v13086_v43 }
 0x412   : > { %5146 = vmatpush1.msra.mxu0 %v5106_v47  ;;  %v5201_v30 = vpop.permute.xlu1 %5200 }
 0x413   : > { %5147 = vmatprep.subr.mxu0 %v13048_v48  ;;  %v3880_v18 = vpop.f32.mrf.mxu0 }
 0x414   : > { %5148 = vmatpush1.msra.mxu0 %v5105_v12  ;;  %v5195_v10 = vpop.permute.xlu0 %5194  ;;  %5956 = vrot.lane.b32.xlu1 %v12963_v11, %s11262_s12  ;;  %v3884_v41 = vadd.f32 %v3880_v18, %v3783_v14 }
 0x415   : > { %5958 = vrot.lane.b32.xlu0 %v13103_v13, %s11262_s12  ;;  %10913 = vmatmul.mubr.msk.f32.vlgmr.msra.gmra.mxu0 %vm275_vm1, %v12704_v36  ;;  %v3883_v36 = vadd.f32 %v3878_v51, %v3782_v25  ;;  %v4080_v57 = vpop.f32.mrf.mxu0  ;;  %v5207_v58 = vsel %vm262_vm0, %v5195_v10, %v5197_v5 }
 0x416   : > { %v5205_v42 = vpop.permute.xlu1 %5204  ;;  %5383 = vmatprep.mubr.f32.mxu0 %v11260_v8  ;;  %v3985_v1 = vadd.f32 %v3981_v54, %v3884_v41 }
 0x417   : > { %5242 = vmatprep.subr.mxu1 %v5205_v42  ;;  %v3984_v55 = vadd.f32 %v3979_v2, %v3883_v36  ;;  %v4082_v17 = vpop.f32.mrf.mxu0 }
 0x418   : > { %v5199_v48 = vpop.permute.xlu0 %5198  ;;  %5960 = vrot.lane.b32.xlu1 %v12968_v3, %s11262_s12  ;;  %v4086_v53 = vadd.f32 %v4082_v17, %v3985_v1 }
 0x419   : > { %5962 = vrot.lane.b32.xlu0 %v12976_v44, %s11262_s12  ;;  %v5208_v60 = vsel %vm262_vm0, %v5199_v48, %v5201_v30  ;;  %v4085_v19 = vadd.f32 %v4080_v57, %v3984_v55 }
 0x41a   : > { %v13123_v40 = vpop.permute.xlu1 %5293 }
 0x41c   : > { %v5203_v45 = vpop.permute.xlu0 %5202  ;;  %5964 = vrot.lane.b32.xlu1 %v13119_v61, %s11262_s12 }
 0x41d   : > { %v5209_v4 = vsel %vm262_vm0, %v5203_v45, %v5205_v42  ;;  %6055 = vrot.lane.b32.xlu0 %v12934_v6, %s11263_s19 }
 0x41e   : > { %5243 = vmatpush1.msra.mxu1 %v5209_v4  ;;  %v5298_v50 = vpop.permute.xlu1 %5297 }
 0x41f   : > { %5244 = vmatprep.subr.mxu1 %v5201_v30 }
 0x420   : > { %5245 = vmatpush1.msra.mxu1 %v5208_v60  ;;  %v5292_v37 = vpop.permute.xlu0 %5291  ;;  %6057 = vrot.lane.b32.xlu1 %v12939_v31, %s11263_s19 }
 0x421   : > { %5246 = vmatprep.subr.mxu1 %v5197_v5  ;;  %6059 = vrot.lane.b32.xlu0 %v13077_v39, %s11263_s19  ;;  %v5307_v12 = vsel %vm469_vm3, %v5292_v37, %v13123_v40 }
 0x422   : > { %5247 = vmatpush1.msra.mxu1 %v5207_v58  ;;  %v5302_v33 = vpop.permute.xlu1 %5301  ;;  %v13219_v58 = vld [vmem:[#allocation4 + $0x4] sm:$0x7] }
 0x423   : > { %5248 = vmatprep.subr.mxu1 %v13086_v43 }
 0x424   : > { %5249 = vmatpush1.msra.mxu1 %v5206_v21  ;;  %v5296_v35 = vpop.permute.xlu0 %5295  ;;  %6061 = vrot.lane.b32.xlu1 %v12944_v32, %s11263_s19 }
 0x425   : > { %v4181_v22 = vpop.f32.mrf.mxu1  ;;  %6063 = vrot.lane.b32.xlu0 %v12949_v27, %s11263_s19  ;;  %10914 = vmatmul.mubr.msk.f32.vlgmr.msra.gmra.mxu1 %vm275_vm1, %v12736_v16  ;;  %v5308_v30 = vsel %vm469_vm3, %v5296_v35, %v5298_v50 }
 0x426   : > { %v4186_v49 = vadd.f32 %v4181_v22, %v4085_v19  ;;  %v5306_v62 = vpop.permute.xlu1 %5305  ;;  %5484 = vmatprep.mubr.f32.mxu1 %v11260_v8 }
 0x427   : > { %v4183_v9 = vpop.f32.mrf.mxu1  ;;  %5343 = vmatprep.subr.mxu0 %v5306_v62 }
 0x428   : > { %v4187_v43 = vadd.f32 %v4183_v9, %v4086_v53  ;;  %v5300_v52 = vpop.permute.xlu0 %5299  ;;  %6065 = vrot.lane.b32.xlu1 %v13092_v23, %s11263_s19  ;;  %v4188_v5 = vadd.f32 %v4186_v49, %v11951_v63 }
 0x429   : > { %6067 = vrot.lane.b32.xlu0 %v12956_v59, %s11263_s19  ;;  %v5309_v56 = vsel %vm469_vm3, %v5300_v52, %v5302_v33 }
 0x42a   : > { %v4189_v20 = vadd.f32 %v4187_v43, %v11951_v63  ;;  %v5395_v16 = vpop.permute.xlu1 %5394 }
 0x42c   : > { %v4192_v7 = vcombine.low %v4188_v5, %v4189_v20  ;;  %v5304_v26 = vpop.permute.xlu0 %5303  ;;  %6069 = vrot.lane.b32.xlu1 %v12963_v11, %s11263_s19 }
 0x42d   : > { %v5310_v34 = vsel %vm469_vm3, %v5304_v26, %v5306_v62  ;;  %6071 = vrot.lane.b32.xlu0 %v13103_v13, %s11263_s19 }
 0x42e   : > { %10884 = vst.msk [vmem:[%s12305_s26 + $0x10] sm:$0x77] %vm12307_vm11, %v4192_v7  ;;  %5344 = vmatpush1.msra.mxu0 %v5310_v34  ;;  %v5399_v47 = vpop.permute.xlu1 %5398 }
 0x42f   : > { %5345 = vmatprep.subr.mxu0 %v5302_v33 }
 0x430   : > { %5346 = vmatpush1.msra.mxu0 %v5309_v56  ;;  %v5393_v15 = vpop.permute.xlu0 %5392  ;;  %6073 = vrot.lane.b32.xlu1 %v12968_v3, %s11263_s19 }
 0x431   : > { %5347 = vmatprep.subr.mxu0 %v5298_v50  ;;  %6075 = vrot.lane.b32.xlu0 %v12976_v44, %s11263_s19 }
 0x432   : > { %5348 = vmatpush1.msra.mxu0 %v5308_v30  ;;  %v5403_v46 = vpop.permute.xlu1 %5402 }
 0x433   : > { %5349 = vmatprep.subr.mxu0 %v13123_v40  ;;  %v5408_v40 = vsel %vm574_vm4, %v5393_v15, %v5395_v16 }
 0x434   : > { %5350 = vmatpush1.msra.mxu0 %v5307_v12  ;;  %v5397_v10 = vpop.permute.xlu0 %5396  ;;  %6077 = vrot.lane.b32.xlu1 %v13119_v61, %s11263_s19 }
 0x435   : > { %6168 = vrot.lane.b32.xlu0 %v12934_v6, %s11265_s15  ;;  %10915 = vmatmul.mubr.msk.f32.vlgmr.msra.gmra.mxu0 %vm275_vm1, %v12768_v38  ;;  %v5409_v18 = vsel %vm574_vm4, %v5397_v10, %v5399_v47 }
 0x436   : > { %v5407_v29 = vpop.permute.xlu1 %5406  ;;  %5610 = vmatprep.mubr.f32.mxu0 %v11260_v8 }
 0x437   : > { %5444 = vmatprep.subr.mxu1 %v5407_v29 }
 0x438   : > { %v5401_v28 = vpop.permute.xlu0 %5400  ;;  %6170 = vrot.lane.b32.xlu1 %v12939_v31, %s11265_s15 }
 0x439   : > { %6172 = vrot.lane.b32.xlu0 %v13077_v39, %s11265_s15  ;;  %v5410_v48 = vsel %vm574_vm4, %v5401_v28, %v5403_v46 }
 0x43a   : > { %v5521_v51 = vpop.permute.xlu1 %5520 }
 0x43c   : > { %v5405_v42 = vpop.permute.xlu0 %5404  ;;  %6174 = vrot.lane.b32.xlu1 %v12944_v32, %s11265_s15 }
 0x43d   : > { %v5411_v25 = vsel %vm574_vm4, %v5405_v42, %v5407_v29  ;;  %6176 = vrot.lane.b32.xlu0 %v12949_v27, %s11265_s15 }
 0x43e   : > { %5445 = vmatpush1.msra.mxu1 %v5411_v25  ;;  %v5525_v38 = vpop.permute.xlu1 %5524 }
 0x43f   : > { %5446 = vmatprep.subr.mxu1 %v5403_v46  ;;  %v13269_v46 = vld [vmem:[#allocation4 + $0x8] sm:$0x7] }
 0x440   : > { %5447 = vmatpush1.msra.mxu1 %v5410_v48  ;;  %v5519_v14 = vpop.permute.xlu0 %5518  ;;  %6178 = vrot.lane.b32.xlu1 %v13092_v23, %s11265_s15 }
 0x441   : > { %5448 = vmatprep.subr.mxu1 %v5399_v47  ;;  %6180 = vrot.lane.b32.xlu0 %v12956_v59, %s11265_s15 }
 0x442   : > { %5449 = vmatpush1.msra.mxu1 %v5409_v18  ;;  %v5529_v2 = vpop.permute.xlu1 %5528 }
 0x443   : > { %5450 = vmatprep.subr.mxu1 %v5395_v16 }
 0x444   : > { %5451 = vmatpush1.msra.mxu1 %v5408_v40  ;;  %v5523_v36 = vpop.permute.xlu0 %5522  ;;  %6182 = vrot.lane.b32.xlu1 %v12963_v11, %s11265_s15  ;;  %v13294_v40 = vld [vmem:[#allocation4 + $0xc] sm:$0x7] }
 0x445   : > { %10916 = vmatmul.mubr.msk.f32.vlgmr.msra.gmra.mxu1 %vm275_vm1, %v12791_v0  ;;  %6184 = vrot.lane.b32.xlu0 %v13103_v13, %s11265_s15  ;;  %v5535_v60 = vsel %vm262_vm0, %v5523_v36, %v5525_v38 }
 0x446   : > { %v5533_v45 = vpop.permute.xlu1 %5532  ;;  %5709 = vmatprep.mubr.f32.mxu1 %v11260_v8 }
 0x447   : > { %5570 = vmatprep.subr.mxu0 %v5533_v45 }
 0x448   : > { %v5527_v41 = vpop.permute.xlu0 %5526  ;;  %6186 = vrot.lane.b32.xlu1 %v12968_v3, %s11265_s15 }
 0x449   : > { %6188 = vrot.lane.b32.xlu0 %v12976_v44, %s11265_s15  ;;  %v5536_v50 = vsel %vm262_vm0, %v5527_v41, %v5529_v2 }
 0x44a   : > { %v5620_v4 = vpop.permute.xlu1 %5619 }
 0x44c   : > { %v5531_v54 = vpop.permute.xlu0 %5530  ;;  %6190 = vrot.lane.b32.xlu1 %v13119_v61, %s11265_s15 }
 0x44d   : > { %v5537_v0 = vsel %vm262_vm0, %v5531_v54, %v5533_v45  ;;  %6281 = vrot.lane.b32.xlu0 %v12934_v6, %s11266_s20  ;;  %v5534_v6 = vsel %vm262_vm0, %v5519_v14, %v5521_v51 }
 0x44e   : > { %5571 = vmatpush1.msra.mxu0 %v5537_v0  ;;  %v5624_v57 = vpop.permute.xlu1 %5623 }
 0x44f   : > { %5572 = vmatprep.subr.mxu0 %v5529_v2 }
 0x450   : > { %5573 = vmatpush1.msra.mxu0 %v5536_v50  ;;  %v5618_v55 = vpop.permute.xlu0 %5617  ;;  %6283 = vrot.lane.b32.xlu1 %v12939_v31, %s11266_s20 }
 0x451   : > { %5574 = vmatprep.subr.mxu0 %v5525_v38  ;;  %6285 = vrot.lane.b32.xlu0 %v13077_v39, %s11266_s20  ;;  %v5633_v62 = vsel %vm366_vm2, %v5618_v55, %v5620_v4 }
 0x452   : > { %5575 = vmatpush1.msra.mxu0 %v5535_v60  ;;  %v5628_v37 = vpop.permute.xlu1 %5627 }
 0x453   : > { %5576 = vmatprep.subr.mxu0 %v5521_v51 }
 0x454   : > { %5577 = vmatpush1.msra.mxu0 %v5534_v6  ;;  %v5622_v1 = vpop.permute.xlu0 %5621  ;;  %6287 = vrot.lane.b32.xlu1 %v12944_v32, %s11266_s20 }
 0x455   : > { %6289 = vrot.lane.b32.xlu0 %v12949_v27, %s11266_s20  ;;  %10926 = vmatmul.mubr.msk.f32.vlgmr.msra.gmra.mxu0 %vm275_vm1, %v13219_v58 }
 0x456   : > { %v5632_v17 = vpop.permute.xlu1 %5631  ;;  %5808 = vmatprep.mubr.f32.mxu0 %v11260_v8 }
 0x457   : > { %5669 = vmatprep.subr.mxu1 %v5632_v17 }
 0x458   : > { %v5626_v33 = vpop.permute.xlu0 %5625  ;;  %6291 = vrot.lane.b32.xlu1 %v13092_v23, %s11266_s20 }
 0x459   : > { %6293 = vrot.lane.b32.xlu0 %v12956_v59, %s11266_s20  ;;  %v5635_v53 = vsel %vm366_vm2, %v5626_v33, %v5628_v37  ;;  %v5634_v59 = vsel %vm366_vm2, %v5622_v1, %v5624_v57 }
 0x45a   : > { %v5719_v32 = vpop.permute.xlu1 %5718 }
 0x45c   : > { %v5630_v19 = vpop.permute.xlu0 %5629  ;;  %6295 = vrot.lane.b32.xlu1 %v12963_v11, %s11266_s20 }
 0x45d   : > { %v5636_v21 = vsel %vm366_vm2, %v5630_v19, %v5632_v17  ;;  %6297 = vrot.lane.b32.xlu0 %v13103_v13, %s11266_s20 }
 0x45e   : > { %5670 = vmatpush1.msra.mxu1 %v5636_v21  ;;  %v5723_v35 = vpop.permute.xlu1 %5722 }
 0x45f   : > { %5671 = vmatprep.subr.mxu1 %v5628_v37 }
 0x460   : > { %5672 = vmatpush1.msra.mxu1 %v5635_v53  ;;  %v5717_v22 = vpop.permute.xlu0 %5716  ;;  %6299 = vrot.lane.b32.xlu1 %v12968_v3, %s11266_s20  ;;  %v13244_v3 = vld [vmem:[#allocation4] sm:$0x7] }
 0x461   : > { %5673 = vmatprep.subr.mxu1 %v5624_v57  ;;  %6301 = vrot.lane.b32.xlu0 %v12976_v44, %s11266_s20  ;;  %v5732_v15 = vsel %vm469_vm3, %v5717_v22, %v5719_v32  ;;  %v13345_v22 = vld [vmem:[%s11387_s11 + $0x1e0] sm:$0xff] }
 0x462   : > { %5674 = vmatpush1.msra.mxu1 %v5634_v59  ;;  %v5727_v49 = vpop.permute.xlu1 %5726  ;;  %v13350_v59 = vld [vmem:[%s11387_s11 + $0x1e8] sm:$0xff] }
 0x463   : > { %5675 = vmatprep.subr.mxu1 %v5620_v4 }
 0x464   : > { %5676 = vmatpush1.msra.mxu1 %v5633_v62  ;;  %v5721_v9 = vpop.permute.xlu0 %5720  ;;  %6303 = vrot.lane.b32.xlu1 %v13119_v61, %s11266_s20  ;;  %v13355_v62 = vld [vmem:[%s11387_s11 + $0x1f8] sm:$0xff] }
 0x465   : > { %6394 = vrot.lane.b32.xlu0 %v12939_v31, %s11258_s18  ;;  %10927 = vmatmul.mubr.msk.f32.vlgmr.msra.gmra.mxu1 %vm275_vm1, %v13244_v3  ;;  %v5733_v47 = vsel %vm469_vm3, %v5721_v9, %v5723_v35 }
 0x466   : > { %v5731_v43 = vpop.permute.xlu1 %5730  ;;  %5909 = vmatprep.mubr.f32.mxu1 %v11260_v8 }
 0x467   : > { %5768 = vmatprep.subr.mxu0 %v5731_v43 }
 0x468   : > { %v5725_v52 = vpop.permute.xlu0 %5724  ;;  %6396 = vrot.lane.b32.xlu1 %v13077_v39, %s11258_s18 }
 0x469   : > { %6398 = vrot.lane.b32.xlu0 %v12949_v27, %s11258_s18  ;;  %v5734_v26 = vsel %vm469_vm3, %v5725_v52, %v5727_v49 }
 0x46a   : > { %v5820_v5 = vpop.permute.xlu1 %5819 }
 0x46c   : > { %v5729_v20 = vpop.permute.xlu0 %5728  ;;  %6400 = vrot.lane.b32.xlu1 %v13092_v23, %s11258_s18 }
 0x46d   : > { %v5735_v16 = vsel %vm469_vm3, %v5729_v20, %v5731_v43  ;;  %6402 = vrot.lane.b32.xlu0 %v12963_v11, %s11258_s18  ;;  %v13374_v20 = vld [vmem:[%s11387_s11 + $0x218] sm:$0xff] }
 0x46e   : > { %5769 = vmatpush1.msra.mxu0 %v5735_v16  ;;  %v5824_v7 = vpop.permute.xlu1 %5823 }
 0x46f   : > { %5770 = vmatprep.subr.mxu0 %v5727_v49 }
 0x470   : > { %5771 = vmatpush1.msra.mxu0 %v5734_v26  ;;  %v5818_v34 = vpop.permute.xlu0 %5817  ;;  %6404 = vrot.lane.b32.xlu1 %v13103_v13, %s11258_s18 }
 0x471   : > { %5772 = vmatprep.subr.mxu0 %v5723_v35  ;;  %6406 = vrot.lane.b32.xlu0 %v12976_v44, %s11258_s18  ;;  %v5833_v18 = vsel %vm574_vm4, %v5818_v34, %v5820_v5 }
 0x472   : > { %5773 = vmatpush1.msra.mxu0 %v5733_v47  ;;  %v5828_v56 = vpop.permute.xlu1 %5827 }
 0x473   : > { %5774 = vmatprep.subr.mxu0 %v5719_v32 }
 0x474   : > { %5775 = vmatpush1.msra.mxu0 %v5732_v15  ;;  %v5822_v30 = vpop.permute.xlu0 %5821  ;;  %6408 = vrot.lane.b32.xlu1 %v13119_v61, %s11258_s18  ;;  %v13387_v15 = vld [vmem:[%s11387_s11 + $0x230] sm:$0xff] }
 0x475   : > { %6495 = vrot.lane.b32.xlu0 %v12939_v31, %s11257_s17  ;;  %10928 = vmatmul.mubr.msk.f32.vlgmr.msra.gmra.mxu0 %vm275_vm1, %v13269_v46  ;;  %v5834_v48 = vsel %vm574_vm4, %v5822_v30, %v5824_v7 }
 0x476   : > { %v5832_v12 = vpop.permute.xlu1 %5831  ;;  %6046 = vmatprep.mubr.f32.mxu0 %v11260_v8 }
 0x477   : > { %5869 = vmatprep.subr.mxu1 %v5832_v12 }
 0x478   : > { %v5826_v10 = vpop.permute.xlu0 %5825  ;;  %6497 = vrot.lane.b32.xlu1 %v13077_v39, %s11257_s17 }
 0x479   : > { %6499 = vrot.lane.b32.xlu0 %v12949_v27, %s11257_s17  ;;  %v5835_v25 = vsel %vm574_vm4, %v5826_v10, %v5828_v56 }
 0x47a   : > { %v5945_v29 = vpop.permute.xlu1 %5944 }
 0x47c   : > { %v5830_v28 = vpop.permute.xlu0 %5829  ;;  %6501 = vrot.lane.b32.xlu1 %v13092_v23, %s11257_s17 }
 0x47d   : > { %v5836_v51 = vsel %vm574_vm4, %v5830_v28, %v5832_v12  ;;  %6503 = vrot.lane.b32.xlu0 %v12963_v11, %s11257_s17 }
 0x47e   : > { %5870 = vmatpush1.msra.mxu1 %v5836_v51  ;;  %v5949_v42 = vpop.permute.xlu1 %5948 }
 0x47f   : > { %5871 = vmatprep.subr.mxu1 %v5828_v56 }
 0x480   : > { %5872 = vmatpush1.msra.mxu1 %v5835_v25  ;;  %v5943_v38 = vpop.permute.xlu0 %5942  ;;  %6505 = vrot.lane.b32.xlu1 %v13103_v13, %s11257_s17 }
 0x481   : > { %5873 = vmatprep.subr.mxu1 %v5824_v7  ;;  %6507 = vrot.lane.b32.xlu0 %v12976_v44, %s11257_s17  ;;  %v5966_v21 = vsel %vm711_vm5, %v5943_v38, %v5945_v29  ;;  %v13379_v7 = vld [vmem:[%s11387_s11 + $0x228] sm:$0xff] }
 0x482   : > { %5874 = vmatpush1.msra.mxu1 %v5834_v48  ;;  %v5953_v14 = vpop.permute.xlu1 %5952 }
 0x483   : > { %5875 = vmatprep.subr.mxu1 %v5820_v5 }
 0x484   : > { %5876 = vmatpush1.msra.mxu1 %v5833_v18  ;;  %v5947_v2 = vpop.permute.xlu0 %5946  ;;  %6509 = vrot.lane.b32.xlu1 %v13119_v61, %s11257_s17 }
 0x485   : > { %6596 = vrot.lane.b32.xlu0 %v12939_v31, %s11259_s7  ;;  %10929 = vmatmul.mubr.msk.f32.vlgmr.msra.gmra.mxu1 %vm275_vm1, %v13294_v40  ;;  %v5967_v19 = vsel %vm711_vm5, %v5945_v29, %v5947_v2 }
 0x486   : > { %v5957_v36 = vpop.permute.xlu1 %5956  ;;  %6159 = vmatprep.mubr.f32.mxu1 %v11260_v8 }
 0x488   : > { %v5951_v45 = vpop.permute.xlu0 %5950  ;;  %6598 = vrot.lane.b32.xlu1 %v13077_v39, %s11259_s7 }
 0x489   : > { %6600 = vrot.lane.b32.xlu0 %v12949_v27, %s11259_s7  ;;  %v5969_v33 = vsel %vm711_vm5, %v5951_v45, %v5953_v14  ;;  %v5968_v32 = vsel %vm711_vm5, %v5949_v42, %v5951_v45  ;;  %v13401_v42 = vld [vmem:[#allocation4 + $0x14] sm:$0x7] }
 0x48a   : > { %v5961_v41 = vpop.permute.xlu1 %5960 }
 0x48c   : > { %v5955_v4 = vpop.permute.xlu0 %5954  ;;  %6602 = vrot.lane.b32.xlu1 %v13092_v23, %s11259_s7 }
 0x48d   : > { %6604 = vrot.lane.b32.xlu0 %v12963_v11, %s11259_s7  ;;  %v5970_v1 = vsel %vm711_vm5, %v5955_v4, %v5957_v36 }
 0x48e   : > { %v5965_v54 = vpop.permute.xlu1 %5964 }
 0x490   : > { %v5959_v0 = vpop.permute.xlu0 %5958  ;;  %6606 = vrot.lane.b32.xlu1 %v13103_v13, %s11259_s7 }
 0x491   : > { %6608 = vrot.lane.b32.xlu0 %v12976_v44, %s11259_s7  ;;  %v5971_v6 = vsel %vm711_vm5, %v5957_v36, %v5959_v0 }
 0x492   : > { %v13311_v57 = vpop.permute.xlu1 %6057 }
 0x494   : > { %v5963_v50 = vpop.permute.xlu0 %5962  ;;  %6610 = vrot.lane.b32.xlu1 %v13119_v61, %s11259_s7 }
 0x495   : > { %v5973_v55 = vsel %vm711_vm5, %v5963_v50, %v5965_v54  ;;  %v5972_v60 = vsel %vm711_vm5, %v5961_v41, %v5963_v50  ;;  %6697 = vrot.lane.b32.xlu0 %v12939_v31, %s11261_s10 }
 0x496   : > { %6006 = vmatprep.subr.mxu0 %v5973_v55  ;;  %v13319_v37 = vpop.permute.xlu1 %6061 }
 0x497   : > { %6007 = vmatpush1.msra.mxu0 %v5972_v60 }
 0x498   : > { %6008 = vmatprep.subr.mxu0 %v5971_v6  ;;  %v6056_v17 = vpop.permute.xlu0 %6055  ;;  %6699 = vrot.lane.b32.xlu1 %v13077_v39, %s11261_s10  ;;  %v13335_v39 = vld [vmem:[#allocation4 + $0x10] sm:$0x7] }
 0x499   : > { %6009 = vmatpush1.msra.mxu0 %v5970_v1  ;;  %6701 = vrot.lane.b32.xlu0 %v12949_v27, %s11261_s10  ;;  %v6079_v29 = vsel %vm828_vm6, %v6056_v17, %v13311_v57 }
 0x49a   : > { %6010 = vmatprep.subr.mxu0 %v5969_v33  ;;  %v6066_v31 = vpop.permute.xlu1 %6065  ;;  %v13446_v33 = vld [vmem:[#allocation4 + $0x18] sm:$0x7] }
 0x49b   : > { %6011 = vmatpush1.msra.mxu0 %v5968_v32 }
 0x49c   : > { %6012 = vmatprep.subr.mxu0 %v5967_v19  ;;  %v6060_v35 = vpop.permute.xlu0 %6059  ;;  %6703 = vrot.lane.b32.xlu1 %v13092_v23, %s11261_s10 }
 0x49d   : > { %6013 = vmatpush1.msra.mxu0 %v5966_v21  ;;  %6705 = vrot.lane.b32.xlu0 %v12963_v11, %s11261_s10  ;;  %v6080_v10 = vsel %vm828_vm6, %v13311_v57, %v6060_v35  ;;  %v4307_v21 = vpop.f32.mrf.mxu0 }
 0x49e   : > { %v6070_v27 = vpop.permute.xlu1 %6069  ;;  %10942 = vmatmul.mubr.msk.f32.vlgmr.msra.gmra.mxu0 %vm275_vm1, %v13335_v39 }
 0x49f   : > { %6272 = vmatprep.mubr.f32.mxu0 %v11260_v8 }
 0x4a0   : > { %v6064_v53 = vpop.permute.xlu0 %6063  ;;  %6707 = vrot.lane.b32.xlu1 %v13103_v13, %s11261_s10 }
 0x4a1   : > { %6709 = vrot.lane.b32.xlu0 %v12976_v44, %s11261_s10  ;;  %v13360_v44 = vld [vmem:[%s11387_s11 + $0x200] sm:$0xff]  ;;  %v6082_v56 = vsel %vm828_vm6, %v6064_v53, %v6066_v31  ;;  %v6081_v12 = vsel %vm828_vm6, %v13319_v37, %v6064_v53  ;;  %v4309_v53 = vpop.f32.mrf.mxu0 }
 0x4a2   : > { %v6074_v23 = vpop.permute.xlu1 %6073 }
 0x4a4   : > { %v6068_v11 = vpop.permute.xlu0 %6067  ;;  %6711 = vrot.lane.b32.xlu1 %v13119_v61, %s11261_s10  ;;  %v13367_v61 = vld [vmem:[%s11387_s11 + $0x210] sm:$0xff] }
 0x4a5   : > { %6823 = vrot.lane.b32.xlu0 %v13345_v22, %s11257_s17  ;;  %v6083_v34 = vsel %vm828_vm6, %v6068_v11, %v6070_v27 }
 0x4a6   : > { %v6078_v49 = vpop.permute.xlu1 %6077 }
 0x4a8   : > { %v6072_v13 = vpop.permute.xlu0 %6071  ;;  %6825 = vrot.lane.b32.xlu1 %v13350_v59, %s11257_s17 }
 0x4a9   : > { %6827 = vrot.lane.b32.xlu0 %v13355_v62, %s11257_s17  ;;  %v6084_v26 = vsel %vm828_vm6, %v6070_v27, %v6072_v13 }
 0x4aa   : > { %v13364_v9 = vpop.permute.xlu1 %6170 }
 0x4ac   : > { %v6076_v43 = vpop.permute.xlu0 %6075  ;;  %6829 = vrot.lane.b32.xlu1 %v13360_v44, %s11257_s17 }
 0x4ad   : > { %v6086_v52 = vsel %vm828_vm6, %v6076_v43, %v6078_v49  ;;  %v6085_v5 = vsel %vm828_vm6, %v6074_v23, %v6076_v43  ;;  %6831 = vrot.lane.b32.xlu0 %v13367_v61, %s11257_s17  ;;  %v4406_v23 = vpop.f32.mrf.mxu1 }
 0x4ae   : > { %6119 = vmatprep.subr.mxu1 %v6086_v52  ;;  %v6175_v16 = vpop.permute.xlu1 %6174  ;;  %v4505_v52 = vpop.f32.mrf.mxu0 }
 0x4af   : > { %6120 = vmatpush1.msra.mxu1 %v6085_v5  ;;  %v4408_v43 = vpop.f32.mrf.mxu1 }
 0x4b0   : > { %6121 = vmatprep.subr.mxu1 %v6084_v26  ;;  %v6169_v47 = vpop.permute.xlu0 %6168  ;;  %6833 = vrot.lane.b32.xlu1 %v13374_v20, %s11257_s17 }
 0x4b1   : > { %6122 = vmatpush1.msra.mxu1 %v6083_v34  ;;  %6835 = vrot.lane.b32.xlu0 %v13379_v7, %s11257_s17  ;;  %v6192_v6 = vsel %vm945_vm7, %v6169_v47, %v13364_v9 }
 0x4b2   : > { %6123 = vmatprep.subr.mxu1 %v6082_v56  ;;  %v6179_v30 = vpop.permute.xlu1 %6178  ;;  %v4409_v56 = vadd.f32 %v4408_v43, %v4309_v53 }
 0x4b3   : > { %6124 = vmatpush1.msra.mxu1 %v6081_v12  ;;  %v4507_v12 = vpop.f32.mrf.mxu0 }
 0x4b4   : > { %6125 = vmatprep.subr.mxu1 %v6080_v10  ;;  %v6173_v28 = vpop.permute.xlu0 %6172  ;;  %6837 = vrot.lane.b32.xlu1 %v13387_v15, %s11257_s17  ;;  %v4606_v10 = vpop.f32.mrf.mxu1 }
 0x4b5   : > { %6126 = vmatpush1.msra.mxu1 %v6079_v29  ;;  %6922 = vrot.lane.b32.xlu0 %v13345_v22, %s11258_s18  ;;  %v6193_v37 = vsel %vm945_vm7, %v13364_v9, %v6173_v28 }
 0x4b6   : > { %v6183_v51 = vpop.permute.xlu1 %6182  ;;  %10943 = vmatmul.mubr.msk.f32.vlgmr.msra.gmra.mxu1 %vm275_vm1, %v13401_v42 }
 0x4b7   : > { %6385 = vmatprep.mubr.f32.mxu1 %v11260_v8 }
 0x4b8   : > { %v6177_v25 = vpop.permute.xlu0 %6176  ;;  %6924 = vrot.lane.b32.xlu1 %v13350_v59, %s11258_s18 }
 0x4b9   : > { %6926 = vrot.lane.b32.xlu0 %v13355_v62, %s11258_s18  ;;  %v6195_v50 = vsel %vm945_vm7, %v6177_v25, %v6179_v30  ;;  %v6194_v60 = vsel %vm945_vm7, %v6175_v16, %v6177_v25  ;;  %v4407_v16 = vadd.f32 %v4406_v23, %v4307_v21 }
 0x4ba   : > { %v6187_v38 = vpop.permute.xlu1 %6186 }
 0x4bc   : > { %v6181_v48 = vpop.permute.xlu0 %6180  ;;  %6928 = vrot.lane.b32.xlu1 %v13360_v44, %s11258_s18 }
 0x4bd   : > { %6930 = vrot.lane.b32.xlu0 %v13367_v61, %s11258_s18  ;;  %v6196_v0 = vsel %vm945_vm7, %v6181_v48, %v6183_v51 }
 0x4be   : > { %v6191_v14 = vpop.permute.xlu1 %6190 }
 0x4c0   : > { %v6185_v18 = vpop.permute.xlu0 %6184  ;;  %6932 = vrot.lane.b32.xlu1 %v13374_v20, %s11258_s18 }
 0x4c1   : > { %6934 = vrot.lane.b32.xlu0 %v13379_v7, %s11258_s18  ;;  %v6197_v54 = vsel %vm945_vm7, %v6183_v51, %v6185_v18  ;;  %v4510_v51 = vadd.f32 %v4505_v52, %v4407_v16  ;;  %v4608_v18 = vpop.f32.mrf.mxu1  ;;  %v13520_v52 = vld [vmem:[%s11387_s11 + $0x220] sm:$0xff] }
 0x4c2   : > { %v13418_v2 = vpop.permute.xlu1 %6283 }
 0x4c4   : > { %v6189_v36 = vpop.permute.xlu0 %6188  ;;  %6936 = vrot.lane.b32.xlu1 %v13387_v15, %s11258_s18 }
 0x4c5   : > { %v6199_v45 = vsel %vm945_vm7, %v6189_v36, %v6191_v14  ;;  %v6198_v41 = vsel %vm945_vm7, %v6187_v38, %v6189_v36  ;;  %7021 = vrot.lane.b32.xlu0 %v13345_v22, %s11259_s7  ;;  %v4511_v14 = vadd.f32 %v4507_v12, %v4409_v56  ;;  %v4743_v36 = vpop.f32.mrf.mxu0 }
 0x4c6   : > { %6232 = vmatprep.subr.mxu0 %v6199_v45  ;;  %v13426_v4 = vpop.permute.xlu1 %6287 }
 0x4c7   : > { %6233 = vmatpush1.msra.mxu0 %v6198_v41  ;;  %v13492_v41 = vld [vmem:[%s11387_s11 + $0x1f0] sm:$0xff] }
 0x4c8   : > { %6234 = vmatprep.subr.mxu0 %v6197_v54  ;;  %v13430_v57 = vpop.permute.xlu0 %6281  ;;  %7023 = vrot.lane.b32.xlu1 %v13350_v59, %s11259_s7  ;;  %v13494_v54 = vld [vmem:[#allocation4 + $0x1c] sm:$0x7] }
 0x4c9   : > { %6235 = vmatpush1.msra.mxu0 %v6196_v0  ;;  %7025 = vrot.lane.b32.xlu0 %v13355_v62, %s11259_s7  ;;  %v6305_v38 = vsel %vm1062_vm8, %v13430_v57, %v13418_v2  ;;  %v4612_v0 = vadd.f32 %v4608_v18, %v4511_v14  ;;  %v4745_v57 = vpop.f32.mrf.mxu0 }
 0x4ca   : > { %6236 = vmatprep.subr.mxu0 %v6195_v50  ;;  %v6292_v55 = vpop.permute.xlu1 %6291  ;;  %v4856_v50 = vpop.f32.mrf.mxu1 }
 0x4cb   : > { %6237 = vmatpush1.msra.mxu0 %v6194_v60 }
 0x4cc   : > { %6238 = vmatprep.subr.mxu0 %v6193_v37  ;;  %v6286_v1 = vpop.permute.xlu0 %6285  ;;  %7027 = vrot.lane.b32.xlu1 %v13360_v44, %s11259_s7 }
 0x4cd   : > { %6239 = vmatpush1.msra.mxu0 %v6192_v6  ;;  %7029 = vrot.lane.b32.xlu0 %v13367_v61, %s11259_s7  ;;  %v6306_v25 = vsel %vm1062_vm8, %v13418_v2, %v6286_v1  ;;  %v4749_v6 = vadd.f32 %v4745_v57, %v4612_v0 }
 0x4ce   : > { %v6296_v17 = vpop.permute.xlu1 %6295  ;;  %10944 = vmatmul.mubr.msk.f32.vlgmr.msra.gmra.mxu0 %vm275_vm1, %v13446_v33 }
 0x4cf   : > { %6486 = vmatprep.mubr.f32.mxu0 %v11260_v8 }
 0x4d0   : > { %v6290_v31 = vpop.permute.xlu0 %6289  ;;  %7031 = vrot.lane.b32.xlu1 %v13374_v20, %s11259_s7 }
 0x4d1   : > { %7033 = vrot.lane.b32.xlu0 %v13379_v7, %s11259_s7  ;;  %v6308_v30 = vsel %vm1062_vm8, %v6290_v31, %v6292_v55  ;;  %v6307_v28 = vsel %vm1062_vm8, %v13426_v4, %v6290_v31  ;;  %v4611_v4 = vadd.f32 %v4606_v10, %v4510_v51  ;;  %v4858_v31 = vpop.f32.mrf.mxu1 }
 0x4d2   : > { %v6300_v32 = vpop.permute.xlu1 %6299  ;;  %v4862_v53 = vadd.f32 %v4858_v31, %v4749_v6 }
 0x4d3   : > { %v4748_v60 = vadd.f32 %v4743_v36, %v4611_v4 }
 0x4d4   : > { %v6294_v19 = vpop.permute.xlu0 %6293  ;;  %7035 = vrot.lane.b32.xlu1 %v13387_v15, %s11259_s7 }
 0x4d5   : > { %7122 = vrot.lane.b32.xlu0 %v13345_v22, %s11261_s10  ;;  %v6309_v34 = vsel %vm1062_vm8, %v6294_v19, %v6296_v17  ;;  %v4861_v21 = vadd.f32 %v4856_v50, %v4748_v60 }
 0x4d6   : > { %v6304_v35 = vpop.permute.xlu1 %6303 }
 0x4d8   : > { %v6298_v27 = vpop.permute.xlu0 %6297  ;;  %7124 = vrot.lane.b32.xlu1 %v13350_v59, %s11261_s10 }
 0x4d9   : > { %7126 = vrot.lane.b32.xlu0 %v13355_v62, %s11261_s10  ;;  %v6310_v26 = vsel %vm1062_vm8, %v6296_v17, %v6298_v27  ;;  %v13509_v17 = vld [vmem:[%s11387_s11 + $0x208] sm:$0xff] }
 0x4da   : > { %v13463_v11 = vpop.permute.xlu1 %6396 }
 0x4dc   : > { %v6302_v49 = vpop.permute.xlu0 %6301  ;;  %7128 = vrot.lane.b32.xlu1 %v13360_v44, %s11261_s10 }
 0x4dd   : > { %v6312_v13 = vsel %vm1062_vm8, %v6302_v49, %v6304_v35  ;;  %v6311_v9 = vsel %vm1062_vm8, %v6300_v32, %v6302_v49  ;;  %7130 = vrot.lane.b32.xlu0 %v13367_v61, %s11261_s10  ;;  %v4969_v32 = vpop.f32.mrf.mxu0 }
 0x4de   : > { %6345 = vmatprep.subr.mxu1 %v6312_v13  ;;  %v6401_v5 = vpop.permute.xlu1 %6400  ;;  %v5082_v13 = vpop.f32.mrf.mxu1  ;;  %v4974_v43 = vadd.f32 %v4969_v32, %v4861_v21 }
 0x4df   : > { %6346 = vmatpush1.msra.mxu1 %v6311_v9  ;;  %v4971_v49 = vpop.f32.mrf.mxu0 }
 0x4e0   : > { %6347 = vmatprep.subr.mxu1 %v6310_v26  ;;  %v13473_v47 = vpop.permute.xlu0 %6394  ;;  %7132 = vrot.lane.b32.xlu1 %v13374_v20, %s11261_s10  ;;  %v5087_v12 = vadd.f32 %v5082_v13, %v4974_v43 }
 0x4e1   : > { %6348 = vmatpush1.msra.mxu1 %v6309_v34  ;;  %7134 = vrot.lane.b32.xlu0 %v13379_v7, %s11261_s10  ;;  %v6410_v16 = vsel %vm366_vm2, %v13473_v47, %v13463_v11  ;;  %v5084_v34 = vpop.f32.mrf.mxu1  ;;  %v5183_v56 = vpop.f32.mrf.mxu0 }
 0x4e2   : > { %6349 = vmatprep.subr.mxu1 %v6308_v30  ;;  %v6405_v29 = vpop.permute.xlu1 %6404  ;;  %v13530_v30 = vld [vmem:[#allocation4 + $0x20] sm:$0x7] }
 0x4e3   : > { %6350 = vmatpush1.msra.mxu1 %v6307_v28  ;;  %v5185_v28 = vpop.f32.mrf.mxu0 }
 0x4e4   : > { %6351 = vmatprep.subr.mxu1 %v6306_v25  ;;  %v6399_v48 = vpop.permute.xlu0 %6398  ;;  %7136 = vrot.lane.b32.xlu1 %v13387_v15, %s11261_s10 }
 0x4e5   : > { %6352 = vmatpush1.msra.mxu1 %v6305_v38  ;;  %7247 = vrot.lane.b32.xlu0 %v13345_v22, %s11262_s12  ;;  %v6411_v23 = vsel %vm366_vm2, %v6399_v48, %v6401_v5  ;;  %v5284_v51 = vpop.f32.mrf.mxu1  ;;  %v5188_v38 = vadd.f32 %v5183_v56, %v5087_v12 }
 0x4e6   : > { %v6409_v45 = vpop.permute.xlu1 %6408  ;;  %10945 = vmatmul.mubr.msk.f32.vlgmr.msra.gmra.mxu1 %vm275_vm1, %v13494_v54 }
 0x4e7   : > { %6446 = vmatprep.subr.mxu0 %v6409_v45  ;;  %6587 = vmatprep.mubr.f32.mxu1 %v11260_v8  ;;  %v5286_v36 = vpop.f32.mrf.mxu1 }
 0x4e8   : > { %v6403_v2 = vpop.permute.xlu0 %6402  ;;  %7249 = vrot.lane.b32.xlu1 %v13350_v59, %s11262_s12 }
 0x4e9   : > { %7251 = vrot.lane.b32.xlu0 %v13492_v41, %s11262_s12  ;;  %v6412_v35 = vsel %vm366_vm2, %v6403_v2, %v6405_v29  ;;  %v5289_v2 = vadd.f32 %v5284_v51, %v5188_v38  ;;  %v13594_v51 = vld [vmem:[#allocation4 + $0x28] sm:$0x7] }
 0x4ea   : > { %v13503_v55 = vpop.permute.xlu1 %6497 }
 0x4ec   : > { %v6407_v37 = vpop.permute.xlu0 %6406  ;;  %7253 = vrot.lane.b32.xlu1 %v13355_v62, %s11262_s12 }
 0x4ed   : > { %v6413_v1 = vsel %vm366_vm2, %v6407_v37, %v6409_v45  ;;  %7255 = vrot.lane.b32.xlu0 %v13360_v44, %s11262_s12 }
 0x4ee   : > { %6447 = vmatpush1.msra.mxu0 %v6413_v1  ;;  %v6502_v19 = vpop.permute.xlu1 %6501 }
 0x4ef   : > { %6448 = vmatprep.subr.mxu0 %v6405_v29  ;;  %v13538_v29 = vld [vmem:[%s11387_s11 + $0x238] sm:$0xff] }
 0x4f0   : > { %6449 = vmatpush1.msra.mxu0 %v6412_v35  ;;  %v6496_v27 = vpop.permute.xlu0 %6495  ;;  %7257 = vrot.lane.b32.xlu1 %v13509_v17, %s11262_s12 }
 0x4f1   : > { %6450 = vmatprep.subr.mxu0 %v6401_v5  ;;  %7259 = vrot.lane.b32.xlu0 %v13367_v61, %s11262_s12  ;;  %v4975_v5 = vadd.f32 %v4971_v49, %v4862_v53  ;;  %v6511_v31 = vsel %vm262_vm0, %v6496_v27, %v13503_v55 }
 0x4f2   : > { %6451 = vmatpush1.msra.mxu0 %v6411_v23  ;;  %v6506_v9 = vpop.permute.xlu1 %6505 }
 0x4f3   : > { %6452 = vmatprep.subr.mxu0 %v13463_v11  ;;  %v5088_v10 = vadd.f32 %v5084_v34, %v4975_v5 }
 0x4f4   : > { %6453 = vmatpush1.msra.mxu0 %v6410_v16  ;;  %v6500_v26 = vpop.permute.xlu0 %6499  ;;  %7261 = vrot.lane.b32.xlu1 %v13374_v20, %s11262_s12 }
 0x4f5   : > { %7263 = vrot.lane.b32.xlu0 %v13520_v52, %s11262_s12  ;;  %10946 = vmatmul.mubr.msk.f32.vlgmr.msra.gmra.mxu0 %vm275_vm1, %v13530_v30  ;;  %v5189_v14 = vadd.f32 %v5185_v28, %v5088_v10  ;;  %v5385_v45 = vpop.f32.mrf.mxu0  ;;  %v6512_v60 = vsel %vm262_vm0, %v6500_v26, %v6502_v19 }
 0x4f6   : > { %v6510_v47 = vpop.permute.xlu1 %6509  ;;  %6688 = vmatprep.mubr.f32.mxu0 %v11260_v8  ;;  %v5390_v1 = vadd.f32 %v5385_v45, %v5289_v2 }
 0x4f7   : > { %6547 = vmatprep.subr.mxu1 %v6510_v47  ;;  %v5290_v50 = vadd.f32 %v5286_v36, %v5189_v14  ;;  %v5387_v37 = vpop.f32.mrf.mxu0 }
 0x4f8   : > { %v6504_v11 = vpop.permute.xlu0 %6503  ;;  %7265 = vrot.lane.b32.xlu1 %v13379_v7, %s11262_s12 }
 0x4f9   : > { %7267 = vrot.lane.b32.xlu0 %v13387_v15, %s11262_s12  ;;  %v6513_v0 = vsel %vm262_vm0, %v6504_v11, %v6506_v9  ;;  %v5391_v21 = vadd.f32 %v5387_v37, %v5290_v50 }
 0x4fa   : > { %v13542_v25 = vpop.permute.xlu1 %6598 }
 0x4fc   : > { %v6508_v48 = vpop.permute.xlu0 %6507  ;;  %7269 = vrot.lane.b32.xlu1 %v13538_v29, %s11262_s12 }
 0x4fd   : > { %v6514_v18 = vsel %vm262_vm0, %v6508_v48, %v6510_v47  ;;  %7360 = vrot.lane.b32.xlu0 %v13345_v22, %s11263_s19 }
 0x4fe   : > { %6548 = vmatpush1.msra.mxu1 %v6514_v18  ;;  %v6603_v4 = vpop.permute.xlu1 %6602 }
 0x4ff   : > { %6549 = vmatprep.subr.mxu1 %v6506_v9 }
 0x500   : > { %6550 = vmatpush1.msra.mxu1 %v6513_v0  ;;  %v6597_v57 = vpop.permute.xlu0 %6596  ;;  %7362 = vrot.lane.b32.xlu1 %v13350_v59, %s11263_s19 }
 0x501   : > { %6551 = vmatprep.subr.mxu1 %v6502_v19  ;;  %7364 = vrot.lane.b32.xlu0 %v13492_v41, %s11263_s19  ;;  %v13562_v19 = vld [vmem:[#allocation4 + $0x24] sm:$0x7]  ;;  %v6612_v10 = vsel %vm469_vm3, %v6597_v57, %v13542_v25 }
 0x502   : > { %6552 = vmatpush1.msra.mxu1 %v6512_v60  ;;  %v6607_v6 = vpop.permute.xlu1 %6606  ;;  %v13617_v60 = vld [vmem:[#allocation4 + $0x2c] sm:$0x7] }
 0x503   : > { %6553 = vmatprep.subr.mxu1 %v13503_v55 }
 0x504   : > { %6554 = vmatpush1.msra.mxu1 %v6511_v31  ;;  %v6601_v32 = vpop.permute.xlu0 %6600  ;;  %7366 = vrot.lane.b32.xlu1 %v13355_v62, %s11263_s19 }
 0x505   : > { %v5486_v35 = vpop.f32.mrf.mxu1  ;;  %7368 = vrot.lane.b32.xlu0 %v13360_v44, %s11263_s19  ;;  %10947 = vmatmul.mubr.msk.f32.vlgmr.msra.gmra.mxu1 %vm275_vm1, %v13562_v19  ;;  %v6613_v12 = vsel %vm469_vm3, %v6601_v32, %v6603_v4 }
 0x506   : > { %v5491_v53 = vadd.f32 %v5486_v35, %v5390_v1  ;;  %v6611_v23 = vpop.permute.xlu1 %6610  ;;  %6789 = vmatprep.mubr.f32.mxu1 %v11260_v8 }
 0x507   : > { %v5488_v55 = vpop.f32.mrf.mxu1  ;;  %6648 = vmatprep.subr.mxu0 %v6611_v23 }
 0x508   : > { %v5492_v27 = vadd.f32 %v5488_v55, %v5391_v21  ;;  %v6605_v49 = vpop.permute.xlu0 %6604  ;;  %7370 = vrot.lane.b32.xlu1 %v13509_v17, %s11263_s19  ;;  %v5493_v13 = vadd.f32 %v5491_v53, %v11951_v63 }
 0x509   : > { %7372 = vrot.lane.b32.xlu0 %v13367_v61, %s11263_s19  ;;  %v6614_v56 = vsel %vm469_vm3, %v6605_v49, %v6607_v6 }
 0x50a   : > { %v5494_v9 = vadd.f32 %v5492_v27, %v11951_v63  ;;  %v6700_v43 = vpop.permute.xlu1 %6699 }
 0x50c   : > { %v5497_v16 = vcombine.low %v5493_v13, %v5494_v9  ;;  %v6609_v26 = vpop.permute.xlu0 %6608  ;;  %7374 = vrot.lane.b32.xlu1 %v13374_v20, %s11263_s19 }
 0x50d   : > { %v6615_v5 = vsel %vm469_vm3, %v6609_v26, %v6611_v23  ;;  %7376 = vrot.lane.b32.xlu0 %v13520_v52, %s11263_s19 }
 0x50e   : > { %10917 = vst.msk [vmem:[%s12305_s26 + $0x18] sm:$0x77] %vm12307_vm11, %v5497_v16  ;;  %6649 = vmatpush1.msra.mxu0 %v6615_v5  ;;  %v6704_v34 = vpop.permute.xlu1 %6703 }
 0x50f   : > { %6650 = vmatprep.subr.mxu0 %v6607_v6 }
 0x510   : > { %6651 = vmatpush1.msra.mxu0 %v6614_v56  ;;  %v6698_v47 = vpop.permute.xlu0 %6697  ;;  %7378 = vrot.lane.b32.xlu1 %v13379_v7, %s11263_s19 }
 0x511   : > { %6652 = vmatprep.subr.mxu0 %v6603_v4  ;;  %7380 = vrot.lane.b32.xlu0 %v13387_v15, %s11263_s19  ;;  %v6713_v57 = vsel %vm574_vm4, %v6698_v47, %v6700_v43 }
 0x512   : > { %6653 = vmatpush1.msra.mxu0 %v6613_v12  ;;  %v6708_v11 = vpop.permute.xlu1 %6707 }
 0x513   : > { %6654 = vmatprep.subr.mxu0 %v13542_v25 }
 0x514   : > { %6655 = vmatpush1.msra.mxu0 %v6612_v10  ;;  %v6702_v28 = vpop.permute.xlu0 %6701  ;;  %7382 = vrot.lane.b32.xlu1 %v13538_v29, %s11263_s19 }
 0x515   : > { %7473 = vrot.lane.b32.xlu0 %v13345_v22, %s11265_s15  ;;  %10948 = vmatmul.mubr.msk.f32.vlgmr.msra.gmra.mxu0 %vm275_vm1, %v13594_v51  ;;  %v6714_v2 = vsel %vm574_vm4, %v6702_v28, %v6704_v34 }
 0x516   : > { %v6712_v38 = vpop.permute.xlu1 %6711  ;;  %6915 = vmatprep.mubr.f32.mxu0 %v11260_v8 }
 0x517   : > { %6749 = vmatprep.subr.mxu1 %v6712_v38 }
 0x518   : > { %v6706_v48 = vpop.permute.xlu0 %6705  ;;  %7475 = vrot.lane.b32.xlu1 %v13350_v59, %s11265_s15 }
 0x519   : > { %7477 = vrot.lane.b32.xlu0 %v13492_v41, %s11265_s15  ;;  %v6715_v45 = vsel %vm574_vm4, %v6706_v48, %v6708_v11 }
 0x51a   : > { %v6826_v25 = vpop.permute.xlu1 %6825 }
 0x51c   : > { %v6710_v14 = vpop.permute.xlu0 %6709  ;;  %7479 = vrot.lane.b32.xlu1 %v13355_v62, %s11265_s15 }
 0x51d   : > { %v6716_v18 = vsel %vm574_vm4, %v6710_v14, %v6712_v38  ;;  %7481 = vrot.lane.b32.xlu0 %v13360_v44, %s11265_s15 }
 0x51e   : > { %6750 = vmatpush1.msra.mxu1 %v6716_v18  ;;  %v6830_v36 = vpop.permute.xlu1 %6829 }
 0x51f   : > { %6751 = vmatprep.subr.mxu1 %v6708_v11 }
 0x520   : > { %6752 = vmatpush1.msra.mxu1 %v6715_v45  ;;  %v6824_v4 = vpop.permute.xlu0 %6823  ;;  %7483 = vrot.lane.b32.xlu1 %v13509_v17, %s11265_s15 }
 0x521   : > { %6753 = vmatprep.subr.mxu1 %v6704_v34  ;;  %7485 = vrot.lane.b32.xlu0 %v13367_v61, %s11265_s15 }
 0x522   : > { %6754 = vmatpush1.msra.mxu1 %v6714_v2  ;;  %v6834_v0 = vpop.permute.xlu1 %6833 }
 0x523   : > { %6755 = vmatprep.subr.mxu1 %v6700_v43 }
 0x524   : > { %6756 = vmatpush1.msra.mxu1 %v6713_v57  ;;  %v6828_v50 = vpop.permute.xlu0 %6827  ;;  %7487 = vrot.lane.b32.xlu1 %v13374_v20, %s11265_s15 }
 0x525   : > { %10949 = vmatmul.mubr.msk.f32.vlgmr.msra.gmra.mxu1 %vm275_vm1, %v13617_v60  ;;  %7489 = vrot.lane.b32.xlu0 %v13520_v52, %s11265_s15  ;;  %v6840_v23 = vsel %vm262_vm0, %v6828_v50, %v6830_v36 }
 0x526   : > { %v6838_v37 = vpop.permute.xlu1 %6837  ;;  %7014 = vmatprep.mubr.f32.mxu1 %v11260_v8 }
 0x527   : > { %6875 = vmatprep.subr.mxu0 %v6838_v37 }
 0x528   : > { %v6832_v6 = vpop.permute.xlu0 %6831  ;;  %7491 = vrot.lane.b32.xlu1 %v13379_v7, %s11265_s15 }
 0x529   : > { %7493 = vrot.lane.b32.xlu0 %v13387_v15, %s11265_s15  ;;  %v6841_v35 = vsel %vm262_vm0, %v6832_v6, %v6834_v0 }
 0x52a   : > { %v6925_v1 = vpop.permute.xlu1 %6924 }
 0x52c   : > { %v6836_v31 = vpop.permute.xlu0 %6835  ;;  %7495 = vrot.lane.b32.xlu1 %v13538_v29, %s11265_s15 }
 0x52d   : > { %v6842_v32 = vsel %vm262_vm0, %v6836_v31, %v6838_v37  ;;  %7586 = vrot.lane.b32.xlu0 %v13345_v22, %s11266_s20  ;;  %v6839_v22 = vsel %vm262_vm0, %v6824_v4, %v6826_v25 }
 0x52e   : > { %6876 = vmatpush1.msra.mxu0 %v6842_v32  ;;  %v6929_v21 = vpop.permute.xlu1 %6928 }
 0x52f   : > { %6877 = vmatprep.subr.mxu0 %v6834_v0 }
 0x530   : > { %6878 = vmatpush1.msra.mxu0 %v6841_v35  ;;  %v6923_v53 = vpop.permute.xlu0 %6922  ;;  %7588 = vrot.lane.b32.xlu1 %v13350_v59, %s11266_s20 }
 0x531   : > { %6879 = vmatprep.subr.mxu0 %v6830_v36  ;;  %7590 = vrot.lane.b32.xlu0 %v13492_v41, %s11266_s20  ;;  %v6938_v34 = vsel %vm366_vm2, %v6923_v53, %v6925_v1 }
 0x532   : > { %6880 = vmatpush1.msra.mxu0 %v6840_v23  ;;  %v6933_v55 = vpop.permute.xlu1 %6932 }
 0x533   : > { %6881 = vmatprep.subr.mxu0 %v6826_v25 }
 0x534   : > { %6882 = vmatpush1.msra.mxu0 %v6839_v22  ;;  %v6927_v27 = vpop.permute.xlu0 %6926  ;;  %7592 = vrot.lane.b32.xlu1 %v13355_v62, %s11266_s20 }
 0x535   : > { %7594 = vrot.lane.b32.xlu0 %v13360_v44, %s11266_s20  ;;  %10959 = vmatmul.mubr.msk.f32.vlgmr.msra.gmra.mxu0 %vm275_vm1, %v13219_v58 }
 0x536   : > { %v6937_v49 = vpop.permute.xlu1 %6936  ;;  %7113 = vmatprep.mubr.f32.mxu0 %v11260_v8 }
 0x537   : > { %6974 = vmatprep.subr.mxu1 %v6937_v49 }
 0x538   : > { %v6931_v13 = vpop.permute.xlu0 %6930  ;;  %7596 = vrot.lane.b32.xlu1 %v13509_v17, %s11266_s20 }
 0x539   : > { %7598 = vrot.lane.b32.xlu0 %v13367_v61, %s11266_s20  ;;  %v6940_v16 = vsel %vm366_vm2, %v6931_v13, %v6933_v55  ;;  %v6939_v61 = vsel %vm366_vm2, %v6927_v27, %v6929_v21 }
 0x53a   : > { %v7024_v9 = vpop.permute.xlu1 %7023 }
 0x53c   : > { %v6935_v43 = vpop.permute.xlu0 %6934  ;;  %7600 = vrot.lane.b32.xlu1 %v13374_v20, %s11266_s20 }
 0x53d   : > { %v6941_v62 = vsel %vm366_vm2, %v6935_v43, %v6937_v49  ;;  %7602 = vrot.lane.b32.xlu0 %v13520_v52, %s11266_s20 }
 0x53e   : > { %6975 = vmatpush1.msra.mxu1 %v6941_v62  ;;  %v7028_v58 = vpop.permute.xlu1 %7027 }
 0x53f   : > { %6976 = vmatprep.subr.mxu1 %v6933_v55 }
 0x540   : > { %6977 = vmatpush1.msra.mxu1 %v6940_v16  ;;  %v7022_v26 = vpop.permute.xlu0 %7021  ;;  %7604 = vrot.lane.b32.xlu1 %v13379_v7, %s11266_s20 }
 0x541   : > { %6978 = vmatprep.subr.mxu1 %v6929_v21  ;;  %7606 = vrot.lane.b32.xlu0 %v13387_v15, %s11266_s20  ;;  %v7037_v14 = vsel %vm469_vm3, %v7022_v26, %v7024_v9 }
 0x542   : > { %6979 = vmatpush1.msra.mxu1 %v6939_v61  ;;  %v7032_v5 = vpop.permute.xlu1 %7031 }
 0x543   : > { %6980 = vmatprep.subr.mxu1 %v6925_v1 }
 0x544   : > { %6981 = vmatpush1.msra.mxu1 %v6938_v34  ;;  %v7026_v56 = vpop.permute.xlu0 %7025  ;;  %7608 = vrot.lane.b32.xlu1 %v13538_v29, %s11266_s20  ;;  %v13760_v34 = vld [vmem:[%s11387_s11 + $0x240] sm:$0xff] }
 0x545   : > { %7699 = vrot.lane.b32.xlu0 %v13350_v59, %s11258_s18  ;;  %10960 = vmatmul.mubr.msk.f32.vlgmr.msra.gmra.mxu1 %vm275_vm1, %v13244_v3  ;;  %v7038_v48 = vsel %vm469_vm3, %v7026_v56, %v7028_v58 }
 0x546   : > { %v7036_v7 = vpop.permute.xlu1 %7035  ;;  %7214 = vmatprep.mubr.f32.mxu1 %v11260_v8 }
 0x547   : > { %7073 = vmatprep.subr.mxu0 %v7036_v7 }
 0x548   : > { %v7030_v47 = vpop.permute.xlu0 %7029  ;;  %7701 = vrot.lane.b32.xlu1 %v13492_v41, %s11258_s18 }
 0x549   : > { %7703 = vrot.lane.b32.xlu0 %v13360_v44, %s11258_s18  ;;  %v7039_v28 = vsel %vm469_vm3, %v7030_v47, %v7032_v5 }
 0x54a   : > { %v7125_v12 = vpop.permute.xlu1 %7124 }
 0x54c   : > { %v7034_v11 = vpop.permute.xlu0 %7033  ;;  %7705 = vrot.lane.b32.xlu1 %v13509_v17, %s11258_s18 }
 0x54d   : > { %v7040_v10 = vsel %vm469_vm3, %v7034_v11, %v7036_v7  ;;  %7707 = vrot.lane.b32.xlu0 %v13374_v20, %s11258_s18  ;;  %v13770_v7 = vld [vmem:[%s11387_s11 + $0x258] sm:$0xff] }
 0x54e   : > { %7074 = vmatpush1.msra.mxu0 %v7040_v10  ;;  %v7129_v3 = vpop.permute.xlu1 %7128 }
 0x54f   : > { %7075 = vmatprep.subr.mxu0 %v7032_v5 }
 0x550   : > { %7076 = vmatpush1.msra.mxu0 %v7039_v28  ;;  %v7123_v38 = vpop.permute.xlu0 %7122  ;;  %7709 = vrot.lane.b32.xlu1 %v13520_v52, %s11258_s18 }
 0x551   : > { %7077 = vmatprep.subr.mxu0 %v7028_v58  ;;  %7711 = vrot.lane.b32.xlu0 %v13387_v15, %s11258_s18  ;;  %v7138_v1 = vsel %vm574_vm4, %v7123_v38, %v7125_v12  ;;  %v13794_v38 = vld [vmem:[%s11387_s11 + $0x288] sm:$0xff] }
 0x552   : > { %7078 = vmatpush1.msra.mxu0 %v7038_v48  ;;  %v7133_v25 = vpop.permute.xlu1 %7132 }
 0x553   : > { %7079 = vmatprep.subr.mxu0 %v7024_v9 }
 0x554   : > { %7080 = vmatpush1.msra.mxu0 %v7037_v14  ;;  %v7127_v18 = vpop.permute.xlu0 %7126  ;;  %7713 = vrot.lane.b32.xlu1 %v13538_v29, %s11258_s18 }
 0x555   : > { %7800 = vrot.lane.b32.xlu0 %v13350_v59, %s11257_s17  ;;  %10961 = vmatmul.mubr.msk.f32.vlgmr.msra.gmra.mxu0 %vm275_vm1, %v13269_v46  ;;  %v7139_v37 = vsel %vm574_vm4, %v7127_v18, %v7129_v3 }
 0x556   : > { %v7137_v36 = vpop.permute.xlu1 %7136  ;;  %7351 = vmatprep.mubr.f32.mxu0 %v11260_v8 }
 0x557   : > { %7174 = vmatprep.subr.mxu1 %v7137_v36 }
 0x558   : > { %v7131_v45 = vpop.permute.xlu0 %7130  ;;  %7802 = vrot.lane.b32.xlu1 %v13492_v41, %s11257_s17 }
 0x559   : > { %7804 = vrot.lane.b32.xlu0 %v13360_v44, %s11257_s17  ;;  %v7140_v57 = vsel %vm574_vm4, %v7131_v45, %v7133_v25 }
 0x55a   : > { %v7250_v4 = vpop.permute.xlu1 %7249 }
 0x55c   : > { %v7135_v2 = vpop.permute.xlu0 %7134  ;;  %7806 = vrot.lane.b32.xlu1 %v13509_v17, %s11257_s17 }
 0x55d   : > { %v7141_v0 = vsel %vm574_vm4, %v7135_v2, %v7137_v36  ;;  %7808 = vrot.lane.b32.xlu0 %v13374_v20, %s11257_s17  ;;  %v13802_v36 = vld [vmem:[%s11387_s11 + $0x290] sm:$0xff] }
 0x55e   : > { %7175 = vmatpush1.msra.mxu1 %v7141_v0  ;;  %v7254_v46 = vpop.permute.xlu1 %7253 }
 0x55f   : > { %7176 = vmatprep.subr.mxu1 %v7133_v25 }
 0x560   : > { %7177 = vmatpush1.msra.mxu1 %v7140_v57  ;;  %v7248_v50 = vpop.permute.xlu0 %7247  ;;  %7810 = vrot.lane.b32.xlu1 %v13520_v52, %s11257_s17 }
 0x561   : > { %7178 = vmatprep.subr.mxu1 %v7129_v3  ;;  %7812 = vrot.lane.b32.xlu0 %v13387_v15, %s11257_s17  ;;  %v7271_v61 = vsel %vm711_vm5, %v7248_v50, %v7250_v4  ;;  %v13789_v3 = vld [vmem:[%s11387_s11 + $0x278] sm:$0xff] }
 0x562   : > { %7179 = vmatpush1.msra.mxu1 %v7139_v37  ;;  %v7258_v6 = vpop.permute.xlu1 %7257 }
 0x563   : > { %7180 = vmatprep.subr.mxu1 %v7125_v12 }
 0x564   : > { %7181 = vmatpush1.msra.mxu1 %v7138_v1  ;;  %v7252_v31 = vpop.permute.xlu0 %7251  ;;  %7814 = vrot.lane.b32.xlu1 %v13538_v29, %s11257_s17 }
 0x565   : > { %7901 = vrot.lane.b32.xlu0 %v13350_v59, %s11259_s7  ;;  %10962 = vmatmul.mubr.msk.f32.vlgmr.msra.gmra.mxu1 %vm275_vm1, %v13294_v40  ;;  %v7272_v26 = vsel %vm711_vm5, %v7250_v4, %v7252_v31 }
 0x566   : > { %v7262_v32 = vpop.permute.xlu1 %7261  ;;  %7464 = vmatprep.mubr.f32.mxu1 %v11260_v8 }
 0x568   : > { %v7256_v21 = vpop.permute.xlu0 %7255  ;;  %7903 = vrot.lane.b32.xlu1 %v13492_v41, %s11259_s7 }
 0x569   : > { %7905 = vrot.lane.b32.xlu0 %v13360_v44, %s11259_s7  ;;  %v7274_v58 = vsel %vm711_vm5, %v7256_v21, %v7258_v6  ;;  %v7273_v16 = vsel %vm711_vm5, %v7254_v46, %v7256_v21 }
 0x56a   : > { %v7266_v35 = vpop.permute.xlu1 %7265 }
 0x56c   : > { %v7260_v53 = vpop.permute.xlu0 %7259  ;;  %7907 = vrot.lane.b32.xlu1 %v13509_v17, %s11259_s7 }
 0x56d   : > { %7909 = vrot.lane.b32.xlu0 %v13374_v20, %s11259_s7  ;;  %v7275_v43 = vsel %vm711_vm5, %v7260_v53, %v7262_v32 }
 0x56e   : > { %v7270_v23 = vpop.permute.xlu1 %7269 }
 0x570   : > { %v7264_v40 = vpop.permute.xlu0 %7263  ;;  %7911 = vrot.lane.b32.xlu1 %v13520_v52, %s11259_s7 }
 0x571   : > { %7913 = vrot.lane.b32.xlu0 %v13387_v15, %s11259_s7  ;;  %v7276_v9 = vsel %vm711_vm5, %v7262_v32, %v7264_v40 }
 0x572   : > { %v13728_v55 = vpop.permute.xlu1 %7362 }
 0x574   : > { %v7268_v22 = vpop.permute.xlu0 %7267  ;;  %7915 = vrot.lane.b32.xlu1 %v13538_v29, %s11259_s7 }
 0x575   : > { %v7278_v27 = vsel %vm711_vm5, %v7268_v22, %v7270_v23  ;;  %v7277_v49 = vsel %vm711_vm5, %v7266_v35, %v7268_v22  ;;  %8002 = vrot.lane.b32.xlu0 %v13350_v59, %s11261_s10 }
 0x576   : > { %7311 = vmatprep.subr.mxu0 %v7278_v27  ;;  %v13736_v13 = vpop.permute.xlu1 %7366 }
 0x577   : > { %7312 = vmatpush1.msra.mxu0 %v7277_v49 }
 0x578   : > { %7313 = vmatprep.subr.mxu0 %v7276_v9  ;;  %v7361_v62 = vpop.permute.xlu0 %7360  ;;  %8004 = vrot.lane.b32.xlu1 %v13492_v41, %s11261_s10 }
 0x579   : > { %7314 = vmatpush1.msra.mxu0 %v7275_v43  ;;  %8006 = vrot.lane.b32.xlu0 %v13360_v44, %s11261_s10  ;;  %v7384_v0 = vsel %vm828_vm6, %v7361_v62, %v13728_v55 }
 0x57a   : > { %7315 = vmatprep.subr.mxu0 %v7274_v58  ;;  %v7371_v59 = vpop.permute.xlu1 %7370 }
 0x57b   : > { %7316 = vmatpush1.msra.mxu0 %v7273_v16 }
 0x57c   : > { %7317 = vmatprep.subr.mxu0 %v7272_v26  ;;  %v7365_v5 = vpop.permute.xlu0 %7364  ;;  %8008 = vrot.lane.b32.xlu1 %v13509_v17, %s11261_s10  ;;  %v5612_v26 = vpop.f32.mrf.mxu0 }
 0x57d   : > { %7318 = vmatpush1.msra.mxu0 %v7271_v61  ;;  %8010 = vrot.lane.b32.xlu0 %v13374_v20, %s11261_s10  ;;  %v13765_v20 = vld [vmem:[%s11387_s11 + $0x248] sm:$0xff]  ;;  %v7385_v2 = vsel %vm828_vm6, %v13728_v55, %v7365_v5 }
 0x57e   : > { %v7375_v44 = vpop.permute.xlu1 %7374  ;;  %10975 = vmatmul.mubr.msk.f32.vlgmr.msra.gmra.mxu0 %vm275_vm1, %v13335_v39  ;;  %v5614_v5 = vpop.f32.mrf.mxu0 }
 0x57f   : > { %7577 = vmatprep.mubr.f32.mxu0 %v11260_v8 }
 0x580   : > { %v7369_v41 = vpop.permute.xlu0 %7368  ;;  %8012 = vrot.lane.b32.xlu1 %v13520_v52, %s11261_s10 }
 0x581   : > { %8014 = vrot.lane.b32.xlu0 %v13387_v15, %s11261_s10  ;;  %v13775_v15 = vld [vmem:[%s11387_s11 + $0x260] sm:$0xff]  ;;  %v7387_v18 = vsel %vm828_vm6, %v7369_v41, %v7371_v59  ;;  %v7386_v4 = vsel %vm828_vm6, %v13736_v13, %v7369_v41 }
 0x582   : > { %v7379_v17 = vpop.permute.xlu1 %7378 }
 0x584   : > { %v7373_v56 = vpop.permute.xlu0 %7372  ;;  %8016 = vrot.lane.b32.xlu1 %v13538_v29, %s11261_s10  ;;  %v13782_v29 = vld [vmem:[%s11387_s11 + $0x270] sm:$0xff] }
 0x585   : > { %8128 = vrot.lane.b32.xlu0 %v13760_v34, %s11257_s17  ;;  %v7388_v25 = vsel %vm828_vm6, %v7373_v56, %v7375_v44 }
 0x586   : > { %v7383_v39 = vpop.permute.xlu1 %7382 }
 0x588   : > { %v7377_v52 = vpop.permute.xlu0 %7376  ;;  %8130 = vrot.lane.b32.xlu1 %v13765_v20, %s11257_s17 }
 0x589   : > { %8132 = vrot.lane.b32.xlu0 %v13770_v7, %s11257_s17  ;;  %v7389_v48 = vsel %vm828_vm6, %v7375_v44, %v7377_v52  ;;  %v5711_v44 = vpop.f32.mrf.mxu1 }
 0x58a   : > { %v13779_v47 = vpop.permute.xlu1 %7475 }
 0x58b   : > { %v5713_v52 = vpop.f32.mrf.mxu1 }
 0x58c   : > { %v7381_v12 = vpop.permute.xlu0 %7380  ;;  %8134 = vrot.lane.b32.xlu1 %v13775_v15, %s11257_s17 }
 0x58d   : > { %v7391_v11 = vsel %vm828_vm6, %v7381_v12, %v7383_v39  ;;  %v7390_v10 = vsel %vm828_vm6, %v7379_v17, %v7381_v12  ;;  %8136 = vrot.lane.b32.xlu0 %v13782_v29, %s11257_s17 }
 0x58e   : > { %7424 = vmatprep.subr.mxu1 %v7391_v11  ;;  %v7480_v28 = vpop.permute.xlu1 %7479  ;;  %v5712_v11 = vadd.f32 %v5711_v44, %v5612_v26 }
 0x58f   : > { %7425 = vmatpush1.msra.mxu1 %v7390_v10 }
 0x590   : > { %7426 = vmatprep.subr.mxu1 %v7389_v48  ;;  %v7474_v14 = vpop.permute.xlu0 %7473  ;;  %8138 = vrot.lane.b32.xlu1 %v13789_v3, %s11257_s17 }
 0x591   : > { %7427 = vmatpush1.msra.mxu1 %v7388_v25  ;;  %8140 = vrot.lane.b32.xlu0 %v13794_v38, %s11257_s17  ;;  %v7497_v9 = vsel %vm945_vm7, %v7474_v14, %v13779_v47  ;;  %v5714_v25 = vadd.f32 %v5713_v52, %v5614_v5 }
 0x592   : > { %7428 = vmatprep.subr.mxu1 %v7387_v18  ;;  %v7484_v45 = vpop.permute.xlu1 %7483 }
 0x593   : > { %7429 = vmatpush1.msra.mxu1 %v7386_v4 }
 0x594   : > { %7430 = vmatprep.subr.mxu1 %v7385_v2  ;;  %v7478_v46 = vpop.permute.xlu0 %7477  ;;  %8142 = vrot.lane.b32.xlu1 %v13802_v36, %s11257_s17 }
 0x595   : > { %7431 = vmatpush1.msra.mxu1 %v7384_v0  ;;  %8227 = vrot.lane.b32.xlu0 %v13760_v34, %s11258_s18  ;;  %v7498_v13 = vsel %vm945_vm7, %v13779_v47, %v7478_v46  ;;  %v5810_v47 = vpop.f32.mrf.mxu0 }
 0x596   : > { %v7488_v57 = vpop.permute.xlu1 %7487  ;;  %10976 = vmatmul.mubr.msk.f32.vlgmr.msra.gmra.mxu1 %vm275_vm1, %v13401_v42  ;;  %v5815_v0 = vadd.f32 %v5810_v47, %v5712_v11 }
 0x597   : > { %7690 = vmatprep.mubr.f32.mxu1 %v11260_v8  ;;  %v5812_v18 = vpop.f32.mrf.mxu0 }
 0x598   : > { %v7482_v50 = vpop.permute.xlu0 %7481  ;;  %8229 = vrot.lane.b32.xlu1 %v13765_v20, %s11258_s18 }
 0x599   : > { %8231 = vrot.lane.b32.xlu0 %v13770_v7, %s11258_s18  ;;  %v7500_v22 = vsel %vm945_vm7, %v7482_v50, %v7484_v45  ;;  %v7499_v49 = vsel %vm945_vm7, %v7480_v28, %v7482_v50  ;;  %v5911_v45 = vpop.f32.mrf.mxu1 }
 0x59a   : > { %v7492_v37 = vpop.permute.xlu1 %7491 }
 0x59c   : > { %v7486_v6 = vpop.permute.xlu0 %7485  ;;  %8233 = vrot.lane.b32.xlu1 %v13775_v15, %s11258_s18 }
 0x59d   : > { %8235 = vrot.lane.b32.xlu0 %v13782_v29, %s11258_s18  ;;  %v7501_v40 = vsel %vm945_vm7, %v7486_v6, %v7488_v57  ;;  %v5913_v6 = vpop.f32.mrf.mxu1 }
 0x59e   : > { %v7496_v1 = vpop.permute.xlu1 %7495 }
 0x5a0   : > { %v7490_v31 = vpop.permute.xlu0 %7489  ;;  %8237 = vrot.lane.b32.xlu1 %v13789_v3, %s11258_s18 }
 0x5a1   : > { %8239 = vrot.lane.b32.xlu0 %v13794_v38, %s11258_s18  ;;  %v7502_v23 = vsel %vm945_vm7, %v7488_v57, %v7490_v31 }
 0x5a2   : > { %v13831_v42 = vpop.permute.xlu1 %7588 }
 0x5a4   : > { %v7494_v32 = vpop.permute.xlu0 %7493  ;;  %8241 = vrot.lane.b32.xlu1 %v13802_v36, %s11258_s18 }
 0x5a5   : > { %v7504_v21 = vsel %vm945_vm7, %v7494_v32, %v7496_v1  ;;  %v7503_v35 = vsel %vm945_vm7, %v7492_v37, %v7494_v32  ;;  %8326 = vrot.lane.b32.xlu0 %v13760_v34, %s11259_s7  ;;  %v5816_v37 = vadd.f32 %v5812_v18, %v5714_v25  ;;  %v6048_v1 = vpop.f32.mrf.mxu0  ;;  %v13903_v32 = vld [vmem:[%s11387_s11 + $0x250] sm:$0xff] }
 0x5a6   : > { %7537 = vmatprep.subr.mxu0 %v7504_v21  ;;  %v13839_v53 = vpop.permute.xlu1 %7592  ;;  %v5916_v21 = vadd.f32 %v5911_v45, %v5815_v0 }
 0x5a7   : > { %7538 = vmatpush1.msra.mxu0 %v7503_v35  ;;  %v5917_v35 = vadd.f32 %v5913_v6, %v5816_v37 }
 0x5a8   : > { %7539 = vmatprep.subr.mxu0 %v7502_v23  ;;  %v13843_v55 = vpop.permute.xlu0 %7586  ;;  %8328 = vrot.lane.b32.xlu1 %v13765_v20, %s11259_s7  ;;  %v6161_v23 = vpop.f32.mrf.mxu1 }
 0x5a9   : > { %7540 = vmatpush1.msra.mxu0 %v7501_v40  ;;  %8330 = vrot.lane.b32.xlu0 %v13770_v7, %s11259_s7  ;;  %v7610_v57 = vsel %vm1062_vm8, %v13843_v55, %v13831_v42  ;;  %v6053_v55 = vadd.f32 %v6048_v1, %v5916_v21 }
 0x5aa   : > { %7541 = vmatprep.subr.mxu0 %v7500_v22  ;;  %v7597_v27 = vpop.permute.xlu1 %7596 }
 0x5ab   : > { %7542 = vmatpush1.msra.mxu0 %v7499_v49  ;;  %v13918_v49 = vld [vmem:[%s11387_s11 + $0x268] sm:$0xff] }
 0x5ac   : > { %7543 = vmatprep.subr.mxu0 %v7498_v13  ;;  %v7591_v43 = vpop.permute.xlu0 %7590  ;;  %8332 = vrot.lane.b32.xlu1 %v13775_v15, %s11259_s7  ;;  %v6163_v13 = vpop.f32.mrf.mxu1 }
 0x5ad   : > { %7544 = vmatpush1.msra.mxu0 %v7497_v9  ;;  %8334 = vrot.lane.b32.xlu0 %v13782_v29, %s11259_s7  ;;  %v7611_v46 = vsel %vm1062_vm8, %v13831_v42, %v7591_v43 }
 0x5ae   : > { %v7601_v62 = vpop.permute.xlu1 %7600  ;;  %10977 = vmatmul.mubr.msk.f32.vlgmr.msra.gmra.mxu0 %vm275_vm1, %v13446_v33 }
 0x5af   : > { %7791 = vmatprep.mubr.f32.mxu0 %v11260_v8 }
 0x5b0   : > { %v7595_v58 = vpop.permute.xlu0 %7594  ;;  %8336 = vrot.lane.b32.xlu1 %v13789_v3, %s11259_s7 }
 0x5b1   : > { %8338 = vrot.lane.b32.xlu0 %v13794_v38, %s11259_s7  ;;  %v7613_v14 = vsel %vm1062_vm8, %v7595_v58, %v7597_v27  ;;  %v7612_v2 = vsel %vm1062_vm8, %v13839_v53, %v7595_v58  ;;  %v6050_v53 = vpop.f32.mrf.mxu0 }
 0x5b2   : > { %v7605_v59 = vpop.permute.xlu1 %7604 }
 0x5b3   : > { %v6274_v9 = vpop.f32.mrf.mxu0 }
 0x5b4   : > { %v7599_v16 = vpop.permute.xlu0 %7598  ;;  %8340 = vrot.lane.b32.xlu1 %v13802_v36, %s11259_s7 }
 0x5b5   : > { %8427 = vrot.lane.b32.xlu0 %v13760_v34, %s11261_s10  ;;  %v7614_v28 = vsel %vm1062_vm8, %v7599_v16, %v7601_v62 }
 0x5b6   : > { %v7609_v61 = vpop.permute.xlu1 %7608 }
 0x5b8   : > { %v7603_v33 = vpop.permute.xlu0 %7602  ;;  %8429 = vrot.lane.b32.xlu1 %v13765_v20, %s11261_s10 }
 0x5b9   : > { %8431 = vrot.lane.b32.xlu0 %v13770_v7, %s11261_s10  ;;  %v7615_v10 = vsel %vm1062_vm8, %v7601_v62, %v7603_v33  ;;  %v6166_v62 = vadd.f32 %v6161_v23, %v6053_v55  ;;  %v6387_v33 = vpop.f32.mrf.mxu1 }
 0x5ba   : > { %v13874_v41 = vpop.permute.xlu1 %7701 }
 0x5bb   : > { %v6279_v44 = vadd.f32 %v6274_v9, %v6166_v62  ;;  %v6389_v47 = vpop.f32.mrf.mxu1 }
 0x5bc   : > { %v7607_v17 = vpop.permute.xlu0 %7606  ;;  %8433 = vrot.lane.b32.xlu1 %v13775_v15, %s11261_s10 }
 0x5bd   : > { %v7617_v56 = vsel %vm1062_vm8, %v7607_v17, %v7609_v61  ;;  %v7616_v39 = vsel %vm1062_vm8, %v7605_v59, %v7607_v17  ;;  %8435 = vrot.lane.b32.xlu0 %v13782_v29, %s11261_s10  ;;  %v6276_v61 = vpop.f32.mrf.mxu0  ;;  %v13929_v17 = vld [vmem:[%s11387_s11 + $0x280] sm:$0xff] }
 0x5be   : > { %7650 = vmatprep.subr.mxu1 %v7617_v56  ;;  %v7706_v12 = vpop.permute.xlu1 %7705 }
 0x5bf   : > { %7651 = vmatpush1.msra.mxu1 %v7616_v39 }
 0x5c0   : > { %7652 = vmatprep.subr.mxu1 %v7615_v10  ;;  %v13884_v48 = vpop.permute.xlu0 %7699  ;;  %8437 = vrot.lane.b32.xlu1 %v13789_v3, %s11261_s10  ;;  %v6392_v10 = vadd.f32 %v6387_v33, %v6279_v44 }
 0x5c1   : > { %7653 = vmatpush1.msra.mxu1 %v7614_v28  ;;  %8439 = vrot.lane.b32.xlu0 %v13794_v38, %s11261_s10  ;;  %v7715_v56 = vsel %vm366_vm2, %v13884_v48, %v13874_v41  ;;  %v13945_v48 = vld [vmem:[%s11387_s11 + $0x298] sm:$0xff] }
 0x5c2   : > { %7654 = vmatprep.subr.mxu1 %v7613_v14  ;;  %v7710_v4 = vpop.permute.xlu1 %7709 }
 0x5c3   : > { %7655 = vmatpush1.msra.mxu1 %v7612_v2 }
 0x5c4   : > { %7656 = vmatprep.subr.mxu1 %v7611_v46  ;;  %v7704_v50 = vpop.permute.xlu0 %7703  ;;  %8441 = vrot.lane.b32.xlu1 %v13802_v36, %s11261_s10 }
 0x5c5   : > { %7657 = vmatpush1.msra.mxu1 %v7610_v57  ;;  %8552 = vrot.lane.b32.xlu0 %v13760_v34, %s11262_s12  ;;  %v7716_v26 = vsel %vm366_vm2, %v7704_v50, %v7706_v12  ;;  %v6589_v14 = vpop.f32.mrf.mxu1 }
 0x5c6   : > { %v7714_v31 = vpop.permute.xlu1 %7713  ;;  %10978 = vmatmul.mubr.msk.f32.vlgmr.msra.gmra.mxu1 %vm275_vm1, %v13494_v54  ;;  %v6054_v54 = vadd.f32 %v6050_v53, %v5917_v35 }
 0x5c7   : > { %7751 = vmatprep.subr.mxu0 %v7714_v31  ;;  %7892 = vmatprep.mubr.f32.mxu1 %v11260_v8  ;;  %v6591_v0 = vpop.f32.mrf.mxu1 }
 0x5c8   : > { %v7708_v42 = vpop.permute.xlu0 %7707  ;;  %8554 = vrot.lane.b32.xlu1 %v13765_v20, %s11262_s12  ;;  %v6167_v16 = vadd.f32 %v6163_v13, %v6054_v54 }
 0x5c9   : > { %8556 = vrot.lane.b32.xlu0 %v13903_v32, %s11262_s12  ;;  %v7717_v58 = vsel %vm366_vm2, %v7708_v42, %v7710_v4 }
 0x5ca   : > { %v13912_v40 = vpop.permute.xlu1 %7802  ;;  %v6280_v52 = vadd.f32 %v6276_v61, %v6167_v16 }
 0x5cc   : > { %v7712_v22 = vpop.permute.xlu0 %7711  ;;  %8558 = vrot.lane.b32.xlu1 %v13770_v7, %s11262_s12  ;;  %v6393_v28 = vadd.f32 %v6389_v47, %v6280_v52 }
 0x5cd   : > { %v7718_v27 = vsel %vm366_vm2, %v7712_v22, %v7714_v31  ;;  %8560 = vrot.lane.b32.xlu0 %v13775_v15, %s11262_s12 }
 0x5ce   : > { %7752 = vmatpush1.msra.mxu0 %v7718_v27  ;;  %v7807_v43 = vpop.permute.xlu1 %7806 }
 0x5cf   : > { %7753 = vmatprep.subr.mxu0 %v7710_v4 }
 0x5d0   : > { %7754 = vmatpush1.msra.mxu0 %v7717_v58  ;;  %v7801_v59 = vpop.permute.xlu0 %7800  ;;  %8562 = vrot.lane.b32.xlu1 %v13918_v49, %s11262_s12 }
 0x5d1   : > { %7755 = vmatprep.subr.mxu0 %v7706_v12  ;;  %8564 = vrot.lane.b32.xlu0 %v13782_v29, %s11262_s12  ;;  %v6488_v12 = vpop.f32.mrf.mxu0  ;;  %v7816_v53 = vsel %vm262_vm0, %v7801_v59, %v13912_v40 }
 0x5d2   : > { %7756 = vmatpush1.msra.mxu0 %v7716_v26  ;;  %v7811_v5 = vpop.permute.xlu1 %7810 }
 0x5d3   : > { %7757 = vmatprep.subr.mxu0 %v13874_v41  ;;  %v6490_v25 = vpop.f32.mrf.mxu0 }
 0x5d4   : > { %7758 = vmatpush1.msra.mxu0 %v7715_v56  ;;  %v7805_v39 = vpop.permute.xlu0 %7804  ;;  %8566 = vrot.lane.b32.xlu1 %v13789_v3, %s11262_s12  ;;  %v6494_v4 = vadd.f32 %v6490_v25, %v6393_v28 }
 0x5d5   : > { %8568 = vrot.lane.b32.xlu0 %v13929_v17, %s11262_s12  ;;  %10979 = vmatmul.mubr.msk.f32.vlgmr.msra.gmra.mxu0 %vm275_vm1, %v13530_v30  ;;  %v6493_v30 = vadd.f32 %v6488_v12, %v6392_v10  ;;  %v6690_v46 = vpop.f32.mrf.mxu0  ;;  %v7817_v31 = vsel %vm262_vm0, %v7805_v39, %v7807_v43 }
 0x5d6   : > { %v7815_v11 = vpop.permute.xlu1 %7814  ;;  %7993 = vmatprep.mubr.f32.mxu0 %v11260_v8  ;;  %v6595_v1 = vadd.f32 %v6591_v0, %v6494_v4 }
 0x5d7   : > { %7852 = vmatprep.subr.mxu1 %v7815_v11  ;;  %v6594_v50 = vadd.f32 %v6589_v14, %v6493_v30  ;;  %v6692_v21 = vpop.f32.mrf.mxu0 }
 0x5d8   : > { %v7809_v41 = vpop.permute.xlu0 %7808  ;;  %8570 = vrot.lane.b32.xlu1 %v13794_v38, %s11262_s12  ;;  %v6696_v55 = vadd.f32 %v6692_v21, %v6595_v1 }
 0x5d9   : > { %8572 = vrot.lane.b32.xlu0 %v13802_v36, %s11262_s12  ;;  %v7818_v37 = vsel %vm262_vm0, %v7809_v41, %v7811_v5  ;;  %v6695_v35 = vadd.f32 %v6690_v46, %v6594_v50 }
 0x5da   : > { %v13949_v18 = vpop.permute.xlu1 %7903 }
 0x5dc   : > { %v7813_v45 = vpop.permute.xlu0 %7812  ;;  %8574 = vrot.lane.b32.xlu1 %v13945_v48, %s11262_s12 }
 0x5dd   : > { %v7819_v2 = vsel %vm262_vm0, %v7813_v45, %v7815_v11  ;;  %8665 = vrot.lane.b32.xlu0 %v13760_v34, %s11263_s19 }
 0x5de   : > { %7853 = vmatpush1.msra.mxu1 %v7819_v2  ;;  %v7908_v57 = vpop.permute.xlu1 %7907 }
 0x5df   : > { %7854 = vmatprep.subr.mxu1 %v7811_v5 }
 0x5e0   : > { %7855 = vmatpush1.msra.mxu1 %v7818_v37  ;;  %v7902_v6 = vpop.permute.xlu0 %7901  ;;  %8667 = vrot.lane.b32.xlu1 %v13765_v20, %s11263_s19 }
 0x5e1   : > { %7856 = vmatprep.subr.mxu1 %v7807_v43  ;;  %8669 = vrot.lane.b32.xlu0 %v13903_v32, %s11263_s19  ;;  %v7917_v56 = vsel %vm469_vm3, %v7902_v6, %v13949_v18 }
 0x5e2   : > { %7857 = vmatpush1.msra.mxu1 %v7817_v31  ;;  %v7912_v42 = vpop.permute.xlu1 %7911  ;;  %v14045_v31 = vld [vmem:[#allocation4 + $0x4] sm:$0x7] }
 0x5e3   : > { %7858 = vmatprep.subr.mxu1 %v13912_v40 }
 0x5e4   : > { %7859 = vmatpush1.msra.mxu1 %v7816_v53  ;;  %v7906_v23 = vpop.permute.xlu0 %7905  ;;  %8671 = vrot.lane.b32.xlu1 %v13770_v7, %s11263_s19 }
 0x5e5   : > { %v6791_v22 = vpop.f32.mrf.mxu1  ;;  %8673 = vrot.lane.b32.xlu0 %v13775_v15, %s11263_s19  ;;  %10980 = vmatmul.mubr.msk.f32.vlgmr.msra.gmra.mxu1 %vm275_vm1, %v13562_v19  ;;  %v7918_v5 = vsel %vm469_vm3, %v7906_v23, %v7908_v57 }
 0x5e6   : > { %v6796_v54 = vadd.f32 %v6791_v22, %v6695_v35  ;;  %v7916_v27 = vpop.permute.xlu1 %7915  ;;  %8094 = vmatprep.mubr.f32.mxu1 %v11260_v8 }
 0x5e7   : > { %v6793_v13 = vpop.f32.mrf.mxu1  ;;  %7953 = vmatprep.subr.mxu0 %v7916_v27 }
 0x5e8   : > { %v6797_v40 = vadd.f32 %v6793_v13, %v6696_v55  ;;  %v7910_v9 = vpop.permute.xlu0 %7909  ;;  %8675 = vrot.lane.b32.xlu1 %v13918_v49, %s11263_s19  ;;  %v6798_v43 = vadd.f32 %v6796_v54, %v11951_v63 }
 0x5e9   : > { %8677 = vrot.lane.b32.xlu0 %v13782_v29, %s11263_s19  ;;  %v7919_v61 = vsel %vm469_vm3, %v7910_v9, %v7912_v42 }
 0x5ea   : > { %v6799_v62 = vadd.f32 %v6797_v40, %v11951_v63  ;;  %v8005_v19 = vpop.permute.xlu1 %8004  ;;  %v14070_v40 = vld [vmem:[#allocation4] sm:$0x7] }
 0x5ec   : > { %v6802_v58 = vcombine.low %v6798_v43, %v6799_v62  ;;  %v7914_v59 = vpop.permute.xlu0 %7913  ;;  %8679 = vrot.lane.b32.xlu1 %v13789_v3, %s11263_s19 }
 0x5ed   : > { %v7920_v16 = vsel %vm469_vm3, %v7914_v59, %v7916_v27  ;;  %8681 = vrot.lane.b32.xlu0 %v13929_v17, %s11263_s19 }
 0x5ee   : > { %10950 = vst.msk [vmem:[%s12305_s26 + $0x20] sm:$0x77] %vm12307_vm11, %v6802_v58  ;;  %7954 = vmatpush1.msra.mxu0 %v7920_v16  ;;  %v8009_v26 = vpop.permute.xlu1 %8008 }
 0x5ef   : > { %7955 = vmatprep.subr.mxu0 %v7912_v42 }
 0x5f0   : > { %7956 = vmatpush1.msra.mxu0 %v7919_v61  ;;  %v8003_v33 = vpop.permute.xlu0 %8002  ;;  %8683 = vrot.lane.b32.xlu1 %v13794_v38, %s11263_s19 }
 0x5f1   : > { %7957 = vmatprep.subr.mxu0 %v7908_v57  ;;  %8685 = vrot.lane.b32.xlu0 %v13802_v36, %s11263_s19 }
 0x5f2   : > { %7958 = vmatpush1.msra.mxu0 %v7918_v5  ;;  %v8013_v44 = vpop.permute.xlu1 %8012 }
 0x5f3   : > { %7959 = vmatprep.subr.mxu0 %v13949_v18  ;;  %v8018_v18 = vsel %vm574_vm4, %v8003_v33, %v8005_v19 }
 0x5f4   : > { %7960 = vmatpush1.msra.mxu0 %v7917_v56  ;;  %v8007_v39 = vpop.permute.xlu0 %8006  ;;  %8687 = vrot.lane.b32.xlu1 %v13945_v48, %s11263_s19 }
 0x5f5   : > { %8778 = vrot.lane.b32.xlu0 %v13760_v34, %s11265_s15  ;;  %10981 = vmatmul.mubr.msk.f32.vlgmr.msra.gmra.mxu0 %vm275_vm1, %v13594_v51  ;;  %v8019_v25 = vsel %vm574_vm4, %v8007_v39, %v8009_v26 }
 0x5f6   : > { %v8017_v52 = vpop.permute.xlu1 %8016  ;;  %8220 = vmatprep.mubr.f32.mxu0 %v11260_v8 }
 0x5f7   : > { %8054 = vmatprep.subr.mxu1 %v8017_v52 }
 0x5f8   : > { %v8011_v47 = vpop.permute.xlu0 %8010  ;;  %8798 = vrot.lane.b32.xlu1 %v13802_v36, %s11265_s15 }
 0x5f9   : > { %8800 = vrot.lane.b32.xlu0 %v13945_v48, %s11265_s15  ;;  %v8020_v41 = vsel %vm574_vm4, %v8011_v47, %v8013_v44 }
 0x5fa   : > { %v8131_v12 = vpop.permute.xlu1 %8130 }
 0x5fc   : > { %v8015_v11 = vpop.permute.xlu0 %8014  ;;  %8796 = vrot.lane.b32.xlu1 %v13794_v38, %s11265_s15 }
 0x5fd   : > { %v8021_v10 = vsel %vm574_vm4, %v8015_v11, %v8017_v52  ;;  %8792 = vrot.lane.b32.xlu0 %v13789_v3, %s11265_s15 }
 0x5fe   : > { %8055 = vmatpush1.msra.mxu1 %v8021_v10  ;;  %v8135_v51 = vpop.permute.xlu1 %8134 }
 0x5ff   : > { %8056 = vmatprep.subr.mxu1 %v8013_v44  ;;  %v14095_v44 = vld [vmem:[#allocation4 + $0x8] sm:$0x7] }
 0x600   : > { %8057 = vmatpush1.msra.mxu1 %v8020_v41  ;;  %v8129_v28 = vpop.permute.xlu0 %8128  ;;  %8794 = vrot.lane.b32.xlu1 %v13929_v17, %s11265_s15 }
 0x601   : > { %8058 = vmatprep.subr.mxu1 %v8009_v26  ;;  %8911 = vrot.lane.b32.xlu0 %v13802_v36, %s11266_s20  ;;  %v8144_v6 = vsel %vm262_vm0, %v8129_v28, %v8131_v12 }
 0x602   : > { %8059 = vmatpush1.msra.mxu1 %v8019_v25  ;;  %v8139_v14 = vpop.permute.xlu1 %8138 }
 0x603   : > { %8060 = vmatprep.subr.mxu1 %v8005_v19 }
 0x604   : > { %8061 = vmatpush1.msra.mxu1 %v8018_v18  ;;  %v8133_v30 = vpop.permute.xlu0 %8132  ;;  %8913 = vrot.lane.b32.xlu1 %v13945_v48, %s11266_s20  ;;  %v14120_v18 = vld [vmem:[#allocation4 + $0xc] sm:$0x7] }
 0x605   : > { %10982 = vmatmul.mubr.msk.f32.vlgmr.msra.gmra.mxu1 %vm275_vm1, %v13617_v60  ;;  %8790 = vrot.lane.b32.xlu0 %v13782_v29, %s11265_s15  ;;  %v8145_v50 = vsel %vm262_vm0, %v8133_v30, %v8135_v51 }
 0x606   : > { %v8143_v45 = vpop.permute.xlu1 %8142  ;;  %8319 = vmatprep.mubr.f32.mxu1 %v11260_v8 }
 0x607   : > { %8180 = vmatprep.subr.mxu0 %v8143_v45 }
 0x608   : > { %v8137_v4 = vpop.permute.xlu0 %8136  ;;  %8909 = vrot.lane.b32.xlu1 %v13794_v38, %s11266_s20 }
 0x609   : > { %8786 = vrot.lane.b32.xlu0 %v13775_v15, %s11265_s15  ;;  %v8146_v57 = vsel %vm262_vm0, %v8137_v4, %v8139_v14 }
 0x60a   : > { %v8230_v2 = vpop.permute.xlu1 %8229 }
 0x60c   : > { %v8141_v0 = vpop.permute.xlu0 %8140  ;;  %8788 = vrot.lane.b32.xlu1 %v13918_v49, %s11265_s15 }
 0x60d   : > { %v8147_v60 = vsel %vm262_vm0, %v8141_v0, %v8143_v45  ;;  %8905 = vrot.lane.b32.xlu0 %v13789_v3, %s11266_s20 }
 0x60e   : > { %8181 = vmatpush1.msra.mxu0 %v8147_v60  ;;  %v8234_v46 = vpop.permute.xlu1 %8233 }
 0x60f   : > { %8182 = vmatprep.subr.mxu0 %v8139_v14 }
 0x610   : > { %8183 = vmatpush1.msra.mxu0 %v8146_v57  ;;  %v8228_v38 = vpop.permute.xlu0 %8227  ;;  %8907 = vrot.lane.b32.xlu1 %v13929_v17, %s11266_s20 }
 0x611   : > { %8184 = vmatprep.subr.mxu0 %v8135_v51  ;;  %8784 = vrot.lane.b32.xlu0 %v13770_v7, %s11265_s15 }
 0x612   : > { %8185 = vmatpush1.msra.mxu0 %v8145_v50  ;;  %v8238_v37 = vpop.permute.xlu1 %8237 }
 0x613   : > { %8186 = vmatprep.subr.mxu0 %v8131_v12 }
 0x614   : > { %8187 = vmatpush1.msra.mxu0 %v8144_v6  ;;  %v8232_v1 = vpop.permute.xlu0 %8231  ;;  %8903 = vrot.lane.b32.xlu1 %v13782_v29, %s11266_s20 }
 0x615   : > { %8780 = vrot.lane.b32.xlu0 %v13765_v20, %s11265_s15  ;;  %10992 = vmatmul.mubr.msk.f32.vlgmr.msra.gmra.mxu0 %vm275_vm1, %v14045_v31  ;;  %v8244_v54 = vsel %vm366_vm2, %v8232_v1, %v8234_v46 }
 0x616   : > { %v8242_v21 = vpop.permute.xlu1 %8241  ;;  %8418 = vmatprep.mubr.f32.mxu0 %v11260_v8 }
 0x617   : > { %8279 = vmatprep.subr.mxu1 %v8242_v21 }
 0x618   : > { %v8236_v42 = vpop.permute.xlu0 %8235  ;;  %8782 = vrot.lane.b32.xlu1 %v13903_v32, %s11265_s15 }
 0x619   : > { %8899 = vrot.lane.b32.xlu0 %v13775_v15, %s11266_s20  ;;  %v8245_v55 = vsel %vm366_vm2, %v8236_v42, %v8238_v37 }
 0x61a   : > { %v8329_v29 = vpop.permute.xlu1 %8328 }
 0x61c   : > { %v8240_v35 = vpop.permute.xlu0 %8239  ;;  %8901 = vrot.lane.b32.xlu1 %v13918_v49, %s11266_s20 }
 0x61d   : > { %v8246_v53 = vsel %vm366_vm2, %v8240_v35, %v8242_v21  ;;  %8897 = vrot.lane.b32.xlu0 %v13770_v7, %s11266_s20  ;;  %v8243_v7 = vsel %vm366_vm2, %v8228_v38, %v8230_v2 }
 0x61e   : > { %8280 = vmatpush1.msra.mxu1 %v8246_v53  ;;  %v8333_v23 = vpop.permute.xlu1 %8332  ;;  %v14159_v53 = vld [vmem:[#allocation4 + $0x10] sm:$0x7] }
 0x61f   : > { %8281 = vmatprep.subr.mxu1 %v8238_v37 }
 0x620   : > { %8282 = vmatpush1.msra.mxu1 %v8245_v55  ;;  %v8327_v22 = vpop.permute.xlu0 %8326  ;;  %8893 = vrot.lane.b32.xlu1 %v13765_v20, %s11266_s20 }
 0x621   : > { %8283 = vmatprep.subr.mxu1 %v8234_v46  ;;  %8895 = vrot.lane.b32.xlu0 %v13903_v32, %s11266_s20  ;;  %v8342_v33 = vsel %vm469_vm3, %v8327_v22, %v8329_v29  ;;  %v14169_v22 = vld [vmem:[%s11387_s11 + $0x2e8] sm:$0xff] }
 0x622   : > { %8284 = vmatpush1.msra.mxu1 %v8244_v54  ;;  %v8337_v27 = vpop.permute.xlu1 %8336  ;;  %v14174_v54 = vld [vmem:[%s11387_s11 + $0x2f0] sm:$0xff] }
 0x623   : > { %8285 = vmatprep.subr.mxu1 %v8230_v2 }
 0x624   : > { %8286 = vmatpush1.msra.mxu1 %v8243_v7  ;;  %v8331_v13 = vpop.permute.xlu0 %8330  ;;  %8891 = vrot.lane.b32.xlu1 %v13760_v34, %s11266_s20  ;;  %v14179_v7 = vld [vmem:[%s11387_s11 + $0x2d0] sm:$0xff] }
 0x625   : > { %9016 = vrot.lane.b32.xlu0 %v13802_v36, %s11258_s18  ;;  %10993 = vmatmul.mubr.msk.f32.vlgmr.msra.gmra.mxu1 %vm275_vm1, %v14070_v40  ;;  %v8343_v26 = vsel %vm469_vm3, %v8331_v13, %v8333_v23 }
 0x626   : > { %v8341_v9 = vpop.permute.xlu1 %8340  ;;  %8519 = vmatprep.mubr.f32.mxu1 %v11260_v8 }
 0x627   : > { %8378 = vmatprep.subr.mxu0 %v8341_v9 }
 0x628   : > { %v8335_v43 = vpop.permute.xlu0 %8334  ;;  %9018 = vrot.lane.b32.xlu1 %v13945_v48, %s11258_s18 }
 0x629   : > { %9012 = vrot.lane.b32.xlu0 %v13789_v3, %s11258_s18  ;;  %v8344_v59 = vsel %vm469_vm3, %v8335_v43, %v8337_v27 }
 0x62a   : > { %v8430_v34 = vpop.permute.xlu1 %8429 }
 0x62c   : > { %v8339_v62 = vpop.permute.xlu0 %8338  ;;  %9014 = vrot.lane.b32.xlu1 %v13929_v17, %s11258_s18 }
 0x62d   : > { %v8345_v19 = vsel %vm469_vm3, %v8339_v62, %v8341_v9  ;;  %9117 = vrot.lane.b32.xlu0 %v13802_v36, %s11257_s17  ;;  %v14195_v62 = vld [vmem:[%s11387_s11 + $0x2b8] sm:$0xff] }
 0x62e   : > { %8379 = vmatpush1.msra.mxu0 %v8345_v19  ;;  %v8434_v58 = vpop.permute.xlu1 %8433 }
 0x62f   : > { %8380 = vmatprep.subr.mxu0 %v8337_v27 }
 0x630   : > { %8381 = vmatpush1.msra.mxu0 %v8344_v59  ;;  %v8428_v16 = vpop.permute.xlu0 %8427  ;;  %9119 = vrot.lane.b32.xlu1 %v13945_v48, %s11257_s17 }
 0x631   : > { %8382 = vmatprep.subr.mxu0 %v8333_v23  ;;  %9008 = vrot.lane.b32.xlu0 %v13775_v15, %s11258_s18  ;;  %v8443_v25 = vsel %vm574_vm4, %v8428_v16, %v8430_v34 }
 0x632   : > { %8383 = vmatpush1.msra.mxu0 %v8343_v26  ;;  %v8438_v61 = vpop.permute.xlu1 %8437  ;;  %v14205_v26 = vld [vmem:[%s11387_s11 + $0x2c0] sm:$0xff] }
 0x633   : > { %8384 = vmatprep.subr.mxu0 %v8329_v29 }
 0x634   : > { %8385 = vmatpush1.msra.mxu0 %v8342_v33  ;;  %v8432_v5 = vpop.permute.xlu0 %8431  ;;  %9010 = vrot.lane.b32.xlu1 %v13918_v49, %s11258_s18 }
 0x635   : > { %9113 = vrot.lane.b32.xlu0 %v13789_v3, %s11257_s17  ;;  %10994 = vmatmul.mubr.msk.f32.vlgmr.msra.gmra.mxu0 %vm275_vm1, %v14095_v44  ;;  %v8444_v41 = vsel %vm574_vm4, %v8432_v5, %v8434_v58 }
 0x636   : > { %v8442_v56 = vpop.permute.xlu1 %8441  ;;  %8656 = vmatprep.mubr.f32.mxu0 %v11260_v8 }
 0x637   : > { %8479 = vmatprep.subr.mxu1 %v8442_v56 }
 0x638   : > { %v8436_v39 = vpop.permute.xlu0 %8435  ;;  %9115 = vrot.lane.b32.xlu1 %v13929_v17, %s11257_s17 }
 0x639   : > { %9004 = vrot.lane.b32.xlu0 %v13765_v20, %s11258_s18  ;;  %v8445_v10 = vsel %vm574_vm4, %v8436_v39, %v8438_v61 }
 0x63a   : > { %v8555_v52 = vpop.permute.xlu1 %8554 }
 0x63c   : > { %v8440_v47 = vpop.permute.xlu0 %8439  ;;  %9006 = vrot.lane.b32.xlu1 %v13903_v32, %s11258_s18 }
 0x63d   : > { %v8446_v12 = vsel %vm574_vm4, %v8440_v47, %v8442_v56  ;;  %9109 = vrot.lane.b32.xlu0 %v13775_v15, %s11257_s17 }
 0x63e   : > { %8480 = vmatpush1.msra.mxu1 %v8446_v12  ;;  %v8559_v11 = vpop.permute.xlu1 %8558 }
 0x63f   : > { %8481 = vmatprep.subr.mxu1 %v8438_v61 }
 0x640   : > { %8482 = vmatpush1.msra.mxu1 %v8445_v10  ;;  %v8553_v51 = vpop.permute.xlu0 %8552  ;;  %9111 = vrot.lane.b32.xlu1 %v13918_v49, %s11257_s17  ;;  %v14225_v10 = vld [vmem:[%s11387_s11 + $0x2a0] sm:$0xff] }
 0x641   : > { %8483 = vmatprep.subr.mxu1 %v8434_v58  ;;  %9105 = vrot.lane.b32.xlu0 %v13765_v20, %s11257_s17  ;;  %v8576_v29 = vsel %vm711_vm5, %v8553_v51, %v8555_v52 }
 0x642   : > { %8484 = vmatpush1.msra.mxu1 %v8444_v41  ;;  %v8563_v28 = vpop.permute.xlu1 %8562 }
 0x643   : > { %8485 = vmatprep.subr.mxu1 %v8430_v34 }
 0x644   : > { %8486 = vmatpush1.msra.mxu1 %v8443_v25  ;;  %v8557_v14 = vpop.permute.xlu0 %8556  ;;  %9107 = vrot.lane.b32.xlu1 %v13903_v32, %s11257_s17 }
 0x645   : > { %9218 = vrot.lane.b32.xlu0 %v13802_v36, %s11259_s7  ;;  %10995 = vmatmul.mubr.msk.f32.vlgmr.msra.gmra.mxu1 %vm275_vm1, %v14120_v18  ;;  %v8577_v42 = vsel %vm711_vm5, %v8555_v52, %v8557_v14 }
 0x646   : > { %v8567_v30 = vpop.permute.xlu1 %8566  ;;  %8769 = vmatprep.mubr.f32.mxu1 %v11260_v8 }
 0x648   : > { %v8561_v45 = vpop.permute.xlu0 %8560  ;;  %9220 = vrot.lane.b32.xlu1 %v13945_v48, %s11259_s7 }
 0x649   : > { %9214 = vrot.lane.b32.xlu0 %v13789_v3, %s11259_s7  ;;  %v8579_v1 = vsel %vm711_vm5, %v8561_v45, %v8563_v28  ;;  %v8578_v21 = vsel %vm711_vm5, %v8559_v11, %v8561_v45  ;;  %v14220_v11 = vld [vmem:[#allocation4 + $0x14] sm:$0x7]  ;;  %v14232_v28 = vld [vmem:[%s11387_s11 + $0x2a8] sm:$0xff] }
 0x64a   : > { %v8571_v4 = vpop.permute.xlu1 %8570 }
 0x64c   : > { %v8565_v2 = vpop.permute.xlu0 %8564  ;;  %9216 = vrot.lane.b32.xlu1 %v13929_v17, %s11259_s7 }
 0x64d   : > { %9319 = vrot.lane.b32.xlu0 %v13802_v36, %s11261_s10  ;;  %v8580_v37 = vsel %vm711_vm5, %v8565_v2, %v8567_v30 }
 0x64e   : > { %v8575_v0 = vpop.permute.xlu1 %8574 }
 0x650   : > { %v8569_v60 = vpop.permute.xlu0 %8568  ;;  %9321 = vrot.lane.b32.xlu1 %v13945_v48, %s11261_s10 }
 0x651   : > { %9210 = vrot.lane.b32.xlu0 %v13775_v15, %s11259_s7  ;;  %v8581_v48 = vsel %vm711_vm5, %v8567_v30, %v8569_v60 }
 0x652   : > { %v14137_v46 = vpop.permute.xlu1 %8667 }
 0x654   : > { %v8573_v57 = vpop.permute.xlu0 %8572  ;;  %9212 = vrot.lane.b32.xlu1 %v13918_v49, %s11259_s7 }
 0x655   : > { %v8583_v38 = vsel %vm711_vm5, %v8573_v57, %v8575_v0  ;;  %v8582_v50 = vsel %vm711_vm5, %v8571_v4, %v8573_v57  ;;  %9315 = vrot.lane.b32.xlu0 %v13789_v3, %s11261_s10 }
 0x656   : > { %8616 = vmatprep.subr.mxu0 %v8583_v38  ;;  %v8672_v36 = vpop.permute.xlu1 %8671 }
 0x657   : > { %8617 = vmatpush1.msra.mxu0 %v8582_v50 }
 0x658   : > { %8618 = vmatprep.subr.mxu0 %v8581_v48  ;;  %v8666_v6 = vpop.permute.xlu0 %8665  ;;  %9317 = vrot.lane.b32.xlu1 %v13929_v17, %s11261_s10 }
 0x659   : > { %8619 = vmatpush1.msra.mxu0 %v8580_v37  ;;  %9206 = vrot.lane.b32.xlu0 %v13765_v20, %s11259_s7  ;;  %v8689_v56 = vsel %vm828_vm6, %v8666_v6, %v14137_v46 }
 0x65a   : > { %8620 = vmatprep.subr.mxu0 %v8579_v1  ;;  %v8676_v3 = vpop.permute.xlu1 %8675 }
 0x65b   : > { %8621 = vmatpush1.msra.mxu0 %v8578_v21 }
 0x65c   : > { %8622 = vmatprep.subr.mxu0 %v8577_v42  ;;  %v8670_v35 = vpop.permute.xlu0 %8669  ;;  %9208 = vrot.lane.b32.xlu1 %v13903_v32, %s11259_s7 }
 0x65d   : > { %8623 = vmatpush1.msra.mxu0 %v8576_v29  ;;  %9311 = vrot.lane.b32.xlu0 %v13775_v15, %s11261_s10  ;;  %v8690_v5 = vsel %vm828_vm6, %v14137_v46, %v8670_v35 }
 0x65e   : > { %v8680_v17 = vpop.permute.xlu1 %8679  ;;  %11008 = vmatmul.mubr.msk.f32.vlgmr.msra.gmra.mxu0 %vm275_vm1, %v14159_v53 }
 0x65f   : > { %8882 = vmatprep.mubr.f32.mxu0 %v11260_v8 }
 0x660   : > { %v8674_v23 = vpop.permute.xlu0 %8673  ;;  %9313 = vrot.lane.b32.xlu1 %v13918_v49, %s11261_s10 }
 0x661   : > { %9307 = vrot.lane.b32.xlu0 %v13765_v20, %s11261_s10  ;;  %v14184_v20 = vld [vmem:[%s11387_s11 + $0x2d8] sm:$0xff]  ;;  %v8692_v16 = vsel %vm828_vm6, %v8674_v23, %v8676_v3  ;;  %v8691_v33 = vsel %vm828_vm6, %v8672_v36, %v8674_v23 }
 0x662   : > { %v8684_v55 = vpop.permute.xlu1 %8683  ;;  %v14272_v23 = vld [vmem:[#allocation4 + $0x18] sm:$0x7] }
 0x664   : > { %v8678_v15 = vpop.permute.xlu0 %8677  ;;  %9309 = vrot.lane.b32.xlu1 %v13903_v32, %s11261_s10 }
 0x665   : > { %9445 = vrot.lane.b32.xlu0 %v14169_v22, %s11257_s17  ;;  %v8693_v58 = vsel %vm828_vm6, %v8678_v15, %v8680_v17  ;;  %v6917_v15 = vpop.f32.mrf.mxu0 }
 0x666   : > { %v8688_v27 = vpop.permute.xlu1 %8687 }
 0x668   : > { %v8682_v49 = vpop.permute.xlu0 %8681  ;;  %9447 = vrot.lane.b32.xlu1 %v14174_v54, %s11257_s17 }
 0x669   : > { %9441 = vrot.lane.b32.xlu0 %v14179_v7, %s11257_s17  ;;  %v8694_v19 = vsel %vm828_vm6, %v8680_v17, %v8682_v49 }
 0x66a   : > { %v8799_v13 = vpop.permute.xlu1 %8798 }
 0x66c   : > { %v8686_v32 = vpop.permute.xlu0 %8685  ;;  %9443 = vrot.lane.b32.xlu1 %v14184_v20, %s11257_s17 }
 0x66d   : > { %v8696_v9 = vsel %vm828_vm6, %v8686_v32, %v8688_v27  ;;  %v8695_v43 = vsel %vm828_vm6, %v8684_v55, %v8686_v32  ;;  %9544 = vrot.lane.b32.xlu0 %v14169_v22, %s11258_s18  ;;  %v6919_v32 = vpop.f32.mrf.mxu0 }
 0x66e   : > { %8729 = vmatprep.subr.mxu1 %v8696_v9  ;;  %v8797_v34 = vpop.permute.xlu1 %8796  ;;  %v7016_v9 = vpop.f32.mrf.mxu1 }
 0x66f   : > { %8730 = vmatpush1.msra.mxu1 %v8695_v43  ;;  %v8808_v47 = vsel %vm945_vm7, %v8797_v34, %v8799_v13 }
 0x670   : > { %8731 = vmatprep.subr.mxu1 %v8694_v19  ;;  %v14199_v59 = vpop.permute.xlu0 %8778  ;;  %9546 = vrot.lane.b32.xlu1 %v14174_v54, %s11258_s18 }
 0x671   : > { %8732 = vmatpush1.msra.mxu1 %v8693_v58  ;;  %9437 = vrot.lane.b32.xlu0 %v14195_v62, %s11257_s17  ;;  %v7018_v58 = vpop.f32.mrf.mxu1 }
 0x672   : > { %8733 = vmatprep.subr.mxu1 %v8692_v16  ;;  %v8795_v61 = vpop.permute.xlu1 %8794 }
 0x673   : > { %8734 = vmatpush1.msra.mxu1 %v8691_v33  ;;  %v7017_v33 = vadd.f32 %v7016_v9, %v6917_v15 }
 0x674   : > { %8735 = vmatprep.subr.mxu1 %v8690_v5  ;;  %v8801_v39 = vpop.permute.xlu0 %8800  ;;  %9439 = vrot.lane.b32.xlu1 %v14205_v26, %s11257_s17 }
 0x675   : > { %8736 = vmatpush1.msra.mxu1 %v8689_v56  ;;  %v8809_v52 = vsel %vm945_vm7, %v8799_v13, %v8801_v39  ;;  %9540 = vrot.lane.b32.xlu0 %v14179_v7, %s11258_s18  ;;  %v14293_v56 = vld [vmem:[#allocation4 + $0x1c] sm:$0x7]  ;;  %v7019_v39 = vadd.f32 %v7018_v58, %v6919_v32 }
 0x676   : > { %8842 = vmatprep.subr.mxu0 %v8809_v52  ;;  %v8914_v12 = vpop.permute.xlu1 %8913  ;;  %11009 = vmatmul.mubr.msk.f32.vlgmr.msra.gmra.mxu1 %vm275_vm1, %v14220_v11 }
 0x677   : > { %8843 = vmatpush1.msra.mxu0 %v8808_v47  ;;  %8995 = vmatprep.mubr.f32.mxu1 %v11260_v8  ;;  %v14299_v47 = vld [vmem:[%s11387_s11 + $0x2f8] sm:$0xff] }
 0x678   : > { %v8793_v51 = vpop.permute.xlu0 %8792  ;;  %9542 = vrot.lane.b32.xlu1 %v14184_v20, %s11258_s18 }
 0x679   : > { %v8807_v41 = vsel %vm945_vm7, %v8793_v51, %v8795_v61  ;;  %9433 = vrot.lane.b32.xlu0 %v14225_v10, %s11257_s17 }
 0x67a   : > { %8844 = vmatprep.subr.mxu0 %v8807_v41  ;;  %v8910_v25 = vpop.permute.xlu1 %8909 }
 0x67c   : > { %v8912_v14 = vpop.permute.xlu0 %8911  ;;  %9435 = vrot.lane.b32.xlu1 %v14232_v28, %s11257_s17 }
 0x67d   : > { %v8922_v30 = vsel %vm1062_vm8, %v8912_v14, %v8914_v12  ;;  %v8921_v45 = vsel %vm1062_vm8, %v8910_v25, %v8912_v14  ;;  %9536 = vrot.lane.b32.xlu0 %v14195_v62, %s11258_s18 }
 0x67e   : > { %8955 = vmatprep.subr.mxu1 %v8922_v30  ;;  %v8789_v4 = vpop.permute.xlu1 %8788 }
 0x67f   : > { %8956 = vmatpush1.msra.mxu1 %v8921_v45 }
 0x680   : > { %v8791_v2 = vpop.permute.xlu0 %8790  ;;  %9538 = vrot.lane.b32.xlu1 %v14205_v26, %s11258_s18 }
 0x681   : > { %v8806_v0 = vsel %vm945_vm7, %v8791_v2, %v8793_v51  ;;  %9532 = vrot.lane.b32.xlu0 %v14225_v10, %s11258_s18  ;;  %v7216_v51 = vpop.f32.mrf.mxu1 }
 0x682   : > { %8845 = vmatpush1.msra.mxu0 %v8806_v0  ;;  %v8908_v60 = vpop.permute.xlu1 %8907 }
 0x684   : > { %v8787_v46 = vpop.permute.xlu0 %8786  ;;  %9534 = vrot.lane.b32.xlu1 %v14232_v28, %s11258_s18 }
 0x685   : > { %v8805_v57 = vsel %vm945_vm7, %v8787_v46, %v8789_v4  ;;  %9643 = vrot.lane.b32.xlu0 %v14169_v22, %s11259_s7  ;;  %v7218_v4 = vpop.f32.mrf.mxu1 }
 0x686   : > { %8846 = vmatprep.subr.mxu0 %v8805_v57  ;;  %v8904_v38 = vpop.permute.xlu1 %8903 }
 0x688   : > { %v8906_v50 = vpop.permute.xlu0 %8905  ;;  %9645 = vrot.lane.b32.xlu1 %v14174_v54, %s11259_s7 }
 0x689   : > { %v8920_v36 = vsel %vm1062_vm8, %v8906_v50, %v8908_v60  ;;  %v8919_v48 = vsel %vm1062_vm8, %v8904_v38, %v8906_v50  ;;  %9639 = vrot.lane.b32.xlu0 %v14179_v7, %s11259_s7 }
 0x68a   : > { %8957 = vmatprep.subr.mxu1 %v8920_v36  ;;  %v8783_v37 = vpop.permute.xlu1 %8782  ;;  %v7466_v36 = vpop.f32.mrf.mxu1 }
 0x68b   : > { %8958 = vmatpush1.msra.mxu1 %v8919_v48 }
 0x68c   : > { %v8785_v6 = vpop.permute.xlu0 %8784  ;;  %9641 = vrot.lane.b32.xlu1 %v14184_v20, %s11259_s7 }
 0x68d   : > { %v8804_v1 = vsel %vm945_vm7, %v8785_v6, %v8787_v46  ;;  %9744 = vrot.lane.b32.xlu0 %v14169_v22, %s11261_s10 }
 0x68e   : > { %8847 = vmatpush1.msra.mxu0 %v8804_v1  ;;  %v8902_v3 = vpop.permute.xlu1 %8901 }
 0x690   : > { %v8781_v21 = vpop.permute.xlu0 %8780  ;;  %9746 = vrot.lane.b32.xlu1 %v14174_v54, %s11261_s10 }
 0x691   : > { %v8803_v42 = vsel %vm945_vm7, %v8781_v21, %v8783_v37  ;;  %v8802_v29 = vsel %vm945_vm7, %v14199_v59, %v8781_v21  ;;  %9635 = vrot.lane.b32.xlu0 %v14195_v62, %s11259_s7  ;;  %v7115_v59 = vpop.f32.mrf.mxu0  ;;  %v14315_v37 = vld [vmem:[%s11387_s11 + $0x2e0] sm:$0xff] }
 0x692   : > { %8848 = vmatprep.subr.mxu0 %v8803_v42  ;;  %v8894_v35 = vpop.permute.xlu1 %8893  ;;  %v7120_v25 = vadd.f32 %v7115_v59, %v7017_v33  ;;  %v7468_v42 = vpop.f32.mrf.mxu1  ;;  %v14333_v33 = vld [vmem:[%s11387_s11 + $0x2c8] sm:$0xff] }
 0x693   : > { %8849 = vmatpush1.msra.mxu0 %v8802_v29  ;;  %v7117_v12 = vpop.f32.mrf.mxu0 }
 0x694   : > { %v8900_v17 = vpop.permute.xlu0 %8899  ;;  %9637 = vrot.lane.b32.xlu1 %v14205_v26, %s11259_s7  ;;  %11010 = vmatmul.mubr.msk.f32.vlgmr.msra.gmra.mxu0 %vm275_vm1, %v14272_v23  ;;  %v7121_v30 = vadd.f32 %v7117_v12, %v7019_v39  ;;  %v7221_v60 = vadd.f32 %v7216_v51, %v7120_v25 }
 0x695   : > { %v8918_v55 = vsel %vm1062_vm8, %v8900_v17, %v8902_v3  ;;  %9740 = vrot.lane.b32.xlu0 %v14179_v7, %s11261_s10  ;;  %9096 = vmatprep.mubr.f32.mxu0 %v11260_v8  ;;  %v7353_v2 = vpop.f32.mrf.mxu0 }
 0x696   : > { %8959 = vmatprep.subr.mxu1 %v8918_v55  ;;  %v8892_v27 = vpop.permute.xlu1 %8891  ;;  %v7222_v57 = vadd.f32 %v7218_v4, %v7121_v30  ;;  %v7358_v6 = vadd.f32 %v7353_v2, %v7221_v60 }
 0x697   : > { %v8915_v16 = vsel %vm1062_vm8, %v8892_v27, %v8894_v35  ;;  %v7355_v50 = vpop.f32.mrf.mxu0 }
 0x698   : > { %v8898_v49 = vpop.permute.xlu0 %8897  ;;  %9742 = vrot.lane.b32.xlu1 %v14184_v20, %s11261_s10  ;;  %v7359_v3 = vadd.f32 %v7355_v50, %v7222_v57  ;;  %v14350_v57 = vld [vmem:[#allocation4 + $0x24] sm:$0x7] }
 0x699   : > { %v8917_v13 = vsel %vm1062_vm8, %v8898_v49, %v8900_v17  ;;  %9631 = vrot.lane.b32.xlu0 %v14225_v10, %s11259_s7  ;;  %v7579_v29 = vpop.f32.mrf.mxu0  ;;  %v7471_v17 = vadd.f32 %v7466_v36, %v7358_v6 }
 0x69a   : > { %8960 = vmatpush1.msra.mxu1 %v8917_v13  ;;  %v9019_v43 = vpop.permute.xlu1 %9018  ;;  %v7472_v15 = vadd.f32 %v7468_v42, %v7359_v3  ;;  %v7692_v13 = vpop.f32.mrf.mxu1  ;;  %v14361_v3 = vld [vmem:[%s11387_s11 + $0x2b0] sm:$0xff] }
 0x69b   : > { %9056 = vmatprep.subr.mxu0 %v9019_v43  ;;  %v7581_v49 = vpop.f32.mrf.mxu0  ;;  %v7584_v9 = vadd.f32 %v7579_v29, %v7471_v17 }
 0x69c   : > { %v8896_v34 = vpop.permute.xlu0 %8895  ;;  %9633 = vrot.lane.b32.xlu1 %v14232_v28, %s11259_s7  ;;  %v7694_v58 = vpop.f32.mrf.mxu1 }
 0x69d   : > { %v8916_v19 = vsel %vm1062_vm8, %v8894_v35, %v8896_v34  ;;  %9736 = vrot.lane.b32.xlu0 %v14195_v62, %s11261_s10  ;;  %v7585_v34 = vadd.f32 %v7581_v49, %v7472_v15  ;;  %v7793_v59 = vpop.f32.mrf.mxu0 }
 0x69e   : > { %8961 = vmatprep.subr.mxu1 %v8916_v19  ;;  %v9015_v61 = vpop.permute.xlu1 %9014 }
 0x69f   : > { %8962 = vmatpush1.msra.mxu1 %v8915_v16  ;;  %v7795_v51 = vpop.f32.mrf.mxu0 }
 0x6a0   : > { %v9017_v5 = vpop.permute.xlu0 %9016  ;;  %9738 = vrot.lane.b32.xlu1 %v14205_v26, %s11261_s10  ;;  %11011 = vmatmul.mubr.msk.f32.vlgmr.msra.gmra.mxu1 %vm275_vm1, %v14293_v56 }
 0x6a1   : > { %v9023_v52 = vsel %vm366_vm2, %v9017_v5, %v9019_v43  ;;  %9877 = vrot.lane.b32.xlu0 %v14174_v54, %s11262_s12  ;;  %9197 = vmatprep.mubr.f32.mxu1 %v11260_v8  ;;  %v14335_v5 = vld [vmem:[#allocation4 + $0x20] sm:$0x7] }
 0x6a2   : > { %9057 = vmatpush1.msra.mxu0 %v9023_v52  ;;  %v9120_v41 = vpop.permute.xlu1 %9119  ;;  %v7698_v52 = vadd.f32 %v7694_v58, %v7585_v34 }
 0x6a3   : > { %9058 = vmatprep.subr.mxu0 %v9015_v61  ;;  %9157 = vmatprep.subr.mxu1 %v9120_v41 }
 0x6a4   : > { %v9013_v14 = vpop.permute.xlu0 %9012  ;;  %9879 = vrot.lane.b32.xlu1 %v14299_v47, %s11262_s12 }
 0x6a5   : > { %v9022_v45 = vsel %vm366_vm2, %v9013_v14, %v9015_v61  ;;  %9732 = vrot.lane.b32.xlu0 %v14225_v10, %s11261_s10  ;;  %v7697_v61 = vadd.f32 %v7692_v13, %v7584_v9 }
 0x6a6   : > { %9059 = vmatpush1.msra.mxu0 %v9022_v45  ;;  %v9011_v0 = vpop.permute.xlu1 %9010  ;;  %v7799_v45 = vadd.f32 %v7795_v51, %v7698_v52 }
 0x6a7   : > { %9060 = vmatprep.subr.mxu0 %v9011_v0  ;;  %v7798_v14 = vadd.f32 %v7793_v59, %v7697_v61 }
 0x6a8   : > { %v9118_v46 = vpop.permute.xlu0 %9117  ;;  %9734 = vrot.lane.b32.xlu1 %v14232_v28, %s11261_s10 }
 0x6a9   : > { %v9124_v38 = vsel %vm262_vm0, %v9118_v46, %v9120_v41  ;;  %9875 = vrot.lane.b32.xlu0 %v14169_v22, %s11262_s12  ;;  %v7894_v41 = vpop.f32.mrf.mxu1 }
 0x6aa   : > { %9158 = vmatpush1.msra.mxu1 %v9124_v38  ;;  %v9116_v48 = vpop.permute.xlu1 %9115  ;;  %v7899_v46 = vadd.f32 %v7894_v41, %v7798_v14  ;;  %v14393_v41 = vld [vmem:[#allocation4 + $0x28] sm:$0x7] }
 0x6ab   : > { %9159 = vmatprep.subr.mxu1 %v9116_v48  ;;  %v7896_v2 = vpop.f32.mrf.mxu1 }
 0x6ac   : > { %v9009_v1 = vpop.permute.xlu0 %9008  ;;  %9871 = vrot.lane.b32.xlu1 %v14184_v20, %s11262_s12  ;;  %v7900_v50 = vadd.f32 %v7896_v2, %v7799_v45 }
 0x6ad   : > { %v9021_v21 = vsel %vm366_vm2, %v9009_v1, %v9011_v0  ;;  %9873 = vrot.lane.b32.xlu0 %v14315_v37, %s11262_s12 }
 0x6ae   : > { %9061 = vmatpush1.msra.mxu0 %v9021_v21  ;;  %v9007_v35 = vpop.permute.xlu1 %9006 }
 0x6af   : > { %9062 = vmatprep.subr.mxu0 %v9007_v35 }
 0x6b0   : > { %v9114_v55 = vpop.permute.xlu0 %9113  ;;  %9990 = vrot.lane.b32.xlu1 %v14174_v54, %s11263_s19 }
 0x6b1   : > { %v9123_v27 = vsel %vm262_vm0, %v9114_v55, %v9116_v48  ;;  %9992 = vrot.lane.b32.xlu0 %v14299_v47, %s11263_s19 }
 0x6b2   : > { %9160 = vmatpush1.msra.mxu1 %v9123_v27  ;;  %v9112_v32 = vpop.permute.xlu1 %9111 }
 0x6b3   : > { %9161 = vmatprep.subr.mxu1 %v9112_v32 }
 0x6b4   : > { %v9005_v43 = vpop.permute.xlu0 %9004  ;;  %9869 = vrot.lane.b32.xlu1 %v14179_v7, %s11262_s12 }
 0x6b5   : > { %v9020_v19 = vsel %vm366_vm2, %v9005_v43, %v9007_v35  ;;  %9988 = vrot.lane.b32.xlu0 %v14169_v22, %s11263_s19  ;;  %v7995_v0 = vpop.f32.mrf.mxu0 }
 0x6b6   : > { %9063 = vmatpush1.msra.mxu0 %v9020_v19  ;;  %v9108_v16 = vpop.permute.xlu1 %9107  ;;  %v8000_v1 = vadd.f32 %v7995_v0, %v7899_v46  ;;  %v14408_v0 = vld [vmem:[#allocation4 + $0x2c] sm:$0x7] }
 0x6b7   : > { %11012 = vmatmul.mubr.msk.f32.vlgmr.msra.gmra.mxu0 %vm275_vm1, %v14335_v5  ;;  %v7997_v48 = vpop.f32.mrf.mxu0 }
 0x6b8   : > { %v9110_v39 = vpop.permute.xlu0 %9109  ;;  %9865 = vrot.lane.b32.xlu1 %v14205_v26, %s11262_s12  ;;  %9298 = vmatprep.mubr.f32.mxu0 %v11260_v8  ;;  %v8001_v42 = vadd.f32 %v7997_v48, %v7900_v50 }
 0x6b9   : > { %v9122_v12 = vsel %vm262_vm0, %v9110_v39, %v9112_v32  ;;  %9867 = vrot.lane.b32.xlu0 %v14333_v33, %s11262_s12 }
 0x6ba   : > { %9162 = vmatpush1.msra.mxu1 %v9122_v12  ;;  %v9221_v25 = vpop.permute.xlu1 %9220 }
 0x6bb   : > { %9163 = vmatprep.subr.mxu1 %v9108_v16  ;;  %9258 = vmatprep.subr.mxu0 %v9221_v25 }
 0x6bc   : > { %v9106_v30 = vpop.permute.xlu0 %9105  ;;  %9984 = vrot.lane.b32.xlu1 %v14184_v20, %s11263_s19 }
 0x6bd   : > { %v9121_v4 = vsel %vm262_vm0, %v9106_v30, %v9108_v16  ;;  %9986 = vrot.lane.b32.xlu0 %v14315_v37, %s11263_s19 }
 0x6be   : > { %9164 = vmatpush1.msra.mxu1 %v9121_v4  ;;  %v9217_v60 = vpop.permute.xlu1 %9216 }
 0x6bf   : > { %11013 = vmatmul.mubr.msk.f32.vlgmr.msra.gmra.mxu1 %vm275_vm1, %v14350_v57 }
 0x6c0   : > { %v9219_v38 = vpop.permute.xlu0 %9218  ;;  %9863 = vrot.lane.b32.xlu1 %v14195_v62, %s11262_s12  ;;  %9399 = vmatprep.mubr.f32.mxu1 %v11260_v8 }
 0x6c1   : > { %v9225_v36 = vsel %vm469_vm3, %v9219_v38, %v9221_v25  ;;  %9982 = vrot.lane.b32.xlu0 %v14179_v7, %s11263_s19 }
 0x6c2   : > { %9259 = vmatpush1.msra.mxu0 %v9225_v36  ;;  %v9322_v6 = vpop.permute.xlu1 %9321 }
 0x6c3   : > { %9260 = vmatprep.subr.mxu0 %v9217_v60  ;;  %9359 = vmatprep.subr.mxu1 %v9322_v6 }
 0x6c4   : > { %v9215_v21 = vpop.permute.xlu0 %9214  ;;  %9859 = vrot.lane.b32.xlu1 %v14232_v28, %s11262_s12 }
 0x6c5   : > { %v9224_v29 = vsel %vm469_vm3, %v9215_v21, %v9217_v60  ;;  %v8096_v35 = vpop.f32.mrf.mxu1  ;;  %9861 = vrot.lane.b32.xlu0 %v14361_v3, %s11262_s12 }
 0x6c6   : > { %v8101_v17 = vadd.f32 %v8096_v35, %v8000_v1  ;;  %9261 = vmatpush1.msra.mxu0 %v9224_v29  ;;  %v9213_v55 = vpop.permute.xlu1 %9212 }
 0x6c7   : > { %v8098_v15 = vpop.f32.mrf.mxu1  ;;  %9262 = vmatprep.subr.mxu0 %v9213_v55 }
 0x6c8   : > { %v8102_v27 = vadd.f32 %v8098_v15, %v8001_v42  ;;  %v9320_v49 = vpop.permute.xlu0 %9319  ;;  %9978 = vrot.lane.b32.xlu1 %v14205_v26, %s11263_s19  ;;  %v8103_v32 = vadd.f32 %v8101_v17, %v11951_v63 }
 0x6c9   : > { %v9326_v13 = vsel %vm574_vm4, %v9320_v49, %v9322_v6  ;;  %9980 = vrot.lane.b32.xlu0 %v14333_v33, %s11263_s19 }
 0x6ca   : > { %v8104_v9 = vadd.f32 %v8102_v27, %v11951_v63  ;;  %9360 = vmatpush1.msra.mxu1 %v9326_v13  ;;  %v9318_v43 = vpop.permute.xlu1 %9317 }
 0x6cb   : > { %9361 = vmatprep.subr.mxu1 %v9318_v43 }
 0x6cc   : > { %v8107_v34 = vcombine.low %v8103_v32, %v8104_v9  ;;  %v9211_v19 = vpop.permute.xlu0 %9210  ;;  %9857 = vrot.lane.b32.xlu1 %v14225_v10, %s11262_s12 }
 0x6cd   : > { %v9223_v58 = vsel %vm469_vm3, %v9211_v19, %v9213_v55  ;;  %9976 = vrot.lane.b32.xlu0 %v14195_v62, %s11263_s19 }
 0x6ce   : > { %10983 = vst.msk [vmem:[%s12305_s26 + $0x28] sm:$0x77] %vm12307_vm11, %v8107_v34  ;;  %9263 = vmatpush1.msra.mxu0 %v9223_v58  ;;  %v9209_v59 = vpop.permute.xlu1 %9208 }
 0x6cf   : > { %9264 = vmatprep.subr.mxu0 %v9209_v59 }
 0x6d0   : > { %v9316_v16 = vpop.permute.xlu0 %9315  ;;  %9972 = vrot.lane.b32.xlu1 %v14232_v28, %s11263_s19 }
 0x6d1   : > { %v9325_v61 = vsel %vm574_vm4, %v9316_v16, %v9318_v43  ;;  %9974 = vrot.lane.b32.xlu0 %v14361_v3, %s11263_s19 }
 0x6d2   : > { %9362 = vmatpush1.msra.mxu1 %v9325_v61  ;;  %v9314_v39 = vpop.permute.xlu1 %9313 }
 0x6d3   : > { %9363 = vmatprep.subr.mxu1 %v9314_v39 }
 0x6d4   : > { %v9207_v52 = vpop.permute.xlu0 %9206  ;;  %10103 = vrot.lane.b32.xlu1 %v14174_v54, %s11265_s15 }
 0x6d5   : > { %v9222_v12 = vsel %vm469_vm3, %v9207_v52, %v9209_v59  ;;  %10105 = vrot.lane.b32.xlu0 %v14299_v47, %s11265_s15 }
 0x6d6   : > { %9265 = vmatpush1.msra.mxu0 %v9222_v12  ;;  %v9310_v51 = vpop.permute.xlu1 %9309 }
 0x6d7   : > { %11014 = vmatmul.mubr.msk.f32.vlgmr.msra.gmra.mxu0 %vm275_vm1, %v14393_v41 }
 0x6d8   : > { %v9312_v25 = vpop.permute.xlu0 %9311  ;;  %9970 = vrot.lane.b32.xlu1 %v14225_v10, %s11263_s19  ;;  %9525 = vmatprep.mubr.f32.mxu0 %v11260_v8 }
 0x6d9   : > { %v9324_v14 = vsel %vm574_vm4, %v9312_v25, %v9314_v39  ;;  %10101 = vrot.lane.b32.xlu0 %v14169_v22, %s11265_s15 }
 0x6da   : > { %9364 = vmatpush1.msra.mxu1 %v9324_v14  ;;  %v9448_v30 = vpop.permute.xlu1 %9447 }
 0x6db   : > { %9365 = vmatprep.subr.mxu1 %v9310_v51  ;;  %9485 = vmatprep.subr.mxu0 %v9448_v30 }
 0x6dc   : > { %v9308_v45 = vpop.permute.xlu0 %9307  ;;  %10097 = vrot.lane.b32.xlu1 %v14184_v20, %s11265_s15 }
 0x6dd   : > { %v9323_v4 = vsel %vm574_vm4, %v9308_v45, %v9310_v51  ;;  %10099 = vrot.lane.b32.xlu0 %v14315_v37, %s11265_s15 }
 0x6de   : > { %9366 = vmatpush1.msra.mxu1 %v9323_v4  ;;  %v9444_v2 = vpop.permute.xlu1 %9443 }
 0x6df   : > { %11015 = vmatmul.mubr.msk.f32.vlgmr.msra.gmra.mxu1 %vm275_vm1, %v14408_v0 }
 0x6e0   : > { %v9446_v60 = vpop.permute.xlu0 %9445  ;;  %10216 = vrot.lane.b32.xlu1 %v14174_v54, %s11266_s20  ;;  %9624 = vmatprep.mubr.f32.mxu1 %v11260_v8 }
 0x6e1   : > { %v9452_v46 = vsel %vm262_vm0, %v9446_v60, %v9448_v30  ;;  %10218 = vrot.lane.b32.xlu0 %v14299_v47, %s11266_s20 }
 0x6e2   : > { %9486 = vmatpush1.msra.mxu0 %v9452_v46  ;;  %v9547_v38 = vpop.permute.xlu1 %9546 }
 0x6e3   : > { %9487 = vmatprep.subr.mxu0 %v9444_v2  ;;  %9584 = vmatprep.subr.mxu1 %v9547_v38 }
 0x6e4   : > { %v9442_v50 = vpop.permute.xlu0 %9441  ;;  %10095 = vrot.lane.b32.xlu1 %v14179_v7, %s11265_s15 }
 0x6e5   : > { %v9451_v36 = vsel %vm262_vm0, %v9442_v50, %v9444_v2  ;;  %10214 = vrot.lane.b32.xlu0 %v14169_v22, %s11266_s20 }
 0x6e6   : > { %9488 = vmatpush1.msra.mxu0 %v9451_v36  ;;  %v9440_v48 = vpop.permute.xlu1 %9439 }
 0x6e7   : > { %9489 = vmatprep.subr.mxu0 %v9440_v48 }
 0x6e8   : > { %v9545_v6 = vpop.permute.xlu0 %9544  ;;  %10091 = vrot.lane.b32.xlu1 %v14205_v26, %s11265_s15 }
 0x6e9   : > { %v9551_v1 = vsel %vm366_vm2, %v9545_v6, %v9547_v38  ;;  %10093 = vrot.lane.b32.xlu0 %v14333_v33, %s11265_s15 }
 0x6ea   : > { %9585 = vmatpush1.msra.mxu1 %v9551_v1  ;;  %v9543_v21 = vpop.permute.xlu1 %9542 }
 0x6eb   : > { %9586 = vmatprep.subr.mxu1 %v9543_v21 }
 0x6ec   : > { %v9438_v42 = vpop.permute.xlu0 %9437  ;;  %10210 = vrot.lane.b32.xlu1 %v14184_v20, %s11266_s20 }
 0x6ed   : > { %v9450_v22 = vsel %vm262_vm0, %v9438_v42, %v9440_v48  ;;  %10212 = vrot.lane.b32.xlu0 %v14315_v37, %s11266_s20 }
 0x6ee   : > { %9490 = vmatpush1.msra.mxu0 %v9450_v22  ;;  %v9436_v29 = vpop.permute.xlu1 %9435 }
 0x6ef   : > { %9491 = vmatprep.subr.mxu0 %v9436_v29 }
 0x6f0   : > { %v9541_v35 = vpop.permute.xlu0 %9540  ;;  %10089 = vrot.lane.b32.xlu1 %v14195_v62, %s11265_s15 }
 0x6f1   : > { %v9550_v17 = vsel %vm366_vm2, %v9541_v35, %v9543_v21  ;;  %10208 = vrot.lane.b32.xlu0 %v14179_v7, %s11266_s20 }
 0x6f2   : > { %9587 = vmatpush1.msra.mxu1 %v9550_v17  ;;  %v9539_v55 = vpop.permute.xlu1 %9538 }
 0x6f3   : > { %9588 = vmatprep.subr.mxu1 %v9539_v55 }
 0x6f4   : > { %v9434_v15 = vpop.permute.xlu0 %9433  ;;  %10085 = vrot.lane.b32.xlu1 %v14232_v28, %s11265_s15 }
 0x6f5   : > { %v9449_v27 = vsel %vm262_vm0, %v9434_v15, %v9436_v29  ;;  %10087 = vrot.lane.b32.xlu0 %v14361_v3, %s11265_s15 }
 0x6f6   : > { %9492 = vmatpush1.msra.mxu0 %v9449_v27  ;;  %v9535_v49 = vpop.permute.xlu1 %9534 }
 0x6f7   : > { %11025 = vmatmul.mubr.msk.f32.vlgmr.msra.gmra.mxu0 %vm275_vm1, %v14045_v31 }
 0x6f8   : > { %v9537_v13 = vpop.permute.xlu0 %9536  ;;  %10204 = vrot.lane.b32.xlu1 %v14205_v26, %s11266_s20  ;;  %9723 = vmatprep.mubr.f32.mxu0 %v11260_v8 }
 0x6f9   : > { %v9549_v7 = vsel %vm366_vm2, %v9537_v13, %v9539_v55  ;;  %10206 = vrot.lane.b32.xlu0 %v14333_v33, %s11266_s20 }
 0x6fa   : > { %9589 = vmatpush1.msra.mxu1 %v9549_v7  ;;  %v9646_v32 = vpop.permute.xlu1 %9645 }
 0x6fb   : > { %9590 = vmatprep.subr.mxu1 %v9535_v49  ;;  %9683 = vmatprep.subr.mxu0 %v9646_v32 }
 0x6fc   : > { %v9533_v9 = vpop.permute.xlu0 %9532  ;;  %10083 = vrot.lane.b32.xlu1 %v14225_v10, %s11265_s15 }
 0x6fd   : > { %v9548_v31 = vsel %vm366_vm2, %v9533_v9, %v9535_v49  ;;  %10202 = vrot.lane.b32.xlu0 %v14195_v62, %s11266_s20 }
 0x6fe   : > { %9591 = vmatpush1.msra.mxu1 %v9548_v31  ;;  %v9642_v43 = vpop.permute.xlu1 %9641 }
 0x6ff   : > { %11026 = vmatmul.mubr.msk.f32.vlgmr.msra.gmra.mxu1 %vm275_vm1, %v14070_v40 }
 0x700   : > { %v9644_v34 = vpop.permute.xlu0 %9643  ;;  %10198 = vrot.lane.b32.xlu1 %v14232_v28, %s11266_s20  ;;  %9824 = vmatprep.mubr.f32.mxu1 %v11260_v8 }
 0x701   : > { %v9650_v19 = vsel %vm469_vm3, %v9644_v34, %v9646_v32  ;;  %10200 = vrot.lane.b32.xlu0 %v14361_v3, %s11266_s20 }
 0x702   : > { %9684 = vmatpush1.msra.mxu0 %v9650_v19  ;;  %v9747_v58 = vpop.permute.xlu1 %9746 }
 0x703   : > { %9685 = vmatprep.subr.mxu0 %v9642_v43  ;;  %9784 = vmatprep.subr.mxu1 %v9747_v58 }
 0x704   : > { %v9640_v62 = vpop.permute.xlu0 %9639  ;;  %10196 = vrot.lane.b32.xlu1 %v14225_v10, %s11266_s20 }
 0x705   : > { %v9649_v40 = vsel %vm469_vm3, %v9640_v62, %v9642_v43  ;;  %10321 = vrot.lane.b32.xlu0 %v14174_v54, %s11258_s18 }
 0x706   : > { %9686 = vmatpush1.msra.mxu0 %v9649_v40  ;;  %v9638_v59 = vpop.permute.xlu1 %9637 }
 0x707   : > { %9687 = vmatprep.subr.mxu0 %v9638_v59 }
 0x708   : > { %v9745_v16 = vpop.permute.xlu0 %9744  ;;  %10323 = vrot.lane.b32.xlu1 %v14299_v47, %s11258_s18 }
 0x709   : > { %v9751_v61 = vsel %vm574_vm4, %v9745_v16, %v9747_v58  ;;  %10317 = vrot.lane.b32.xlu0 %v14184_v20, %s11258_s18 }
 0x70a   : > { %9785 = vmatpush1.msra.mxu1 %v9751_v61  ;;  %v9743_v39 = vpop.permute.xlu1 %9742 }
 0x70b   : > { %9786 = vmatprep.subr.mxu1 %v9743_v39 }
 0x70c   : > { %v9636_v10 = vpop.permute.xlu0 %9635  ;;  %10319 = vrot.lane.b32.xlu1 %v14315_v37, %s11258_s18 }
 0x70d   : > { %v9648_v52 = vsel %vm469_vm3, %v9636_v10, %v9638_v59  ;;  %10422 = vrot.lane.b32.xlu0 %v14174_v54, %s11257_s17 }
 0x70e   : > { %9688 = vmatpush1.msra.mxu0 %v9648_v52  ;;  %v9634_v12 = vpop.permute.xlu1 %9633 }
 0x70f   : > { %9689 = vmatprep.subr.mxu0 %v9634_v12 }
 0x710   : > { %v9741_v51 = vpop.permute.xlu0 %9740  ;;  %10424 = vrot.lane.b32.xlu1 %v14299_v47, %s11257_s17 }
 0x711   : > { %v9750_v25 = vsel %vm574_vm4, %v9741_v51, %v9743_v39  ;;  %10313 = vrot.lane.b32.xlu0 %v14205_v26, %s11258_s18 }
 0x712   : > { %9787 = vmatpush1.msra.mxu1 %v9750_v25  ;;  %v9739_v14 = vpop.permute.xlu1 %9738 }
 0x713   : > { %9788 = vmatprep.subr.mxu1 %v9739_v14 }
 0x714   : > { %v9632_v30 = vpop.permute.xlu0 %9631  ;;  %10315 = vrot.lane.b32.xlu1 %v14333_v33, %s11258_s18 }
 0x715   : > { %v9647_v45 = vsel %vm469_vm3, %v9632_v30, %v9634_v12  ;;  %10418 = vrot.lane.b32.xlu0 %v14184_v20, %s11257_s17 }
 0x716   : > { %9690 = vmatpush1.msra.mxu0 %v9647_v45  ;;  %v9880_v4 = vpop.permute.xlu1 %9879 }
 0x717   : > { %11027 = vmatmul.mubr.msk.f32.vlgmr.msra.gmra.mxu0 %vm275_vm1, %v14095_v44 }
 0x718   : > { %v9737_v2 = vpop.permute.xlu0 %9736  ;;  %10420 = vrot.lane.b32.xlu1 %v14315_v37, %s11257_s17  ;;  %9961 = vmatprep.mubr.f32.mxu0 %v11260_v8 }
 0x719   : > { %v9749_v60 = vsel %vm574_vm4, %v9737_v2, %v9739_v14  ;;  %10309 = vrot.lane.b32.xlu0 %v14232_v28, %s11258_s18 }
 0x71a   : > { %9789 = vmatpush1.msra.mxu1 %v9749_v60  ;;  %v9735_v46 = vpop.permute.xlu1 %9734 }
 0x71b   : > { %9790 = vmatprep.subr.mxu1 %v9735_v46 }
 0x71c   : > { %v9878_v38 = vpop.permute.xlu0 %9877  ;;  %10311 = vrot.lane.b32.xlu1 %v14361_v3, %s11258_s18 }
 0x71d   : > { %v9888_v44 = vsel %vm711_vm5, %v9878_v38, %v9880_v4  ;;  %10414 = vrot.lane.b32.xlu0 %v14205_v26, %s11257_s17 }
 0x71e   : > { %9921 = vmatprep.subr.mxu0 %v9888_v44  ;;  %v9872_v50 = vpop.permute.xlu1 %9871 }
 0x720   : > { %v9733_v36 = vpop.permute.xlu0 %9732  ;;  %10416 = vrot.lane.b32.xlu1 %v14333_v33, %s11257_s17 }
 0x721   : > { %v9748_v48 = vsel %vm574_vm4, %v9733_v36, %v9735_v46  ;;  %10410 = vrot.lane.b32.xlu0 %v14232_v28, %s11257_s17 }
 0x722   : > { %9791 = vmatpush1.msra.mxu1 %v9748_v48  ;;  %v9991_v6 = vpop.permute.xlu1 %9990 }
 0x723   : > { %11028 = vmatmul.mubr.msk.f32.vlgmr.msra.gmra.mxu1 %vm275_vm1, %v14120_v18 }
 0x724   : > { %v9876_v1 = vpop.permute.xlu0 %9875  ;;  %10412 = vrot.lane.b32.xlu1 %v14361_v3, %s11257_s17  ;;  %10074 = vmatprep.mubr.f32.mxu1 %v11260_v8 }
 0x725   : > { %v9887_v21 = vsel %vm711_vm5, %v9876_v1, %v9878_v38  ;;  %10523 = vrot.lane.b32.xlu0 %v14174_v54, %s11259_s7 }
 0x726   : > { %9922 = vmatpush1.msra.mxu0 %v9887_v21  ;;  %v9870_v42 = vpop.permute.xlu1 %9869 }
 0x727   : > { %v9885_v18 = vsel %vm711_vm5, %v9870_v42, %v9872_v50 }
 0x728   : > { %v9874_v22 = vpop.permute.xlu0 %9873  ;;  %10525 = vrot.lane.b32.xlu1 %v14299_v47, %s11259_s7 }
 0x729   : > { %v9886_v29 = vsel %vm711_vm5, %v9872_v50, %v9874_v22  ;;  %10519 = vrot.lane.b32.xlu0 %v14184_v20, %s11259_s7 }
 0x72a   : > { %9923 = vmatprep.subr.mxu0 %v9886_v29  ;;  %v9866_v35 = vpop.permute.xlu1 %9865 }
 0x72b   : > { %9924 = vmatpush1.msra.mxu0 %v9885_v18 }
 0x72c   : > { %v9993_v17 = vpop.permute.xlu0 %9992  ;;  %10521 = vrot.lane.b32.xlu1 %v14315_v37, %s11259_s7 }
 0x72d   : > { %v10001_v55 = vsel %vm828_vm6, %v9991_v6, %v9993_v17  ;;  %10624 = vrot.lane.b32.xlu0 %v14174_v54, %s11261_s10 }
 0x72e   : > { %10034 = vmatprep.subr.mxu1 %v10001_v55  ;;  %v9985_v15 = vpop.permute.xlu1 %9984  ;;  %v8222_v55 = vpop.f32.mrf.mxu0 }
 0x730   : > { %v9989_v27 = vpop.permute.xlu0 %9988  ;;  %10626 = vrot.lane.b32.xlu1 %v14299_v47, %s11261_s10 }
 0x731   : > { %v10000_v49 = vsel %vm828_vm6, %v9989_v27, %v9991_v6  ;;  %10515 = vrot.lane.b32.xlu0 %v14205_v26, %s11259_s7 }
 0x732   : > { %10035 = vmatpush1.msra.mxu1 %v10000_v49  ;;  %v9864_v13 = vpop.permute.xlu1 %9863 }
 0x733   : > { %v9883_v54 = vsel %vm711_vm5, %v9864_v13, %v9866_v35 }
 0x734   : > { %v9868_v7 = vpop.permute.xlu0 %9867  ;;  %10517 = vrot.lane.b32.xlu1 %v14333_v33, %s11259_s7 }
 0x735   : > { %v9884_v32 = vsel %vm711_vm5, %v9866_v35, %v9868_v7  ;;  %10620 = vrot.lane.b32.xlu0 %v14184_v20, %s11261_s10  ;;  %v8224_v7 = vpop.f32.mrf.mxu0 }
 0x736   : > { %9925 = vmatprep.subr.mxu0 %v9884_v32  ;;  %v9860_v47 = vpop.permute.xlu1 %9859  ;;  %v8321_v32 = vpop.f32.mrf.mxu1 }
 0x737   : > { %9926 = vmatpush1.msra.mxu0 %v9883_v54 }
 0x738   : > { %v9987_v9 = vpop.permute.xlu0 %9986  ;;  %10622 = vrot.lane.b32.xlu1 %v14315_v37, %s11261_s10 }
 0x739   : > { %v9999_v31 = vsel %vm828_vm6, %v9985_v15, %v9987_v9  ;;  %10511 = vrot.lane.b32.xlu0 %v14232_v28, %s11259_s7 }
 0x73a   : > { %10036 = vmatprep.subr.mxu1 %v9999_v31  ;;  %v9979_v43 = vpop.permute.xlu1 %9978  ;;  %v8323_v31 = vpop.f32.mrf.mxu1 }
 0x73c   : > { %v9983_v34 = vpop.permute.xlu0 %9982  ;;  %10513 = vrot.lane.b32.xlu1 %v14361_v3, %s11259_s7 }
 0x73d   : > { %v9998_v20 = vsel %vm828_vm6, %v9983_v34, %v9985_v15  ;;  %10616 = vrot.lane.b32.xlu0 %v14205_v26, %s11261_s10 }
 0x73e   : > { %10037 = vmatpush1.msra.mxu1 %v9998_v20  ;;  %v9858_v19 = vpop.permute.xlu1 %9857  ;;  %v8322_v20 = vadd.f32 %v8321_v32, %v8222_v55 }
 0x73f   : > { %v9881_v62 = vsel %vm711_vm5, %v9858_v19, %v9860_v47 }
 0x740   : > { %v9862_v58 = vpop.permute.xlu0 %9861  ;;  %10618 = vrot.lane.b32.xlu1 %v14333_v33, %s11261_s10 }
 0x741   : > { %v9882_v37 = vsel %vm711_vm5, %v9860_v47, %v9862_v58  ;;  %10612 = vrot.lane.b32.xlu0 %v14232_v28, %s11261_s10 }
 0x742   : > { %9927 = vmatprep.subr.mxu0 %v9882_v37  ;;  %v9973_v40 = vpop.permute.xlu1 %9972  ;;  %v8324_v37 = vadd.f32 %v8323_v31, %v8224_v7 }
 0x743   : > { %9928 = vmatpush1.msra.mxu0 %v9881_v62 }
 0x744   : > { %v9981_v59 = vpop.permute.xlu0 %9980  ;;  %10614 = vrot.lane.b32.xlu1 %v14361_v3, %s11261_s10  ;;  %11041 = vmatmul.mubr.msk.f32.vlgmr.msra.gmra.mxu0 %vm275_vm1, %v14159_v53 }
 0x745   : > { %v9997_v26 = vsel %vm828_vm6, %v9979_v43, %v9981_v59  ;;  %10187 = vmatprep.mubr.f32.mxu0 %v11260_v8 }
 0x746   : > { %10038 = vmatprep.subr.mxu1 %v9997_v26  ;;  %v10104_v33 = vpop.permute.xlu1 %10103 }
 0x748   : > { %v9977_v16 = vpop.permute.xlu0 %9976 }
 0x749   : > { %v9996_v28 = vsel %vm828_vm6, %v9977_v16, %v9979_v43  ;;  %v8420_v43 = vpop.f32.mrf.mxu0 }
 0x74a   : > { %10039 = vmatpush1.msra.mxu1 %v9996_v28  ;;  %v9971_v61 = vpop.permute.xlu1 %9970 }
 0x74b   : > { %v9994_v52 = vsel %vm828_vm6, %v9971_v61, %v9973_v40  ;;  %v8422_v62 = vpop.f32.mrf.mxu0 }
 0x74c   : > { %v9975_v39 = vpop.permute.xlu0 %9974  ;;  %v8426_v28 = vadd.f32 %v8422_v62, %v8324_v37 }
 0x74d   : > { %v9995_v10 = vsel %vm828_vm6, %v9973_v40, %v9975_v39  ;;  %v8521_v40 = vpop.f32.mrf.mxu1  ;;  %v8658_v39 = vpop.f32.mrf.mxu0 }
 0x74e   : > { %10040 = vmatprep.subr.mxu1 %v9995_v10  ;;  %v10098_v3 = vpop.permute.xlu1 %10097 }
 0x74f   : > { %10041 = vmatpush1.msra.mxu1 %v9994_v52  ;;  %v8523_v61 = vpop.f32.mrf.mxu1 }
 0x750   : > { %v10106_v53 = vpop.permute.xlu0 %10105  ;;  %11042 = vmatmul.mubr.msk.f32.vlgmr.msra.gmra.mxu1 %vm275_vm1, %v14220_v11 }
 0x751   : > { %v10114_v12 = vsel %vm945_vm7, %v10104_v33, %v10106_v53  ;;  %10300 = vmatprep.mubr.f32.mxu1 %v11260_v8 }
 0x752   : > { %10147 = vmatprep.subr.mxu0 %v10114_v12  ;;  %v10217_v51 = vpop.permute.xlu1 %10216  ;;  %v8527_v12 = vadd.f32 %v8523_v61, %v8426_v28 }
 0x754   : > { %v10102_v25 = vpop.permute.xlu0 %10101 }
 0x755   : > { %v10113_v14 = vsel %vm945_vm7, %v10102_v25, %v10104_v33  ;;  %v8771_v25 = vpop.f32.mrf.mxu1 }
 0x756   : > { %10148 = vmatpush1.msra.mxu0 %v10113_v14  ;;  %v10096_v30 = vpop.permute.xlu1 %10095 }
 0x757   : > { %v10111_v2 = vsel %vm945_vm7, %v10096_v30, %v10098_v3 }
 0x758   : > { %v10100_v45 = vpop.permute.xlu0 %10099 }
 0x759   : > { %v10112_v4 = vsel %vm945_vm7, %v10098_v3, %v10100_v45 }
 0x75a   : > { %10149 = vmatprep.subr.mxu0 %v10112_v4  ;;  %v10092_v60 = vpop.permute.xlu1 %10091 }
 0x75b   : > { %10150 = vmatpush1.msra.mxu0 %v10111_v2 }
 0x75c   : > { %v10219_v11 = vpop.permute.xlu0 %10218 }
 0x75d   : > { %v10227_v46 = vsel %vm1062_vm8, %v10217_v51, %v10219_v11 }
 0x75e   : > { %10260 = vmatprep.subr.mxu1 %v10227_v46  ;;  %v10211_v38 = vpop.permute.xlu1 %10210 }
 0x760   : > { %v10215_v44 = vpop.permute.xlu0 %10214 }
 0x761   : > { %v10226_v50 = vsel %vm1062_vm8, %v10215_v44, %v10217_v51  ;;  %v8660_v51 = vpop.f32.mrf.mxu0 }
 0x762   : > { %10261 = vmatpush1.msra.mxu1 %v10226_v50  ;;  %v10090_v36 = vpop.permute.xlu1 %10089  ;;  %v8664_v2 = vadd.f32 %v8660_v51, %v8527_v12 }
 0x763   : > { %v10109_v1 = vsel %vm945_vm7, %v10090_v36, %v10092_v60 }
 0x764   : > { %v10094_v48 = vpop.permute.xlu0 %10093 }
 0x765   : > { %v10110_v6 = vsel %vm945_vm7, %v10092_v60, %v10094_v48  ;;  %v8884_v60 = vpop.f32.mrf.mxu0 }
 0x766   : > { %10151 = vmatprep.subr.mxu0 %v10110_v6  ;;  %v10086_v21 = vpop.permute.xlu1 %10085 }
 0x767   : > { %10152 = vmatpush1.msra.mxu0 %v10109_v1  ;;  %v8886_v36 = vpop.f32.mrf.mxu0 }
 0x768   : > { %v10213_v42 = vpop.permute.xlu0 %10212 }
 0x769   : > { %v10225_v22 = vsel %vm1062_vm8, %v10211_v38, %v10213_v42 }
 0x76a   : > { %10262 = vmatprep.subr.mxu1 %v10225_v22  ;;  %v10205_v29 = vpop.permute.xlu1 %10204 }
 0x76c   : > { %v10209_v18 = vpop.permute.xlu0 %10208 }
 0x76d   : > { %v10224_v35 = vsel %vm1062_vm8, %v10209_v18, %v10211_v38 }
 0x76e   : > { %10263 = vmatpush1.msra.mxu1 %v10224_v35  ;;  %v10084_v17 = vpop.permute.xlu1 %10083 }
 0x76f   : > { %v10107_v49 = vsel %vm945_vm7, %v10084_v17, %v10086_v21 }
 0x770   : > { %v10088_v15 = vpop.permute.xlu0 %10087 }
 0x771   : > { %v10108_v27 = vsel %vm945_vm7, %v10086_v21, %v10088_v15 }
 0x772   : > { %10153 = vmatprep.subr.mxu0 %v10108_v27  ;;  %v10199_v13 = vpop.permute.xlu1 %10198 }
 0x773   : > { %10154 = vmatpush1.msra.mxu0 %v10107_v49 }
 0x774   : > { %v10207_v54 = vpop.permute.xlu0 %10206  ;;  %11043 = vmatmul.mubr.msk.f32.vlgmr.msra.gmra.mxu0 %vm275_vm1, %v14272_v23  ;;  %v8425_v23 = vadd.f32 %v8420_v43, %v8322_v20 }
 0x775   : > { %v10223_v47 = vsel %vm1062_vm8, %v10205_v29, %v10207_v54  ;;  %10401 = vmatprep.mubr.f32.mxu0 %v11260_v8 }
 0x776   : > { %10264 = vmatprep.subr.mxu1 %v10223_v47  ;;  %v10197_v9 = vpop.permute.xlu1 %10196  ;;  %v8526_v52 = vadd.f32 %v8521_v40, %v8425_v23 }
 0x777   : > { %v10220_v33 = vsel %vm1062_vm8, %v10197_v9, %v10199_v13  ;;  %v9098_v18 = vpop.f32.mrf.mxu0 }
 0x778   : > { %v10203_v34 = vpop.permute.xlu0 %10202  ;;  %v8663_v30 = vadd.f32 %v8658_v39, %v8526_v52 }
 0x779   : > { %v10222_v19 = vsel %vm1062_vm8, %v10203_v34, %v10205_v29  ;;  %v9100_v49 = vpop.f32.mrf.mxu0 }
 0x77a   : > { %10265 = vmatpush1.msra.mxu1 %v10222_v19  ;;  %v10324_v58 = vpop.permute.xlu1 %10323  ;;  %v8776_v46 = vadd.f32 %v8771_v25, %v8663_v30 }
 0x77b   : > { %10361 = vmatprep.subr.mxu0 %v10324_v58 }
 0x77c   : > { %v10201_v59 = vpop.permute.xlu0 %10200  ;;  %v8889_v1 = vadd.f32 %v8884_v60, %v8776_v46 }
 0x77d   : > { %v10221_v26 = vsel %vm1062_vm8, %v10199_v13, %v10201_v59 }
 0x77e   : > { %10266 = vmatprep.subr.mxu1 %v10221_v26  ;;  %v10320_v16 = vpop.permute.xlu1 %10319 }
 0x77f   : > { %10267 = vmatpush1.msra.mxu1 %v10220_v33 }
 0x780   : > { %v10322_v10 = vpop.permute.xlu0 %10321  ;;  %11044 = vmatmul.mubr.msk.f32.vlgmr.msra.gmra.mxu1 %vm275_vm1, %v14293_v56  ;;  %v8773_v56 = vpop.f32.mrf.mxu1 }
 0x781   : > { %v10328_v3 = vsel %vm366_vm2, %v10322_v10, %v10324_v58  ;;  %10502 = vmatprep.mubr.f32.mxu1 %v11260_v8  ;;  %v8777_v50 = vadd.f32 %v8773_v56, %v8664_v2 }
 0x782   : > { %10362 = vmatpush1.msra.mxu0 %v10328_v3  ;;  %v10425_v53 = vpop.permute.xlu1 %10424  ;;  %v8997_v48 = vpop.f32.mrf.mxu1 }
 0x783   : > { %10363 = vmatprep.subr.mxu0 %v10320_v16  ;;  %10462 = vmatprep.subr.mxu1 %v10425_v53  ;;  %v8890_v22 = vadd.f32 %v8886_v36, %v8777_v50  ;;  %v9002_v17 = vadd.f32 %v8997_v48, %v8889_v1 }
 0x784   : > { %v10318_v14 = vpop.permute.xlu0 %10317  ;;  %v8999_v29 = vpop.f32.mrf.mxu1 }
 0x785   : > { %v10327_v45 = vsel %vm366_vm2, %v10318_v14, %v10320_v16  ;;  %v9003_v27 = vadd.f32 %v8999_v29, %v8890_v22  ;;  %v9103_v32 = vadd.f32 %v9098_v18, %v9002_v17 }
 0x786   : > { %10364 = vmatpush1.msra.mxu0 %v10327_v45  ;;  %v10316_v4 = vpop.permute.xlu1 %10315  ;;  %v9199_v13 = vpop.f32.mrf.mxu1 }
 0x787   : > { %10365 = vmatprep.subr.mxu0 %v10316_v4  ;;  %v9104_v47 = vadd.f32 %v9100_v49, %v9003_v27  ;;  %v9204_v20 = vadd.f32 %v9199_v13, %v9103_v32 }
 0x788   : > { %v10423_v11 = vpop.permute.xlu0 %10422  ;;  %v9201_v31 = vpop.f32.mrf.mxu1 }
 0x789   : > { %v10429_v38 = vsel %vm262_vm0, %v10423_v11, %v10425_v53  ;;  %v9205_v58 = vadd.f32 %v9201_v31, %v9104_v47 }
 0x78a   : > { %10463 = vmatpush1.msra.mxu1 %v10429_v38  ;;  %v10421_v44 = vpop.permute.xlu1 %10420 }
 0x78b   : > { %10464 = vmatprep.subr.mxu1 %v10421_v44 }
 0x78c   : > { %v10314_v6 = vpop.permute.xlu0 %10313 }
 0x78d   : > { %v10326_v21 = vsel %vm366_vm2, %v10314_v6, %v10316_v4 }
 0x78e   : > { %10366 = vmatpush1.msra.mxu0 %v10326_v21  ;;  %v10312_v42 = vpop.permute.xlu1 %10311 }
 0x78f   : > { %10367 = vmatprep.subr.mxu0 %v10312_v42 }
 0x790   : > { %v10419_v35 = vpop.permute.xlu0 %10418 }
 0x791   : > { %v10428_v55 = vsel %vm262_vm0, %v10419_v35, %v10421_v44 }
 0x792   : > { %10465 = vmatpush1.msra.mxu1 %v10428_v55  ;;  %v10417_v15 = vpop.permute.xlu1 %10416 }
 0x793   : > { %10466 = vmatprep.subr.mxu1 %v10417_v15 }
 0x794   : > { %v10310_v7 = vpop.permute.xlu0 %10309 }
 0x795   : > { %v10325_v54 = vsel %vm366_vm2, %v10310_v7, %v10312_v42 }
 0x796   : > { %10368 = vmatpush1.msra.mxu0 %v10325_v54  ;;  %v10413_v9 = vpop.permute.xlu1 %10412 }
 0x797   : > { %v9300_v43 = vpop.f32.mrf.mxu0  ;;  %11045 = vmatmul.mubr.msk.f32.vlgmr.msra.gmra.mxu0 %vm275_vm1, %v14335_v5 }
 0x798   : > { %v10415_v34 = vpop.permute.xlu0 %10414  ;;  %10603 = vmatprep.mubr.f32.mxu0 %v11260_v8  ;;  %v9305_v59 = vadd.f32 %v9300_v43, %v9204_v20 }
 0x799   : > { %v10427_v19 = vsel %vm262_vm0, %v10415_v34, %v10417_v15  ;;  %v9302_v62 = vpop.f32.mrf.mxu0 }
 0x79a   : > { %10467 = vmatpush1.msra.mxu1 %v10427_v19  ;;  %v10526_v37 = vpop.permute.xlu1 %10525  ;;  %v9306_v26 = vadd.f32 %v9302_v62, %v9205_v58 }
 0x79b   : > { %10468 = vmatprep.subr.mxu1 %v10413_v9  ;;  %10563 = vmatprep.subr.mxu0 %v10526_v37 }
 0x79c   : > { %v10411_v40 = vpop.permute.xlu0 %10410 }
 0x79d   : > { %v10426_v23 = vsel %vm262_vm0, %v10411_v40, %v10413_v9 }
 0x79e   : > { %10469 = vmatpush1.msra.mxu1 %v10426_v23  ;;  %v10522_v33 = vpop.permute.xlu1 %10521 }
 0x79f   : > { %v9401_v5 = vpop.f32.mrf.mxu1  ;;  %11046 = vmatmul.mubr.msk.f32.vlgmr.msra.gmra.mxu1 %vm275_vm1, %v14350_v57 }
 0x7a0   : > { %v9406_v16 = vadd.f32 %v9401_v5, %v9305_v59  ;;  %v10524_v28 = vpop.permute.xlu0 %10523  ;;  %10704 = vmatprep.mubr.f32.mxu1 %v11260_v8 }
 0x7a1   : > { %v10530_v61 = vsel %vm469_vm3, %v10524_v28, %v10526_v37  ;;  %v9403_v39 = vpop.f32.mrf.mxu1 }
 0x7a2   : > { %v9407_v10 = vadd.f32 %v9403_v39, %v9306_v26  ;;  %10564 = vmatpush1.msra.mxu0 %v10530_v61  ;;  %v10627_v52 = vpop.permute.xlu1 %10626  ;;  %v9408_v3 = vadd.f32 %v9406_v16, %v11951_v63 }
 0x7a3   : > { %10565 = vmatprep.subr.mxu0 %v10522_v33  ;;  %10664 = vmatprep.subr.mxu1 %v10627_v52 }
 0x7a4   : > { %v9409_v53 = vadd.f32 %v9407_v10, %v11951_v63  ;;  %v10520_v12 = vpop.permute.xlu0 %10519 }
 0x7a5   : > { %v10529_v57 = vsel %vm469_vm3, %v10520_v12, %v10522_v33 }
 0x7a6   : > { %v9412_v51 = vcombine.low %v9408_v3, %v9409_v53  ;;  %10566 = vmatpush1.msra.mxu0 %v10529_v57  ;;  %v10518_v25 = vpop.permute.xlu1 %10517 }
 0x7a7   : > { %10567 = vmatprep.subr.mxu0 %v10518_v25 }
 0x7a8   : > { %11016 = vst.msk [vmem:[%s12305_s26 + $0x30] sm:$0x77] %vm12307_vm11, %v9412_v51  ;;  %v10625_v8 = vpop.permute.xlu0 %10624 }
 0x7a9   : > { %v10631_v14 = vsel %vm574_vm4, %v10625_v8, %v10627_v52 }
 0x7aa   : > { %10665 = vmatpush1.msra.mxu1 %v10631_v14  ;;  %v10623_v30 = vpop.permute.xlu1 %10622 }
 0x7ab   : > { %10666 = vmatprep.subr.mxu1 %v10623_v30 }
 0x7ac   : > { %v10516_v45 = vpop.permute.xlu0 %10515 }
 0x7ad   : > { %v10528_v4 = vsel %vm469_vm3, %v10516_v45, %v10518_v25 }
 0x7ae   : > { %10568 = vmatpush1.msra.mxu0 %v10528_v4  ;;  %v10514_v2 = vpop.permute.xlu1 %10513 }
 0x7af   : > { %10569 = vmatprep.subr.mxu0 %v10514_v2 }
 0x7b0   : > { %v10621_v56 = vpop.permute.xlu0 %10620 }
 0x7b1   : > { %v10630_v60 = vsel %vm574_vm4, %v10621_v56, %v10623_v30 }
 0x7b2   : > { %10667 = vmatpush1.msra.mxu1 %v10630_v60  ;;  %v10619_v11 = vpop.permute.xlu1 %10618 }
 0x7b3   : > { %10668 = vmatprep.subr.mxu1 %v10619_v11 }
 0x7b4   : > { %v10512_v46 = vpop.permute.xlu0 %10511 }
 0x7b5   : > { %v10527_v38 = vsel %vm469_vm3, %v10512_v46, %v10514_v2 }
 0x7b6   : > { %10570 = vmatpush1.msra.mxu0 %v10527_v38  ;;  %v10615_v50 = vpop.permute.xlu1 %10614 }
 0x7b7   : > { %11047 = vmatmul.mubr.msk.f32.vlgmr.msra.gmra.mxu0 %vm275_vm1, %v14393_v41  ;;  %v9527_v1 = vpop.f32.mrf.mxu0 }
 0x7b8   : > { %v10617_v44 = vpop.permute.xlu0 %10616 }
 0x7b9   : > { %v10629_v36 = vsel %vm574_vm4, %v10617_v44, %v10619_v11  ;;  %v9529_v21 = vpop.f32.mrf.mxu0 }
 0x7ba   : > { %10669 = vmatpush1.msra.mxu1 %v10629_v36 }
 0x7bb   : > { %10670 = vmatprep.subr.mxu1 %v10615_v50 }
 0x7bc   : > { %v10613_v48 = vpop.permute.xlu0 %10612 }
 0x7bd   : > { %v10628_v6 = vsel %vm574_vm4, %v10613_v48, %v10615_v50 }
 0x7be   : > { %10671 = vmatpush1.msra.mxu1 %v10628_v6 }
 0x7bf   : > { %11048 = vmatmul.mubr.msk.f32.vlgmr.msra.gmra.mxu1 %vm275_vm1, %v14408_v0  ;;  %v9626_v42 = vpop.f32.mrf.mxu1 }
 0x7c0   : > { %v9627_v18 = vadd.f32 %v9626_v42, %v9527_v1 }
 0x7c1   : > { %v9628_v22 = vpop.f32.mrf.mxu1 }
 0x7c2   : > { %v9629_v41 = vadd.f32 %v9628_v22, %v9529_v21 }
 0x7d7   : > { %v9725_v29 = vpop.f32.mrf.mxu0 }
 0x7d8   : > { %v9730_v55 = vadd.f32 %v9725_v29, %v9627_v18 }
 0x7d9   : > { %v9727_v35 = vpop.f32.mrf.mxu0 }
 0x7da   : > { %v9731_v15 = vadd.f32 %v9727_v35, %v9629_v41 }
 0x7e3   : > { %v9826_v17 = vpop.f32.mrf.mxu1 }
 0x7e4   : > { %v9831_v13 = vadd.f32 %v9826_v17, %v9730_v55 }
 0x7e5   : > { %v9828_v27 = vpop.f32.mrf.mxu1 }
 0x7e6   : > { %v9832_v7 = vadd.f32 %v9828_v27, %v9731_v15 }
 0x804   : > { %v9963_v49 = vpop.f32.mrf.mxu0 }
 0x805   : > { %v9968_v47 = vadd.f32 %v9963_v49, %v9831_v13 }
 0x806   : > { %v9965_v32 = vpop.f32.mrf.mxu0 }
 0x807   : > { %v9969_v9 = vadd.f32 %v9965_v32, %v9832_v7 }
 0x810   : > { %v10076_v54 = vpop.f32.mrf.mxu1 }
 0x811   : > { %v10081_v43 = vadd.f32 %v10076_v54, %v9968_v47 }
 0x812   : > { %v10078_v0 = vpop.f32.mrf.mxu1 }
 0x813   : > { %v10082_v34 = vadd.f32 %v10078_v0, %v9969_v9 }
 0x834   : > { %v10189_v31 = vpop.f32.mrf.mxu0 }
 0x835   : > { %v10194_v58 = vadd.f32 %v10189_v31, %v10081_v43 }
 0x836   : > { %v10191_v20 = vpop.f32.mrf.mxu0 }
 0x837   : > { %v10195_v37 = vadd.f32 %v10191_v20, %v10082_v34 }
 0x840   : > { %v10302_v19 = vpop.f32.mrf.mxu1 }
 0x841   : > { %v10307_v59 = vadd.f32 %v10302_v19, %v10194_v58 }
 0x842   : > { %v10304_v62 = vpop.f32.mrf.mxu1 }
 0x843   : > { %v10308_v23 = vadd.f32 %v10304_v62, %v10195_v37 }
 0x857   : > { %v10403_v40 = vpop.f32.mrf.mxu0 }
 0x858   : > { %v10408_v5 = vadd.f32 %v10403_v40, %v10307_v59 }
 0x859   : > { %v10405_v26 = vpop.f32.mrf.mxu0 }
 0x85a   : > { %v10409_v28 = vadd.f32 %v10405_v26, %v10308_v23 }
 0x85f   : > { %v10504_v33 = vpop.f32.mrf.mxu1 }
 0x860   : > { %v10509_v39 = vadd.f32 %v10504_v33, %v10408_v5 }
 0x861   : > { %v10506_v61 = vpop.f32.mrf.mxu1 }
 0x862   : > { %v10510_v52 = vadd.f32 %v10506_v61, %v10409_v28 }
 0x877   : > { %v10605_v16 = vpop.f32.mrf.mxu0 }
 0x878   : > { %v10610_v3 = vadd.f32 %v10605_v16, %v10509_v39 }
 0x879   : > { %v10607_v10 = vpop.f32.mrf.mxu0 }
 0x87a   : > { %v10611_v12 = vadd.f32 %v10607_v10, %v10510_v52 }
 0x87f   : > { %v10706_v53 = vpop.f32.mrf.mxu1 }
 0x880   : > { %v10711_v57 = vadd.f32 %v10706_v53, %v10610_v3 }
 0x881   : > { %v10708_v51 = vpop.f32.mrf.mxu1 }
 0x882   : > { %v10712_v25 = vadd.f32 %v10708_v51, %v10611_v12  ;;  %v10713_v8 = vadd.f32 %v10711_v57, %v11951_v63 }
 0x884   : > { %v10714_v14 = vadd.f32 %v10712_v25, %v11951_v63 }
 0x886   : > { %v10717_v30 = vcombine.low %v10713_v8, %v10714_v14 }
 0x888   : > { %11049 = vst.msk [vmem:[%s12305_s26 + $0x38] sm:$0x77] %vm12307_vm11, %v10717_v30 }
 0x889 PF: > { %p14_p0 = scmp.ge.s32.totalorder %s11331_s22, 4   ;;  %s14653_s12 = smov %s11241_s13 }
 0x88a   : > { %s14654_s13 = smov %s11245_s14  ;;  %s14655_s14 = smov %s11348_s30 }
 0x88b   : > { %s14656_s15 = smov %s11331_s22  ;;  %16 = sbr.rel (!%p14_p0) target bundleno = 4 (0x4), region = 101 }
 0x890   :  { %10742 = vsyncpa [#allocation3], 1 }
 0x891   :  { %10744 = vsyncpa [#allocation3 + $0x1], 1 }
 0x892   :  { %10745 = vsyncpa [#allocation5], 1 }

</bundles_post_ra>
